<compile_context>
chip_gen: v7x
topology: tpu7x:2x2x1
jax: 0.10.0
libtpu: 0.0.40
codegen_flags: <defaults>
</compile_context>

<pallas_src>
import math

import jax
import jax.numpy as jnp
from jax.experimental import pallas as pl
from jax.experimental.pallas import tpu as pltpu

# ----------------------------- small deterministic config -----------------------------
D_MODEL = 32
N_LAYER = 2
VOCAB = 16                               # already a multiple of pad_vocab_size_multiple=8
D_STATE = 16
D_CONV = 4
EXPAND = 2
D_INNER = EXPAND * D_MODEL               # 64
DT_RANK = math.ceil(D_MODEL / 16)        # 'auto' -> 2
BATCH = 2
SEQ = 8
EPS = 1e-5


def _silu(x):
    return x * jax.nn.sigmoid(x)


# ================================ fused whole-model kernel ================================
def bimamba_kernel(h0_ref, temb_ref, ln_g_ref, ln_b_ref,
                   w_in_ref, convw_ref, convb_ref, w_xproj_ref, w_dt_ref, b_dt_ref,
                   AT_ref, Dskip_ref, w_out_ref,
                   normf_g_ref, normf_b_ref, head_w_ref,
                   o_ref, hscan_ref):
    BL = BATCH * SEQ

    hidden = h0_ref[...].astype(jnp.float32)        # (B*L, D)
    temb = temb_ref[...].astype(jnp.float32)        # (B*L, D)  (temb broadcast over L)
    residual = jnp.zeros_like(hidden)

    # position within each sequence (for causal conv mask across the folded batch axis)
    rows = jax.lax.broadcasted_iota(jnp.int32, (BL, 1), 0)
    pos = rows % SEQ                                 # (B*L, 1)

    def layer_norm(x, g, b):
        mean = jnp.mean(x, axis=-1, keepdims=True)
        c = x - mean
        var = jnp.mean(c * c, axis=-1, keepdims=True)
        return c * jax.lax.rsqrt(var + EPS) * g + b

    def mamba_branch(x, layer, br):
        # --- fused in_proj: x @ [Wx | Wz]  (rev branch has the feature flip pre-folded)
        xz = jnp.dot(x, w_in_ref[layer, br], preferred_element_type=jnp.float32)  # (BL, 2*DI)
        xin = xz[:, :D_INNER]
        z = xz[:, D_INNER:]

        # --- depthwise causal conv1d: taps via sublane roll + causal/batch-boundary mask
        cw = convw_ref[layer, br].astype(jnp.float32)          # (K, DI)
        acc = xin * cw[D_CONV - 1:D_CONV, :]                   # tap with zero shift
        for k in range(D_CONV - 1):
            s = D_CONV - 1 - k                                 # shift in {3, 2, 1}
            shifted = pltpu.roll(xin, shift=s, axis=0)
            shifted = jnp.where(pos >= s, shifted, 0.0)        # zero causal pad + no batch leak
            acc = acc + shifted * cw[k:k + 1, :]
        xc = _silu(acc + convb_ref[layer, br].astype(jnp.float32))   # (BL, DI)

        # --- fused x_proj, columns ordered [B | C | dt]
        dbc = jnp.dot(xc, w_xproj_ref[layer, br], preferred_element_type=jnp.float32)
        Bm = dbc[:, :D_STATE]                                  # (BL, S)
        Cm = dbc[:, D_STATE:2 * D_STATE]                       # (BL, S)
        dtr = dbc[:, 2 * D_STATE:]                             # (BL, dt_rank)
        delta = jax.nn.softplus(
            jnp.dot(dtr, w_dt_ref[layer, br], preferred_element_type=jnp.float32)
            + b_dt_ref[layer, br])                             # (BL, DI)

        # --- selective scan
        A_T = AT_ref[layer, br].astype(jnp.float32)            # (S, DI) = (-exp(A_log)).T
        du = delta * xc                                        # (BL, DI)
        dA = jnp.exp(delta[:, None, :] * A_T[None, :, :])      # (BL, S, DI)
        Bdu = Bm[:, :, None] * du[:, None, :]                  # (BL, S, DI)
        dA4 = dA.reshape(BATCH, SEQ, D_STATE, D_INNER)
        Bdu4 = Bdu.reshape(BATCH, SEQ, D_STATE, D_INNER)

        H = jnp.zeros((BATCH, D_STATE, D_INNER), jnp.float32)
        for t in range(SEQ):                                   # L static & small -> unrolled
            H = dA4[:, t] * H + Bdu4[:, t]
            hscan_ref[:, t, :, :] = H                          # stash state in VMEM scratch

        Cm4 = Cm.reshape(BATCH, SEQ, D_STATE)
        y = jnp.sum(hscan_ref[...] * Cm4[:, :, :, None], axis=2)    # (B, L, DI)
        y = y.reshape(BL, D_INNER)
        y = y + xc * Dskip_ref[layer, br]                      # D-skip
        y = y * _silu(z)                                       # gate
        return jnp.dot(y, w_out_ref[layer, br], preferred_element_type=jnp.float32)  # (BL, D)

    for layer in range(N_LAYER):
        # residual = hidden + residual + temb ; normed = LayerNorm(residual)
        residual = hidden + residual + temb
        normed = layer_norm(residual, ln_g_ref[layer], ln_b_ref[layer])
        # BiMambaBlock: fwd_mamba(x) + rev_mamba(x.flip(dims=[-1]))  (flip folded into rev w_in)
        hidden = mamba_branch(normed, layer, 0) + mamba_branch(normed, layer, 1)

    # final: residual = hidden + residual ; hidden = norm_f(residual) ; tied LM head
    residual = hidden + residual
    normed = layer_norm(residual, normf_g_ref[...], normf_b_ref[...])
    o_ref[...] = jnp.dot(normed, head_w_ref[...],
                         preferred_element_type=jnp.float32).astype(o_ref.dtype)


def bimamba_forward(params, input_ids, t):
    # embedding gather (glue, plain JAX)
    hidden = params["embedding"][input_ids]                                  # (B, L, D)
    B, L, D = hidden.shape

    # timestep embedding: PositionalEmbedding -> Linear -> GELU(tanh) -> Linear -> GELU(tanh)
    half = D_MODEL // 2
    scale = -math.log(10000.0) / (half - 1)
    freqs = jnp.exp(scale * jnp.arange(half, dtype=jnp.float32))
    pe = t.astype(jnp.float32)[:, None] * freqs[None, :]
    pe = jnp.concatenate([jnp.sin(pe), jnp.cos(pe)], axis=-1)                # (B, D)
    temb = jax.nn.gelu(pe @ params["temb_w1"].T + params["temb_b1"], approximate=True)
    temb = jax.nn.gelu(temb @ params["temb_w2"].T + params["temb_b2"], approximate=True)

    # fold batch into rows; pre-broadcast temb over L (tiny)
    h0 = hidden.reshape(B * L, D)
    temb_full = jnp.broadcast_to(temb[:, None, :], (B, L, D)).reshape(B * L, D)
    head_w = params["embedding"].T                                           # tied weights (D, V)

    vmem = pl.BlockSpec(memory_space=pltpu.MemorySpace.VMEM)
    # Single invocation (no grid): every weight is DMA'd exactly once and stays VMEM-resident.
    # (On v7x a 2-way "parallel" batch grid could use both TensorCores; kept single-step since
    #  v5e/v6e have one TC and per-grid-step overhead dominates at these tiny shapes.)
    logits = pl.pallas_call(
        bimamba_kernel,
        out_shape=jax.ShapeDtypeStruct((B * L, VOCAB), jnp.float32),
        in_specs=[vmem] * 16,
        out_specs=vmem,
        scratch_shapes=[pltpu.VMEM((BATCH, SEQ, D_STATE, D_INNER), jnp.float32)],
    )(h0, temb_full,
      params["ln_g"], params["ln_b"],
      params["w_in"], params["convw"], params["convb"],
      params["w_xproj"], params["w_dt"], params["b_dt"],
      params["A_T"], params["Dskip"], params["w_out"],
      params["normf_g"], params["normf_b"], head_w)
    return logits.reshape(B, L, VOCAB)


# =================================== parameter init =====================================
def _nrm(key, shape, scale=0.02):
    return (scale * jax.random.normal(key, shape)).astype(jnp.float32)


def init_branch(key):
    """Per-Mamba-branch params, already in kernel-ready (pre-transposed / fused) layout."""
    ks = jax.random.split(key, 5)
    convw = _nrm(ks[0], (D_CONV, D_INNER), 0.1)                  # depthwise conv taps (K, DI)
    convb = _nrm(ks[1], (1, D_INNER), 0.1)
    # fused x_proj, columns ordered [B | C | dt] (lane-aligned static slices in-kernel)
    w_xproj = _nrm(ks[2], (D_INNER, 2 * D_STATE + DT_RANK))
    w_dt = (DT_RANK ** -0.5) * jax.random.normal(ks[3], (DT_RANK, D_INNER)).astype(jnp.float32)
    # dt bias via inverse-softplus of dt sampled in [dt_min, dt_max] (Mamba-style)
    u = jax.random.uniform(ks[4], (1, D_INNER), dtype=jnp.float32)
    dt = jnp.exp(u * (math.log(0.1) - math.log(0.001)) + math.log(0.001))
    dt = jnp.maximum(dt, 1e-4)
    b_dt = dt + jnp.log(-jnp.expm1(-dt))
    # A = -exp(A_log) with A_log[c, s] = log(s+1) -- precomputed, stored transposed (S, DI)
    A_T = -(jnp.arange(1, D_STATE + 1, dtype=jnp.float32)[:, None]
            * jnp.ones((D_STATE, D_INNER), jnp.float32))
    Dskip = jnp.ones((1, D_INNER), jnp.float32)
    return dict(convw=convw, convb=convb, w_xproj=w_xproj, w_dt=w_dt, b_dt=b_dt,
                A_T=A_T, Dskip=Dskip)


def init_layer(key):
    ks = jax.random.split(key, 4)
    # shared (fwd/rev) in_proj [Wx | Wz] and out_proj, pre-transposed for x @ W
    w_in_fwd = _nrm(ks[0], (D_MODEL, 2 * D_INNER))
    w_out_shared = _nrm(ks[1], (D_INNER, D_MODEL))
    # rev_mamba consumes x.flip(dims=[-1]) (FEATURE flip, as in the reference):
    # flip(x) @ W  ==  x @ flip_rows(W)  -> fold the flip into the rev in_proj weight.
    w_in_rev = jnp.flip(w_in_fwd, axis=0)
    fwd = init_branch(ks[2])
    rev = init_branch(ks[3])
    out = {name: jnp.stack([fwd[name], rev[name]], axis=0) for name in fwd}
    out["w_in"] = jnp.stack([w_in_fwd, w_in_rev], axis=0)
    out["w_out"] = jnp.stack([w_out_shared, w_out_shared], axis=0)
    out["ln_g"] = jnp.ones((1, D_MODEL), jnp.float32)
    out["ln_b"] = jnp.zeros((1, D_MODEL), jnp.float32)
    return out


def init_params(key):
    keys = jax.random.split(key, 5 + N_LAYER)
    params = {
        "embedding": _nrm(keys[0], (VOCAB, D_MODEL)),
        "temb_w1": _nrm(keys[1], (D_MODEL, D_MODEL)),
        "temb_b1": jnp.zeros((D_MODEL,), jnp.float32),
        "temb_w2": _nrm(keys[2], (D_MODEL, D_MODEL)),
        "temb_b2": jnp.zeros((D_MODEL,), jnp.float32),
        "normf_g": jnp.ones((1, D_MODEL), jnp.float32),
        "normf_b": jnp.zeros((1, D_MODEL), jnp.float32),
    }
    per_layer = [init_layer(keys[5 + i]) for i in range(N_LAYER)]
    for name in per_layer[0]:
        params[name] = jnp.stack([lyr[name] for lyr in per_layer], axis=0)
    return params


# ========================================= main =========================================
if __name__ == "__main__":
    key = jax.random.PRNGKey(0)
    kparam, kids, kt = jax.random.split(key, 3)
    params = init_params(kparam)
    input_ids = jax.random.randint(kids, (BATCH, SEQ), 0, VOCAB)             # (2, 8) int32
    t = jax.random.randint(kt, (BATCH,), 0, 1000).astype(jnp.float32)        # (2,) timesteps

    logits = jax.jit(bimamba_forward)(params, input_ids, t)
    jax.block_until_ready(logits)

    assert logits.shape == (BATCH, SEQ, VOCAB), logits.shape
    assert bool(jnp.all(jnp.isfinite(logits)))
    print("KERNEL_OK")
</pallas_src>

<mosaic_0001>
module attributes {stable_mosaic.version = 11 : i64} {
  func.func @bimamba_kernel(%arg0: memref<16x32xf32, #tpu.memory_space<vmem>>, %arg1: memref<16x32xf32, #tpu.memory_space<vmem>>, %arg2: memref<2x1x32xf32, #tpu.memory_space<vmem>>, %arg3: memref<2x1x32xf32, #tpu.memory_space<vmem>>, %arg4: memref<2x2x32x128xf32, #tpu.memory_space<vmem>>, %arg5: memref<2x2x4x64xf32, #tpu.memory_space<vmem>>, %arg6: memref<2x2x1x64xf32, #tpu.memory_space<vmem>>, %arg7: memref<2x2x64x34xf32, #tpu.memory_space<vmem>>, %arg8: memref<2x2x2x64xf32, #tpu.memory_space<vmem>>, %arg9: memref<2x2x1x64xf32, #tpu.memory_space<vmem>>, %arg10: memref<2x2x16x64xf32, #tpu.memory_space<vmem>>, %arg11: memref<2x2x1x64xf32, #tpu.memory_space<vmem>>, %arg12: memref<2x2x64x32xf32, #tpu.memory_space<vmem>>, %arg13: memref<1x32xf32, #tpu.memory_space<vmem>>, %arg14: memref<1x32xf32, #tpu.memory_space<vmem>>, %arg15: memref<32x16xf32, #tpu.memory_space<vmem>>, %arg16: memref<16x16xf32, #tpu.memory_space<vmem>>, %arg17: memref<2x8x16x64xf32, #tpu.memory_space<vmem>>) attributes {dimension_semantics = [], scalar_prefetch = 0 : i64, scratch_operands = 1 : i64, tpu.core_type = #tpu.core_type<tc>} {
    %c0 = arith.constant 0 : index
    %c0_0 = arith.constant 0 : index
    %0 = vector.load %arg0[%c0, %c0_0] : memref<16x32xf32, #tpu.memory_space<vmem>>, vector<16x32xf32>
    %c0_1 = arith.constant 0 : index
    %c0_2 = arith.constant 0 : index
    %1 = vector.load %arg1[%c0_1, %c0_2] : memref<16x32xf32, #tpu.memory_space<vmem>>, vector<16x32xf32>
    %cst = arith.constant 0.000000e+00 : f32
    %2 = vector.broadcast %cst : f32 to vector<16x32xf32>
    %3 = tpu.iota {dimensions = array<i32: 0>} : vector<16x1xi32>
    %c8_i32 = arith.constant 8 : i32
    %c0_i32 = arith.constant 0 : i32
    %4 = arith.cmpi eq, %c8_i32, %c0_i32 : i32
    %c1_i32 = arith.constant 1 : i32
    %5 = arith.select %4, %c1_i32, %c8_i32 : i32
    %6 = vector.broadcast %5 : i32 to vector<16x1xi32>
    %7 = arith.remsi %3, %6 : vector<16x1xi32>
    %c0_i32_3 = arith.constant 0 : i32
    %8 = vector.broadcast %c0_i32_3 : i32 to vector<16x1xi32>
    %9 = arith.cmpi ne, %7, %8 : vector<16x1xi32>
    %c0_i32_4 = arith.constant 0 : i32
    %10 = vector.broadcast %c0_i32_4 : i32 to vector<16x1xi32>
    %11 = arith.cmpi slt, %7, %10 : vector<16x1xi32>
    %c0_i32_5 = arith.constant 0 : i32
    %12 = arith.cmpi slt, %5, %c0_i32_5 : i32
    %13 = vector.broadcast %12 : i1 to vector<16x1xi1>
    %14 = vector.broadcast %13 : vector<16x1xi1> to vector<16x1xi1>
    %15 = arith.xori %11, %14 : vector<16x1xi1>
    %16 = arith.andi %15, %9 : vector<16x1xi1>
    %17 = vector.broadcast %5 : i32 to vector<16x1xi32>
    %18 = arith.addi %7, %17 : vector<16x1xi32>
    %19 = arith.select %16, %18, %7 : vector<16x1xi1>, vector<16x1xi32>
    %20 = arith.addf %0, %2 : vector<16x32xf32>
    %21 = arith.addf %20, %1 : vector<16x32xf32>
    %c0_6 = arith.constant 0 : index
    %c0_7 = arith.constant 0 : index
    %c0_8 = arith.constant 0 : index
    %22 = vector.load %arg2[%c0_6, %c0_7, %c0_8] : memref<2x1x32xf32, #tpu.memory_space<vmem>>, vector<1x1x32xf32>
    %23 = vector.shape_cast %22 : vector<1x1x32xf32> to vector<1x32xf32>
    %c0_9 = arith.constant 0 : index
    %c0_10 = arith.constant 0 : index
    %c0_11 = arith.constant 0 : index
    %24 = vector.load %arg3[%c0_9, %c0_10, %c0_11] : memref<2x1x32xf32, #tpu.memory_space<vmem>>, vector<1x1x32xf32>
    %25 = vector.shape_cast %24 : vector<1x1x32xf32> to vector<1x32xf32>
    %cst_12 = arith.constant dense<0.000000e+00> : vector<16xf32>
    %26 = vector.multi_reduction <add>, %21, %cst_12 [1] : vector<16x32xf32> to vector<16xf32>
    %27 = vector.shape_cast %26 : vector<16xf32> to vector<16x1xf32>
    %cst_13 = arith.constant 3.200000e+01 : f32
    %28 = vector.broadcast %cst_13 : f32 to vector<16x1xf32>
    %29 = arith.divf %27, %28 : vector<16x1xf32>
    %30 = vector.broadcast %29 : vector<16x1xf32> to vector<16x32xf32>
    %31 = arith.subf %21, %30 : vector<16x32xf32>
    %32 = arith.mulf %31, %31 : vector<16x32xf32>
    %cst_14 = arith.constant dense<0.000000e+00> : vector<16xf32>
    %33 = vector.multi_reduction <add>, %32, %cst_14 [1] : vector<16x32xf32> to vector<16xf32>
    %34 = vector.shape_cast %33 : vector<16xf32> to vector<16x1xf32>
    %cst_15 = arith.constant 3.200000e+01 : f32
    %35 = vector.broadcast %cst_15 : f32 to vector<16x1xf32>
    %36 = arith.divf %34, %35 : vector<16x1xf32>
    %cst_16 = arith.constant 9.99999974E-6 : f32
    %37 = vector.broadcast %cst_16 : f32 to vector<16x1xf32>
    %38 = arith.addf %36, %37 : vector<16x1xf32>
    %39 = math.rsqrt %38 : vector<16x1xf32>
    %40 = vector.broadcast %39 : vector<16x1xf32> to vector<16x32xf32>
    %41 = arith.mulf %31, %40 : vector<16x32xf32>
    %42 = vector.broadcast %23 : vector<1x32xf32> to vector<16x32xf32>
    %43 = arith.mulf %41, %42 : vector<16x32xf32>
    %44 = vector.broadcast %25 : vector<1x32xf32> to vector<16x32xf32>
    %45 = arith.addf %43, %44 : vector<16x32xf32>
    %c0_17 = arith.constant 0 : index
    %c0_18 = arith.constant 0 : index
    %c0_19 = arith.constant 0 : index
    %c0_20 = arith.constant 0 : index
    %46 = vector.load %arg4[%c0_17, %c0_18, %c0_19, %c0_20] : memref<2x2x32x128xf32, #tpu.memory_space<vmem>>, vector<1x1x32x128xf32>
    %47 = vector.shape_cast %46 : vector<1x1x32x128xf32> to vector<32x128xf32>
    %cst_21 = arith.constant dense<0.000000e+00> : vector<16x128xf32>
    %48 = tpu.matmul %45, %47, %cst_21 {dimension_numbers = #tpu.dot_dimension_numbers<[1], [0], [0], [1], [0, 0, 1, 1], [], []>} : vector<16x32xf32>, vector<32x128xf32>, vector<16x128xf32> -> vector<16x128xf32>
    %49 = vector.extract_strided_slice %48 {offsets = [0, 0], sizes = [16, 64], strides = [1, 1]} : vector<16x128xf32> to vector<16x64xf32>
    %50 = vector.extract_strided_slice %48 {offsets = [0, 64], sizes = [16, 64], strides = [1, 1]} : vector<16x128xf32> to vector<16x64xf32>
    %c0_22 = arith.constant 0 : index
    %c0_23 = arith.constant 0 : index
    %c0_24 = arith.constant 0 : index
    %c0_25 = arith.constant 0 : index
    %51 = vector.load %arg5[%c0_22, %c0_23, %c0_24, %c0_25] : memref<2x2x4x64xf32, #tpu.memory_space<vmem>>, vector<1x1x4x64xf32>
    %52 = vector.shape_cast %51 : vector<1x1x4x64xf32> to vector<4x64xf32>
    %53 = vector.extract_strided_slice %52 {offsets = [3, 0], sizes = [1, 64], strides = [1, 1]} : vector<4x64xf32> to vector<1x64xf32>
    %54 = vector.broadcast %53 : vector<1x64xf32> to vector<16x64xf32>
    %55 = arith.mulf %49, %54 : vector<16x64xf32>
    %c3_i32 = arith.constant 3 : i32
    %56 = tpu.dynamic_rotate %49 by %c3_i32 dim 0 : vector<16x64xf32>, i32 -> vector<16x64xf32>
    %c3_i32_26 = arith.constant 3 : i32
    %57 = vector.broadcast %c3_i32_26 : i32 to vector<16x1xi32>
    %58 = arith.cmpi sge, %19, %57 : vector<16x1xi32>
    %cst_27 = arith.constant 0.000000e+00 : f32
    %59 = vector.shape_cast %58 : vector<16x1xi1> to vector<16x1xi1>
    %60 = vector.broadcast %59 : vector<16x1xi1> to vector<16x64xi1>
    %61 = vector.broadcast %cst_27 : f32 to vector<16x64xf32>
    %62 = arith.select %60, %56, %61 : vector<16x64xi1>, vector<16x64xf32>
    %63 = vector.extract_strided_slice %52 {offsets = [0, 0], sizes = [1, 64], strides = [1, 1]} : vector<4x64xf32> to vector<1x64xf32>
    %64 = vector.broadcast %63 : vector<1x64xf32> to vector<16x64xf32>
    %65 = arith.mulf %62, %64 : vector<16x64xf32>
    %66 = arith.addf %55, %65 : vector<16x64xf32>
    %c2_i32 = arith.constant 2 : i32
    %67 = tpu.dynamic_rotate %49 by %c2_i32 dim 0 : vector<16x64xf32>, i32 -> vector<16x64xf32>
    %c2_i32_28 = arith.constant 2 : i32
    %68 = vector.broadcast %c2_i32_28 : i32 to vector<16x1xi32>
    %69 = arith.cmpi sge, %19, %68 : vector<16x1xi32>
    %cst_29 = arith.constant 0.000000e+00 : f32
    %70 = vector.shape_cast %69 : vector<16x1xi1> to vector<16x1xi1>
    %71 = vector.broadcast %70 : vector<16x1xi1> to vector<16x64xi1>
    %72 = vector.broadcast %cst_29 : f32 to vector<16x64xf32>
    %73 = arith.select %71, %67, %72 : vector<16x64xi1>, vector<16x64xf32>
    %74 = vector.extract_strided_slice %52 {offsets = [1, 0], sizes = [1, 64], strides = [1, 1]} : vector<4x64xf32> to vector<1x64xf32>
    %75 = vector.broadcast %74 : vector<1x64xf32> to vector<16x64xf32>
    %76 = arith.mulf %73, %75 : vector<16x64xf32>
    %77 = arith.addf %66, %76 : vector<16x64xf32>
    %c1_i32_30 = arith.constant 1 : i32
    %78 = tpu.dynamic_rotate %49 by %c1_i32_30 dim 0 : vector<16x64xf32>, i32 -> vector<16x64xf32>
    %c1_i32_31 = arith.constant 1 : i32
    %79 = vector.broadcast %c1_i32_31 : i32 to vector<16x1xi32>
    %80 = arith.cmpi sge, %19, %79 : vector<16x1xi32>
    %cst_32 = arith.constant 0.000000e+00 : f32
    %81 = vector.shape_cast %80 : vector<16x1xi1> to vector<16x1xi1>
    %82 = vector.broadcast %81 : vector<16x1xi1> to vector<16x64xi1>
    %83 = vector.broadcast %cst_32 : f32 to vector<16x64xf32>
    %84 = arith.select %82, %78, %83 : vector<16x64xi1>, vector<16x64xf32>
    %85 = vector.extract_strided_slice %52 {offsets = [2, 0], sizes = [1, 64], strides = [1, 1]} : vector<4x64xf32> to vector<1x64xf32>
    %86 = vector.broadcast %85 : vector<1x64xf32> to vector<16x64xf32>
    %87 = arith.mulf %84, %86 : vector<16x64xf32>
    %88 = arith.addf %77, %87 : vector<16x64xf32>
    %c0_33 = arith.constant 0 : index
    %c0_34 = arith.constant 0 : index
    %c0_35 = arith.constant 0 : index
    %c0_36 = arith.constant 0 : index
    %89 = vector.load %arg6[%c0_33, %c0_34, %c0_35, %c0_36] : memref<2x2x1x64xf32, #tpu.memory_space<vmem>>, vector<1x1x1x64xf32>
    %90 = vector.shape_cast %89 : vector<1x1x1x64xf32> to vector<1x64xf32>
    %91 = vector.broadcast %90 : vector<1x64xf32> to vector<16x64xf32>
    %92 = arith.addf %88, %91 : vector<16x64xf32>
    %93 = arith.negf %92 : vector<16x64xf32>
    %94 = math.exp %93 : vector<16x64xf32>
    %cst_37 = arith.constant 1.000000e+00 : f32
    %95 = vector.broadcast %cst_37 : f32 to vector<16x64xf32>
    %96 = arith.addf %95, %94 : vector<16x64xf32>
    %97 = arith.divf %95, %96 : vector<16x64xf32>
    %98 = arith.mulf %92, %97 : vector<16x64xf32>
    %c0_38 = arith.constant 0 : index
    %c0_39 = arith.constant 0 : index
    %c0_40 = arith.constant 0 : index
    %c0_41 = arith.constant 0 : index
    %99 = vector.load %arg7[%c0_38, %c0_39, %c0_40, %c0_41] : memref<2x2x64x34xf32, #tpu.memory_space<vmem>>, vector<1x1x64x34xf32>
    %100 = vector.shape_cast %99 : vector<1x1x64x34xf32> to vector<64x34xf32>
    %cst_42 = arith.constant dense<0.000000e+00> : vector<16x34xf32>
    %101 = tpu.matmul %98, %100, %cst_42 {dimension_numbers = #tpu.dot_dimension_numbers<[1], [0], [0], [1], [0, 0, 1, 1], [], []>} : vector<16x64xf32>, vector<64x34xf32>, vector<16x34xf32> -> vector<16x34xf32>
    %102 = vector.extract_strided_slice %101 {offsets = [0, 0], sizes = [16, 16], strides = [1, 1]} : vector<16x34xf32> to vector<16x16xf32>
    %103 = vector.extract_strided_slice %101 {offsets = [0, 16], sizes = [16, 16], strides = [1, 1]} : vector<16x34xf32> to vector<16x16xf32>
    %104 = vector.extract_strided_slice %101 {offsets = [0, 32], sizes = [16, 2], strides = [1, 1]} : vector<16x34xf32> to vector<16x2xf32>
    %c0_43 = arith.constant 0 : index
    %c0_44 = arith.constant 0 : index
    %c0_45 = arith.constant 0 : index
    %c0_46 = arith.constant 0 : index
    %105 = vector.load %arg8[%c0_43, %c0_44, %c0_45, %c0_46] : memref<2x2x2x64xf32, #tpu.memory_space<vmem>>, vector<1x1x2x64xf32>
    %106 = vector.shape_cast %105 : vector<1x1x2x64xf32> to vector<2x64xf32>
    %cst_47 = arith.constant dense<0.000000e+00> : vector<16x64xf32>
    %107 = tpu.matmul %104, %106, %cst_47 {dimension_numbers = #tpu.dot_dimension_numbers<[1], [0], [0], [1], [0, 0, 1, 1], [], []>} : vector<16x2xf32>, vector<2x64xf32>, vector<16x64xf32> -> vector<16x64xf32>
    %c0_48 = arith.constant 0 : index
    %c0_49 = arith.constant 0 : index
    %c0_50 = arith.constant 0 : index
    %c0_51 = arith.constant 0 : index
    %108 = vector.load %arg9[%c0_48, %c0_49, %c0_50, %c0_51] : memref<2x2x1x64xf32, #tpu.memory_space<vmem>>, vector<1x1x1x64xf32>
    %109 = vector.shape_cast %108 : vector<1x1x1x64xf32> to vector<1x64xf32>
    %110 = vector.broadcast %109 : vector<1x64xf32> to vector<16x64xf32>
    %111 = arith.addf %107, %110 : vector<16x64xf32>
    %cst_52 = arith.constant 0.000000e+00 : f32
    %112 = vector.broadcast %cst_52 : f32 to vector<16x64xf32>
    %113 = arith.maximumf %111, %112 : vector<16x64xf32>
    %114 = vector.broadcast %cst_52 : f32 to vector<16x64xf32>
    %115 = arith.subf %111, %114 : vector<16x64xf32>
    %116 = arith.cmpf one, %115, %115 : vector<16x64xf32>
    %117 = vector.broadcast %cst_52 : f32 to vector<16x64xf32>
    %118 = arith.addf %111, %117 : vector<16x64xf32>
    %119 = math.absf %115 : vector<16x64xf32>
    %cst_53 = arith.constant 0.000000e+00 : f32
    %120 = vector.broadcast %cst_53 : f32 to vector<16x64xf32>
    %121 = arith.subf %120, %119 : vector<16x64xf32>
    %122 = math.exp %121 : vector<16x64xf32>
    %123 = math.log1p %122 : vector<16x64xf32>
    %124 = arith.addf %113, %123 : vector<16x64xf32>
    %125 = arith.select %116, %118, %124 : vector<16x64xi1>, vector<16x64xf32>
    %c0_54 = arith.constant 0 : index
    %c0_55 = arith.constant 0 : index
    %c0_56 = arith.constant 0 : index
    %c0_57 = arith.constant 0 : index
    %126 = vector.load %arg10[%c0_54, %c0_55, %c0_56, %c0_57] : memref<2x2x16x64xf32, #tpu.memory_space<vmem>>, vector<1x1x16x64xf32>
    %127 = vector.shape_cast %126 : vector<1x1x16x64xf32> to vector<16x64xf32>
    %128 = arith.mulf %125, %98 : vector<16x64xf32>
    %129 = vector.shape_cast %125 : vector<16x64xf32> to vector<16x1x64xf32>
    %130 = vector.shape_cast %127 : vector<16x64xf32> to vector<1x16x64xf32>
    %131 = vector.broadcast %129 : vector<16x1x64xf32> to vector<16x16x64xf32>
    %132 = vector.broadcast %130 : vector<1x16x64xf32> to vector<16x16x64xf32>
    %133 = arith.mulf %131, %132 : vector<16x16x64xf32>
    %134 = math.exp %133 : vector<16x16x64xf32>
    %135 = vector.shape_cast %102 : vector<16x16xf32> to vector<16x16x1xf32>
    %136 = vector.shape_cast %128 : vector<16x64xf32> to vector<16x1x64xf32>
    %137 = vector.broadcast %135 : vector<16x16x1xf32> to vector<16x16x64xf32>
    %138 = vector.broadcast %136 : vector<16x1x64xf32> to vector<16x16x64xf32>
    %139 = arith.mulf %137, %138 : vector<16x16x64xf32>
    %140 = vector.shape_cast %134 : vector<16x16x64xf32> to vector<2x8x16x64xf32>
    %141 = vector.shape_cast %139 : vector<16x16x64xf32> to vector<2x8x16x64xf32>
    %cst_58 = arith.constant 0.000000e+00 : f32
    %142 = vector.broadcast %cst_58 : f32 to vector<2x16x64xf32>
    %143 = vector.extract_strided_slice %140 {offsets = [0, 0, 0, 0], sizes = [2, 1, 16, 64], strides = [1, 1, 1, 1]} : vector<2x8x16x64xf32> to vector<2x1x16x64xf32>
    %144 = vector.shape_cast %143 : vector<2x1x16x64xf32> to vector<2x16x64xf32>
    %145 = arith.mulf %144, %142 : vector<2x16x64xf32>
    %146 = vector.extract_strided_slice %141 {offsets = [0, 0, 0, 0], sizes = [2, 1, 16, 64], strides = [1, 1, 1, 1]} : vector<2x8x16x64xf32> to vector<2x1x16x64xf32>
    %147 = vector.shape_cast %146 : vector<2x1x16x64xf32> to vector<2x16x64xf32>
    %148 = arith.addf %145, %147 : vector<2x16x64xf32>
    %c0_59 = arith.constant 0 : index
    %c0_60 = arith.constant 0 : index
    %c0_61 = arith.constant 0 : index
    %c0_62 = arith.constant 0 : index
    %149 = vector.load %arg17[%c0_59, %c0_60, %c0_61, %c0_62] : memref<2x8x16x64xf32, #tpu.memory_space<vmem>>, vector<2x1x16x64xf32>
    %150 = vector.shape_cast %149 : vector<2x1x16x64xf32> to vector<2x16x64xf32>
    %151 = vector.shape_cast %148 : vector<2x16x64xf32> to vector<2x1x16x64xf32>
    tpu.vector_store %arg17[%c0_59, %c0_60, %c0_61, %c0_62], %151 {strides = array<i32>} : memref<2x8x16x64xf32, #tpu.memory_space<vmem>>, vector<2x1x16x64xf32>,
    %152 = vector.extract_strided_slice %140 {offsets = [0, 1, 0, 0], sizes = [2, 1, 16, 64], strides = [1, 1, 1, 1]} : vector<2x8x16x64xf32> to vector<2x1x16x64xf32>
    %153 = vector.shape_cast %152 : vector<2x1x16x64xf32> to vector<2x16x64xf32>
    %154 = arith.mulf %153, %148 : vector<2x16x64xf32>
    %155 = vector.extract_strided_slice %141 {offsets = [0, 1, 0, 0], sizes = [2, 1, 16, 64], strides = [1, 1, 1, 1]} : vector<2x8x16x64xf32> to vector<2x1x16x64xf32>
    %156 = vector.shape_cast %155 : vector<2x1x16x64xf32> to vector<2x16x64xf32>
    %157 = arith.addf %154, %156 : vector<2x16x64xf32>
    %c0_63 = arith.constant 0 : index
    %c1 = arith.constant 1 : index
    %c0_64 = arith.constant 0 : index
    %c0_65 = arith.constant 0 : index
    %158 = vector.load %arg17[%c0_63, %c1, %c0_64, %c0_65] : memref<2x8x16x64xf32, #tpu.memory_space<vmem>>, vector<2x1x16x64xf32>
    %159 = vector.shape_cast %158 : vector<2x1x16x64xf32> to vector<2x16x64xf32>
    %160 = vector.shape_cast %157 : vector<2x16x64xf32> to vector<2x1x16x64xf32>
    tpu.vector_store %arg17[%c0_63, %c1, %c0_64, %c0_65], %160 {strides = array<i32>} : memref<2x8x16x64xf32, #tpu.memory_space<vmem>>, vector<2x1x16x64xf32>,
    %161 = vector.extract_strided_slice %140 {offsets = [0, 2, 0, 0], sizes = [2, 1, 16, 64], strides = [1, 1, 1, 1]} : vector<2x8x16x64xf32> to vector<2x1x16x64xf32>
    %162 = vector.shape_cast %161 : vector<2x1x16x64xf32> to vector<2x16x64xf32>
    %163 = arith.mulf %162, %157 : vector<2x16x64xf32>
    %164 = vector.extract_strided_slice %141 {offsets = [0, 2, 0, 0], sizes = [2, 1, 16, 64], strides = [1, 1, 1, 1]} : vector<2x8x16x64xf32> to vector<2x1x16x64xf32>
    %165 = vector.shape_cast %164 : vector<2x1x16x64xf32> to vector<2x16x64xf32>
    %166 = arith.addf %163, %165 : vector<2x16x64xf32>
    %c0_66 = arith.constant 0 : index
    %c2 = arith.constant 2 : index
    %c0_67 = arith.constant 0 : index
    %c0_68 = arith.constant 0 : index
    %167 = vector.load %arg17[%c0_66, %c2, %c0_67, %c0_68] : memref<2x8x16x64xf32, #tpu.memory_space<vmem>>, vector<2x1x16x64xf32>
    %168 = vector.shape_cast %167 : vector<2x1x16x64xf32> to vector<2x16x64xf32>
    %169 = vector.shape_cast %166 : vector<2x16x64xf32> to vector<2x1x16x64xf32>
    tpu.vector_store %arg17[%c0_66, %c2, %c0_67, %c0_68], %169 {strides = array<i32>} : memref<2x8x16x64xf32, #tpu.memory_space<vmem>>, vector<2x1x16x64xf32>,
    %170 = vector.extract_strided_slice %140 {offsets = [0, 3, 0, 0], sizes = [2, 1, 16, 64], strides = [1, 1, 1, 1]} : vector<2x8x16x64xf32> to vector<2x1x16x64xf32>
    %171 = vector.shape_cast %170 : vector<2x1x16x64xf32> to vector<2x16x64xf32>
    %172 = arith.mulf %171, %166 : vector<2x16x64xf32>
    %173 = vector.extract_strided_slice %141 {offsets = [0, 3, 0, 0], sizes = [2, 1, 16, 64], strides = [1, 1, 1, 1]} : vector<2x8x16x64xf32> to vector<2x1x16x64xf32>
    %174 = vector.shape_cast %173 : vector<2x1x16x64xf32> to vector<2x16x64xf32>
    %175 = arith.addf %172, %174 : vector<2x16x64xf32>
    %c0_69 = arith.constant 0 : index
    %c3 = arith.constant 3 : index
    %c0_70 = arith.constant 0 : index
    %c0_71 = arith.constant 0 : index
    %176 = vector.load %arg17[%c0_69, %c3, %c0_70, %c0_71] : memref<2x8x16x64xf32, #tpu.memory_space<vmem>>, vector<2x1x16x64xf32>
    %177 = vector.shape_cast %176 : vector<2x1x16x64xf32> to vector<2x16x64xf32>
    %178 = vector.shape_cast %175 : vector<2x16x64xf32> to vector<2x1x16x64xf32>
    tpu.vector_store %arg17[%c0_69, %c3, %c0_70, %c0_71], %178 {strides = array<i32>} : memref<2x8x16x64xf32, #tpu.memory_space<vmem>>, vector<2x1x16x64xf32>,
    %179 = vector.extract_strided_slice %140 {offsets = [0, 4, 0, 0], sizes = [2, 1, 16, 64], strides = [1, 1, 1, 1]} : vector<2x8x16x64xf32> to vector<2x1x16x64xf32>
    %180 = vector.shape_cast %179 : vector<2x1x16x64xf32> to vector<2x16x64xf32>
    %181 = arith.mulf %180, %175 : vector<2x16x64xf32>
    %182 = vector.extract_strided_slice %141 {offsets = [0, 4, 0, 0], sizes = [2, 1, 16, 64], strides = [1, 1, 1, 1]} : vector<2x8x16x64xf32> to vector<2x1x16x64xf32>
    %183 = vector.shape_cast %182 : vector<2x1x16x64xf32> to vector<2x16x64xf32>
    %184 = arith.addf %181, %183 : vector<2x16x64xf32>
    %c0_72 = arith.constant 0 : index
    %c4 = arith.constant 4 : index
    %c0_73 = arith.constant 0 : index
    %c0_74 = arith.constant 0 : index
    %185 = vector.load %arg17[%c0_72, %c4, %c0_73, %c0_74] : memref<2x8x16x64xf32, #tpu.memory_space<vmem>>, vector<2x1x16x64xf32>
    %186 = vector.shape_cast %185 : vector<2x1x16x64xf32> to vector<2x16x64xf32>
    %187 = vector.shape_cast %184 : vector<2x16x64xf32> to vector<2x1x16x64xf32>
    tpu.vector_store %arg17[%c0_72, %c4, %c0_73, %c0_74], %187 {strides = array<i32>} : memref<2x8x16x64xf32, #tpu.memory_space<vmem>>, vector<2x1x16x64xf32>,
    %188 = vector.extract_strided_slice %140 {offsets = [0, 5, 0, 0], sizes = [2, 1, 16, 64], strides = [1, 1, 1, 1]} : vector<2x8x16x64xf32> to vector<2x1x16x64xf32>
    %189 = vector.shape_cast %188 : vector<2x1x16x64xf32> to vector<2x16x64xf32>
    %190 = arith.mulf %189, %184 : vector<2x16x64xf32>
    %191 = vector.extract_strided_slice %141 {offsets = [0, 5, 0, 0], sizes = [2, 1, 16, 64], strides = [1, 1, 1, 1]} : vector<2x8x16x64xf32> to vector<2x1x16x64xf32>
    %192 = vector.shape_cast %191 : vector<2x1x16x64xf32> to vector<2x16x64xf32>
    %193 = arith.addf %190, %192 : vector<2x16x64xf32>
    %c0_75 = arith.constant 0 : index
    %c5 = arith.constant 5 : index
    %c0_76 = arith.constant 0 : index
    %c0_77 = arith.constant 0 : index
    %194 = vector.load %arg17[%c0_75, %c5, %c0_76, %c0_77] : memref<2x8x16x64xf32, #tpu.memory_space<vmem>>, vector<2x1x16x64xf32>
    %195 = vector.shape_cast %194 : vector<2x1x16x64xf32> to vector<2x16x64xf32>
    %196 = vector.shape_cast %193 : vector<2x16x64xf32> to vector<2x1x16x64xf32>
    tpu.vector_store %arg17[%c0_75, %c5, %c0_76, %c0_77], %196 {strides = array<i32>} : memref<2x8x16x64xf32, #tpu.memory_space<vmem>>, vector<2x1x16x64xf32>,
    %197 = vector.extract_strided_slice %140 {offsets = [0, 6, 0, 0], sizes = [2, 1, 16, 64], strides = [1, 1, 1, 1]} : vector<2x8x16x64xf32> to vector<2x1x16x64xf32>
    %198 = vector.shape_cast %197 : vector<2x1x16x64xf32> to vector<2x16x64xf32>
    %199 = arith.mulf %198, %193 : vector<2x16x64xf32>
    %200 = vector.extract_strided_slice %141 {offsets = [0, 6, 0, 0], sizes = [2, 1, 16, 64], strides = [1, 1, 1, 1]} : vector<2x8x16x64xf32> to vector<2x1x16x64xf32>
    %201 = vector.shape_cast %200 : vector<2x1x16x64xf32> to vector<2x16x64xf32>
    %202 = arith.addf %199, %201 : vector<2x16x64xf32>
    %c0_78 = arith.constant 0 : index
    %c6 = arith.constant 6 : index
    %c0_79 = arith.constant 0 : index
    %c0_80 = arith.constant 0 : index
    %203 = vector.load %arg17[%c0_78, %c6, %c0_79, %c0_80] : memref<2x8x16x64xf32, #tpu.memory_space<vmem>>, vector<2x1x16x64xf32>
    %204 = vector.shape_cast %203 : vector<2x1x16x64xf32> to vector<2x16x64xf32>
    %205 = vector.shape_cast %202 : vector<2x16x64xf32> to vector<2x1x16x64xf32>
    tpu.vector_store %arg17[%c0_78, %c6, %c0_79, %c0_80], %205 {strides = array<i32>} : memref<2x8x16x64xf32, #tpu.memory_space<vmem>>, vector<2x1x16x64xf32>,
    %206 = vector.extract_strided_slice %140 {offsets = [0, 7, 0, 0], sizes = [2, 1, 16, 64], strides = [1, 1, 1, 1]} : vector<2x8x16x64xf32> to vector<2x1x16x64xf32>
    %207 = vector.shape_cast %206 : vector<2x1x16x64xf32> to vector<2x16x64xf32>
    %208 = arith.mulf %207, %202 : vector<2x16x64xf32>
    %209 = vector.extract_strided_slice %141 {offsets = [0, 7, 0, 0], sizes = [2, 1, 16, 64], strides = [1, 1, 1, 1]} : vector<2x8x16x64xf32> to vector<2x1x16x64xf32>
    %210 = vector.shape_cast %209 : vector<2x1x16x64xf32> to vector<2x16x64xf32>
    %211 = arith.addf %208, %210 : vector<2x16x64xf32>
    %c0_81 = arith.constant 0 : index
    %c7 = arith.constant 7 : index
    %c0_82 = arith.constant 0 : index
    %c0_83 = arith.constant 0 : index
    %212 = vector.load %arg17[%c0_81, %c7, %c0_82, %c0_83] : memref<2x8x16x64xf32, #tpu.memory_space<vmem>>, vector<2x1x16x64xf32>
    %213 = vector.shape_cast %212 : vector<2x1x16x64xf32> to vector<2x16x64xf32>
    %214 = vector.shape_cast %211 : vector<2x16x64xf32> to vector<2x1x16x64xf32>
    tpu.vector_store %arg17[%c0_81, %c7, %c0_82, %c0_83], %214 {strides = array<i32>} : memref<2x8x16x64xf32, #tpu.memory_space<vmem>>, vector<2x1x16x64xf32>,
    %215 = vector.shape_cast %103 : vector<16x16xf32> to vector<2x8x16xf32>
    %c0_84 = arith.constant 0 : index
    %c0_85 = arith.constant 0 : index
    %c0_86 = arith.constant 0 : index
    %c0_87 = arith.constant 0 : index
    %216 = vector.load %arg17[%c0_84, %c0_85, %c0_86, %c0_87] : memref<2x8x16x64xf32, #tpu.memory_space<vmem>>, vector<2x8x16x64xf32>
    %217 = vector.shape_cast %215 : vector<2x8x16xf32> to vector<2x8x16x1xf32>
    %218 = vector.broadcast %217 : vector<2x8x16x1xf32> to vector<2x8x16x64xf32>
    %219 = arith.mulf %216, %218 : vector<2x8x16x64xf32>
    %cst_88 = arith.constant dense<0.000000e+00> : vector<2x8x64xf32>
    %220 = vector.multi_reduction <add>, %219, %cst_88 [2] : vector<2x8x16x64xf32> to vector<2x8x64xf32>
    %221 = vector.shape_cast %220 : vector<2x8x64xf32> to vector<16x64xf32>
    %c0_89 = arith.constant 0 : index
    %c0_90 = arith.constant 0 : index
    %c0_91 = arith.constant 0 : index
    %c0_92 = arith.constant 0 : index
    %222 = vector.load %arg11[%c0_89, %c0_90, %c0_91, %c0_92] : memref<2x2x1x64xf32, #tpu.memory_space<vmem>>, vector<1x1x1x64xf32>
    %223 = vector.shape_cast %222 : vector<1x1x1x64xf32> to vector<1x64xf32>
    %224 = vector.broadcast %223 : vector<1x64xf32> to vector<16x64xf32>
    %225 = arith.mulf %98, %224 : vector<16x64xf32>
    %226 = arith.addf %221, %225 : vector<16x64xf32>
    %227 = arith.negf %50 : vector<16x64xf32>
    %228 = math.exp %227 : vector<16x64xf32>
    %cst_93 = arith.constant 1.000000e+00 : f32
    %229 = vector.broadcast %cst_93 : f32 to vector<16x64xf32>
    %230 = arith.addf %229, %228 : vector<16x64xf32>
    %231 = arith.divf %229, %230 : vector<16x64xf32>
    %232 = arith.mulf %50, %231 : vector<16x64xf32>
    %233 = arith.mulf %226, %232 : vector<16x64xf32>
    %c0_94 = arith.constant 0 : index
    %c0_95 = arith.constant 0 : index
    %c0_96 = arith.constant 0 : index
    %c0_97 = arith.constant 0 : index
    %234 = vector.load %arg12[%c0_94, %c0_95, %c0_96, %c0_97] : memref<2x2x64x32xf32, #tpu.memory_space<vmem>>, vector<1x1x64x32xf32>
    %235 = vector.shape_cast %234 : vector<1x1x64x32xf32> to vector<64x32xf32>
    %cst_98 = arith.constant dense<0.000000e+00> : vector<16x32xf32>
    %236 = tpu.matmul %233, %235, %cst_98 {dimension_numbers = #tpu.dot_dimension_numbers<[1], [0], [0], [1], [0, 0, 1, 1], [], []>} : vector<16x64xf32>, vector<64x32xf32>, vector<16x32xf32> -> vector<16x32xf32>
    %c0_99 = arith.constant 0 : index
    %c1_100 = arith.constant 1 : index
    %c0_101 = arith.constant 0 : index
    %c0_102 = arith.constant 0 : index
    %237 = vector.load %arg4[%c0_99, %c1_100, %c0_101, %c0_102] : memref<2x2x32x128xf32, #tpu.memory_space<vmem>>, vector<1x1x32x128xf32>
    %238 = vector.shape_cast %237 : vector<1x1x32x128xf32> to vector<32x128xf32>
    %cst_103 = arith.constant dense<0.000000e+00> : vector<16x128xf32>
    %239 = tpu.matmul %45, %238, %cst_103 {dimension_numbers = #tpu.dot_dimension_numbers<[1], [0], [0], [1], [0, 0, 1, 1], [], []>} : vector<16x32xf32>, vector<32x128xf32>, vector<16x128xf32> -> vector<16x128xf32>
    %240 = vector.extract_strided_slice %239 {offsets = [0, 0], sizes = [16, 64], strides = [1, 1]} : vector<16x128xf32> to vector<16x64xf32>
    %241 = vector.extract_strided_slice %239 {offsets = [0, 64], sizes = [16, 64], strides = [1, 1]} : vector<16x128xf32> to vector<16x64xf32>
    %c0_104 = arith.constant 0 : index
    %c1_105 = arith.constant 1 : index
    %c0_106 = arith.constant 0 : index
    %c0_107 = arith.constant 0 : index
    %242 = vector.load %arg5[%c0_104, %c1_105, %c0_106, %c0_107] : memref<2x2x4x64xf32, #tpu.memory_space<vmem>>, vector<1x1x4x64xf32>
    %243 = vector.shape_cast %242 : vector<1x1x4x64xf32> to vector<4x64xf32>
    %244 = vector.extract_strided_slice %243 {offsets = [3, 0], sizes = [1, 64], strides = [1, 1]} : vector<4x64xf32> to vector<1x64xf32>
    %245 = vector.broadcast %244 : vector<1x64xf32> to vector<16x64xf32>
    %246 = arith.mulf %240, %245 : vector<16x64xf32>
    %c3_i32_108 = arith.constant 3 : i32
    %247 = tpu.dynamic_rotate %240 by %c3_i32_108 dim 0 : vector<16x64xf32>, i32 -> vector<16x64xf32>
    %c3_i32_109 = arith.constant 3 : i32
    %248 = vector.broadcast %c3_i32_109 : i32 to vector<16x1xi32>
    %249 = arith.cmpi sge, %19, %248 : vector<16x1xi32>
    %cst_110 = arith.constant 0.000000e+00 : f32
    %250 = vector.shape_cast %249 : vector<16x1xi1> to vector<16x1xi1>
    %251 = vector.broadcast %250 : vector<16x1xi1> to vector<16x64xi1>
    %252 = vector.broadcast %cst_110 : f32 to vector<16x64xf32>
    %253 = arith.select %251, %247, %252 : vector<16x64xi1>, vector<16x64xf32>
    %254 = vector.extract_strided_slice %243 {offsets = [0, 0], sizes = [1, 64], strides = [1, 1]} : vector<4x64xf32> to vector<1x64xf32>
    %255 = vector.broadcast %254 : vector<1x64xf32> to vector<16x64xf32>
    %256 = arith.mulf %253, %255 : vector<16x64xf32>
    %257 = arith.addf %246, %256 : vector<16x64xf32>
    %c2_i32_111 = arith.constant 2 : i32
    %258 = tpu.dynamic_rotate %240 by %c2_i32_111 dim 0 : vector<16x64xf32>, i32 -> vector<16x64xf32>
    %c2_i32_112 = arith.constant 2 : i32
    %259 = vector.broadcast %c2_i32_112 : i32 to vector<16x1xi32>
    %260 = arith.cmpi sge, %19, %259 : vector<16x1xi32>
    %cst_113 = arith.constant 0.000000e+00 : f32
    %261 = vector.shape_cast %260 : vector<16x1xi1> to vector<16x1xi1>
    %262 = vector.broadcast %261 : vector<16x1xi1> to vector<16x64xi1>
    %263 = vector.broadcast %cst_113 : f32 to vector<16x64xf32>
    %264 = arith.select %262, %258, %263 : vector<16x64xi1>, vector<16x64xf32>
    %265 = vector.extract_strided_slice %243 {offsets = [1, 0], sizes = [1, 64], strides = [1, 1]} : vector<4x64xf32> to vector<1x64xf32>
    %266 = vector.broadcast %265 : vector<1x64xf32> to vector<16x64xf32>
    %267 = arith.mulf %264, %266 : vector<16x64xf32>
    %268 = arith.addf %257, %267 : vector<16x64xf32>
    %c1_i32_114 = arith.constant 1 : i32
    %269 = tpu.dynamic_rotate %240 by %c1_i32_114 dim 0 : vector<16x64xf32>, i32 -> vector<16x64xf32>
    %c1_i32_115 = arith.constant 1 : i32
    %270 = vector.broadcast %c1_i32_115 : i32 to vector<16x1xi32>
    %271 = arith.cmpi sge, %19, %270 : vector<16x1xi32>
    %cst_116 = arith.constant 0.000000e+00 : f32
    %272 = vector.shape_cast %271 : vector<16x1xi1> to vector<16x1xi1>
    %273 = vector.broadcast %272 : vector<16x1xi1> to vector<16x64xi1>
    %274 = vector.broadcast %cst_116 : f32 to vector<16x64xf32>
    %275 = arith.select %273, %269, %274 : vector<16x64xi1>, vector<16x64xf32>
    %276 = vector.extract_strided_slice %243 {offsets = [2, 0], sizes = [1, 64], strides = [1, 1]} : vector<4x64xf32> to vector<1x64xf32>
    %277 = vector.broadcast %276 : vector<1x64xf32> to vector<16x64xf32>
    %278 = arith.mulf %275, %277 : vector<16x64xf32>
    %279 = arith.addf %268, %278 : vector<16x64xf32>
    %c0_117 = arith.constant 0 : index
    %c1_118 = arith.constant 1 : index
    %c0_119 = arith.constant 0 : index
    %c0_120 = arith.constant 0 : index
    %280 = vector.load %arg6[%c0_117, %c1_118, %c0_119, %c0_120] : memref<2x2x1x64xf32, #tpu.memory_space<vmem>>, vector<1x1x1x64xf32>
    %281 = vector.shape_cast %280 : vector<1x1x1x64xf32> to vector<1x64xf32>
    %282 = vector.broadcast %281 : vector<1x64xf32> to vector<16x64xf32>
    %283 = arith.addf %279, %282 : vector<16x64xf32>
    %284 = arith.negf %283 : vector<16x64xf32>
    %285 = math.exp %284 : vector<16x64xf32>
    %cst_121 = arith.constant 1.000000e+00 : f32
    %286 = vector.broadcast %cst_121 : f32 to vector<16x64xf32>
    %287 = arith.addf %286, %285 : vector<16x64xf32>
    %288 = arith.divf %286, %287 : vector<16x64xf32>
    %289 = arith.mulf %283, %288 : vector<16x64xf32>
    %c0_122 = arith.constant 0 : index
    %c1_123 = arith.constant 1 : index
    %c0_124 = arith.constant 0 : index
    %c0_125 = arith.constant 0 : index
    %290 = vector.load %arg7[%c0_122, %c1_123, %c0_124, %c0_125] : memref<2x2x64x34xf32, #tpu.memory_space<vmem>>, vector<1x1x64x34xf32>
    %291 = vector.shape_cast %290 : vector<1x1x64x34xf32> to vector<64x34xf32>
    %cst_126 = arith.constant dense<0.000000e+00> : vector<16x34xf32>
    %292 = tpu.matmul %289, %291, %cst_126 {dimension_numbers = #tpu.dot_dimension_numbers<[1], [0], [0], [1], [0, 0, 1, 1], [], []>} : vector<16x64xf32>, vector<64x34xf32>, vector<16x34xf32> -> vector<16x34xf32>
    %293 = vector.extract_strided_slice %292 {offsets = [0, 0], sizes = [16, 16], strides = [1, 1]} : vector<16x34xf32> to vector<16x16xf32>
    %294 = vector.extract_strided_slice %292 {offsets = [0, 16], sizes = [16, 16], strides = [1, 1]} : vector<16x34xf32> to vector<16x16xf32>
    %295 = vector.extract_strided_slice %292 {offsets = [0, 32], sizes = [16, 2], strides = [1, 1]} : vector<16x34xf32> to vector<16x2xf32>
    %c0_127 = arith.constant 0 : index
    %c1_128 = arith.constant 1 : index
    %c0_129 = arith.constant 0 : index
    %c0_130 = arith.constant 0 : index
    %296 = vector.load %arg8[%c0_127, %c1_128, %c0_129, %c0_130] : memref<2x2x2x64xf32, #tpu.memory_space<vmem>>, vector<1x1x2x64xf32>
    %297 = vector.shape_cast %296 : vector<1x1x2x64xf32> to vector<2x64xf32>
    %cst_131 = arith.constant dense<0.000000e+00> : vector<16x64xf32>
    %298 = tpu.matmul %295, %297, %cst_131 {dimension_numbers = #tpu.dot_dimension_numbers<[1], [0], [0], [1], [0, 0, 1, 1], [], []>} : vector<16x2xf32>, vector<2x64xf32>, vector<16x64xf32> -> vector<16x64xf32>
    %c0_132 = arith.constant 0 : index
    %c1_133 = arith.constant 1 : index
    %c0_134 = arith.constant 0 : index
    %c0_135 = arith.constant 0 : index
    %299 = vector.load %arg9[%c0_132, %c1_133, %c0_134, %c0_135] : memref<2x2x1x64xf32, #tpu.memory_space<vmem>>, vector<1x1x1x64xf32>
    %300 = vector.shape_cast %299 : vector<1x1x1x64xf32> to vector<1x64xf32>
    %301 = vector.broadcast %300 : vector<1x64xf32> to vector<16x64xf32>
    %302 = arith.addf %298, %301 : vector<16x64xf32>
    %cst_136 = arith.constant 0.000000e+00 : f32
    %303 = vector.broadcast %cst_136 : f32 to vector<16x64xf32>
    %304 = arith.maximumf %302, %303 : vector<16x64xf32>
    %305 = vector.broadcast %cst_136 : f32 to vector<16x64xf32>
    %306 = arith.subf %302, %305 : vector<16x64xf32>
    %307 = arith.cmpf one, %306, %306 : vector<16x64xf32>
    %308 = vector.broadcast %cst_136 : f32 to vector<16x64xf32>
    %309 = arith.addf %302, %308 : vector<16x64xf32>
    %310 = math.absf %306 : vector<16x64xf32>
    %cst_137 = arith.constant 0.000000e+00 : f32
    %311 = vector.broadcast %cst_137 : f32 to vector<16x64xf32>
    %312 = arith.subf %311, %310 : vector<16x64xf32>
    %313 = math.exp %312 : vector<16x64xf32>
    %314 = math.log1p %313 : vector<16x64xf32>
    %315 = arith.addf %304, %314 : vector<16x64xf32>
    %316 = arith.select %307, %309, %315 : vector<16x64xi1>, vector<16x64xf32>
    %c0_138 = arith.constant 0 : index
    %c1_139 = arith.constant 1 : index
    %c0_140 = arith.constant 0 : index
    %c0_141 = arith.constant 0 : index
    %317 = vector.load %arg10[%c0_138, %c1_139, %c0_140, %c0_141] : memref<2x2x16x64xf32, #tpu.memory_space<vmem>>, vector<1x1x16x64xf32>
    %318 = vector.shape_cast %317 : vector<1x1x16x64xf32> to vector<16x64xf32>
    %319 = arith.mulf %316, %289 : vector<16x64xf32>
    %320 = vector.shape_cast %316 : vector<16x64xf32> to vector<16x1x64xf32>
    %321 = vector.shape_cast %318 : vector<16x64xf32> to vector<1x16x64xf32>
    %322 = vector.broadcast %320 : vector<16x1x64xf32> to vector<16x16x64xf32>
    %323 = vector.broadcast %321 : vector<1x16x64xf32> to vector<16x16x64xf32>
    %324 = arith.mulf %322, %323 : vector<16x16x64xf32>
    %325 = math.exp %324 : vector<16x16x64xf32>
    %326 = vector.shape_cast %293 : vector<16x16xf32> to vector<16x16x1xf32>
    %327 = vector.shape_cast %319 : vector<16x64xf32> to vector<16x1x64xf32>
    %328 = vector.broadcast %326 : vector<16x16x1xf32> to vector<16x16x64xf32>
    %329 = vector.broadcast %327 : vector<16x1x64xf32> to vector<16x16x64xf32>
    %330 = arith.mulf %328, %329 : vector<16x16x64xf32>
    %331 = vector.shape_cast %325 : vector<16x16x64xf32> to vector<2x8x16x64xf32>
    %332 = vector.shape_cast %330 : vector<16x16x64xf32> to vector<2x8x16x64xf32>
    %cst_142 = arith.constant 0.000000e+00 : f32
    %333 = vector.broadcast %cst_142 : f32 to vector<2x16x64xf32>
    %334 = vector.extract_strided_slice %331 {offsets = [0, 0, 0, 0], sizes = [2, 1, 16, 64], strides = [1, 1, 1, 1]} : vector<2x8x16x64xf32> to vector<2x1x16x64xf32>
    %335 = vector.shape_cast %334 : vector<2x1x16x64xf32> to vector<2x16x64xf32>
    %336 = arith.mulf %335, %333 : vector<2x16x64xf32>
    %337 = vector.extract_strided_slice %332 {offsets = [0, 0, 0, 0], sizes = [2, 1, 16, 64], strides = [1, 1, 1, 1]} : vector<2x8x16x64xf32> to vector<2x1x16x64xf32>
    %338 = vector.shape_cast %337 : vector<2x1x16x64xf32> to vector<2x16x64xf32>
    %339 = arith.addf %336, %338 : vector<2x16x64xf32>
    %c0_143 = arith.constant 0 : index
    %c0_144 = arith.constant 0 : index
    %c0_145 = arith.constant 0 : index
    %c0_146 = arith.constant 0 : index
    %340 = vector.load %arg17[%c0_143, %c0_144, %c0_145, %c0_146] : memref<2x8x16x64xf32, #tpu.memory_space<vmem>>, vector<2x1x16x64xf32>
    %341 = vector.shape_cast %340 : vector<2x1x16x64xf32> to vector<2x16x64xf32>
    %342 = vector.shape_cast %339 : vector<2x16x64xf32> to vector<2x1x16x64xf32>
    tpu.vector_store %arg17[%c0_143, %c0_144, %c0_145, %c0_146], %342 {strides = array<i32>} : memref<2x8x16x64xf32, #tpu.memory_space<vmem>>, vector<2x1x16x64xf32>,
    %343 = vector.extract_strided_slice %331 {offsets = [0, 1, 0, 0], sizes = [2, 1, 16, 64], strides = [1, 1, 1, 1]} : vector<2x8x16x64xf32> to vector<2x1x16x64xf32>
    %344 = vector.shape_cast %343 : vector<2x1x16x64xf32> to vector<2x16x64xf32>
    %345 = arith.mulf %344, %339 : vector<2x16x64xf32>
    %346 = vector.extract_strided_slice %332 {offsets = [0, 1, 0, 0], sizes = [2, 1, 16, 64], strides = [1, 1, 1, 1]} : vector<2x8x16x64xf32> to vector<2x1x16x64xf32>
    %347 = vector.shape_cast %346 : vector<2x1x16x64xf32> to vector<2x16x64xf32>
    %348 = arith.addf %345, %347 : vector<2x16x64xf32>
    %c0_147 = arith.constant 0 : index
    %c1_148 = arith.constant 1 : index
    %c0_149 = arith.constant 0 : index
    %c0_150 = arith.constant 0 : index
    %349 = vector.load %arg17[%c0_147, %c1_148, %c0_149, %c0_150] : memref<2x8x16x64xf32, #tpu.memory_space<vmem>>, vector<2x1x16x64xf32>
    %350 = vector.shape_cast %349 : vector<2x1x16x64xf32> to vector<2x16x64xf32>
    %351 = vector.shape_cast %348 : vector<2x16x64xf32> to vector<2x1x16x64xf32>
    tpu.vector_store %arg17[%c0_147, %c1_148, %c0_149, %c0_150], %351 {strides = array<i32>} : memref<2x8x16x64xf32, #tpu.memory_space<vmem>>, vector<2x1x16x64xf32>,
    %352 = vector.extract_strided_slice %331 {offsets = [0, 2, 0, 0], sizes = [2, 1, 16, 64], strides = [1, 1, 1, 1]} : vector<2x8x16x64xf32> to vector<2x1x16x64xf32>
    %353 = vector.shape_cast %352 : vector<2x1x16x64xf32> to vector<2x16x64xf32>
    %354 = arith.mulf %353, %348 : vector<2x16x64xf32>
    %355 = vector.extract_strided_slice %332 {offsets = [0, 2, 0, 0], sizes = [2, 1, 16, 64], strides = [1, 1, 1, 1]} : vector<2x8x16x64xf32> to vector<2x1x16x64xf32>
    %356 = vector.shape_cast %355 : vector<2x1x16x64xf32> to vector<2x16x64xf32>
    %357 = arith.addf %354, %356 : vector<2x16x64xf32>
    %c0_151 = arith.constant 0 : index
    %c2_152 = arith.constant 2 : index
    %c0_153 = arith.constant 0 : index
    %c0_154 = arith.constant 0 : index
    %358 = vector.load %arg17[%c0_151, %c2_152, %c0_153, %c0_154] : memref<2x8x16x64xf32, #tpu.memory_space<vmem>>, vector<2x1x16x64xf32>
    %359 = vector.shape_cast %358 : vector<2x1x16x64xf32> to vector<2x16x64xf32>
    %360 = vector.shape_cast %357 : vector<2x16x64xf32> to vector<2x1x16x64xf32>
    tpu.vector_store %arg17[%c0_151, %c2_152, %c0_153, %c0_154], %360 {strides = array<i32>} : memref<2x8x16x64xf32, #tpu.memory_space<vmem>>, vector<2x1x16x64xf32>,
    %361 = vector.extract_strided_slice %331 {offsets = [0, 3, 0, 0], sizes = [2, 1, 16, 64], strides = [1, 1, 1, 1]} : vector<2x8x16x64xf32> to vector<2x1x16x64xf32>
    %362 = vector.shape_cast %361 : vector<2x1x16x64xf32> to vector<2x16x64xf32>
    %363 = arith.mulf %362, %357 : vector<2x16x64xf32>
    %364 = vector.extract_strided_slice %332 {offsets = [0, 3, 0, 0], sizes = [2, 1, 16, 64], strides = [1, 1, 1, 1]} : vector<2x8x16x64xf32> to vector<2x1x16x64xf32>
    %365 = vector.shape_cast %364 : vector<2x1x16x64xf32> to vector<2x16x64xf32>
    %366 = arith.addf %363, %365 : vector<2x16x64xf32>
    %c0_155 = arith.constant 0 : index
    %c3_156 = arith.constant 3 : index
    %c0_157 = arith.constant 0 : index
    %c0_158 = arith.constant 0 : index
    %367 = vector.load %arg17[%c0_155, %c3_156, %c0_157, %c0_158] : memref<2x8x16x64xf32, #tpu.memory_space<vmem>>, vector<2x1x16x64xf32>
    %368 = vector.shape_cast %367 : vector<2x1x16x64xf32> to vector<2x16x64xf32>
    %369 = vector.shape_cast %366 : vector<2x16x64xf32> to vector<2x1x16x64xf32>
    tpu.vector_store %arg17[%c0_155, %c3_156, %c0_157, %c0_158], %369 {strides = array<i32>} : memref<2x8x16x64xf32, #tpu.memory_space<vmem>>, vector<2x1x16x64xf32>,
    %370 = vector.extract_strided_slice %331 {offsets = [0, 4, 0, 0], sizes = [2, 1, 16, 64], strides = [1, 1, 1, 1]} : vector<2x8x16x64xf32> to vector<2x1x16x64xf32>
    %371 = vector.shape_cast %370 : vector<2x1x16x64xf32> to vector<2x16x64xf32>
    %372 = arith.mulf %371, %366 : vector<2x16x64xf32>
    %373 = vector.extract_strided_slice %332 {offsets = [0, 4, 0, 0], sizes = [2, 1, 16, 64], strides = [1, 1, 1, 1]} : vector<2x8x16x64xf32> to vector<2x1x16x64xf32>
    %374 = vector.shape_cast %373 : vector<2x1x16x64xf32> to vector<2x16x64xf32>
    %375 = arith.addf %372, %374 : vector<2x16x64xf32>
    %c0_159 = arith.constant 0 : index
    %c4_160 = arith.constant 4 : index
    %c0_161 = arith.constant 0 : index
    %c0_162 = arith.constant 0 : index
    %376 = vector.load %arg17[%c0_159, %c4_160, %c0_161, %c0_162] : memref<2x8x16x64xf32, #tpu.memory_space<vmem>>, vector<2x1x16x64xf32>
    %377 = vector.shape_cast %376 : vector<2x1x16x64xf32> to vector<2x16x64xf32>
    %378 = vector.shape_cast %375 : vector<2x16x64xf32> to vector<2x1x16x64xf32>
    tpu.vector_store %arg17[%c0_159, %c4_160, %c0_161, %c0_162], %378 {strides = array<i32>} : memref<2x8x16x64xf32, #tpu.memory_space<vmem>>, vector<2x1x16x64xf32>,
    %379 = vector.extract_strided_slice %331 {offsets = [0, 5, 0, 0], sizes = [2, 1, 16, 64], strides = [1, 1, 1, 1]} : vector<2x8x16x64xf32> to vector<2x1x16x64xf32>
    %380 = vector.shape_cast %379 : vector<2x1x16x64xf32> to vector<2x16x64xf32>
    %381 = arith.mulf %380, %375 : vector<2x16x64xf32>
    %382 = vector.extract_strided_slice %332 {offsets = [0, 5, 0, 0], sizes = [2, 1, 16, 64], strides = [1, 1, 1, 1]} : vector<2x8x16x64xf32> to vector<2x1x16x64xf32>
    %383 = vector.shape_cast %382 : vector<2x1x16x64xf32> to vector<2x16x64xf32>
    %384 = arith.addf %381, %383 : vector<2x16x64xf32>
    %c0_163 = arith.constant 0 : index
    %c5_164 = arith.constant 5 : index
    %c0_165 = arith.constant 0 : index
    %c0_166 = arith.constant 0 : index
    %385 = vector.load %arg17[%c0_163, %c5_164, %c0_165, %c0_166] : memref<2x8x16x64xf32, #tpu.memory_space<vmem>>, vector<2x1x16x64xf32>
    %386 = vector.shape_cast %385 : vector<2x1x16x64xf32> to vector<2x16x64xf32>
    %387 = vector.shape_cast %384 : vector<2x16x64xf32> to vector<2x1x16x64xf32>
    tpu.vector_store %arg17[%c0_163, %c5_164, %c0_165, %c0_166], %387 {strides = array<i32>} : memref<2x8x16x64xf32, #tpu.memory_space<vmem>>, vector<2x1x16x64xf32>,
    %388 = vector.extract_strided_slice %331 {offsets = [0, 6, 0, 0], sizes = [2, 1, 16, 64], strides = [1, 1, 1, 1]} : vector<2x8x16x64xf32> to vector<2x1x16x64xf32>
    %389 = vector.shape_cast %388 : vector<2x1x16x64xf32> to vector<2x16x64xf32>
    %390 = arith.mulf %389, %384 : vector<2x16x64xf32>
    %391 = vector.extract_strided_slice %332 {offsets = [0, 6, 0, 0], sizes = [2, 1, 16, 64], strides = [1, 1, 1, 1]} : vector<2x8x16x64xf32> to vector<2x1x16x64xf32>
    %392 = vector.shape_cast %391 : vector<2x1x16x64xf32> to vector<2x16x64xf32>
    %393 = arith.addf %390, %392 : vector<2x16x64xf32>
    %c0_167 = arith.constant 0 : index
    %c6_168 = arith.constant 6 : index
    %c0_169 = arith.constant 0 : index
    %c0_170 = arith.constant 0 : index
    %394 = vector.load %arg17[%c0_167, %c6_168, %c0_169, %c0_170] : memref<2x8x16x64xf32, #tpu.memory_space<vmem>>, vector<2x1x16x64xf32>
    %395 = vector.shape_cast %394 : vector<2x1x16x64xf32> to vector<2x16x64xf32>
    %396 = vector.shape_cast %393 : vector<2x16x64xf32> to vector<2x1x16x64xf32>
    tpu.vector_store %arg17[%c0_167, %c6_168, %c0_169, %c0_170], %396 {strides = array<i32>} : memref<2x8x16x64xf32, #tpu.memory_space<vmem>>, vector<2x1x16x64xf32>,
    %397 = vector.extract_strided_slice %331 {offsets = [0, 7, 0, 0], sizes = [2, 1, 16, 64], strides = [1, 1, 1, 1]} : vector<2x8x16x64xf32> to vector<2x1x16x64xf32>
    %398 = vector.shape_cast %397 : vector<2x1x16x64xf32> to vector<2x16x64xf32>
    %399 = arith.mulf %398, %393 : vector<2x16x64xf32>
    %400 = vector.extract_strided_slice %332 {offsets = [0, 7, 0, 0], sizes = [2, 1, 16, 64], strides = [1, 1, 1, 1]} : vector<2x8x16x64xf32> to vector<2x1x16x64xf32>
    %401 = vector.shape_cast %400 : vector<2x1x16x64xf32> to vector<2x16x64xf32>
    %402 = arith.addf %399, %401 : vector<2x16x64xf32>
    %c0_171 = arith.constant 0 : index
    %c7_172 = arith.constant 7 : index
    %c0_173 = arith.constant 0 : index
    %c0_174 = arith.constant 0 : index
    %403 = vector.load %arg17[%c0_171, %c7_172, %c0_173, %c0_174] : memref<2x8x16x64xf32, #tpu.memory_space<vmem>>, vector<2x1x16x64xf32>
    %404 = vector.shape_cast %403 : vector<2x1x16x64xf32> to vector<2x16x64xf32>
    %405 = vector.shape_cast %402 : vector<2x16x64xf32> to vector<2x1x16x64xf32>
    tpu.vector_store %arg17[%c0_171, %c7_172, %c0_173, %c0_174], %405 {strides = array<i32>} : memref<2x8x16x64xf32, #tpu.memory_space<vmem>>, vector<2x1x16x64xf32>,
    %406 = vector.shape_cast %294 : vector<16x16xf32> to vector<2x8x16xf32>
    %c0_175 = arith.constant 0 : index
    %c0_176 = arith.constant 0 : index
    %c0_177 = arith.constant 0 : index
    %c0_178 = arith.constant 0 : index
    %407 = vector.load %arg17[%c0_175, %c0_176, %c0_177, %c0_178] : memref<2x8x16x64xf32, #tpu.memory_space<vmem>>, vector<2x8x16x64xf32>
    %408 = vector.shape_cast %406 : vector<2x8x16xf32> to vector<2x8x16x1xf32>
    %409 = vector.broadcast %408 : vector<2x8x16x1xf32> to vector<2x8x16x64xf32>
    %410 = arith.mulf %407, %409 : vector<2x8x16x64xf32>
    %cst_179 = arith.constant dense<0.000000e+00> : vector<2x8x64xf32>
    %411 = vector.multi_reduction <add>, %410, %cst_179 [2] : vector<2x8x16x64xf32> to vector<2x8x64xf32>
    %412 = vector.shape_cast %411 : vector<2x8x64xf32> to vector<16x64xf32>
    %c0_180 = arith.constant 0 : index
    %c1_181 = arith.constant 1 : index
    %c0_182 = arith.constant 0 : index
    %c0_183 = arith.constant 0 : index
    %413 = vector.load %arg11[%c0_180, %c1_181, %c0_182, %c0_183] : memref<2x2x1x64xf32, #tpu.memory_space<vmem>>, vector<1x1x1x64xf32>
    %414 = vector.shape_cast %413 : vector<1x1x1x64xf32> to vector<1x64xf32>
    %415 = vector.broadcast %414 : vector<1x64xf32> to vector<16x64xf32>
    %416 = arith.mulf %289, %415 : vector<16x64xf32>
    %417 = arith.addf %412, %416 : vector<16x64xf32>
    %418 = arith.negf %241 : vector<16x64xf32>
    %419 = math.exp %418 : vector<16x64xf32>
    %cst_184 = arith.constant 1.000000e+00 : f32
    %420 = vector.broadcast %cst_184 : f32 to vector<16x64xf32>
    %421 = arith.addf %420, %419 : vector<16x64xf32>
    %422 = arith.divf %420, %421 : vector<16x64xf32>
    %423 = arith.mulf %241, %422 : vector<16x64xf32>
    %424 = arith.mulf %417, %423 : vector<16x64xf32>
    %c0_185 = arith.constant 0 : index
    %c1_186 = arith.constant 1 : index
    %c0_187 = arith.constant 0 : index
    %c0_188 = arith.constant 0 : index
    %425 = vector.load %arg12[%c0_185, %c1_186, %c0_187, %c0_188] : memref<2x2x64x32xf32, #tpu.memory_space<vmem>>, vector<1x1x64x32xf32>
    %426 = vector.shape_cast %425 : vector<1x1x64x32xf32> to vector<64x32xf32>
    %cst_189 = arith.constant dense<0.000000e+00> : vector<16x32xf32>
    %427 = tpu.matmul %424, %426, %cst_189 {dimension_numbers = #tpu.dot_dimension_numbers<[1], [0], [0], [1], [0, 0, 1, 1], [], []>} : vector<16x64xf32>, vector<64x32xf32>, vector<16x32xf32> -> vector<16x32xf32>
    %428 = arith.addf %236, %427 : vector<16x32xf32>
    %429 = arith.addf %428, %21 : vector<16x32xf32>
    %430 = arith.addf %429, %1 : vector<16x32xf32>
    %c1_190 = arith.constant 1 : index
    %c0_191 = arith.constant 0 : index
    %c0_192 = arith.constant 0 : index
    %431 = vector.load %arg2[%c1_190, %c0_191, %c0_192] : memref<2x1x32xf32, #tpu.memory_space<vmem>>, vector<1x1x32xf32>
    %432 = vector.shape_cast %431 : vector<1x1x32xf32> to vector<1x32xf32>
    %c1_193 = arith.constant 1 : index
    %c0_194 = arith.constant 0 : index
    %c0_195 = arith.constant 0 : index
    %433 = vector.load %arg3[%c1_193, %c0_194, %c0_195] : memref<2x1x32xf32, #tpu.memory_space<vmem>>, vector<1x1x32xf32>
    %434 = vector.shape_cast %433 : vector<1x1x32xf32> to vector<1x32xf32>
    %cst_196 = arith.constant dense<0.000000e+00> : vector<16xf32>
    %435 = vector.multi_reduction <add>, %430, %cst_196 [1] : vector<16x32xf32> to vector<16xf32>
    %436 = vector.shape_cast %435 : vector<16xf32> to vector<16x1xf32>
    %cst_197 = arith.constant 3.200000e+01 : f32
    %437 = vector.broadcast %cst_197 : f32 to vector<16x1xf32>
    %438 = arith.divf %436, %437 : vector<16x1xf32>
    %439 = vector.broadcast %438 : vector<16x1xf32> to vector<16x32xf32>
    %440 = arith.subf %430, %439 : vector<16x32xf32>
    %441 = arith.mulf %440, %440 : vector<16x32xf32>
    %cst_198 = arith.constant dense<0.000000e+00> : vector<16xf32>
    %442 = vector.multi_reduction <add>, %441, %cst_198 [1] : vector<16x32xf32> to vector<16xf32>
    %443 = vector.shape_cast %442 : vector<16xf32> to vector<16x1xf32>
    %cst_199 = arith.constant 3.200000e+01 : f32
    %444 = vector.broadcast %cst_199 : f32 to vector<16x1xf32>
    %445 = arith.divf %443, %444 : vector<16x1xf32>
    %cst_200 = arith.constant 9.99999974E-6 : f32
    %446 = vector.broadcast %cst_200 : f32 to vector<16x1xf32>
    %447 = arith.addf %445, %446 : vector<16x1xf32>
    %448 = math.rsqrt %447 : vector<16x1xf32>
    %449 = vector.broadcast %448 : vector<16x1xf32> to vector<16x32xf32>
    %450 = arith.mulf %440, %449 : vector<16x32xf32>
    %451 = vector.broadcast %432 : vector<1x32xf32> to vector<16x32xf32>
    %452 = arith.mulf %450, %451 : vector<16x32xf32>
    %453 = vector.broadcast %434 : vector<1x32xf32> to vector<16x32xf32>
    %454 = arith.addf %452, %453 : vector<16x32xf32>
    %c1_201 = arith.constant 1 : index
    %c0_202 = arith.constant 0 : index
    %c0_203 = arith.constant 0 : index
    %c0_204 = arith.constant 0 : index
    %455 = vector.load %arg4[%c1_201, %c0_202, %c0_203, %c0_204] : memref<2x2x32x128xf32, #tpu.memory_space<vmem>>, vector<1x1x32x128xf32>
    %456 = vector.shape_cast %455 : vector<1x1x32x128xf32> to vector<32x128xf32>
    %cst_205 = arith.constant dense<0.000000e+00> : vector<16x128xf32>
    %457 = tpu.matmul %454, %456, %cst_205 {dimension_numbers = #tpu.dot_dimension_numbers<[1], [0], [0], [1], [0, 0, 1, 1], [], []>} : vector<16x32xf32>, vector<32x128xf32>, vector<16x128xf32> -> vector<16x128xf32>
    %458 = vector.extract_strided_slice %457 {offsets = [0, 0], sizes = [16, 64], strides = [1, 1]} : vector<16x128xf32> to vector<16x64xf32>
    %459 = vector.extract_strided_slice %457 {offsets = [0, 64], sizes = [16, 64], strides = [1, 1]} : vector<16x128xf32> to vector<16x64xf32>
    %c1_206 = arith.constant 1 : index
    %c0_207 = arith.constant 0 : index
    %c0_208 = arith.constant 0 : index
    %c0_209 = arith.constant 0 : index
    %460 = vector.load %arg5[%c1_206, %c0_207, %c0_208, %c0_209] : memref<2x2x4x64xf32, #tpu.memory_space<vmem>>, vector<1x1x4x64xf32>
    %461 = vector.shape_cast %460 : vector<1x1x4x64xf32> to vector<4x64xf32>
    %462 = vector.extract_strided_slice %461 {offsets = [3, 0], sizes = [1, 64], strides = [1, 1]} : vector<4x64xf32> to vector<1x64xf32>
    %463 = vector.broadcast %462 : vector<1x64xf32> to vector<16x64xf32>
    %464 = arith.mulf %458, %463 : vector<16x64xf32>
    %c3_i32_210 = arith.constant 3 : i32
    %465 = tpu.dynamic_rotate %458 by %c3_i32_210 dim 0 : vector<16x64xf32>, i32 -> vector<16x64xf32>
    %c3_i32_211 = arith.constant 3 : i32
    %466 = vector.broadcast %c3_i32_211 : i32 to vector<16x1xi32>
    %467 = arith.cmpi sge, %19, %466 : vector<16x1xi32>
    %cst_212 = arith.constant 0.000000e+00 : f32
    %468 = vector.shape_cast %467 : vector<16x1xi1> to vector<16x1xi1>
    %469 = vector.broadcast %468 : vector<16x1xi1> to vector<16x64xi1>
    %470 = vector.broadcast %cst_212 : f32 to vector<16x64xf32>
    %471 = arith.select %469, %465, %470 : vector<16x64xi1>, vector<16x64xf32>
    %472 = vector.extract_strided_slice %461 {offsets = [0, 0], sizes = [1, 64], strides = [1, 1]} : vector<4x64xf32> to vector<1x64xf32>
    %473 = vector.broadcast %472 : vector<1x64xf32> to vector<16x64xf32>
    %474 = arith.mulf %471, %473 : vector<16x64xf32>
    %475 = arith.addf %464, %474 : vector<16x64xf32>
    %c2_i32_213 = arith.constant 2 : i32
    %476 = tpu.dynamic_rotate %458 by %c2_i32_213 dim 0 : vector<16x64xf32>, i32 -> vector<16x64xf32>
    %c2_i32_214 = arith.constant 2 : i32
    %477 = vector.broadcast %c2_i32_214 : i32 to vector<16x1xi32>
    %478 = arith.cmpi sge, %19, %477 : vector<16x1xi32>
    %cst_215 = arith.constant 0.000000e+00 : f32
    %479 = vector.shape_cast %478 : vector<16x1xi1> to vector<16x1xi1>
    %480 = vector.broadcast %479 : vector<16x1xi1> to vector<16x64xi1>
    %481 = vector.broadcast %cst_215 : f32 to vector<16x64xf32>
    %482 = arith.select %480, %476, %481 : vector<16x64xi1>, vector<16x64xf32>
    %483 = vector.extract_strided_slice %461 {offsets = [1, 0], sizes = [1, 64], strides = [1, 1]} : vector<4x64xf32> to vector<1x64xf32>
    %484 = vector.broadcast %483 : vector<1x64xf32> to vector<16x64xf32>
    %485 = arith.mulf %482, %484 : vector<16x64xf32>
    %486 = arith.addf %475, %485 : vector<16x64xf32>
    %c1_i32_216 = arith.constant 1 : i32
    %487 = tpu.dynamic_rotate %458 by %c1_i32_216 dim 0 : vector<16x64xf32>, i32 -> vector<16x64xf32>
    %c1_i32_217 = arith.constant 1 : i32
    %488 = vector.broadcast %c1_i32_217 : i32 to vector<16x1xi32>
    %489 = arith.cmpi sge, %19, %488 : vector<16x1xi32>
    %cst_218 = arith.constant 0.000000e+00 : f32
    %490 = vector.shape_cast %489 : vector<16x1xi1> to vector<16x1xi1>
    %491 = vector.broadcast %490 : vector<16x1xi1> to vector<16x64xi1>
    %492 = vector.broadcast %cst_218 : f32 to vector<16x64xf32>
    %493 = arith.select %491, %487, %492 : vector<16x64xi1>, vector<16x64xf32>
    %494 = vector.extract_strided_slice %461 {offsets = [2, 0], sizes = [1, 64], strides = [1, 1]} : vector<4x64xf32> to vector<1x64xf32>
    %495 = vector.broadcast %494 : vector<1x64xf32> to vector<16x64xf32>
    %496 = arith.mulf %493, %495 : vector<16x64xf32>
    %497 = arith.addf %486, %496 : vector<16x64xf32>
    %c1_219 = arith.constant 1 : index
    %c0_220 = arith.constant 0 : index
    %c0_221 = arith.constant 0 : index
    %c0_222 = arith.constant 0 : index
    %498 = vector.load %arg6[%c1_219, %c0_220, %c0_221, %c0_222] : memref<2x2x1x64xf32, #tpu.memory_space<vmem>>, vector<1x1x1x64xf32>
    %499 = vector.shape_cast %498 : vector<1x1x1x64xf32> to vector<1x64xf32>
    %500 = vector.broadcast %499 : vector<1x64xf32> to vector<16x64xf32>
    %501 = arith.addf %497, %500 : vector<16x64xf32>
    %502 = arith.negf %501 : vector<16x64xf32>
    %503 = math.exp %502 : vector<16x64xf32>
    %cst_223 = arith.constant 1.000000e+00 : f32
    %504 = vector.broadcast %cst_223 : f32 to vector<16x64xf32>
    %505 = arith.addf %504, %503 : vector<16x64xf32>
    %506 = arith.divf %504, %505 : vector<16x64xf32>
    %507 = arith.mulf %501, %506 : vector<16x64xf32>
    %c1_224 = arith.constant 1 : index
    %c0_225 = arith.constant 0 : index
    %c0_226 = arith.constant 0 : index
    %c0_227 = arith.constant 0 : index
    %508 = vector.load %arg7[%c1_224, %c0_225, %c0_226, %c0_227] : memref<2x2x64x34xf32, #tpu.memory_space<vmem>>, vector<1x1x64x34xf32>
    %509 = vector.shape_cast %508 : vector<1x1x64x34xf32> to vector<64x34xf32>
    %cst_228 = arith.constant dense<0.000000e+00> : vector<16x34xf32>
    %510 = tpu.matmul %507, %509, %cst_228 {dimension_numbers = #tpu.dot_dimension_numbers<[1], [0], [0], [1], [0, 0, 1, 1], [], []>} : vector<16x64xf32>, vector<64x34xf32>, vector<16x34xf32> -> vector<16x34xf32>
    %511 = vector.extract_strided_slice %510 {offsets = [0, 0], sizes = [16, 16], strides = [1, 1]} : vector<16x34xf32> to vector<16x16xf32>
    %512 = vector.extract_strided_slice %510 {offsets = [0, 16], sizes = [16, 16], strides = [1, 1]} : vector<16x34xf32> to vector<16x16xf32>
    %513 = vector.extract_strided_slice %510 {offsets = [0, 32], sizes = [16, 2], strides = [1, 1]} : vector<16x34xf32> to vector<16x2xf32>
    %c1_229 = arith.constant 1 : index
    %c0_230 = arith.constant 0 : index
    %c0_231 = arith.constant 0 : index
    %c0_232 = arith.constant 0 : index
    %514 = vector.load %arg8[%c1_229, %c0_230, %c0_231, %c0_232] : memref<2x2x2x64xf32, #tpu.memory_space<vmem>>, vector<1x1x2x64xf32>
    %515 = vector.shape_cast %514 : vector<1x1x2x64xf32> to vector<2x64xf32>
    %cst_233 = arith.constant dense<0.000000e+00> : vector<16x64xf32>
    %516 = tpu.matmul %513, %515, %cst_233 {dimension_numbers = #tpu.dot_dimension_numbers<[1], [0], [0], [1], [0, 0, 1, 1], [], []>} : vector<16x2xf32>, vector<2x64xf32>, vector<16x64xf32> -> vector<16x64xf32>
    %c1_234 = arith.constant 1 : index
    %c0_235 = arith.constant 0 : index
    %c0_236 = arith.constant 0 : index
    %c0_237 = arith.constant 0 : index
    %517 = vector.load %arg9[%c1_234, %c0_235, %c0_236, %c0_237] : memref<2x2x1x64xf32, #tpu.memory_space<vmem>>, vector<1x1x1x64xf32>
    %518 = vector.shape_cast %517 : vector<1x1x1x64xf32> to vector<1x64xf32>
    %519 = vector.broadcast %518 : vector<1x64xf32> to vector<16x64xf32>
    %520 = arith.addf %516, %519 : vector<16x64xf32>
    %cst_238 = arith.constant 0.000000e+00 : f32
    %521 = vector.broadcast %cst_238 : f32 to vector<16x64xf32>
    %522 = arith.maximumf %520, %521 : vector<16x64xf32>
    %523 = vector.broadcast %cst_238 : f32 to vector<16x64xf32>
    %524 = arith.subf %520, %523 : vector<16x64xf32>
    %525 = arith.cmpf one, %524, %524 : vector<16x64xf32>
    %526 = vector.broadcast %cst_238 : f32 to vector<16x64xf32>
    %527 = arith.addf %520, %526 : vector<16x64xf32>
    %528 = math.absf %524 : vector<16x64xf32>
    %cst_239 = arith.constant 0.000000e+00 : f32
    %529 = vector.broadcast %cst_239 : f32 to vector<16x64xf32>
    %530 = arith.subf %529, %528 : vector<16x64xf32>
    %531 = math.exp %530 : vector<16x64xf32>
    %532 = math.log1p %531 : vector<16x64xf32>
    %533 = arith.addf %522, %532 : vector<16x64xf32>
    %534 = arith.select %525, %527, %533 : vector<16x64xi1>, vector<16x64xf32>
    %c1_240 = arith.constant 1 : index
    %c0_241 = arith.constant 0 : index
    %c0_242 = arith.constant 0 : index
    %c0_243 = arith.constant 0 : index
    %535 = vector.load %arg10[%c1_240, %c0_241, %c0_242, %c0_243] : memref<2x2x16x64xf32, #tpu.memory_space<vmem>>, vector<1x1x16x64xf32>
    %536 = vector.shape_cast %535 : vector<1x1x16x64xf32> to vector<16x64xf32>
    %537 = arith.mulf %534, %507 : vector<16x64xf32>
    %538 = vector.shape_cast %534 : vector<16x64xf32> to vector<16x1x64xf32>
    %539 = vector.shape_cast %536 : vector<16x64xf32> to vector<1x16x64xf32>
    %540 = vector.broadcast %538 : vector<16x1x64xf32> to vector<16x16x64xf32>
    %541 = vector.broadcast %539 : vector<1x16x64xf32> to vector<16x16x64xf32>
    %542 = arith.mulf %540, %541 : vector<16x16x64xf32>
    %543 = math.exp %542 : vector<16x16x64xf32>
    %544 = vector.shape_cast %511 : vector<16x16xf32> to vector<16x16x1xf32>
    %545 = vector.shape_cast %537 : vector<16x64xf32> to vector<16x1x64xf32>
    %546 = vector.broadcast %544 : vector<16x16x1xf32> to vector<16x16x64xf32>
    %547 = vector.broadcast %545 : vector<16x1x64xf32> to vector<16x16x64xf32>
    %548 = arith.mulf %546, %547 : vector<16x16x64xf32>
    %549 = vector.shape_cast %543 : vector<16x16x64xf32> to vector<2x8x16x64xf32>
    %550 = vector.shape_cast %548 : vector<16x16x64xf32> to vector<2x8x16x64xf32>
    %cst_244 = arith.constant 0.000000e+00 : f32
    %551 = vector.broadcast %cst_244 : f32 to vector<2x16x64xf32>
    %552 = vector.extract_strided_slice %549 {offsets = [0, 0, 0, 0], sizes = [2, 1, 16, 64], strides = [1, 1, 1, 1]} : vector<2x8x16x64xf32> to vector<2x1x16x64xf32>
    %553 = vector.shape_cast %552 : vector<2x1x16x64xf32> to vector<2x16x64xf32>
    %554 = arith.mulf %553, %551 : vector<2x16x64xf32>
    %555 = vector.extract_strided_slice %550 {offsets = [0, 0, 0, 0], sizes = [2, 1, 16, 64], strides = [1, 1, 1, 1]} : vector<2x8x16x64xf32> to vector<2x1x16x64xf32>
    %556 = vector.shape_cast %555 : vector<2x1x16x64xf32> to vector<2x16x64xf32>
    %557 = arith.addf %554, %556 : vector<2x16x64xf32>
    %c0_245 = arith.constant 0 : index
    %c0_246 = arith.constant 0 : index
    %c0_247 = arith.constant 0 : index
    %c0_248 = arith.constant 0 : index
    %558 = vector.load %arg17[%c0_245, %c0_246, %c0_247, %c0_248] : memref<2x8x16x64xf32, #tpu.memory_space<vmem>>, vector<2x1x16x64xf32>
    %559 = vector.shape_cast %558 : vector<2x1x16x64xf32> to vector<2x16x64xf32>
    %560 = vector.shape_cast %557 : vector<2x16x64xf32> to vector<2x1x16x64xf32>
    tpu.vector_store %arg17[%c0_245, %c0_246, %c0_247, %c0_248], %560 {strides = array<i32>} : memref<2x8x16x64xf32, #tpu.memory_space<vmem>>, vector<2x1x16x64xf32>,
    %561 = vector.extract_strided_slice %549 {offsets = [0, 1, 0, 0], sizes = [2, 1, 16, 64], strides = [1, 1, 1, 1]} : vector<2x8x16x64xf32> to vector<2x1x16x64xf32>
    %562 = vector.shape_cast %561 : vector<2x1x16x64xf32> to vector<2x16x64xf32>
    %563 = arith.mulf %562, %557 : vector<2x16x64xf32>
    %564 = vector.extract_strided_slice %550 {offsets = [0, 1, 0, 0], sizes = [2, 1, 16, 64], strides = [1, 1, 1, 1]} : vector<2x8x16x64xf32> to vector<2x1x16x64xf32>
    %565 = vector.shape_cast %564 : vector<2x1x16x64xf32> to vector<2x16x64xf32>
    %566 = arith.addf %563, %565 : vector<2x16x64xf32>
    %c0_249 = arith.constant 0 : index
    %c1_250 = arith.constant 1 : index
    %c0_251 = arith.constant 0 : index
    %c0_252 = arith.constant 0 : index
    %567 = vector.load %arg17[%c0_249, %c1_250, %c0_251, %c0_252] : memref<2x8x16x64xf32, #tpu.memory_space<vmem>>, vector<2x1x16x64xf32>
    %568 = vector.shape_cast %567 : vector<2x1x16x64xf32> to vector<2x16x64xf32>
    %569 = vector.shape_cast %566 : vector<2x16x64xf32> to vector<2x1x16x64xf32>
    tpu.vector_store %arg17[%c0_249, %c1_250, %c0_251, %c0_252], %569 {strides = array<i32>} : memref<2x8x16x64xf32, #tpu.memory_space<vmem>>, vector<2x1x16x64xf32>,
    %570 = vector.extract_strided_slice %549 {offsets = [0, 2, 0, 0], sizes = [2, 1, 16, 64], strides = [1, 1, 1, 1]} : vector<2x8x16x64xf32> to vector<2x1x16x64xf32>
    %571 = vector.shape_cast %570 : vector<2x1x16x64xf32> to vector<2x16x64xf32>
    %572 = arith.mulf %571, %566 : vector<2x16x64xf32>
    %573 = vector.extract_strided_slice %550 {offsets = [0, 2, 0, 0], sizes = [2, 1, 16, 64], strides = [1, 1, 1, 1]} : vector<2x8x16x64xf32> to vector<2x1x16x64xf32>
    %574 = vector.shape_cast %573 : vector<2x1x16x64xf32> to vector<2x16x64xf32>
    %575 = arith.addf %572, %574 : vector<2x16x64xf32>
    %c0_253 = arith.constant 0 : index
    %c2_254 = arith.constant 2 : index
    %c0_255 = arith.constant 0 : index
    %c0_256 = arith.constant 0 : index
    %576 = vector.load %arg17[%c0_253, %c2_254, %c0_255, %c0_256] : memref<2x8x16x64xf32, #tpu.memory_space<vmem>>, vector<2x1x16x64xf32>
    %577 = vector.shape_cast %576 : vector<2x1x16x64xf32> to vector<2x16x64xf32>
    %578 = vector.shape_cast %575 : vector<2x16x64xf32> to vector<2x1x16x64xf32>
    tpu.vector_store %arg17[%c0_253, %c2_254, %c0_255, %c0_256], %578 {strides = array<i32>} : memref<2x8x16x64xf32, #tpu.memory_space<vmem>>, vector<2x1x16x64xf32>,
    %579 = vector.extract_strided_slice %549 {offsets = [0, 3, 0, 0], sizes = [2, 1, 16, 64], strides = [1, 1, 1, 1]} : vector<2x8x16x64xf32> to vector<2x1x16x64xf32>
    %580 = vector.shape_cast %579 : vector<2x1x16x64xf32> to vector<2x16x64xf32>
    %581 = arith.mulf %580, %575 : vector<2x16x64xf32>
    %582 = vector.extract_strided_slice %550 {offsets = [0, 3, 0, 0], sizes = [2, 1, 16, 64], strides = [1, 1, 1, 1]} : vector<2x8x16x64xf32> to vector<2x1x16x64xf32>
    %583 = vector.shape_cast %582 : vector<2x1x16x64xf32> to vector<2x16x64xf32>
    %584 = arith.addf %581, %583 : vector<2x16x64xf32>
    %c0_257 = arith.constant 0 : index
    %c3_258 = arith.constant 3 : index
    %c0_259 = arith.constant 0 : index
    %c0_260 = arith.constant 0 : index
    %585 = vector.load %arg17[%c0_257, %c3_258, %c0_259, %c0_260] : memref<2x8x16x64xf32, #tpu.memory_space<vmem>>, vector<2x1x16x64xf32>
    %586 = vector.shape_cast %585 : vector<2x1x16x64xf32> to vector<2x16x64xf32>
    %587 = vector.shape_cast %584 : vector<2x16x64xf32> to vector<2x1x16x64xf32>
    tpu.vector_store %arg17[%c0_257, %c3_258, %c0_259, %c0_260], %587 {strides = array<i32>} : memref<2x8x16x64xf32, #tpu.memory_space<vmem>>, vector<2x1x16x64xf32>,
    %588 = vector.extract_strided_slice %549 {offsets = [0, 4, 0, 0], sizes = [2, 1, 16, 64], strides = [1, 1, 1, 1]} : vector<2x8x16x64xf32> to vector<2x1x16x64xf32>
    %589 = vector.shape_cast %588 : vector<2x1x16x64xf32> to vector<2x16x64xf32>
    %590 = arith.mulf %589, %584 : vector<2x16x64xf32>
    %591 = vector.extract_strided_slice %550 {offsets = [0, 4, 0, 0], sizes = [2, 1, 16, 64], strides = [1, 1, 1, 1]} : vector<2x8x16x64xf32> to vector<2x1x16x64xf32>
    %592 = vector.shape_cast %591 : vector<2x1x16x64xf32> to vector<2x16x64xf32>
    %593 = arith.addf %590, %592 : vector<2x16x64xf32>
    %c0_261 = arith.constant 0 : index
    %c4_262 = arith.constant 4 : index
    %c0_263 = arith.constant 0 : index
    %c0_264 = arith.constant 0 : index
    %594 = vector.load %arg17[%c0_261, %c4_262, %c0_263, %c0_264] : memref<2x8x16x64xf32, #tpu.memory_space<vmem>>, vector<2x1x16x64xf32>
    %595 = vector.shape_cast %594 : vector<2x1x16x64xf32> to vector<2x16x64xf32>
    %596 = vector.shape_cast %593 : vector<2x16x64xf32> to vector<2x1x16x64xf32>
    tpu.vector_store %arg17[%c0_261, %c4_262, %c0_263, %c0_264], %596 {strides = array<i32>} : memref<2x8x16x64xf32, #tpu.memory_space<vmem>>, vector<2x1x16x64xf32>,
    %597 = vector.extract_strided_slice %549 {offsets = [0, 5, 0, 0], sizes = [2, 1, 16, 64], strides = [1, 1, 1, 1]} : vector<2x8x16x64xf32> to vector<2x1x16x64xf32>
    %598 = vector.shape_cast %597 : vector<2x1x16x64xf32> to vector<2x16x64xf32>
    %599 = arith.mulf %598, %593 : vector<2x16x64xf32>
    %600 = vector.extract_strided_slice %550 {offsets = [0, 5, 0, 0], sizes = [2, 1, 16, 64], strides = [1, 1, 1, 1]} : vector<2x8x16x64xf32> to vector<2x1x16x64xf32>
    %601 = vector.shape_cast %600 : vector<2x1x16x64xf32> to vector<2x16x64xf32>
    %602 = arith.addf %599, %601 : vector<2x16x64xf32>
    %c0_265 = arith.constant 0 : index
    %c5_266 = arith.constant 5 : index
    %c0_267 = arith.constant 0 : index
    %c0_268 = arith.constant 0 : index
    %603 = vector.load %arg17[%c0_265, %c5_266, %c0_267, %c0_268] : memref<2x8x16x64xf32, #tpu.memory_space<vmem>>, vector<2x1x16x64xf32>
    %604 = vector.shape_cast %603 : vector<2x1x16x64xf32> to vector<2x16x64xf32>
    %605 = vector.shape_cast %602 : vector<2x16x64xf32> to vector<2x1x16x64xf32>
    tpu.vector_store %arg17[%c0_265, %c5_266, %c0_267, %c0_268], %605 {strides = array<i32>} : memref<2x8x16x64xf32, #tpu.memory_space<vmem>>, vector<2x1x16x64xf32>,
    %606 = vector.extract_strided_slice %549 {offsets = [0, 6, 0, 0], sizes = [2, 1, 16, 64], strides = [1, 1, 1, 1]} : vector<2x8x16x64xf32> to vector<2x1x16x64xf32>
    %607 = vector.shape_cast %606 : vector<2x1x16x64xf32> to vector<2x16x64xf32>
    %608 = arith.mulf %607, %602 : vector<2x16x64xf32>
    %609 = vector.extract_strided_slice %550 {offsets = [0, 6, 0, 0], sizes = [2, 1, 16, 64], strides = [1, 1, 1, 1]} : vector<2x8x16x64xf32> to vector<2x1x16x64xf32>
    %610 = vector.shape_cast %609 : vector<2x1x16x64xf32> to vector<2x16x64xf32>
    %611 = arith.addf %608, %610 : vector<2x16x64xf32>
    %c0_269 = arith.constant 0 : index
    %c6_270 = arith.constant 6 : index
    %c0_271 = arith.constant 0 : index
    %c0_272 = arith.constant 0 : index
    %612 = vector.load %arg17[%c0_269, %c6_270, %c0_271, %c0_272] : memref<2x8x16x64xf32, #tpu.memory_space<vmem>>, vector<2x1x16x64xf32>
    %613 = vector.shape_cast %612 : vector<2x1x16x64xf32> to vector<2x16x64xf32>
    %614 = vector.shape_cast %611 : vector<2x16x64xf32> to vector<2x1x16x64xf32>
    tpu.vector_store %arg17[%c0_269, %c6_270, %c0_271, %c0_272], %614 {strides = array<i32>} : memref<2x8x16x64xf32, #tpu.memory_space<vmem>>, vector<2x1x16x64xf32>,
    %615 = vector.extract_strided_slice %549 {offsets = [0, 7, 0, 0], sizes = [2, 1, 16, 64], strides = [1, 1, 1, 1]} : vector<2x8x16x64xf32> to vector<2x1x16x64xf32>
    %616 = vector.shape_cast %615 : vector<2x1x16x64xf32> to vector<2x16x64xf32>
    %617 = arith.mulf %616, %611 : vector<2x16x64xf32>
    %618 = vector.extract_strided_slice %550 {offsets = [0, 7, 0, 0], sizes = [2, 1, 16, 64], strides = [1, 1, 1, 1]} : vector<2x8x16x64xf32> to vector<2x1x16x64xf32>
    %619 = vector.shape_cast %618 : vector<2x1x16x64xf32> to vector<2x16x64xf32>
    %620 = arith.addf %617, %619 : vector<2x16x64xf32>
    %c0_273 = arith.constant 0 : index
    %c7_274 = arith.constant 7 : index
    %c0_275 = arith.constant 0 : index
    %c0_276 = arith.constant 0 : index
    %621 = vector.load %arg17[%c0_273, %c7_274, %c0_275, %c0_276] : memref<2x8x16x64xf32, #tpu.memory_space<vmem>>, vector<2x1x16x64xf32>
    %622 = vector.shape_cast %621 : vector<2x1x16x64xf32> to vector<2x16x64xf32>
    %623 = vector.shape_cast %620 : vector<2x16x64xf32> to vector<2x1x16x64xf32>
    tpu.vector_store %arg17[%c0_273, %c7_274, %c0_275, %c0_276], %623 {strides = array<i32>} : memref<2x8x16x64xf32, #tpu.memory_space<vmem>>, vector<2x1x16x64xf32>,
    %624 = vector.shape_cast %512 : vector<16x16xf32> to vector<2x8x16xf32>
    %c0_277 = arith.constant 0 : index
    %c0_278 = arith.constant 0 : index
    %c0_279 = arith.constant 0 : index
    %c0_280 = arith.constant 0 : index
    %625 = vector.load %arg17[%c0_277, %c0_278, %c0_279, %c0_280] : memref<2x8x16x64xf32, #tpu.memory_space<vmem>>, vector<2x8x16x64xf32>
    %626 = vector.shape_cast %624 : vector<2x8x16xf32> to vector<2x8x16x1xf32>
    %627 = vector.broadcast %626 : vector<2x8x16x1xf32> to vector<2x8x16x64xf32>
    %628 = arith.mulf %625, %627 : vector<2x8x16x64xf32>
    %cst_281 = arith.constant dense<0.000000e+00> : vector<2x8x64xf32>
    %629 = vector.multi_reduction <add>, %628, %cst_281 [2] : vector<2x8x16x64xf32> to vector<2x8x64xf32>
    %630 = vector.shape_cast %629 : vector<2x8x64xf32> to vector<16x64xf32>
    %c1_282 = arith.constant 1 : index
    %c0_283 = arith.constant 0 : index
    %c0_284 = arith.constant 0 : index
    %c0_285 = arith.constant 0 : index
    %631 = vector.load %arg11[%c1_282, %c0_283, %c0_284, %c0_285] : memref<2x2x1x64xf32, #tpu.memory_space<vmem>>, vector<1x1x1x64xf32>
    %632 = vector.shape_cast %631 : vector<1x1x1x64xf32> to vector<1x64xf32>
    %633 = vector.broadcast %632 : vector<1x64xf32> to vector<16x64xf32>
    %634 = arith.mulf %507, %633 : vector<16x64xf32>
    %635 = arith.addf %630, %634 : vector<16x64xf32>
    %636 = arith.negf %459 : vector<16x64xf32>
    %637 = math.exp %636 : vector<16x64xf32>
    %cst_286 = arith.constant 1.000000e+00 : f32
    %638 = vector.broadcast %cst_286 : f32 to vector<16x64xf32>
    %639 = arith.addf %638, %637 : vector<16x64xf32>
    %640 = arith.divf %638, %639 : vector<16x64xf32>
    %641 = arith.mulf %459, %640 : vector<16x64xf32>
    %642 = arith.mulf %635, %641 : vector<16x64xf32>
    %c1_287 = arith.constant 1 : index
    %c0_288 = arith.constant 0 : index
    %c0_289 = arith.constant 0 : index
    %c0_290 = arith.constant 0 : index
    %643 = vector.load %arg12[%c1_287, %c0_288, %c0_289, %c0_290] : memref<2x2x64x32xf32, #tpu.memory_space<vmem>>, vector<1x1x64x32xf32>
    %644 = vector.shape_cast %643 : vector<1x1x64x32xf32> to vector<64x32xf32>
    %cst_291 = arith.constant dense<0.000000e+00> : vector<16x32xf32>
    %645 = tpu.matmul %642, %644, %cst_291 {dimension_numbers = #tpu.dot_dimension_numbers<[1], [0], [0], [1], [0, 0, 1, 1], [], []>} : vector<16x64xf32>, vector<64x32xf32>, vector<16x32xf32> -> vector<16x32xf32>
    %c1_292 = arith.constant 1 : index
    %c1_293 = arith.constant 1 : index
    %c0_294 = arith.constant 0 : index
    %c0_295 = arith.constant 0 : index
    %646 = vector.load %arg4[%c1_292, %c1_293, %c0_294, %c0_295] : memref<2x2x32x128xf32, #tpu.memory_space<vmem>>, vector<1x1x32x128xf32>
    %647 = vector.shape_cast %646 : vector<1x1x32x128xf32> to vector<32x128xf32>
    %cst_296 = arith.constant dense<0.000000e+00> : vector<16x128xf32>
    %648 = tpu.matmul %454, %647, %cst_296 {dimension_numbers = #tpu.dot_dimension_numbers<[1], [0], [0], [1], [0, 0, 1, 1], [], []>} : vector<16x32xf32>, vector<32x128xf32>, vector<16x128xf32> -> vector<16x128xf32>
    %649 = vector.extract_strided_slice %648 {offsets = [0, 0], sizes = [16, 64], strides = [1, 1]} : vector<16x128xf32> to vector<16x64xf32>
    %650 = vector.extract_strided_slice %648 {offsets = [0, 64], sizes = [16, 64], strides = [1, 1]} : vector<16x128xf32> to vector<16x64xf32>
    %c1_297 = arith.constant 1 : index
    %c1_298 = arith.constant 1 : index
    %c0_299 = arith.constant 0 : index
    %c0_300 = arith.constant 0 : index
    %651 = vector.load %arg5[%c1_297, %c1_298, %c0_299, %c0_300] : memref<2x2x4x64xf32, #tpu.memory_space<vmem>>, vector<1x1x4x64xf32>
    %652 = vector.shape_cast %651 : vector<1x1x4x64xf32> to vector<4x64xf32>
    %653 = vector.extract_strided_slice %652 {offsets = [3, 0], sizes = [1, 64], strides = [1, 1]} : vector<4x64xf32> to vector<1x64xf32>
    %654 = vector.broadcast %653 : vector<1x64xf32> to vector<16x64xf32>
    %655 = arith.mulf %649, %654 : vector<16x64xf32>
    %c3_i32_301 = arith.constant 3 : i32
    %656 = tpu.dynamic_rotate %649 by %c3_i32_301 dim 0 : vector<16x64xf32>, i32 -> vector<16x64xf32>
    %c3_i32_302 = arith.constant 3 : i32
    %657 = vector.broadcast %c3_i32_302 : i32 to vector<16x1xi32>
    %658 = arith.cmpi sge, %19, %657 : vector<16x1xi32>
    %cst_303 = arith.constant 0.000000e+00 : f32
    %659 = vector.shape_cast %658 : vector<16x1xi1> to vector<16x1xi1>
    %660 = vector.broadcast %659 : vector<16x1xi1> to vector<16x64xi1>
    %661 = vector.broadcast %cst_303 : f32 to vector<16x64xf32>
    %662 = arith.select %660, %656, %661 : vector<16x64xi1>, vector<16x64xf32>
    %663 = vector.extract_strided_slice %652 {offsets = [0, 0], sizes = [1, 64], strides = [1, 1]} : vector<4x64xf32> to vector<1x64xf32>
    %664 = vector.broadcast %663 : vector<1x64xf32> to vector<16x64xf32>
    %665 = arith.mulf %662, %664 : vector<16x64xf32>
    %666 = arith.addf %655, %665 : vector<16x64xf32>
    %c2_i32_304 = arith.constant 2 : i32
    %667 = tpu.dynamic_rotate %649 by %c2_i32_304 dim 0 : vector<16x64xf32>, i32 -> vector<16x64xf32>
    %c2_i32_305 = arith.constant 2 : i32
    %668 = vector.broadcast %c2_i32_305 : i32 to vector<16x1xi32>
    %669 = arith.cmpi sge, %19, %668 : vector<16x1xi32>
    %cst_306 = arith.constant 0.000000e+00 : f32
    %670 = vector.shape_cast %669 : vector<16x1xi1> to vector<16x1xi1>
    %671 = vector.broadcast %670 : vector<16x1xi1> to vector<16x64xi1>
    %672 = vector.broadcast %cst_306 : f32 to vector<16x64xf32>
    %673 = arith.select %671, %667, %672 : vector<16x64xi1>, vector<16x64xf32>
    %674 = vector.extract_strided_slice %652 {offsets = [1, 0], sizes = [1, 64], strides = [1, 1]} : vector<4x64xf32> to vector<1x64xf32>
    %675 = vector.broadcast %674 : vector<1x64xf32> to vector<16x64xf32>
    %676 = arith.mulf %673, %675 : vector<16x64xf32>
    %677 = arith.addf %666, %676 : vector<16x64xf32>
    %c1_i32_307 = arith.constant 1 : i32
    %678 = tpu.dynamic_rotate %649 by %c1_i32_307 dim 0 : vector<16x64xf32>, i32 -> vector<16x64xf32>
    %c1_i32_308 = arith.constant 1 : i32
    %679 = vector.broadcast %c1_i32_308 : i32 to vector<16x1xi32>
    %680 = arith.cmpi sge, %19, %679 : vector<16x1xi32>
    %cst_309 = arith.constant 0.000000e+00 : f32
    %681 = vector.shape_cast %680 : vector<16x1xi1> to vector<16x1xi1>
    %682 = vector.broadcast %681 : vector<16x1xi1> to vector<16x64xi1>
    %683 = vector.broadcast %cst_309 : f32 to vector<16x64xf32>
    %684 = arith.select %682, %678, %683 : vector<16x64xi1>, vector<16x64xf32>
    %685 = vector.extract_strided_slice %652 {offsets = [2, 0], sizes = [1, 64], strides = [1, 1]} : vector<4x64xf32> to vector<1x64xf32>
    %686 = vector.broadcast %685 : vector<1x64xf32> to vector<16x64xf32>
    %687 = arith.mulf %684, %686 : vector<16x64xf32>
    %688 = arith.addf %677, %687 : vector<16x64xf32>
    %c1_310 = arith.constant 1 : index
    %c1_311 = arith.constant 1 : index
    %c0_312 = arith.constant 0 : index
    %c0_313 = arith.constant 0 : index
    %689 = vector.load %arg6[%c1_310, %c1_311, %c0_312, %c0_313] : memref<2x2x1x64xf32, #tpu.memory_space<vmem>>, vector<1x1x1x64xf32>
    %690 = vector.shape_cast %689 : vector<1x1x1x64xf32> to vector<1x64xf32>
    %691 = vector.broadcast %690 : vector<1x64xf32> to vector<16x64xf32>
    %692 = arith.addf %688, %691 : vector<16x64xf32>
    %693 = arith.negf %692 : vector<16x64xf32>
    %694 = math.exp %693 : vector<16x64xf32>
    %cst_314 = arith.constant 1.000000e+00 : f32
    %695 = vector.broadcast %cst_314 : f32 to vector<16x64xf32>
    %696 = arith.addf %695, %694 : vector<16x64xf32>
    %697 = arith.divf %695, %696 : vector<16x64xf32>
    %698 = arith.mulf %692, %697 : vector<16x64xf32>
    %c1_315 = arith.constant 1 : index
    %c1_316 = arith.constant 1 : index
    %c0_317 = arith.constant 0 : index
    %c0_318 = arith.constant 0 : index
    %699 = vector.load %arg7[%c1_315, %c1_316, %c0_317, %c0_318] : memref<2x2x64x34xf32, #tpu.memory_space<vmem>>, vector<1x1x64x34xf32>
    %700 = vector.shape_cast %699 : vector<1x1x64x34xf32> to vector<64x34xf32>
    %cst_319 = arith.constant dense<0.000000e+00> : vector<16x34xf32>
    %701 = tpu.matmul %698, %700, %cst_319 {dimension_numbers = #tpu.dot_dimension_numbers<[1], [0], [0], [1], [0, 0, 1, 1], [], []>} : vector<16x64xf32>, vector<64x34xf32>, vector<16x34xf32> -> vector<16x34xf32>
    %702 = vector.extract_strided_slice %701 {offsets = [0, 0], sizes = [16, 16], strides = [1, 1]} : vector<16x34xf32> to vector<16x16xf32>
    %703 = vector.extract_strided_slice %701 {offsets = [0, 16], sizes = [16, 16], strides = [1, 1]} : vector<16x34xf32> to vector<16x16xf32>
    %704 = vector.extract_strided_slice %701 {offsets = [0, 32], sizes = [16, 2], strides = [1, 1]} : vector<16x34xf32> to vector<16x2xf32>
    %c1_320 = arith.constant 1 : index
    %c1_321 = arith.constant 1 : index
    %c0_322 = arith.constant 0 : index
    %c0_323 = arith.constant 0 : index
    %705 = vector.load %arg8[%c1_320, %c1_321, %c0_322, %c0_323] : memref<2x2x2x64xf32, #tpu.memory_space<vmem>>, vector<1x1x2x64xf32>
    %706 = vector.shape_cast %705 : vector<1x1x2x64xf32> to vector<2x64xf32>
    %cst_324 = arith.constant dense<0.000000e+00> : vector<16x64xf32>
    %707 = tpu.matmul %704, %706, %cst_324 {dimension_numbers = #tpu.dot_dimension_numbers<[1], [0], [0], [1], [0, 0, 1, 1], [], []>} : vector<16x2xf32>, vector<2x64xf32>, vector<16x64xf32> -> vector<16x64xf32>
    %c1_325 = arith.constant 1 : index
    %c1_326 = arith.constant 1 : index
    %c0_327 = arith.constant 0 : index
    %c0_328 = arith.constant 0 : index
    %708 = vector.load %arg9[%c1_325, %c1_326, %c0_327, %c0_328] : memref<2x2x1x64xf32, #tpu.memory_space<vmem>>, vector<1x1x1x64xf32>
    %709 = vector.shape_cast %708 : vector<1x1x1x64xf32> to vector<1x64xf32>
    %710 = vector.broadcast %709 : vector<1x64xf32> to vector<16x64xf32>
    %711 = arith.addf %707, %710 : vector<16x64xf32>
    %cst_329 = arith.constant 0.000000e+00 : f32
    %712 = vector.broadcast %cst_329 : f32 to vector<16x64xf32>
    %713 = arith.maximumf %711, %712 : vector<16x64xf32>
    %714 = vector.broadcast %cst_329 : f32 to vector<16x64xf32>
    %715 = arith.subf %711, %714 : vector<16x64xf32>
    %716 = arith.cmpf one, %715, %715 : vector<16x64xf32>
    %717 = vector.broadcast %cst_329 : f32 to vector<16x64xf32>
    %718 = arith.addf %711, %717 : vector<16x64xf32>
    %719 = math.absf %715 : vector<16x64xf32>
    %cst_330 = arith.constant 0.000000e+00 : f32
    %720 = vector.broadcast %cst_330 : f32 to vector<16x64xf32>
    %721 = arith.subf %720, %719 : vector<16x64xf32>
    %722 = math.exp %721 : vector<16x64xf32>
    %723 = math.log1p %722 : vector<16x64xf32>
    %724 = arith.addf %713, %723 : vector<16x64xf32>
    %725 = arith.select %716, %718, %724 : vector<16x64xi1>, vector<16x64xf32>
    %c1_331 = arith.constant 1 : index
    %c1_332 = arith.constant 1 : index
    %c0_333 = arith.constant 0 : index
    %c0_334 = arith.constant 0 : index
    %726 = vector.load %arg10[%c1_331, %c1_332, %c0_333, %c0_334] : memref<2x2x16x64xf32, #tpu.memory_space<vmem>>, vector<1x1x16x64xf32>
    %727 = vector.shape_cast %726 : vector<1x1x16x64xf32> to vector<16x64xf32>
    %728 = arith.mulf %725, %698 : vector<16x64xf32>
    %729 = vector.shape_cast %725 : vector<16x64xf32> to vector<16x1x64xf32>
    %730 = vector.shape_cast %727 : vector<16x64xf32> to vector<1x16x64xf32>
    %731 = vector.broadcast %729 : vector<16x1x64xf32> to vector<16x16x64xf32>
    %732 = vector.broadcast %730 : vector<1x16x64xf32> to vector<16x16x64xf32>
    %733 = arith.mulf %731, %732 : vector<16x16x64xf32>
    %734 = math.exp %733 : vector<16x16x64xf32>
    %735 = vector.shape_cast %702 : vector<16x16xf32> to vector<16x16x1xf32>
    %736 = vector.shape_cast %728 : vector<16x64xf32> to vector<16x1x64xf32>
    %737 = vector.broadcast %735 : vector<16x16x1xf32> to vector<16x16x64xf32>
    %738 = vector.broadcast %736 : vector<16x1x64xf32> to vector<16x16x64xf32>
    %739 = arith.mulf %737, %738 : vector<16x16x64xf32>
    %740 = vector.shape_cast %734 : vector<16x16x64xf32> to vector<2x8x16x64xf32>
    %741 = vector.shape_cast %739 : vector<16x16x64xf32> to vector<2x8x16x64xf32>
    %cst_335 = arith.constant 0.000000e+00 : f32
    %742 = vector.broadcast %cst_335 : f32 to vector<2x16x64xf32>
    %743 = vector.extract_strided_slice %740 {offsets = [0, 0, 0, 0], sizes = [2, 1, 16, 64], strides = [1, 1, 1, 1]} : vector<2x8x16x64xf32> to vector<2x1x16x64xf32>
    %744 = vector.shape_cast %743 : vector<2x1x16x64xf32> to vector<2x16x64xf32>
    %745 = arith.mulf %744, %742 : vector<2x16x64xf32>
    %746 = vector.extract_strided_slice %741 {offsets = [0, 0, 0, 0], sizes = [2, 1, 16, 64], strides = [1, 1, 1, 1]} : vector<2x8x16x64xf32> to vector<2x1x16x64xf32>
    %747 = vector.shape_cast %746 : vector<2x1x16x64xf32> to vector<2x16x64xf32>
    %748 = arith.addf %745, %747 : vector<2x16x64xf32>
    %c0_336 = arith.constant 0 : index
    %c0_337 = arith.constant 0 : index
    %c0_338 = arith.constant 0 : index
    %c0_339 = arith.constant 0 : index
    %749 = vector.load %arg17[%c0_336, %c0_337, %c0_338, %c0_339] : memref<2x8x16x64xf32, #tpu.memory_space<vmem>>, vector<2x1x16x64xf32>
    %750 = vector.shape_cast %749 : vector<2x1x16x64xf32> to vector<2x16x64xf32>
    %751 = vector.shape_cast %748 : vector<2x16x64xf32> to vector<2x1x16x64xf32>
    tpu.vector_store %arg17[%c0_336, %c0_337, %c0_338, %c0_339], %751 {strides = array<i32>} : memref<2x8x16x64xf32, #tpu.memory_space<vmem>>, vector<2x1x16x64xf32>,
    %752 = vector.extract_strided_slice %740 {offsets = [0, 1, 0, 0], sizes = [2, 1, 16, 64], strides = [1, 1, 1, 1]} : vector<2x8x16x64xf32> to vector<2x1x16x64xf32>
    %753 = vector.shape_cast %752 : vector<2x1x16x64xf32> to vector<2x16x64xf32>
    %754 = arith.mulf %753, %748 : vector<2x16x64xf32>
    %755 = vector.extract_strided_slice %741 {offsets = [0, 1, 0, 0], sizes = [2, 1, 16, 64], strides = [1, 1, 1, 1]} : vector<2x8x16x64xf32> to vector<2x1x16x64xf32>
    %756 = vector.shape_cast %755 : vector<2x1x16x64xf32> to vector<2x16x64xf32>
    %757 = arith.addf %754, %756 : vector<2x16x64xf32>
    %c0_340 = arith.constant 0 : index
    %c1_341 = arith.constant 1 : index
    %c0_342 = arith.constant 0 : index
    %c0_343 = arith.constant 0 : index
    %758 = vector.load %arg17[%c0_340, %c1_341, %c0_342, %c0_343] : memref<2x8x16x64xf32, #tpu.memory_space<vmem>>, vector<2x1x16x64xf32>
    %759 = vector.shape_cast %758 : vector<2x1x16x64xf32> to vector<2x16x64xf32>
    %760 = vector.shape_cast %757 : vector<2x16x64xf32> to vector<2x1x16x64xf32>
    tpu.vector_store %arg17[%c0_340, %c1_341, %c0_342, %c0_343], %760 {strides = array<i32>} : memref<2x8x16x64xf32, #tpu.memory_space<vmem>>, vector<2x1x16x64xf32>,
    %761 = vector.extract_strided_slice %740 {offsets = [0, 2, 0, 0], sizes = [2, 1, 16, 64], strides = [1, 1, 1, 1]} : vector<2x8x16x64xf32> to vector<2x1x16x64xf32>
    %762 = vector.shape_cast %761 : vector<2x1x16x64xf32> to vector<2x16x64xf32>
    %763 = arith.mulf %762, %757 : vector<2x16x64xf32>
    %764 = vector.extract_strided_slice %741 {offsets = [0, 2, 0, 0], sizes = [2, 1, 16, 64], strides = [1, 1, 1, 1]} : vector<2x8x16x64xf32> to vector<2x1x16x64xf32>
    %765 = vector.shape_cast %764 : vector<2x1x16x64xf32> to vector<2x16x64xf32>
    %766 = arith.addf %763, %765 : vector<2x16x64xf32>
    %c0_344 = arith.constant 0 : index
    %c2_345 = arith.constant 2 : index
    %c0_346 = arith.constant 0 : index
    %c0_347 = arith.constant 0 : index
    %767 = vector.load %arg17[%c0_344, %c2_345, %c0_346, %c0_347] : memref<2x8x16x64xf32, #tpu.memory_space<vmem>>, vector<2x1x16x64xf32>
    %768 = vector.shape_cast %767 : vector<2x1x16x64xf32> to vector<2x16x64xf32>
    %769 = vector.shape_cast %766 : vector<2x16x64xf32> to vector<2x1x16x64xf32>
    tpu.vector_store %arg17[%c0_344, %c2_345, %c0_346, %c0_347], %769 {strides = array<i32>} : memref<2x8x16x64xf32, #tpu.memory_space<vmem>>, vector<2x1x16x64xf32>,
    %770 = vector.extract_strided_slice %740 {offsets = [0, 3, 0, 0], sizes = [2, 1, 16, 64], strides = [1, 1, 1, 1]} : vector<2x8x16x64xf32> to vector<2x1x16x64xf32>
    %771 = vector.shape_cast %770 : vector<2x1x16x64xf32> to vector<2x16x64xf32>
    %772 = arith.mulf %771, %766 : vector<2x16x64xf32>
    %773 = vector.extract_strided_slice %741 {offsets = [0, 3, 0, 0], sizes = [2, 1, 16, 64], strides = [1, 1, 1, 1]} : vector<2x8x16x64xf32> to vector<2x1x16x64xf32>
    %774 = vector.shape_cast %773 : vector<2x1x16x64xf32> to vector<2x16x64xf32>
    %775 = arith.addf %772, %774 : vector<2x16x64xf32>
    %c0_348 = arith.constant 0 : index
    %c3_349 = arith.constant 3 : index
    %c0_350 = arith.constant 0 : index
    %c0_351 = arith.constant 0 : index
    %776 = vector.load %arg17[%c0_348, %c3_349, %c0_350, %c0_351] : memref<2x8x16x64xf32, #tpu.memory_space<vmem>>, vector<2x1x16x64xf32>
    %777 = vector.shape_cast %776 : vector<2x1x16x64xf32> to vector<2x16x64xf32>
    %778 = vector.shape_cast %775 : vector<2x16x64xf32> to vector<2x1x16x64xf32>
    tpu.vector_store %arg17[%c0_348, %c3_349, %c0_350, %c0_351], %778 {strides = array<i32>} : memref<2x8x16x64xf32, #tpu.memory_space<vmem>>, vector<2x1x16x64xf32>,
    %779 = vector.extract_strided_slice %740 {offsets = [0, 4, 0, 0], sizes = [2, 1, 16, 64], strides = [1, 1, 1, 1]} : vector<2x8x16x64xf32> to vector<2x1x16x64xf32>
    %780 = vector.shape_cast %779 : vector<2x1x16x64xf32> to vector<2x16x64xf32>
    %781 = arith.mulf %780, %775 : vector<2x16x64xf32>
    %782 = vector.extract_strided_slice %741 {offsets = [0, 4, 0, 0], sizes = [2, 1, 16, 64], strides = [1, 1, 1, 1]} : vector<2x8x16x64xf32> to vector<2x1x16x64xf32>
    %783 = vector.shape_cast %782 : vector<2x1x16x64xf32> to vector<2x16x64xf32>
    %784 = arith.addf %781, %783 : vector<2x16x64xf32>
    %c0_352 = arith.constant 0 : index
    %c4_353 = arith.constant 4 : index
    %c0_354 = arith.constant 0 : index
    %c0_355 = arith.constant 0 : index
    %785 = vector.load %arg17[%c0_352, %c4_353, %c0_354, %c0_355] : memref<2x8x16x64xf32, #tpu.memory_space<vmem>>, vector<2x1x16x64xf32>
    %786 = vector.shape_cast %785 : vector<2x1x16x64xf32> to vector<2x16x64xf32>
    %787 = vector.shape_cast %784 : vector<2x16x64xf32> to vector<2x1x16x64xf32>
    tpu.vector_store %arg17[%c0_352, %c4_353, %c0_354, %c0_355], %787 {strides = array<i32>} : memref<2x8x16x64xf32, #tpu.memory_space<vmem>>, vector<2x1x16x64xf32>,
    %788 = vector.extract_strided_slice %740 {offsets = [0, 5, 0, 0], sizes = [2, 1, 16, 64], strides = [1, 1, 1, 1]} : vector<2x8x16x64xf32> to vector<2x1x16x64xf32>
    %789 = vector.shape_cast %788 : vector<2x1x16x64xf32> to vector<2x16x64xf32>
    %790 = arith.mulf %789, %784 : vector<2x16x64xf32>
    %791 = vector.extract_strided_slice %741 {offsets = [0, 5, 0, 0], sizes = [2, 1, 16, 64], strides = [1, 1, 1, 1]} : vector<2x8x16x64xf32> to vector<2x1x16x64xf32>
    %792 = vector.shape_cast %791 : vector<2x1x16x64xf32> to vector<2x16x64xf32>
    %793 = arith.addf %790, %792 : vector<2x16x64xf32>
    %c0_356 = arith.constant 0 : index
    %c5_357 = arith.constant 5 : index
    %c0_358 = arith.constant 0 : index
    %c0_359 = arith.constant 0 : index
    %794 = vector.load %arg17[%c0_356, %c5_357, %c0_358, %c0_359] : memref<2x8x16x64xf32, #tpu.memory_space<vmem>>, vector<2x1x16x64xf32>
    %795 = vector.shape_cast %794 : vector<2x1x16x64xf32> to vector<2x16x64xf32>
    %796 = vector.shape_cast %793 : vector<2x16x64xf32> to vector<2x1x16x64xf32>
    tpu.vector_store %arg17[%c0_356, %c5_357, %c0_358, %c0_359], %796 {strides = array<i32>} : memref<2x8x16x64xf32, #tpu.memory_space<vmem>>, vector<2x1x16x64xf32>,
    %797 = vector.extract_strided_slice %740 {offsets = [0, 6, 0, 0], sizes = [2, 1, 16, 64], strides = [1, 1, 1, 1]} : vector<2x8x16x64xf32> to vector<2x1x16x64xf32>
    %798 = vector.shape_cast %797 : vector<2x1x16x64xf32> to vector<2x16x64xf32>
    %799 = arith.mulf %798, %793 : vector<2x16x64xf32>
    %800 = vector.extract_strided_slice %741 {offsets = [0, 6, 0, 0], sizes = [2, 1, 16, 64], strides = [1, 1, 1, 1]} : vector<2x8x16x64xf32> to vector<2x1x16x64xf32>
    %801 = vector.shape_cast %800 : vector<2x1x16x64xf32> to vector<2x16x64xf32>
    %802 = arith.addf %799, %801 : vector<2x16x64xf32>
    %c0_360 = arith.constant 0 : index
    %c6_361 = arith.constant 6 : index
    %c0_362 = arith.constant 0 : index
    %c0_363 = arith.constant 0 : index
    %803 = vector.load %arg17[%c0_360, %c6_361, %c0_362, %c0_363] : memref<2x8x16x64xf32, #tpu.memory_space<vmem>>, vector<2x1x16x64xf32>
    %804 = vector.shape_cast %803 : vector<2x1x16x64xf32> to vector<2x16x64xf32>
    %805 = vector.shape_cast %802 : vector<2x16x64xf32> to vector<2x1x16x64xf32>
    tpu.vector_store %arg17[%c0_360, %c6_361, %c0_362, %c0_363], %805 {strides = array<i32>} : memref<2x8x16x64xf32, #tpu.memory_space<vmem>>, vector<2x1x16x64xf32>,
    %806 = vector.extract_strided_slice %740 {offsets = [0, 7, 0, 0], sizes = [2, 1, 16, 64], strides = [1, 1, 1, 1]} : vector<2x8x16x64xf32> to vector<2x1x16x64xf32>
    %807 = vector.shape_cast %806 : vector<2x1x16x64xf32> to vector<2x16x64xf32>
    %808 = arith.mulf %807, %802 : vector<2x16x64xf32>
    %809 = vector.extract_strided_slice %741 {offsets = [0, 7, 0, 0], sizes = [2, 1, 16, 64], strides = [1, 1, 1, 1]} : vector<2x8x16x64xf32> to vector<2x1x16x64xf32>
    %810 = vector.shape_cast %809 : vector<2x1x16x64xf32> to vector<2x16x64xf32>
    %811 = arith.addf %808, %810 : vector<2x16x64xf32>
    %c0_364 = arith.constant 0 : index
    %c7_365 = arith.constant 7 : index
    %c0_366 = arith.constant 0 : index
    %c0_367 = arith.constant 0 : index
    %812 = vector.load %arg17[%c0_364, %c7_365, %c0_366, %c0_367] : memref<2x8x16x64xf32, #tpu.memory_space<vmem>>, vector<2x1x16x64xf32>
    %813 = vector.shape_cast %812 : vector<2x1x16x64xf32> to vector<2x16x64xf32>
    %814 = vector.shape_cast %811 : vector<2x16x64xf32> to vector<2x1x16x64xf32>
    tpu.vector_store %arg17[%c0_364, %c7_365, %c0_366, %c0_367], %814 {strides = array<i32>} : memref<2x8x16x64xf32, #tpu.memory_space<vmem>>, vector<2x1x16x64xf32>,
    %815 = vector.shape_cast %703 : vector<16x16xf32> to vector<2x8x16xf32>
    %c0_368 = arith.constant 0 : index
    %c0_369 = arith.constant 0 : index
    %c0_370 = arith.constant 0 : index
    %c0_371 = arith.constant 0 : index
    %816 = vector.load %arg17[%c0_368, %c0_369, %c0_370, %c0_371] : memref<2x8x16x64xf32, #tpu.memory_space<vmem>>, vector<2x8x16x64xf32>
    %817 = vector.shape_cast %815 : vector<2x8x16xf32> to vector<2x8x16x1xf32>
    %818 = vector.broadcast %817 : vector<2x8x16x1xf32> to vector<2x8x16x64xf32>
    %819 = arith.mulf %816, %818 : vector<2x8x16x64xf32>
    %cst_372 = arith.constant dense<0.000000e+00> : vector<2x8x64xf32>
    %820 = vector.multi_reduction <add>, %819, %cst_372 [2] : vector<2x8x16x64xf32> to vector<2x8x64xf32>
    %821 = vector.shape_cast %820 : vector<2x8x64xf32> to vector<16x64xf32>
    %c1_373 = arith.constant 1 : index
    %c1_374 = arith.constant 1 : index
    %c0_375 = arith.constant 0 : index
    %c0_376 = arith.constant 0 : index
    %822 = vector.load %arg11[%c1_373, %c1_374, %c0_375, %c0_376] : memref<2x2x1x64xf32, #tpu.memory_space<vmem>>, vector<1x1x1x64xf32>
    %823 = vector.shape_cast %822 : vector<1x1x1x64xf32> to vector<1x64xf32>
    %824 = vector.broadcast %823 : vector<1x64xf32> to vector<16x64xf32>
    %825 = arith.mulf %698, %824 : vector<16x64xf32>
    %826 = arith.addf %821, %825 : vector<16x64xf32>
    %827 = arith.negf %650 : vector<16x64xf32>
    %828 = math.exp %827 : vector<16x64xf32>
    %cst_377 = arith.constant 1.000000e+00 : f32
    %829 = vector.broadcast %cst_377 : f32 to vector<16x64xf32>
    %830 = arith.addf %829, %828 : vector<16x64xf32>
    %831 = arith.divf %829, %830 : vector<16x64xf32>
    %832 = arith.mulf %650, %831 : vector<16x64xf32>
    %833 = arith.mulf %826, %832 : vector<16x64xf32>
    %c1_378 = arith.constant 1 : index
    %c1_379 = arith.constant 1 : index
    %c0_380 = arith.constant 0 : index
    %c0_381 = arith.constant 0 : index
    %834 = vector.load %arg12[%c1_378, %c1_379, %c0_380, %c0_381] : memref<2x2x64x32xf32, #tpu.memory_space<vmem>>, vector<1x1x64x32xf32>
    %835 = vector.shape_cast %834 : vector<1x1x64x32xf32> to vector<64x32xf32>
    %cst_382 = arith.constant dense<0.000000e+00> : vector<16x32xf32>
    %836 = tpu.matmul %833, %835, %cst_382 {dimension_numbers = #tpu.dot_dimension_numbers<[1], [0], [0], [1], [0, 0, 1, 1], [], []>} : vector<16x64xf32>, vector<64x32xf32>, vector<16x32xf32> -> vector<16x32xf32>
    %837 = arith.addf %645, %836 : vector<16x32xf32>
    %838 = arith.addf %837, %430 : vector<16x32xf32>
    %c0_383 = arith.constant 0 : index
    %c0_384 = arith.constant 0 : index
    %839 = vector.load %arg13[%c0_383, %c0_384] : memref<1x32xf32, #tpu.memory_space<vmem>>, vector<1x32xf32>
    %c0_385 = arith.constant 0 : index
    %c0_386 = arith.constant 0 : index
    %840 = vector.load %arg14[%c0_385, %c0_386] : memref<1x32xf32, #tpu.memory_space<vmem>>, vector<1x32xf32>
    %cst_387 = arith.constant dense<0.000000e+00> : vector<16xf32>
    %841 = vector.multi_reduction <add>, %838, %cst_387 [1] : vector<16x32xf32> to vector<16xf32>
    %842 = vector.shape_cast %841 : vector<16xf32> to vector<16x1xf32>
    %cst_388 = arith.constant 3.200000e+01 : f32
    %843 = vector.broadcast %cst_388 : f32 to vector<16x1xf32>
    %844 = arith.divf %842, %843 : vector<16x1xf32>
    %845 = vector.broadcast %844 : vector<16x1xf32> to vector<16x32xf32>
    %846 = arith.subf %838, %845 : vector<16x32xf32>
    %847 = arith.mulf %846, %846 : vector<16x32xf32>
    %cst_389 = arith.constant dense<0.000000e+00> : vector<16xf32>
    %848 = vector.multi_reduction <add>, %847, %cst_389 [1] : vector<16x32xf32> to vector<16xf32>
    %849 = vector.shape_cast %848 : vector<16xf32> to vector<16x1xf32>
    %cst_390 = arith.constant 3.200000e+01 : f32
    %850 = vector.broadcast %cst_390 : f32 to vector<16x1xf32>
    %851 = arith.divf %849, %850 : vector<16x1xf32>
    %cst_391 = arith.constant 9.99999974E-6 : f32
    %852 = vector.broadcast %cst_391 : f32 to vector<16x1xf32>
    %853 = arith.addf %851, %852 : vector<16x1xf32>
    %854 = math.rsqrt %853 : vector<16x1xf32>
    %855 = vector.broadcast %854 : vector<16x1xf32> to vector<16x32xf32>
    %856 = arith.mulf %846, %855 : vector<16x32xf32>
    %857 = vector.broadcast %839 : vector<1x32xf32> to vector<16x32xf32>
    %858 = arith.mulf %856, %857 : vector<16x32xf32>
    %859 = vector.broadcast %840 : vector<1x32xf32> to vector<16x32xf32>
    %860 = arith.addf %858, %859 : vector<16x32xf32>
    %c0_392 = arith.constant 0 : index
    %c0_393 = arith.constant 0 : index
    %861 = vector.load %arg15[%c0_392, %c0_393] : memref<32x16xf32, #tpu.memory_space<vmem>>, vector<32x16xf32>
    %cst_394 = arith.constant dense<0.000000e+00> : vector<16x16xf32>
    %862 = tpu.matmul %860, %861, %cst_394 {dimension_numbers = #tpu.dot_dimension_numbers<[1], [0], [0], [1], [0, 0, 1, 1], [], []>} : vector<16x32xf32>, vector<32x16xf32>, vector<16x16xf32> -> vector<16x16xf32>
    %c0_395 = arith.constant 0 : index
    %c0_396 = arith.constant 0 : index
    %863 = vector.load %arg16[%c0_395, %c0_396] : memref<16x16xf32, #tpu.memory_space<vmem>>, vector<16x16xf32>
    tpu.vector_store %arg16[%c0_395, %c0_396], %862 {strides = array<i32>} : memref<16x16xf32, #tpu.memory_space<vmem>>, vector<16x16xf32>,
    return
  }
}

</mosaic_0001>

<bundles_post_ra>
// kernel: bimamba_forward.1
= control target key start
LH: loop header
LB: loop body
LE: loop exit
PB: predicated region body
PF: predicated region fallthrough
CT: control target
= control target key end

     0   :  { %s12534_s0 = inlined_call_operand.vmem [shape: f32[16,32], index: 0, kind: input, shape index: {}]   ;;  %s12535_s1 = inlined_call_operand.vmem [shape: f32[16,32], index: 1, kind: input, shape index: {}]   ;;  %s12536_s2 = inlined_call_operand.vmem [shape: f32[2,1,32], index: 2, kind: input, shape index: {}]   ;;  %s12537_s3 = inlined_call_operand.vmem [shape: f32[2,1,32], index: 3, kind: input, shape index: {}]   ;;  %s12538_s4 = inlined_call_operand.vmem [shape: f32[2,2,32,128], index: 4, kind: input, shape index: {}]   ;;  %s12539_s5 = inlined_call_operand.vmem [shape: f32[2,2,4,64], index: 5, kind: input, shape index: {}]   ;;  %s12540_s6 = inlined_call_operand.vmem [shape: f32[2,2,1,64], index: 6, kind: input, shape index: {}]   ;;  %s12541_s7 = inlined_call_operand.vmem [shape: f32[2,2,64,34], index: 7, kind: input, shape index: {}]   ;;  %s12542_s8 = inlined_call_operand.vmem [shape: f32[2,2,2,64], index: 8, kind: input, shape index: {}]   ;;  %s12543_s9 = inlined_call_operand.vmem [shape: f32[2,2,1,64], index: 9, kind: input, shape index: {}]   ;;  %s12544_s10 = inlined_call_operand.vmem [shape: f32[2,2,16,64], index: 10, kind: input, shape index: {}]   ;;  %s12545_s11 = inlined_call_operand.vmem [shape: f32[2,2,1,64], index: 11, kind: input, shape index: {}]   ;;  %s12546_s12 = inlined_call_operand.vmem [shape: f32[2,2,64,32], index: 12, kind: input, shape index: {}]   ;;  %s12547_s13 = inlined_call_operand.vmem [shape: f32[1,32], index: 13, kind: input, shape index: {}]   ;;  %s12548_s14 = inlined_call_operand.vmem [shape: f32[1,32], index: 14, kind: input, shape index: {}]   ;;  %s12549_s15 = inlined_call_operand.vmem [shape: f32[32,16], index: 15, kind: input, shape index: {}]   ;;  %s12550_s16 = inlined_call_operand.hbm [shape: f32[16,16], index: 16, kind: output, shape index: {}]  }
   0x1   :  { %12688 = sst [smem:[#allocation84_spill]] %s12534_s0 }
   0x2   :  { %s12689_s23 = sld [smem:[#allocation84_spill]]  ;;  %v56_v1 = vld [vmem:[%s12535_s1] sm:$0xff]  ;;  %vm91_vm0 = vcmask 261120   ;;  %v57_v4 = vld [vmem:[%s12535_s1 + $0x8] sm:$0xff] }
   0x8   :  { %v54_v0 = vld [vmem:[%s12689_s23] sm:$0xff]  ;;  %v55_v2 = vld [vmem:[%s12689_s23 + $0x8] sm:$0xff] }
   0x9   :  { %v8600_v3 = vadd.f32 %v56_v1, %v54_v0 }
   0xb   :  { %12690 = vst [vmem:[#allocation6_spill] sm:$0xff] %v8600_v3 }
   0xc   :  { %21 = vsyncpa [#allocation4], 0  ;;  %v8605_v5 = vadd.f32 %v57_v4, %v55_v2  ;;  %v92_v6 = vsel %vm91_vm0, %v8600_v3, 0.0  ;;  %v135_v18 = vld [vmem:[%s12538_s4] sm:$0xff]  ;;  %v136_v19 = vld [vmem:[%s12538_s4 + $0x8] sm:$0xff]  ;;  %v58_v52 = vlaneseq  ;;  %vm321_vm10 = vcmask 523264  }
   0xd   :  { %93 = vadd.xlane.f32.xlu0 %v92_v6  ;;  %v137_v20 = vld [vmem:[%s12538_s4 + $0x10] sm:$0xff]  ;;  %v7932_v21 = vpack.c.bf16 %v136_v19, %v135_v18  ;;  %v138_v22 = vld [vmem:[%s12538_s4 + $0x18] sm:$0xff]  ;;  %v7428_v31 = vld [vmem:[%s12536_s2] ss:$0 sm:$0xff]  ;;  %vm12621_vm11 = vcmask 1041408   ;;  %s8500_s23 = smov 96  }
   0xe   :  { %12691 = vst [vmem:[#allocation7_spill] sm:$0xff] %v8605_v5  ;;  %v95_v7 = vsel %vm91_vm0, %v8605_v5, 0.0  ;;  %v7936_v23 = vpack.c.bf16 %v138_v22, %v137_v20  ;;  %v7429_v33 = vld [vmem:[%s12537_s3] ss:$0 sm:$0xff]  ;;  %v314_v41 = vld [vmem:[%s12541_s7 + $0x8] sm:$0xff]  ;;  %v315_v43 = vld [vmem:[%s12541_s7 + $0x10] sm:$0xff] }
   0xf   :  { %7933 = vmatprep.subr.bf16.mxu0 %v7932_v21  ;;  %v313_v40 = vld [vmem:[%s12541_s7] sm:$0xff]  ;;  %v316_v44 = vld [vmem:[%s12541_s7 + $0x18] sm:$0xff]  ;;  %v318_v47 = vld [vmem:[%s12541_s7 + $0x28] sm:$0xff]  ;;  %v8665_v53 = vshrl.u32 %v58_v52, 7  ;;  %vm12620_vm12 = vcmask 15360   ;;  %s8502_s24 = smov 64  }
  0x10   :  { %7935 = vmatpush3.bf16.msra.mxu0 %v7932_v21  ;;  %v7940_v42 = vpack.c.bf16 %v314_v41, %v313_v40  ;;  %v317_v45 = vld [vmem:[%s12541_s7 + $0x20] sm:$0xff]  ;;  %v7944_v46 = vpack.c.bf16 %v316_v44, %v315_v43  ;;  %v319_v49 = vld [vmem:[%s12541_s7 + $0x30] sm:$0xff]  ;;  %v320_v50 = vld [vmem:[%s12541_s7 + $0x38] sm:$0xff] }
  0x11   :  { %96 = vadd.xlane.f32.xlu0 %v95_v7  ;;  %7937 = vmatprep.subr.bf16.mxu0 %v7936_v23  ;;  %v7948_v48 = vpack.c.bf16 %v318_v47, %v317_v45  ;;  %v7952_v51 = vpack.c.bf16 %v320_v50, %v319_v49  ;;  %12692 = vst [vmem:[#allocation8_spill] sm:$0xff] %v8665_v53  ;;  %v60_v54 = vadd.s32 8, %v8665_v53  ;;  %v8669_v55 = vsub.s32 3, %v8665_v53  ;;  %v220_v56 = vld [vmem:[%s12539_s5] sm:$0xf] }
  0x12   :  { %7941 = vmatprep.subr.bf16.mxu1 %v7940_v42  ;;  %v8675_v57 = vsub.s32 0, %v8665_v53  ;;  %v8678_v58 = vand.u32 7, %v8665_v53  ;;  %v8683_v60 = vsub.s32 1, %v8665_v53  ;;  %vm229_vm1 = vcmp.lt.s32.totalorder %v8665_v53, 3 }
  0x13   :  { %7943 = vmatpush3.bf16.msra.mxu1 %v7940_v42  ;;  %12693 = vst [vmem:[#allocation9_spill] sm:$0xff] %v8669_v55  ;;  %v8680_v59 = vand.u32 7, %v60_v54  ;;  %v224_v61 = vrot.slane %v220_v56, %v8669_v55  ;;  %vm250_vm2 = vcmp.lt.s32.totalorder %v8665_v53, 2  ;;  %v8689_v62 = vsub.s32 2, %v8665_v53  ;;  %v403_v54 = vld [vmem:[%s12542_s8] sm:$0x3] }
  0x14   :  { %7939 = vmatpush3.bf16.msra.mxu0 %v7936_v23  ;;  %7945 = vmatprep.subr.bf16.mxu1 %v7944_v46  ;;  %12694 = vst [vmem:[#allocation10_spill] sm:$0xff] %v8675_v57  ;;  %12695 = vst [vmem:[#allocation11_spill] sm:$0xff] %v8678_v58  ;;  %vm232_vm3 = vcmp.ge.s32.totalorder %v8678_v58, 3  ;;  %v243_v0 = vrot.slane %v220_v56, %v8675_v57  ;;  %vm271_vm5 = vcmp.lt.s32.totalorder %v8665_v53, 1  ;;  %vm253_vm6 = vcmp.ge.s32.totalorder %v8678_v58, 2 }
  0x15   :  { %12696 = vst [vmem:[#allocation12_spill] sm:$0xff] %v8680_v59  ;;  %12697 = vst [vmem:[#allocation13_spill] sm:$0xff] %v8683_v60  ;;  %vm233_vm4 = vcmp.ge.s32.totalorder %v8680_v59, 3  ;;  %vm254_vm7 = vcmp.ge.s32.totalorder %v8680_v59, 2  ;;  %vm12622_vm8 = vcmp.ge.s32.totalorder %v8678_v58, 1  ;;  %vm12623_vm9 = vcmp.ge.s32.totalorder %v8680_v59, 1  ;;  %7735 = vmatprep.subr.msk.mxu0 %vm12621_vm11, %v403_v54 }
  0x16   :  { %12698 = vst [vmem:[#allocation14_spill] sm:$0xff] %v8689_v62 }
  0x17   :  { %7947 = vmatpush3.bf16.msra.mxu1 %v7944_v46 }
  0x18   :  { %7949 = vmatprep.subr.bf16.mxu1 %v7948_v48 }
  0x1b   :  { %7951 = vmatpush3.bf16.msra.mxu1 %v7948_v48 }
  0x1c   :  { %7953 = vmatprep.subr.bf16.mxu1 %v7952_v51 }
  0x1f   :  { %7955 = vmatpush3.bf16.msra.mxu1 %v7952_v51 }
  0x9a   :  { %v94_v8 = vpop.xlane.xlu0 %93 }
  0x9b   :  { %v99_v9 = vmul.f32 0.03125, %v94_v8  ;;  %v264_v8 = vrot.slane %v220_v56, %v8683_v60 }
  0x9d   :  { %v101_v10 = vsub.f32 %v8600_v3, %v99_v9 }
  0x9e   :  { %v97_v11 = vpop.xlane.xlu0 %96 }
  0x9f   :  { %v100_v12 = vmul.f32 0.03125, %v97_v11  ;;  %v103_v13 = vmul.f32 %v101_v10, %v101_v10  ;;  %v285_v11 = vrot.slane %v220_v56, %v8689_v62  ;;  %v7444_v56 = vld [vmem:[%s12538_s4 + $0x20] sm:$0xff] }
  0xa1   :  { %v102_v14 = vsub.f32 %v8605_v5, %v100_v12  ;;  %v105_v15 = vsel %vm91_vm0, %v103_v13, 0.0 }
  0xa2   :  { %106 = vadd.xlane.f32.xlu1 %v105_v15 }
  0xa3   :  { %v104_v16 = vmul.f32 %v102_v14, %v102_v14 }
  0xa5   :  { %v108_v17 = vsel %vm91_vm0, %v104_v16, 0.0 }
  0xa6   :  { %109 = vadd.xlane.f32.xlu1 %v108_v17 }
 0x12f   :  { %v107_v24 = vpop.xlane.xlu1 %106 }
 0x130   :  { %v111_v25 = vmul.f32 0.03125, %v107_v24 }
 0x132   :  { %v113_v26 = vadd.f32 1e-05, %v111_v25 }
 0x133   :  { %v110_v27 = vpop.xlane.xlu1 %109 }
 0x134   :  { %8110 = vrsqrt.f32 %v113_v26  ;;  %v112_v28 = vmul.f32 0.03125, %v110_v27 }
 0x136   :  { %v114_v29 = vadd.f32 1e-05, %v112_v28 }
 0x138   :  { %8112 = vrsqrt.f32 %v114_v29 }
 0x13e   :  { %v8111_v30 = vpop.eup %8110 }
 0x13f   :  { %v117_v32 = vmul.f32 %v8111_v30, %v101_v10 }
 0x141   :  { %v125_v34 = vmul.f32 %v7428_v31, %v117_v32 }
 0x142   :  { %v8113_v35 = vpop.eup %8112 }
 0x143   :  { %v118_v36 = vmul.f32 %v8113_v35, %v102_v14  ;;  %v8633_v37 = vadd.f32 %v7429_v33, %v125_v34 }
 0x145   :  { %v126_v38 = vmul.f32 %v7428_v31, %v118_v36  ;;  %7713 = vmatprep.mubr.msk.f32.mxu0 %vm91_vm0, %v8633_v37  ;;  %v7432_v36 = vld [vmem:[%s12540_s6] ss:$0 sm:$0xff] }
 0x147   :  { %v8637_v39 = vadd.f32 %v7429_v33, %v126_v38 }
 0x149   :  { %7714 = vmatmul.mubr.msk.f32.vlgmr.msra.gmra.mrb[0].mxu0 %vm91_vm0, %v8637_v39 }
 0x14a   :  { %7736 = vmatpush3.msk.msra.mxu0 %vm12621_vm11, %v403_v54 }
 0x21c   :  { %v8691_v63 = vpop.f32.mrb[0].mxu0 }
 0x21d   :  { %12699 = vst [vmem:[#allocation15_spill] sm:$0xff] %v8691_v63  ;;  %v228_v1 = vrot.slane %v8691_v63, 5  ;;  %v249_v2 = vrot.slane %v8691_v63, 6  ;;  %v8699_v4 = vpop.f32.mrb[1].mxu0  ;;  %v270_v9 = vrot.slane %v8691_v63, 7  ;;  %v226_v12 = vmul.f32 %v8691_v63, %v224_v61 }
 0x21e   :  { %12700 = vst [vmem:[#allocation16_spill] sm:$0xff] %v8699_v4  ;;  %v227_v6 = vrot.slane %v8699_v4, 5  ;;  %v248_v7 = vrot.slane %v8699_v4, 6  ;;  %v269_v10 = vrot.slane %v8699_v4, 7  ;;  %v225_v16 = vmul.f32 %v224_v61, %v8699_v4  ;;  %v7445_v61 = vld [vmem:[%s12538_s4 + $0x28] sm:$0xff] }
 0x220   :  { %v230_v13 = vsel %vm229_vm1, %v227_v6, %v228_v1  ;;  %v231_v14 = vsel %vm229_vm1, %v228_v1, %v227_v6  ;;  %v251_v15 = vsel %vm250_vm2, %v248_v7, %v249_v2  ;;  %v252_v19 = vsel %vm250_vm2, %v249_v2, %v248_v7 }
 0x221   :  { %v238_v17 = vsel %vm232_vm3, %v231_v14, 0.0  ;;  %v239_v18 = vsel %vm233_vm4, %v230_v13, 0.0  ;;  %v259_v22 = vsel %vm253_vm6, %v252_v19, 0.0  ;;  %v260_v23 = vsel %vm254_vm7, %v251_v15, 0.0 }
 0x222   :  { %v244_v20 = vmul.f32 %v243_v0, %v238_v17  ;;  %v245_v21 = vmul.f32 %v243_v0, %v239_v18  ;;  %v265_v24 = vmul.f32 %v264_v8, %v259_v22  ;;  %v266_v25 = vmul.f32 %v264_v8, %v260_v23 }
 0x223   :  { %v272_v26 = vsel %vm271_vm5, %v269_v10, %v270_v9  ;;  %v273_v27 = vsel %vm271_vm5, %v270_v9, %v269_v10  ;;  %v7956_v0 = vpack.c.bf16 %v7445_v61, %v7444_v56  ;;  %v8793_v14 = vsub.s32 4, %v8665_v53  ;;  %v7450_v61 = vld [vmem:[%s12539_s5 + $0x4] sm:$0xf] }
 0x224   :  { %v246_v28 = vadd.f32 %v244_v20, %v225_v16  ;;  %v247_v29 = vadd.f32 %v245_v21, %v226_v12  ;;  %v280_v30 = vsel %vm12622_vm8, %v273_v27, 0.0  ;;  %v281_v31 = vsel %vm12623_vm9, %v272_v26, 0.0  ;;  %v7446_v26 = vld [vmem:[%s12538_s4 + $0x30] sm:$0xff]  ;;  %v7447_v27 = vld [vmem:[%s12538_s4 + $0x38] sm:$0xff] }
 0x225   :  { %v286_v34 = vmul.f32 %v285_v11, %v280_v30  ;;  %v287_v35 = vmul.f32 %v285_v11, %v281_v31  ;;  %7957 = vmatprep.subr.bf16.mxu0 %v7956_v0  ;;  %12704 = vst [vmem:[#allocation20_spill] sm:$0xff] %v8793_v14  ;;  %v8804_v17 = vsub.s32 5, %v8665_v53  ;;  %v8815_v20 = vsub.s32 6, %v8665_v53  ;;  %v7455_v31 = vld [vmem:[%s12541_s7 + $0x40] sm:$0xff] }
 0x226   :  { %v267_v32 = vadd.f32 %v265_v24, %v246_v28  ;;  %v268_v33 = vadd.f32 %v266_v25, %v247_v29  ;;  %v8826_v23 = vsub.s32 7, %v8665_v53  ;;  %v7960_v29 = vpack.c.bf16 %v7447_v27, %v7446_v26 }
 0x227   :  { %12707 = vst [vmem:[#allocation23_spill] sm:$0xff] %v8804_v17  ;;  %12709 = vst [vmem:[#allocation25_spill] sm:$0xff] %v8815_v20  ;;  %v1888_v27 = vrot.slane %v7450_v61, %v8669_v55 }
 0x228   :  { %v288_v38 = vadd.f32 %v286_v34, %v267_v32  ;;  %v289_v40 = vadd.f32 %v287_v35, %v268_v33  ;;  %12710 = vst [vmem:[#allocation26_spill] sm:$0xff] %v8826_v23  ;;  %v7456_v32 = vld [vmem:[%s12541_s7 + $0x48] sm:$0xff]  ;;  %v7458_v34 = vld [vmem:[%s12541_s7 + $0x58] sm:$0xff]  ;;  %v7459_v35 = vld [vmem:[%s12541_s7 + $0x60] sm:$0xff] }
 0x229   :  { %v7964_v33 = vpack.c.bf16 %v7456_v32, %v7455_v31 }
 0x22a   :  { %v297_v41 = vadd.f32 %v7432_v36, %v288_v38  ;;  %v298_v42 = vadd.f32 %v7432_v36, %v289_v40  ;;  %v7460_v36 = vld [vmem:[%s12541_s7 + $0x68] sm:$0xff]  ;;  %v7461_v40 = vld [vmem:[%s12541_s7 + $0x70] sm:$0xff] }
 0x22b   :  { %7965 = vmatprep.subr.bf16.mxu1 %v7964_v33  ;;  %v7972_v38 = vpack.c.bf16 %v7460_v36, %v7459_v35  ;;  %v1914_v36 = vrot.slane %v7450_v61, %v8683_v60 }
 0x22c   :  { %v7433_v43 = vmul.f32 -1.442695, %v297_v41  ;;  %v7434_v44 = vmul.f32 -1.442695, %v298_v42 }
 0x22e   :  { %8114 = vpow2.f32 %v7433_v43 }
 0x22f   :  { %8116 = vpow2.f32 %v7434_v44  ;;  %v7437_v44 = vld [vmem:[%s12543_s9] ss:$0 sm:$0xff] }
 0x238   :  { %v8115_v45 = vpop.eup %8114 }
 0x239   :  { %v8117_v46 = vpop.eup %8116  ;;  %v305_v47 = vadd.f32 1.0, %v8115_v45 }
 0x23a   :  { %v306_v48 = vadd.f32 1.0, %v8117_v46 }
 0x23b   :  { %8118 = vrcp.f32 %v305_v47 }
 0x23c   :  { %8120 = vrcp.f32 %v306_v48 }
 0x245   :  { %v8119_v49 = vpop.eup %8118 }
 0x246   :  { %v8121_v50 = vpop.eup %8120  ;;  %v8740_v51 = vmul.f32 %v8119_v49, %v297_v41  ;;  %v7462_v41 = vld [vmem:[%s12541_s7 + $0x78] sm:$0xff] }
 0x247   :  { %v8742_v52 = vmul.f32 %v8121_v50, %v298_v42  ;;  %v7976_v42 = vpack.c.bf16 %v7462_v41, %v7461_v40 }
 0x248   :  { %12701 = vst [vmem:[#allocation17_spill] sm:$0xff] %v8740_v51  ;;  %7732 = vmatprep.mubr.msk.f32.mxu1 %vm321_vm10, %v8740_v51 }
 0x249   :  { %12702 = vst [vmem:[#allocation18_spill] sm:$0xff] %v8742_v52  ;;  %7733 = vmatmul.mubr.msk.f32.vlgmr.msra.gmra.mrb[0].mxu1 %vm321_vm10, %v8742_v52 }
 0x24a   :  { %7967 = vmatpush3.bf16.msra.mxu1 %v7964_v33  ;;  %v1900_v33 = vrot.slane %v7450_v61, %v8675_v57 }
 0x31c   :  { %v7734_v1 = vpop.f32.mrb[0].mxu1 }
 0x31d   :  { %415 = vrot.lane.b32.xlu1 %v7734_v1, %s8500_s23  ;;  %v394_v2 = vpop.f32.mrb[1].mxu1  ;;  %v8766_v7 = vrot.slane %v7734_v1, %v8675_v57  ;;  %v8774_v9 = vrot.slane %v7734_v1, %v8683_v60  ;;  %v8782_v11 = vrot.slane %v7734_v1, %v8689_v62  ;;  %v8790_v13 = vrot.slane %v7734_v1, %v8669_v55 }
 0x31e   :  { %413 = vrot.lane.b32.xlu0 %v394_v2, %s8500_s23  ;;  %v8762_v6 = vrot.slane %v394_v2, %v8675_v57  ;;  %v8770_v8 = vrot.slane %v394_v2, %v8683_v60  ;;  %v8778_v10 = vrot.slane %v394_v2, %v8689_v62  ;;  %v8786_v12 = vrot.slane %v394_v2, %v8669_v55 }
 0x31f   :  { %12703 = vst [vmem:[#allocation19_spill] sm:$0xff] %v8790_v13  ;;  %v8797_v15 = vrot.slane %v394_v2, %v8793_v14  ;;  %v8801_v16 = vrot.slane %v7734_v1, %v8793_v14  ;;  %v8808_v18 = vrot.slane %v394_v2, %v8804_v17  ;;  %v8812_v19 = vrot.slane %v7734_v1, %v8804_v17 }
 0x320   :  { %v8819_v21 = vrot.slane %v394_v2, %v8815_v20  ;;  %v8823_v22 = vrot.slane %v7734_v1, %v8815_v20  ;;  %v8830_v24 = vrot.slane %v394_v2, %v8826_v23  ;;  %v8834_v25 = vrot.slane %v7734_v1, %v8826_v23 }
 0x321   :  { %12705 = vst [vmem:[#allocation21_spill] sm:$0xff] %v8797_v15  ;;  %12706 = vst [vmem:[#allocation22_spill] sm:$0xff] %v8801_v16 }
 0x322   :  { %822 = vbcast.lane.b32.xlu0 %v8762_v6, 256  ;;  %12708 = vst [vmem:[#allocation24_spill] sm:$0xff] %v8808_v18 }
 0x326   :  { %910 = vbcast.lane.b32.xlu0 %v8766_v7, 256 }
 0x32a   :  { %833 = vbcast.lane.b32.xlu0 %v8770_v8, 256 }
 0x32e   :  { %921 = vbcast.lane.b32.xlu0 %v8774_v9, 256 }
 0x332   :  { %844 = vbcast.lane.b32.xlu0 %v8778_v10, 256 }
 0x336   :  { %932 = vbcast.lane.b32.xlu0 %v8782_v11, 256 }
 0x33a   :  { %855 = vbcast.lane.b32.xlu0 %v8786_v12, 256 }
 0x33e   :  { %943 = vbcast.lane.b32.xlu0 %v8790_v13, 256 }
 0x342   :  { %866 = vbcast.lane.b32.xlu0 %v8797_v15, 256 }
 0x346   :  { %954 = vbcast.lane.b32.xlu0 %v8801_v16, 256 }
 0x34a   :  { %877 = vbcast.lane.b32.xlu0 %v8808_v18, 256 }
 0x34e   :  { %965 = vbcast.lane.b32.xlu0 %v8812_v19, 256 }
 0x352   :  { %888 = vbcast.lane.b32.xlu0 %v8819_v21, 256 }
 0x356   :  { %976 = vbcast.lane.b32.xlu0 %v8823_v22, 256 }
 0x35a   :  { %899 = vbcast.lane.b32.xlu0 %v8830_v24, 256 }
 0x35e   :  { %987 = vbcast.lane.b32.xlu0 %v8834_v25, 256 }
 0x362   :  { %1350 = vbcast.lane.b32.xlu0 %v8770_v8, 272 }
 0x366   :  { %1358 = vbcast.lane.b32.xlu0 %v8778_v10, 272 }
 0x36a   :  { %1414 = vbcast.lane.b32.xlu0 %v8774_v9, 272 }
 0x36e   :  { %1342 = vbcast.lane.b32.xlu0 %v8762_v6, 272 }
 0x372   :  { %1366 = vbcast.lane.b32.xlu0 %v8786_v12, 272 }
 0x376   :  { %1422 = vbcast.lane.b32.xlu0 %v8782_v11, 272 }
 0x37a   :  { %1374 = vbcast.lane.b32.xlu0 %v8797_v15, 272 }
 0x37e   :  { %1406 = vbcast.lane.b32.xlu0 %v8766_v7, 272 }
 0x382   :  { %1430 = vbcast.lane.b32.xlu0 %v8790_v13, 272 }
 0x386   :  { %1382 = vbcast.lane.b32.xlu0 %v8808_v18, 272 }
 0x38a   :  { %1438 = vbcast.lane.b32.xlu0 %v8801_v16, 272 }
 0x38f   :  { %v416_v30 = vpop.permute.xlu1 %415 }
 0x390   :  { %v414_v28 = vpop.permute.xlu0 %413 }
 0x391   :  { %7737 = vmatprep.mubr.msk.f32.mxu0 %vm12620_vm12, %v414_v28 }
 0x392   :  { %7738 = vmatmul.mubr.msk.f32.vlgmr.msra.gmra.mrb[2].mxu0 %vm12620_vm12, %v416_v30 }
 0x393   :  { %7959 = vmatpush3.bf16.msra.mxu0 %v7956_v0  ;;  %7748 = vmatprep.mubr.msk.f32.mxu0 %vm91_vm0, %v8633_v37  ;;  %v7457_v37 = vld [vmem:[%s12541_s7 + $0x50] sm:$0xff] }
 0x394   :  { %7961 = vmatprep.subr.bf16.mxu0 %v7960_v29  ;;  %v8884_v43 = vpop.permute.xlu0 %822 }
 0x397   :  { %7963 = vmatpush3.bf16.msra.mxu0 %v7960_v29 }
 0x398   :  { %v8894_v50 = vpop.permute.xlu0 %910 }
 0x39a   :  { %7749 = vmatmul.mubr.msk.f32.vlgmr.msra.gmra.mrb[4].mxu0 %vm91_vm0, %v8637_v39  ;;  %v7968_v39 = vpack.c.bf16 %v7458_v34, %v7457_v37 }
 0x39c   :  { %7969 = vmatprep.subr.bf16.mxu1 %v7968_v39  ;;  %v8907_v31 = vpop.permute.xlu0 %833 }
 0x39d   :  { %7971 = vmatpush3.bf16.msra.mxu1 %v7968_v39 }
 0x39e   :  { %7973 = vmatprep.subr.bf16.mxu1 %v7972_v38 }
 0x3a1   :  { %7975 = vmatpush3.bf16.msra.mxu1 %v7972_v38  ;;  %v1928_v38 = vrot.slane %v7450_v61, %v8689_v62 }
 0x3a2   :  { %7977 = vmatprep.subr.bf16.mxu1 %v7976_v42 }
 0x3a5   :  { %7979 = vmatpush3.bf16.msra.mxu1 %v7976_v42 }
 0x465   :  { %v7739_v45 = vpop.f32.mrb[2].mxu0 }
 0x466   :  { %v8889_v46 = vadd.f32 %v7739_v45, %v7437_v44  ;;  %v492_v47 = vpop.f32.mrb[3].mxu0 }
 0x467   :  { %v8891_v48 = vadd.f32 %v7437_v44, %v492_v47 }
 0x468   :  { %v508_v49 = vand.u32 2147483647, %v8889_v46  ;;  %vm504_vm14 = vcmp.ne.f32.partialorder %v8889_v46, %v8889_v46 }
 0x469   :  { %v507_v54 = vand.u32 2147483647, %v8891_v48 }
 0x46a   :  { %v510_v56 = vsub.f32 0.0, %v508_v49 }
 0x46b   :  { %v509_v0 = vsub.f32 0.0, %v507_v54 }
 0x46c   :  { %v513_v1 = vmul.f32 1.442695, %v510_v56 }
 0x46d   :  { %v511_v2 = vmul.f32 1.442695, %v509_v0  ;;  %v8900_v26 = vpop.f32.mrb[4].mxu0 }
 0x46e   :  { %8122 = vpow2.f32 %v513_v1  ;;  %v1892_v28 = vrot.slane %v8900_v26, 5  ;;  %v1906_v29 = vrot.slane %v8900_v26, 6  ;;  %v8905_v30 = vpop.f32.mrb[5].mxu0  ;;  %v1920_v32 = vrot.slane %v8900_v26, 7 }
 0x46f   :  { %8124 = vpow2.f32 %v511_v2  ;;  %v1891_v37 = vrot.slane %v8905_v30, 5  ;;  %v1905_v34 = vrot.slane %v8905_v30, 6  ;;  %v1919_v39 = vrot.slane %v8905_v30, 7  ;;  %v8936_v2 = vpop.permute.xlu0 %921 }
 0x470   :  { %v1890_v35 = vmul.f32 %v8900_v26, %v1888_v27  ;;  %v1889_v56 = vmul.f32 %v1888_v27, %v8905_v30 }
 0x471   :  { %v1893_v40 = vsel %vm229_vm1, %v1891_v37, %v1892_v28  ;;  %v1894_v41 = vsel %vm229_vm1, %v1892_v28, %v1891_v37  ;;  %v1907_v42 = vsel %vm250_vm2, %v1905_v34, %v1906_v29  ;;  %v1908_v44 = vsel %vm250_vm2, %v1906_v29, %v1905_v34 }
 0x472   :  { %v1895_v45 = vsel %vm232_vm3, %v1894_v41, 0.0  ;;  %v1896_v47 = vsel %vm233_vm4, %v1893_v40, 0.0  ;;  %v1910_v49 = vsel %vm254_vm7, %v1907_v42, 0.0  ;;  %v1921_v54 = vsel %vm271_vm5, %v1919_v39, %v1920_v32 }
 0x473   :  { %v1901_v61 = vmul.f32 %v1900_v33, %v1895_v45  ;;  %v1902_v0 = vmul.f32 %v1900_v33, %v1896_v47  ;;  %v1909_v1 = vsel %vm253_vm6, %v1908_v44, 0.0  ;;  %v1916_v29 = vmul.f32 %v1914_v36, %v1910_v49 }
 0x474   :  { %v1915_v28 = vmul.f32 %v1914_v36, %v1909_v1  ;;  %v1922_v37 = vsel %vm271_vm5, %v1920_v32, %v1919_v39  ;;  %v1924_v27 = vsel %vm12623_vm9, %v1921_v54, 0.0  ;;  %v8944_v36 = vpop.permute.xlu0 %844  ;;  %v7475_v39 = vmul.f32 -1.442695, %v8905_v30 }
 0x475   :  { %v1903_v34 = vadd.f32 %v1901_v61, %v1889_v56  ;;  %v1904_v40 = vadd.f32 %v1902_v0, %v1890_v35  ;;  %v1923_v41 = vsel %vm12622_vm8, %v1922_v37, 0.0  ;;  %v1930_v3 = vmul.f32 %v1928_v38, %v1924_v27 }
 0x476   :  { %v1929_v47 = vmul.f32 %v1928_v38, %v1923_v41  ;;  %v7476_v56 = vmul.f32 -1.442695, %v8900_v26  ;;  %v8501_v61 = vmov 1966171168   ;;  %v502_v41 = vmax.f32 %v8889_v46, 0.0 }
 0x477   :  { %v1917_v33 = vadd.f32 %v1915_v28, %v1903_v34  ;;  %v1918_v45 = vadd.f32 %v1916_v29, %v1904_v40  ;;  %v545_v54 = vunpack.c.l.s4 %v8501_v61  ;;  %vm12625_vm8 = vcmask 1046534  }
 0x478   :  { %v8123_v42 = vpop.eup %8122  ;;  %v8948_v0 = vpop.permute.xlu0 %932  ;;  %vm12624_vm9 = vcmask 1047559  }
 0x479   :  { %v524_v44 = vadd.f32 1.0, %v8123_v42  ;;  %v8125_v5 = vpop.eup %8124  ;;  %v1931_v1 = vadd.f32 %v1929_v47, %v1917_v33  ;;  %v1932_v32 = vadd.f32 %v1930_v3, %v1918_v45  ;;  %v527_v49 = vmul.f32 -0.5, %v8123_v42 }
 0x47a   :  { %v515_v35 = vadd.f32 1.0, %v8125_v5  ;;  %v530_v38 = vand.u32 2147483647, %v8123_v42  ;;  %v546_v29 = vunpack.c.0.s8 %v545_v54  ;;  %v518_v45 = vmul.f32 -0.5, %v8125_v5 }
 0x47b   :  { %8126 = vlog2.f32 %v524_v44  ;;  %v528_v28 = vadd.f32 1.0, %v527_v49  ;;  %v521_v49 = vand.u32 2147483647, %v8125_v5 }
 0x47c   :  { %8128 = vpow2.f32 %v7475_v39  ;;  %v8950_v3 = vpop.permute.xlu0 %855  ;;  %vm531_vm13 = vcmp.lt.f32.partialorder %v530_v38, 0.0004427343  ;;  %v8954_v27 = vsub.s32 %v546_v29, %v8665_v53  ;;  %v7452_v39 = vld [vmem:[%s12540_s6 + $0x1] ss:$0 sm:$0xff]  ;;  %v519_v61 = vadd.f32 1.0, %v518_v45 }
 0x47d   :  { %8130 = vlog2.f32 %v515_v35  ;;  %v529_v40 = vmul.f32 %v8123_v42, %v528_v28  ;;  %v8965_v29 = vadd.f32 %v7452_v39, %v1931_v1  ;;  %vm8968_vm15 = vcmp.lt.f32.partialorder %v521_v49, 0.0004427343 }
 0x47e   :  { %8132 = vpow2.f32 %v7476_v56  ;;  %12711 = vst [vmem:[#allocation27_spill] sm:$0xff] %v8954_v27 }
 0x480   :  { %v8963_v28 = vpop.permute.xlu0 %943 }
 0x485   :  { %v8127_v37 = vpop.eup %8126 }
 0x486   :  { %v526_v34 = vmul.f32 0.6931472, %v8127_v37  ;;  %v8129_v44 = vpop.eup %8128 }
 0x487   :  { %v8131_v42 = vpop.eup %8130  ;;  %v3346_v38 = vadd.f32 1.0, %v8129_v44  ;;  %v520_v44 = vmul.f32 %v8125_v5, %v519_v61  ;;  %v8993_v61 = vpop.permute.xlu0 %866 }
 0x488   :  { %v532_v33 = vsel %vm531_vm13, %v529_v40, %v526_v34  ;;  %v8133_v54 = vpop.eup %8132  ;;  %vm503_vm13 = vcmp.ne.f32.partialorder %v8891_v48, %v8891_v48 }
 0x489   :  { %v534_v47 = vadd.f32 %v532_v33, %v502_v41  ;;  %v517_v41 = vmul.f32 0.6931472, %v8131_v42  ;;  %v3347_v1 = vadd.f32 1.0, %v8133_v54  ;;  %8134 = vrcp.f32 %v3346_v38 }
 0x48a   :  { %v7453_v42 = vmul.f32 -1.442695, %v8965_v29 }
 0x48b   :  { %v536_v35 = vsel %vm504_vm14, %v8889_v46, %v534_v47  ;;  %v8975_v46 = vld [vmem:[%s12544_s10] sm:$0xff]  ;;  %v523_v5 = vsel %vm8968_vm15, %v520_v44, %v517_v41  ;;  %8136 = vrcp.f32 %v3347_v1 }
 0x48c   :  { %v599_v56 = vrot.slane %v536_v35, %v8954_v27  ;;  %v592_v37 = vcombine.high %v536_v35, %v536_v35  ;;  %v8985_v49 = vmul.f32 %v536_v35, %v8742_v52  ;;  %8138 = vpow2.f32 %v7453_v42 }
 0x48e   :  { %v607_v34 = vcombine.high %v599_v56, %v599_v56  ;;  %v615_v40 = vrot.slane %v599_v56, %v8954_v27  ;;  %v8981_v56 = vadd.f32 %v7452_v39, %v1932_v32  ;;  %v606_v58 = vrot.slane %v592_v37, %v8954_v27 }
 0x48f   :  { %v501_v39 = vmax.f32 %v8891_v48, 0.0  ;;  %v1044_v4 = vcombine.high %v8985_v49, %v8985_v49 }
 0x490   :  { %v629_v45 = vrot.slane %v607_v34, %v8954_v27  ;;  %v637_v47 = vcombine.high %v615_v40, %v615_v40  ;;  %v8979_v59 = vrot.slane %v615_v40, %v8675_v57  ;;  %v7454_v40 = vmul.f32 -1.442695, %v8981_v56 }
 0x491   :  { %v533_v34 = vadd.f32 %v523_v5, %v501_v39  ;;  %v608_v41 = vcombine.high %v606_v58, %v606_v58  ;;  %v622_v33 = vrot.slane %v606_v58, %v8954_v27  ;;  %v9014_v5 = vpop.permute.xlu0 %954 }
 0x492   :  { %12714 = vst [vmem:[#allocation28_spill] sm:$0xff] %v8979_v59  ;;  %v8989_v53 = vrot.slane %v629_v45, %v8675_v57  ;;  %v639_v54 = vcombine.high %v629_v45, %v629_v45  ;;  %v8996_v38 = vrot.slane %v637_v47, %v8675_v57  ;;  %v737_v32 = vmul.f32 %v8979_v59, %v8975_v46 }
 0x493   :  { %v1051_v45 = vrot.slane %v8985_v49, %v8954_v27  ;;  %v636_v58 = vrot.slane %v608_v41, %v8954_v27  ;;  %v9022_v52 = vrot.slane %v622_v33, %v8675_v57 }
 0x494   :  { %12715 = vst [vmem:[#allocation29_spill] sm:$0xff] %v8989_v53  ;;  %12716 = vst [vmem:[#allocation30_spill] sm:$0xff] %v8996_v38  ;;  %v739_v35 = vmul.f32 %v8989_v53, %v8975_v46  ;;  %v785_v37 = vmul.f32 1.442695, %v737_v32  ;;  %v9008_v47 = vrot.slane %v639_v54, %v8675_v57  ;;  %v741_v44 = vmul.f32 %v8996_v38, %v8975_v46  ;;  %v8135_v54 = vpop.eup %8134 }
 0x495   :  { %v9017_v32 = vsel %vm503_vm13, %v8891_v48, %v533_v34  ;;  %v1059_v39 = vcombine.high %v1051_v45, %v1051_v45  ;;  %v1067_v42 = vrot.slane %v1051_v45, %v8954_v27  ;;  %12718 = vst [vmem:[#allocation32_spill] sm:$0xff] %v9022_v52  ;;  %v8137_v48 = vpop.eup %8136  ;;  %v638_v34 = vcombine.high %v622_v33, %v622_v33  ;;  %v9035_v45 = vpop.permute.xlu0 %877 }
 0x496   :  { %12717 = vst [vmem:[#allocation31_spill] sm:$0xff] %v9008_v47  ;;  %8140 = vpow2.f32 %v785_v37  ;;  %v789_v1 = vmul.f32 1.442695, %v739_v35  ;;  %v743_v35 = vmul.f32 %v9008_v47, %v8975_v46  ;;  %v793_v37 = vmul.f32 1.442695, %v741_v44  ;;  %v8139_v47 = vpop.eup %8138 }
 0x497   :  { %8142 = vpow2.f32 %v7454_v40  ;;  %v550_v38 = vrot.slane %v9017_v32, %v8954_v27  ;;  %v1081_v41 = vrot.slane %v1059_v39, %v8954_v27  ;;  %v9030_v53 = vrot.slane %v1067_v42, %v8675_v57 }
 0x498   :  { %8144 = vpow2.f32 %v789_v1  ;;  %v9033_v40 = vmul.f32 %v8135_v54, %v8905_v30  ;;  %v9038_v59 = vrot.slane %v636_v58, %v8675_v57  ;;  %v745_v44 = vmul.f32 %v9022_v52, %v8975_v46 }
 0x499   :  { %12719 = vst [vmem:[#allocation33_spill] sm:$0xff] %v9030_v53  ;;  %8146 = vpow2.f32 %v793_v37  ;;  %v797_v1 = vmul.f32 1.442695, %v743_v35  ;;  %v558_v33 = vcombine.high %v550_v38, %v550_v38  ;;  %v640_v39 = vcombine.high %v636_v58, %v636_v58 }
 0x49a   :  { %12720 = vst [vmem:[#allocation34_spill] sm:$0xff] %v9038_v59  ;;  %v1089_v18 = vcombine.high %v1067_v42, %v1067_v42  ;;  %v566_v30 = vrot.slane %v550_v38, %v8954_v27  ;;  %v9046_v54 = vrot.slane %v1081_v41, %v8675_v57  ;;  %v1189_v16 = vmul.f32 %v9030_v53, %v8894_v50  ;;  %v9061_v53 = vpop.permute.xlu0 %965 }
 0x49b   :  { %v3356_v37 = vrot.slane %v9033_v40, 1  ;;  %v9052_v35 = vrot.slane %v638_v34, %v8675_v57  ;;  %v747_v58 = vmul.f32 %v9038_v59, %v8975_v46  ;;  %8148 = vpow2.f32 %v797_v1 }
 0x49c   :  { %v801_v49 = vmul.f32 1.442695, %v745_v44  ;;  %v580_v38 = vrot.slane %v558_v33, %v8954_v27  ;;  %v9058_v13 = vmul.f32 %v8137_v48, %v8900_v26  ;;  %v9064_v34 = vrot.slane %v640_v39, %v8675_v57 }
 0x49d   :  { %12721 = vst [vmem:[#allocation35_spill] sm:$0xff] %v9052_v35  ;;  %3372 = vrot.lane.b32.xlu0 %v3356_v37, %s8502_s24  ;;  %v1058_v1 = vrot.slane %v1044_v4, %v8954_v27  ;;  %v1091_v26 = vcombine.high %v1081_v41, %v1081_v41  ;;  %v9074_v48 = vrot.slane %v1089_v18, %v8675_v57  ;;  %v805_v33 = vmul.f32 1.442695, %v747_v58 }
 0x49e   :  { %12722 = vst [vmem:[#allocation36_spill] sm:$0xff] %v9064_v34  ;;  %v749_v4 = vmul.f32 %v9052_v35, %v8975_v46  ;;  %8150 = vpow2.f32 %v801_v49  ;;  %v588_v39 = vcombine.high %v566_v30, %v566_v30 }
 0x49f   :  { %12723 = vst [vmem:[#allocation37_spill] sm:$0xff] %v9074_v48  ;;  %v1060_v41 = vcombine.high %v1058_v1, %v1058_v1  ;;  %v9090_v58 = vrot.slane %v1091_v26, %v8675_v57  ;;  %v1193_v49 = vmul.f32 %v9074_v48, %v8948_v0 }
 0x4a0   :  { %v8141_v63 = vpop.eup %8140 }
 0x4a1   :  { %v1207_v15 = vmul.f32 0.0, %v8141_v63  ;;  %v8143_v42 = vpop.eup %8142  ;;  %v1949_v63 = vadd.f32 1.0, %v8139_v47  ;;  %v1191_v47 = vmul.f32 %v9046_v54, %v8936_v2  ;;  %1394 = vbcast.lane.b32.xlu0 %v8819_v21, 280  ;;  %v751_v2 = vmul.f32 %v9064_v34, %v8975_v46  ;;  %12724 = vst [vmem:[#allocation38_spill] sm:$0xff] %v9090_v58 }
 0x4a2   :  { %v8145_v50 = vpop.eup %8144  ;;  %v1950_v18 = vadd.f32 1.0, %v8143_v42  ;;  %v9096_v42 = vrot.slane %v566_v30, %v8675_v57  ;;  %v590_v34 = vcombine.high %v580_v38, %v580_v38 }
 0x4a3   :  { %v1211_v52 = vadd.f32 %v1207_v15, %v1189_v16  ;;  %v9069_v15 = vmul.f32 %v9017_v32, %v8740_v51  ;;  %v543_v16 = vcombine.high %v9017_v32, %v9017_v32  ;;  %v9082_v51 = vrot.slane %v580_v38, %v8675_v57  ;;  %v8147_v32 = vpop.eup %8146 }
 0x4a4   :  { %8152 = vrcp.f32 %v1949_v63  ;;  %v9098_v63 = vpop.permute.xlu0 %888  ;;  %v721_v0 = vmul.f32 %v9096_v42, %v8975_v46  ;;  %v3363_v38 = vrot.slane %v9058_v13, 1 }
 0x4a5   :  { %1215 = vst.msk [vmem:[#allocation2 + $0x80] sm:$0xff] %vm321_vm10, %v1211_v52  ;;  %v1219_v44 = vmul.f32 %v8145_v50, %v1211_v52  ;;  %v1074_v52 = vrot.slane %v1058_v1, %v8954_v27  ;;  %v557_v50 = vrot.slane %v543_v16, %v8954_v27  ;;  %8154 = vpow2.f32 %v805_v33  ;;  %1450 = vbcast.lane.b32.xlu0 %v8812_v19, 280  ;;  %v8149_v30 = vpop.eup %8148 }
 0x4a6   :  { %v9101_v1 = vrot.slane %v588_v39, %v8675_v57  ;;  %v723_v26 = vmul.f32 %v9082_v51, %v8975_v46  ;;  %8156 = vrcp.f32 %v1950_v18  ;;  %v1195_v33 = vmul.f32 %v9090_v58, %v8963_v28 }
 0x4a7   :  { %v1223_v37 = vadd.f32 %v1219_v44, %v1191_v47  ;;  %v809_v44 = vmul.f32 1.442695, %v749_v4  ;;  %v9110_v4 = vrot.slane %v1074_v52, %v8675_v57  ;;  %v753_v18 = vmul.f32 1.442695, %v721_v0 }
 0x4a8   :  { %v725_v59 = vmul.f32 %v9101_v1, %v8975_v46  ;;  %v757_v48 = vmul.f32 1.442695, %v723_v26  ;;  %v8151_v28 = vpop.eup %8150  ;;  %v1090_v0 = vcombine.high %v1074_v52, %v1074_v52 }
 0x4a9   :  { %1228 = vst.msk [vmem:[#allocation2 + $0x90] sm:$0xff] %vm321_vm10, %v1223_v37  ;;  %v1232_v47 = vmul.f32 %v8147_v32, %v1223_v37  ;;  %v813_v37 = vmul.f32 1.442695, %v751_v2  ;;  %v1088_v32 = vrot.slane %v1060_v41, %v8954_v27  ;;  %12725 = vst [vmem:[#allocation39_spill] sm:$0xff] %v9110_v4  ;;  %8158 = vpow2.f32 %v809_v44  ;;  %3388 = vrot.lane.b32.xlu0 %v3363_v38, %s8502_s24 }
 0x4aa   :  { %v9118_v2 = vrot.slane %v590_v34, %v8675_v57  ;;  %v1002_v41 = vrot.slane %v9069_v15, %v8954_v27  ;;  %8160 = vpow2.f32 %v753_v18  ;;  %v1197_v34 = vmul.f32 %v9110_v4, %v9014_v5 }
 0x4ab   :  { %v1236_v16 = vadd.f32 %v1232_v47, %v1193_v49  ;;  %v559_v49 = vcombine.high %v557_v50, %v557_v50  ;;  %v573_v47 = vrot.slane %v557_v50, %v8954_v27  ;;  %v9126_v44 = vrot.slane %v1088_v32, %v8675_v57 }
 0x4ac   :  { %8162 = vpow2.f32 %v813_v37  ;;  %v1010_v38 = vcombine.high %v1002_v41, %v1002_v41  ;;  %v727_v37 = vmul.f32 %v9118_v2, %v8975_v46  ;;  %v761_v5 = vmul.f32 1.442695, %v725_v59 }
 0x4ad   :  { %1241 = vst.msk [vmem:[#allocation2 + $0xa0] sm:$0xff] %vm321_vm10, %v1236_v16  ;;  %v1245_v39 = vmul.f32 %v8149_v30, %v1236_v16  ;;  %v977_v16 = vpop.permute.xlu0 %976  ;;  %12726 = vst [vmem:[#allocation40_spill] sm:$0xff] %v9126_v44  ;;  %v9135_v26 = vrot.slane %v573_v47, %v8675_v57  ;;  %8164 = vpow2.f32 %v757_v48  ;;  %1402 = vbcast.lane.b32.xlu0 %v8830_v24, 280 }
 0x4ae   :  { %v8153_v50 = vpop.eup %8152  ;;  %8166 = vpow2.f32 %v761_v5  ;;  %v3358_v5 = vrot.slane %v9033_v40, 3 }
 0x4af   :  { %v1249_v35 = vadd.f32 %v1245_v39, %v1195_v33  ;;  %v9132_v33 = vrot.slane %v559_v49, %v8954_v27  ;;  %v9138_v52 = vmul.f32 %v8153_v50, %v8965_v29  ;;  %v1018_v39 = vrot.slane %v1002_v41, %v8954_v27 }
 0x4b0   :  { %v1092_v49 = vcombine.high %v1088_v32, %v1088_v32  ;;  %v1199_v41 = vmul.f32 %v9126_v44, %v9061_v53  ;;  %v729_v53 = vmul.f32 %v9135_v26, %v8975_v46 }
 0x4b1   :  { %1254 = vst.msk [vmem:[#allocation2 + $0xb0] sm:$0xff] %vm321_vm10, %v1249_v35  ;;  %v1258_v30 = vmul.f32 %v8151_v28, %v1249_v35  ;;  %12727 = vst [vmem:[#allocation41_spill] sm:$0xff] %v9138_v52  ;;  %v8155_v35 = vpop.eup %8154  ;;  %v9145_v28 = vrot.slane %v1090_v0, %v8675_v57  ;;  %7767 = vmatprep.mubr.msk.f32.mxu1 %vm321_vm10, %v9138_v52  ;;  %v9152_v48 = vpop.permute.xlu0 %899  ;;  %v9156_v59 = vrot.slane %v9132_v33, %v8675_v57 }
 0x4b2   :  { %v8157_v29 = vpop.eup %8156  ;;  %v9162_v0 = vrot.slane %v1018_v39, %v8675_v57  ;;  %1458 = vbcast.lane.b32.xlu0 %v8823_v22, 280 }
 0x4b3   :  { %v1262_v18 = vadd.f32 %v1258_v30, %v1197_v34  ;;  %12728 = vst [vmem:[#allocation42_spill] sm:$0xff] %v9145_v28  ;;  %v589_v34 = vcombine.high %v573_v47, %v573_v47  ;;  %v9159_v32 = vmul.f32 %v8157_v29, %v8981_v56  ;;  %v1032_v30 = vrot.slane %v1010_v38, %v8954_v27 }
 0x4b4   :  { %v765_v47 = vmul.f32 1.442695, %v727_v37  ;;  %v1201_v56 = vmul.f32 %v9145_v28, %v977_v16  ;;  %v995_v16 = vcombine.high %v9069_v15, %v9069_v15 }
 0x4b5   :  { %1267 = vst.msk [vmem:[#allocation2 + $0xc0] sm:$0xff] %vm321_vm10, %v1262_v18  ;;  %v1271_v50 = vmul.f32 %v8155_v35, %v1262_v18  ;;  %12729 = vst [vmem:[#allocation43_spill] sm:$0xff] %v9159_v32  ;;  %v8159_v18 = vpop.eup %8158  ;;  %v9169_v35 = vrot.slane %v1092_v49, %v8675_v57  ;;  %7768 = vmatmul.mubr.msk.f32.vlgmr.msra.gmra.mrb[2].mxu1 %vm321_vm10, %v9159_v32  ;;  %v1173_v49 = vmul.f32 %v9162_v0, %v8884_v43 }
 0x4b6   :  { %v8161_v29 = vpop.eup %8160  ;;  %v9182_v44 = vrot.slane %v1032_v30, %v8675_v57  ;;  %3376 = vrot.lane.b32.xlu0 %v3358_v5, %s8502_s24  ;;  %8168 = vpow2.f32 %v765_v47  ;;  %v1042_v15 = vcombine.high %v1032_v30, %v1032_v30 }
 0x4b7   :  { %v1275_v52 = vadd.f32 %v1271_v50, %v1199_v41  ;;  %v9176_v41 = vrot.slane %v589_v34, %v8675_v57  ;;  %v1040_v50 = vcombine.high %v1018_v39, %v1018_v39  ;;  %v1205_v37 = vmul.f32 0.0, %v8161_v29  ;;  %v8163_v32 = vpop.eup %8162  ;;  %v988_v39 = vpop.permute.xlu0 %987 }
 0x4b8   :  { %v769_v34 = vmul.f32 1.442695, %v729_v53  ;;  %v8165_v29 = vpop.eup %8164  ;;  %v1203_v43 = vmul.f32 %v9169_v35, %v988_v39  ;;  %v1175_v53 = vmul.f32 %v9182_v44, %v8907_v31 }
 0x4b9   :  { %1280 = vst.msk [vmem:[#allocation2 + $0xd0] sm:$0xff] %vm321_vm10, %v1275_v52  ;;  %v1284_v38 = vmul.f32 %v8159_v18, %v1275_v52  ;;  %v731_v52 = vmul.f32 %v9156_v59, %v8975_v46  ;;  %v1209_v18 = vadd.f32 %v1205_v37, %v1173_v49  ;;  %v9192_v58 = vrot.slane %v1040_v50, %v8675_v57  ;;  %v8167_v30 = vpop.eup %8166 }
 0x4ba   :  { %v733_v37 = vmul.f32 %v9176_v41, %v8975_v46  ;;  %8170 = vpow2.f32 %v769_v34  ;;  %1462 = vbcast.lane.b32.xlu0 %v8834_v25, 272  ;;  %v9208_v50 = vrot.slane %v1042_v15, %v8675_v57 }
 0x4bb   :  { %v1288_v28 = vadd.f32 %v1284_v38, %v1201_v56  ;;  %v591_v56 = vcombine.high %v9132_v33, %v9132_v33  ;;  %1213 = vst.msk [vmem:[#allocation2] sm:$0xff] %vm321_vm10, %v1209_v18  ;;  %v1217_v47 = vmul.f32 %v8165_v29, %v1209_v18  ;;  %v1009_v38 = vrot.slane %v995_v16, %v8954_v27 }
 0x4bc   :  { %v3359_v33 = vrot.slane %v9033_v40, 4  ;;  %v1177_v31 = vmul.f32 %v9192_v58, %v8944_v36  ;;  %v777_v34 = vmul.f32 1.442695, %v733_v37  ;;  %v3365_v29 = vrot.slane %v9058_v13, 3 }
 0x4bd   :  { %1293 = vst.msk [vmem:[#allocation2 + $0xe0] sm:$0xff] %vm321_vm10, %v1288_v28  ;;  %v1297_v4 = vmul.f32 %v8163_v32, %v1288_v28  ;;  %v773_v28 = vmul.f32 1.442695, %v731_v52  ;;  %v1221_v32 = vadd.f32 %v1217_v47, %v1175_v53  ;;  %v1025_v49 = vrot.slane %v1009_v38, %v8954_v27 }
 0x4be   :  { %v1011_v16 = vcombine.high %v1009_v38, %v1009_v38  ;;  %v9213_v52 = vrot.slane %v591_v56, %v8675_v57  ;;  %3378 = vrot.lane.b32.xlu0 %v3359_v33, %s8502_s24 }
 0x4bf   :  { %v1301_v5 = vadd.f32 %v1297_v4, %v1203_v43  ;;  %1226 = vst.msk [vmem:[#allocation2 + $0x10] sm:$0xff] %vm321_vm10, %v1221_v32  ;;  %v1230_v4 = vmul.f32 %v8167_v30, %v1221_v32  ;;  %8172 = vpow2.f32 %v773_v28  ;;  %v1179_v43 = vmul.f32 %v9208_v50, %v8950_v3 }
 0x4c0   :  { %v735_v36 = vmul.f32 %v9213_v52, %v8975_v46  ;;  %v8169_v18 = vpop.eup %8168  ;;  %v9223_v56 = vrot.slane %v1025_v49, %v8675_v57  ;;  %v1039_v53 = vrot.slane %v1011_v16, %v8954_v27  ;;  %8174 = vpow2.f32 %v777_v34 }
 0x4c1   :  { %1306 = vst.msk [vmem:[#allocation2 + $0xf0] sm:$0xff] %vm321_vm10, %v1301_v5  ;;  %v1234_v39 = vadd.f32 %v1230_v4, %v1177_v31  ;;  %v3366_v5 = vrot.slane %v9058_v13, 4  ;;  %v1041_v32 = vcombine.high %v1025_v49, %v1025_v49  ;;  %v3367_v31 = vrot.slane %v9058_v13, 5 }
 0x4c2   :  { %3392 = vrot.lane.b32.xlu0 %v3365_v29, %s8502_s24  ;;  %v781_v47 = vmul.f32 1.442695, %v735_v36  ;;  %v1181_v37 = vmul.f32 %v9223_v56, %v8993_v61  ;;  %v9232_v28 = vrot.slane %v1039_v53, %v8675_v57  ;;  %v1043_v34 = vcombine.high %v1039_v53, %v1039_v53 }
 0x4c3   :  { %1239 = vst.msk [vmem:[#allocation2 + $0x20] sm:$0xff] %vm321_vm10, %v1234_v39  ;;  %v1243_v15 = vmul.f32 %v8169_v18, %v1234_v39  ;;  %v9240_v61 = vrot.slane %v1041_v32, %v8675_v57 }
 0x4c4   :  { %v8171_v46 = vpop.eup %8170  ;;  %8176 = vpow2.f32 %v781_v47  ;;  %v1183_v4 = vmul.f32 %v9232_v28, %v9035_v45  ;;  %v9247_v29 = vrot.slane %v1043_v34, %v8675_v57  ;;  %v12731_v34 = vld [vmem:[#allocation21_spill] sm:$0xff] }
 0x4c5   :  { %v1247_v38 = vadd.f32 %v1243_v15, %v1179_v43  ;;  %v1185_v36 = vmul.f32 %v9240_v61, %v9098_v63 }
 0x4c6   :  { %3394 = vrot.lane.b32.xlu0 %v3366_v5, %s8502_s24  ;;  %v1187_v15 = vmul.f32 %v9247_v29, %v9152_v48 }
 0x4c7   :  { %1252 = vst.msk [vmem:[#allocation2 + $0x30] sm:$0xff] %vm321_vm10, %v1247_v38  ;;  %v1256_v3 = vmul.f32 %v8171_v46, %v1247_v38  ;;  %v7465_v38 = vld [vmem:[%s12542_s8 + $0x2] sm:$0x3] }
 0x4c8   :  { %7770 = vmatprep.subr.msk.mxu0 %vm12621_vm11, %v7465_v38 }
 0x4c9   :  { %v1260_v30 = vadd.f32 %v1256_v3, %v1181_v37  ;;  %v8173_v33 = vpop.eup %8172  ;;  %7771 = vmatpush3.msk.msra.mxu0 %vm12621_vm11, %v7465_v38  ;;  %vm3472_vm11 = vcmask 1045509  }
 0x4ca   :  { %3396 = vrot.lane.b32.xlu0 %v3367_v31, %s8502_s24  ;;  %v8175_v39 = vpop.eup %8174 }
 0x4cb   :  { %1265 = vst.msk [vmem:[#allocation2 + $0x40] sm:$0xff] %vm321_vm10, %v1260_v30  ;;  %v1269_v16 = vmul.f32 %v8173_v33, %v1260_v30 }
 0x4cd   :  { %v1273_v49 = vadd.f32 %v1269_v16, %v1183_v4  ;;  %v12730_v4 = vld [vmem:[#allocation19_spill] sm:$0xff]  ;;  %v9305_v16 = vpop.permute.xlu0 %1350 }
 0x4ce   :  { %v8177_v45 = vpop.eup %8176 }
 0x4cf   :  { %1278 = vst.msk [vmem:[#allocation2 + $0x50] sm:$0xff] %vm321_vm10, %v1273_v49  ;;  %v1282_v18 = vmul.f32 %v8175_v39, %v1273_v49  ;;  %v12732_v49 = vld [vmem:[#allocation22_spill] sm:$0xff] }
 0x4d1   :  { %v1286_v43 = vadd.f32 %v1282_v18, %v1185_v36  ;;  %v9310_v39 = vpop.permute.xlu0 %1358  ;;  %v12734_v36 = vld [vmem:[#allocation24_spill] sm:$0xff] }
 0x4d2   :  { %12733 = vst [vmem:[#allocation19_spill] sm:$0xff] %v9310_v39 }
 0x4d3   :  { %1291 = vst.msk [vmem:[#allocation2 + $0x60] sm:$0xff] %vm321_vm10, %v1286_v43  ;;  %v1295_v53 = vmul.f32 %v8177_v45, %v1286_v43 }
 0x4d5   :  { %v1299_v47 = vadd.f32 %v1295_v53, %v1187_v15  ;;  %v9315_v18 = vpop.permute.xlu0 %1414 }
 0x4d7   :  { %1304 = vst.msk [vmem:[#allocation2 + $0x70] sm:$0xff] %vm321_vm10, %v1299_v47 }
 0x4d9   :  { %v9320_v43 = vpop.permute.xlu0 %1342 }
 0x4dd   :  { %v9325_v45 = vpop.permute.xlu0 %1366 }
 0x4de   :  { %12735 = vst [vmem:[#allocation21_spill] sm:$0xff] %v9325_v45 }
 0x4e1   :  { %v9338_v47 = vpop.permute.xlu0 %1422 }
 0x588   :  { %v7769_v63 = vpop.f32.mrb[2].mxu1 }
 0x589   :  { %v9258_v46 = vpop.f32.mrb[3].mxu1  ;;  %v9261_v5 = vrot.slane %v7769_v63, %v8675_v57  ;;  %v9267_v48 = vrot.slane %v7769_v63, %v8683_v60  ;;  %v9272_v37 = vrot.slane %v7769_v63, %v8689_v62  ;;  %v9277_v3 = vrot.slane %v7769_v63, %v8669_v55 }
 0x58a   :  { %2059 = vrot.lane.b32.xlu1 %v9258_v46, %s8500_s23  ;;  %v9282_v32 = vrot.slane %v7769_v63, %v8793_v14  ;;  %v9287_v30 = vrot.slane %v7769_v63, %v8804_v17  ;;  %v9292_v33 = vrot.slane %v7769_v63, %v8815_v20  ;;  %v9297_v31 = vrot.slane %v7769_v63, %v8826_v23 }
 0x58b   :  { %2555 = vbcast.lane.b32.xlu0 %v9261_v5, 256  ;;  %v9329_v15 = vrot.slane %v9258_v46, %v8675_v57  ;;  %v9335_v53 = vrot.slane %v9258_v46, %v8683_v60  ;;  %v9343_v38 = vrot.slane %v9258_v46, %v8689_v62  ;;  %v9351_v60 = vrot.slane %v9258_v46, %v8669_v55 }
 0x58c   :  { %v9357_v57 = vrot.slane %v9258_v46, %v8793_v14  ;;  %v9373_v14 = vrot.slane %v9258_v46, %v8815_v20  ;;  %v12739_v20 = vld [vmem:[#allocation15_spill] sm:$0xff] }
 0x58d   :  { %v7443_v27 = vmul.f32 -1.442695, %v12739_v20 }
 0x58e   :  { %2061 = vrot.lane.b32.xlu1 %v7769_v63, %s8500_s23  ;;  %v9347_v63 = vpop.permute.xlu0 %1374 }
 0x58f   :  { %2566 = vbcast.lane.b32.xlu0 %v9267_v48, 256  ;;  %12736 = vst [vmem:[#allocation22_spill] sm:$0xff] %v9347_v63 }
 0x592   :  { %826 = vbcast.lane.b32.xlu1 %v8762_v6, 264  ;;  %v9360_v62 = vpop.permute.xlu0 %1406 }
 0x593   :  { %2577 = vbcast.lane.b32.xlu0 %v9272_v37, 256 }
 0x596   :  { %914 = vbcast.lane.b32.xlu1 %v8766_v7, 264 }
 0x597   :  { %2588 = vbcast.lane.b32.xlu0 %v9277_v3, 256 }
 0x59a   :  { %837 = vbcast.lane.b32.xlu1 %v8770_v8, 264 }
 0x59b   :  { %2599 = vbcast.lane.b32.xlu0 %v9282_v32, 256 }
 0x59e   :  { %925 = vbcast.lane.b32.xlu1 %v8774_v9, 264 }
 0x59f   :  { %2610 = vbcast.lane.b32.xlu0 %v9287_v30, 256 }
 0x5a2   :  { %848 = vbcast.lane.b32.xlu1 %v8778_v10, 264 }
 0x5a3   :  { %2621 = vbcast.lane.b32.xlu0 %v9292_v33, 256 }
 0x5a6   :  { %936 = vbcast.lane.b32.xlu1 %v8782_v11, 264 }
 0x5a7   :  { %2632 = vbcast.lane.b32.xlu0 %v9297_v31, 256 }
 0x5aa   :  { %859 = vbcast.lane.b32.xlu1 %v8786_v12, 264 }
 0x5ab   :  { %3052 = vbcast.lane.b32.xlu0 %v9267_v48, 272 }
 0x5ae   :  { %947 = vbcast.lane.b32.xlu1 %v12730_v4, 264 }
 0x5af   :  { %3060 = vbcast.lane.b32.xlu0 %v9272_v37, 272 }
 0x5b2   :  { %870 = vbcast.lane.b32.xlu1 %v12731_v34, 264 }
 0x5b3   :  { %3044 = vbcast.lane.b32.xlu0 %v9261_v5, 272 }
 0x5b6   :  { %958 = vbcast.lane.b32.xlu1 %v12732_v49, 264 }
 0x5b7   :  { %3068 = vbcast.lane.b32.xlu0 %v9277_v3, 272 }
 0x5ba   :  { %881 = vbcast.lane.b32.xlu1 %v12734_v36, 264 }
 0x5bb   :  { %3076 = vbcast.lane.b32.xlu0 %v9282_v32, 272 }
 0x5be   :  { %969 = vbcast.lane.b32.xlu1 %v8812_v19, 264 }
 0x5bf   :  { %3084 = vbcast.lane.b32.xlu0 %v9287_v30, 272 }
 0x5c2   :  { %892 = vbcast.lane.b32.xlu1 %v8819_v21, 264 }
 0x5c3   :  { %3092 = vbcast.lane.b32.xlu0 %v9292_v33, 272 }
 0x5c6   :  { %980 = vbcast.lane.b32.xlu1 %v8823_v22, 264 }
 0x5c7   :  { %3100 = vbcast.lane.b32.xlu0 %v9297_v31, 272 }
 0x5ca   :  { %903 = vbcast.lane.b32.xlu1 %v8830_v24, 264 }
 0x5cb   :  { %2467 = vbcast.lane.b32.xlu0 %v9329_v15, 256 }
 0x5ce   :  { %991 = vbcast.lane.b32.xlu1 %v8834_v25, 264 }
 0x5cf   :  { %2478 = vbcast.lane.b32.xlu0 %v9335_v53, 256 }
 0x5d2   :  { %1354 = vbcast.lane.b32.xlu1 %v8770_v8, 280  ;;  %v9365_v8 = vrot.slane %v9258_v46, %v8804_v17  ;;  %v12737_v17 = vld [vmem:[#allocation16_spill] sm:$0xff] }
 0x5d3   :  { %2489 = vbcast.lane.b32.xlu0 %v9343_v38, 256  ;;  %v7442_v55 = vmul.f32 -1.442695, %v12737_v17 }
 0x5d5   :  { %8178 = vpow2.f32 %v7442_v55 }
 0x5d6   :  { %1362 = vbcast.lane.b32.xlu1 %v8778_v10, 280  ;;  %v9369_v10 = vpop.permute.xlu0 %1430  ;;  %8180 = vpow2.f32 %v7443_v27 }
 0x5d7   :  { %2500 = vbcast.lane.b32.xlu0 %v9351_v60, 256 }
 0x5da   :  { %1418 = vbcast.lane.b32.xlu1 %v8774_v9, 280  ;;  %v9379_v9 = vrot.slane %v9258_v46, %v8826_v23  ;;  %v9394_v46 = vld [vmem:[%s12544_s10 + $0x8] sm:$0xff] }
 0x5db   :  { %2511 = vbcast.lane.b32.xlu0 %v9357_v57, 256  ;;  %v722_v55 = vmul.f32 %v9096_v42, %v9394_v46 }
 0x5dd   :  { %v755_v23 = vmul.f32 1.442695, %v722_v55  ;;  %v12742_v55 = vld [vmem:[#allocation29_spill] sm:$0xff] }
 0x5de   :  { %1346 = vbcast.lane.b32.xlu1 %v8762_v6, 280  ;;  %v9383_v6 = vpop.permute.xlu0 %1382  ;;  %v740_v39 = vmul.f32 %v12742_v55, %v9394_v46 }
 0x5df   :  { %2522 = vbcast.lane.b32.xlu0 %v9365_v8, 256  ;;  %12738 = vst [vmem:[#allocation24_spill] sm:$0xff] %v9383_v6  ;;  %v12741_v6 = vld [vmem:[#allocation28_spill] sm:$0xff]  ;;  %8182 = vpow2.f32 %v755_v23 }
 0x5e0   :  { %v738_v63 = vmul.f32 %v12741_v6, %v9394_v46  ;;  %v791_v23 = vmul.f32 1.442695, %v740_v39 }
 0x5e2   :  { %1370 = vbcast.lane.b32.xlu1 %v8786_v12, 280  ;;  %v9389_v12 = vpop.permute.xlu0 %1438  ;;  %v787_v42 = vmul.f32 1.442695, %v738_v63 }
 0x5e3   :  { %2533 = vbcast.lane.b32.xlu0 %v9373_v14, 256 }
 0x5e6   :  { %1426 = vbcast.lane.b32.xlu1 %v8782_v11, 280  ;;  %v9400_v11 = vpop.permute.xlu0 %3372 }
 0x5e7   :  { %2544 = vbcast.lane.b32.xlu0 %v9379_v9, 256  ;;  %12740 = vst [vmem:[#allocation16_spill] sm:$0xff] %v9400_v11 }
 0x5ea   :  { %1378 = vbcast.lane.b32.xlu1 %v12731_v34, 280  ;;  %v8179_v34 = vpop.eup %8178  ;;  %v9409_v45 = vpop.permute.xlu0 %1394 }
 0x5eb   :  { %2988 = vbcast.lane.b32.xlu0 %v9335_v53, 272  ;;  %v1707_v27 = vadd.f32 1.0, %v8179_v34 }
 0x5ed   :  { %8184 = vrcp.f32 %v1707_v27  ;;  %v12743_v27 = vld [vmem:[#allocation30_spill] sm:$0xff] }
 0x5ee   :  { %1410 = vbcast.lane.b32.xlu1 %v8766_v7, 280  ;;  %v724_v7 = vmul.f32 %v9082_v51, %v9394_v46  ;;  %8186 = vpow2.f32 %v787_v42  ;;  %v9416_v51 = vpop.permute.xlu0 %1450  ;;  %v742_v42 = vmul.f32 %v12743_v27, %v9394_v46 }
 0x5ef   :  { %2996 = vbcast.lane.b32.xlu0 %v9343_v38, 272 }
 0x5f0   :  { %v759_v11 = vmul.f32 1.442695, %v724_v7 }
 0x5f2   :  { %1434 = vbcast.lane.b32.xlu1 %v12730_v4, 280  ;;  %v8181_v4 = vpop.eup %8180  ;;  %8188 = vpow2.f32 %v759_v11 }
 0x5f3   :  { %2980 = vbcast.lane.b32.xlu0 %v9329_v15, 272  ;;  %v8183_v34 = vpop.eup %8182 }
 0x5f6   :  { %1386 = vbcast.lane.b32.xlu1 %v12734_v36, 280  ;;  %v1708_v36 = vadd.f32 1.0, %v8181_v4  ;;  %v1206_v4 = vmul.f32 0.0, %v8183_v34  ;;  %v12746_v34 = vld [vmem:[#allocation33_spill] sm:$0xff] }
 0x5f7   :  { %3004 = vbcast.lane.b32.xlu0 %v9351_v60, 272  ;;  %v8185_v11 = vpop.eup %8184 }
 0x5f8   :  { %8190 = vrcp.f32 %v1708_v36  ;;  %v8187_v36 = vpop.eup %8186 }
 0x5f9   :  { %8192 = vpow2.f32 %v791_v23 }
 0x5fa   :  { %1442 = vbcast.lane.b32.xlu1 %v12732_v49, 280  ;;  %v726_v49 = vmul.f32 %v9101_v1, %v9394_v46  ;;  %v3357_v1 = vrot.slane %v9033_v40, 2 }
 0x5fb   :  { %3012 = vbcast.lane.b32.xlu0 %v9357_v57, 272 }
 0x5fc   :  { %v2060_v6 = vpop.permute.xlu1 %2059  ;;  %v763_v7 = vmul.f32 1.442695, %v726_v49  ;;  %v8189_v49 = vpop.eup %8188 }
 0x5fd   :  { %7772 = vmatprep.mubr.msk.f32.mxu0 %vm12620_vm12, %v2060_v6  ;;  %v728_v6 = vmul.f32 %v9118_v2, %v9394_v46 }
 0x5fe   :  { %1390 = vbcast.lane.b32.xlu1 %v8819_v21, 272  ;;  %v9427_v21 = vpop.permute.xlu0 %3388  ;;  %8194 = vpow2.f32 %v763_v7  ;;  %v3368_v7 = vrot.slane %v9058_v13, 6 }
 0x5ff   :  { %3020 = vbcast.lane.b32.xlu0 %v9365_v8, 272  ;;  %12744 = vst [vmem:[#allocation15_spill] sm:$0xff] %v9427_v21  ;;  %v767_v2 = vmul.f32 1.442695, %v728_v6  ;;  %v730_v6 = vmul.f32 %v9135_v26, %v9394_v46  ;;  %v12748_v26 = vld [vmem:[#allocation32_spill] sm:$0xff] }
 0x600   :  { %v2062_v63 = vpop.permute.xlu1 %2061 }
 0x601   :  { %7773 = vmatmul.mubr.msk.f32.vlgmr.msra.gmra.mrb[6].mxu0 %vm12620_vm12, %v2062_v63  ;;  %v9437_v63 = vmul.f32 %v8185_v11, %v12737_v17  ;;  %vm3469_vm12 = vcmask 1044484  }
 0x602   :  { %1446 = vbcast.lane.b32.xlu1 %v8812_v19, 272  ;;  %v795_v19 = vmul.f32 1.442695, %v742_v42  ;;  %v9439_v21 = vpop.permute.xlu0 %1402 }
 0x603   :  { %3028 = vbcast.lane.b32.xlu0 %v9373_v14, 272  ;;  %12745 = vst [vmem:[#allocation28_spill] sm:$0xff] %v9439_v21 }
 0x604   :  { %v827_v39 = vpop.permute.xlu1 %826  ;;  %8196 = vpow2.f32 %v795_v19 }
 0x605   :  { %v1174_v55 = vmul.f32 %v9162_v0, %v827_v39  ;;  %v1208_v0 = vmul.f32 0.0, %v8187_v36  ;;  %8198 = vpow2.f32 %v767_v2 }
 0x606   :  { %3374 = vrot.lane.b32.xlu1 %v3357_v1, %s8502_s24  ;;  %v8191_v1 = vpop.eup %8190 }
 0x607   :  { %v1210_v23 = vadd.f32 %v1206_v4, %v1174_v55  ;;  %3036 = vbcast.lane.b32.xlu0 %v9379_v9, 272  ;;  %v12747_v4 = vld [vmem:[#allocation31_spill] sm:$0xff]  ;;  %v8193_v55 = vpop.eup %8192  ;;  %v9449_v36 = vmul.f32 %v8191_v1, %v12739_v20 }
 0x608   :  { %v915_v27 = vpop.permute.xlu1 %914  ;;  %v744_v17 = vmul.f32 %v12747_v4, %v9394_v46  ;;  %v8195_v20 = vpop.eup %8194  ;;  %v3364_v4 = vrot.slane %v9058_v13, 2 }
 0x609   :  { %1214 = vst.msk [vmem:[#allocation2 + $0x8] sm:$0xff] %vm321_vm10, %v1210_v23  ;;  %v1190_v39 = vmul.f32 %v12746_v34, %v915_v27  ;;  %v1218_v42 = vmul.f32 %v8189_v49, %v1210_v23  ;;  %v1717_v49 = vrot.slane %v9437_v63, 1  ;;  %v9457_v27 = vpop.permute.xlu0 %1458 }
 0x60a   :  { %1398 = vbcast.lane.b32.xlu1 %v8830_v24, 272  ;;  %v799_v19 = vmul.f32 1.442695, %v744_v17 }
 0x60b   :  { %v1212_v11 = vadd.f32 %v1208_v0, %v1190_v39  ;;  %3398 = vrot.lane.b32.xlu0 %v3368_v7, %s8502_s24  ;;  %v746_v7 = vmul.f32 %v12748_v26, %v9394_v46 }
 0x60c   :  { %v838_v21 = vpop.permute.xlu1 %837  ;;  %8200 = vpow2.f32 %v799_v19 }
 0x60d   :  { %1216 = vst.msk [vmem:[#allocation2 + $0x88] sm:$0xff] %vm321_vm10, %v1212_v11  ;;  %v1176_v23 = vmul.f32 %v9182_v44, %v838_v21  ;;  %v1220_v24 = vmul.f32 %v8193_v55, %v1212_v11  ;;  %v1724_v21 = vrot.slane %v9449_v36, 1  ;;  %v9469_v17 = vpop.permute.xlu0 %3376  ;;  %v1719_v11 = vrot.slane %v9437_v63, 3 }
 0x60e   :  { %1454 = vbcast.lane.b32.xlu1 %v8823_v22, 272  ;;  %v771_v22 = vmul.f32 1.442695, %v730_v6  ;;  %v8197_v1 = vpop.eup %8196  ;;  %12749 = vst [vmem:[#allocation29_spill] sm:$0xff] %v9469_v17 }
 0x60f   :  { %v1222_v0 = vadd.f32 %v1218_v42, %v1176_v23  ;;  %1733 = vrot.lane.b32.xlu0 %v1717_v49, %s8502_s24  ;;  %v803_v23 = vmul.f32 1.442695, %v746_v7  ;;  %v732_v49 = vmul.f32 %v9156_v59, %v9394_v46  ;;  %v8199_v19 = vpop.eup %8198 }
 0x610   :  { %v926_v34 = vpop.permute.xlu1 %925  ;;  %8202 = vpow2.f32 %v771_v22 }
 0x611   :  { %1227 = vst.msk [vmem:[#allocation2 + $0x18] sm:$0xff] %vm321_vm10, %v1222_v0  ;;  %v1192_v44 = vmul.f32 %v9046_v54, %v926_v34  ;;  %v1231_v39 = vmul.f32 %v8195_v20, %v1222_v0  ;;  %v12750_v0 = vld [vmem:[#allocation37_spill] sm:$0xff]  ;;  %8204 = vpow2.f32 %v803_v23  ;;  %v9484_v59 = vpop.permute.xlu0 %1462  ;;  %v3360_v23 = vrot.slane %v9033_v40, 5 }
 0x612   :  { %3370 = vrot.lane.b32.xlu1 %v9033_v40, %s8502_s24 }
 0x613   :  { %v1224_v42 = vadd.f32 %v1220_v24, %v1192_v44  ;;  %1749 = vrot.lane.b32.xlu0 %v1724_v21, %s8502_s24  ;;  %v775_v44 = vmul.f32 1.442695, %v732_v49  ;;  %v12751_v21 = vld [vmem:[#allocation34_spill] sm:$0xff] }
 0x614   :  { %v849_v2 = vpop.permute.xlu1 %848  ;;  %v748_v22 = vmul.f32 %v12751_v21, %v9394_v46  ;;  %v3361_v21 = vrot.slane %v9033_v40, 6 }
 0x615   :  { %1229 = vst.msk [vmem:[#allocation2 + $0x98] sm:$0xff] %vm321_vm10, %v1224_v42  ;;  %v1178_v54 = vmul.f32 %v9192_v58, %v849_v2  ;;  %v1233_v55 = vmul.f32 %v8197_v1, %v1224_v42  ;;  %v1720_v58 = vrot.slane %v9437_v63, 4  ;;  %v1726_v1 = vrot.slane %v9449_v36, 3  ;;  %v9496_v49 = vpop.permute.xlu0 %3378 }
 0x616   :  { %3390 = vrot.lane.b32.xlu1 %v3364_v4, %s8502_s24  ;;  %v8201_v26 = vpop.eup %8200  ;;  %8206 = vpow2.f32 %v775_v44  ;;  %v734_v4 = vmul.f32 %v9176_v41, %v9394_v46  ;;  %12752 = vst [vmem:[#allocation30_spill] sm:$0xff] %v9496_v49  ;;  %v1326_v49 = vld [vmem:[#allocation2 + $0x90] sm:$0xff] }
 0x617   :  { %v1235_v24 = vadd.f32 %v1231_v39, %v1178_v54  ;;  %1737 = vrot.lane.b32.xlu0 %v1719_v11, %s8502_s24 }
 0x618   :  { %v937_v6 = vpop.permute.xlu1 %936  ;;  %v779_v41 = vmul.f32 1.442695, %v734_v4 }
 0x619   :  { %1240 = vst.msk [vmem:[#allocation2 + $0x28] sm:$0xff] %vm321_vm10, %v1235_v24  ;;  %v1194_v20 = vmul.f32 %v12750_v0, %v937_v6  ;;  %v1244_v34 = vmul.f32 %v8199_v19, %v1235_v24  ;;  %v1727_v19 = vrot.slane %v9449_v36, 4  ;;  %v12754_v0 = vld [vmem:[#allocation35_spill] sm:$0xff] }
 0x61a   :  { %1466 = vbcast.lane.b32.xlu1 %v8834_v25, 280  ;;  %v807_v25 = vmul.f32 1.442695, %v748_v22  ;;  %v8203_v11 = vpop.eup %8202 }
 0x61b   :  { %v1237_v39 = vadd.f32 %v1233_v55, %v1194_v20  ;;  %1739 = vrot.lane.b32.xlu0 %v1720_v58, %s8502_s24  ;;  %v750_v20 = vmul.f32 %v12754_v0, %v9394_v46 }
 0x61c   :  { %v860_v7 = vpop.permute.xlu1 %859  ;;  %8208 = vpow2.f32 %v807_v25 }
 0x61d   :  { %1242 = vst.msk [vmem:[#allocation2 + $0xa8] sm:$0xff] %vm321_vm10, %v1237_v39  ;;  %v1180_v42 = vmul.f32 %v9208_v50, %v860_v7  ;;  %v1246_v2 = vmul.f32 %v8201_v26, %v1237_v39  ;;  %v12753_v50 = vld [vmem:[#allocation38_spill] sm:$0xff]  ;;  %v1728_v39 = vrot.slane %v9449_v36, 5  ;;  %8210 = vpow2.f32 %v779_v41 }
 0x61e   :  { %3386 = vrot.lane.b32.xlu1 %v9058_v13, %s8502_s24  ;;  %v811_v7 = vmul.f32 1.442695, %v750_v20 }
 0x61f   :  { %v1248_v54 = vadd.f32 %v1244_v34, %v1180_v42  ;;  %1753 = vrot.lane.b32.xlu0 %v1726_v1, %s8502_s24  ;;  %v8205_v34 = vpop.eup %8204  ;;  %v736_v42 = vmul.f32 %v9213_v52, %v9394_v46  ;;  %v9512_v1 = vpop.permute.xlu0 %3392 }
 0x620   :  { %v948_v55 = vpop.permute.xlu1 %947  ;;  %12755 = vst [vmem:[#allocation33_spill] sm:$0xff] %v9512_v1  ;;  %v8207_v25 = vpop.eup %8206  ;;  %8212 = vpow2.f32 %v811_v7 }
 0x621   :  { %1253 = vst.msk [vmem:[#allocation2 + $0x38] sm:$0xff] %vm321_vm10, %v1248_v54  ;;  %v1196_v24 = vmul.f32 %v12753_v50, %v948_v55  ;;  %v1257_v6 = vmul.f32 %v8203_v11, %v1248_v54  ;;  %v3362_v54 = vrot.slane %v9033_v40, 7  ;;  %v1729_v55 = vrot.slane %v9449_v36, 6  ;;  %v12757_v50 = vld [vmem:[#allocation36_spill] sm:$0xff] }
 0x622   :  { %3380 = vrot.lane.b32.xlu1 %v3360_v23, %s8502_s24  ;;  %v783_v52 = vmul.f32 1.442695, %v736_v42 }
 0x623   :  { %v1250_v58 = vadd.f32 %v1246_v2, %v1196_v24  ;;  %1755 = vrot.lane.b32.xlu0 %v1727_v19, %s8502_s24  ;;  %v752_v24 = vmul.f32 %v12757_v50, %v9394_v46  ;;  %v9523_v40 = vpop.permute.xlu0 %3394  ;;  %v12759_v46 = vld [vmem:[#allocation40_spill] sm:$0xff] }
 0x624   :  { %v871_v44 = vpop.permute.xlu1 %870  ;;  %12758 = vst [vmem:[#allocation31_spill] sm:$0xff] %v9523_v40  ;;  %8214 = vpow2.f32 %v783_v52 }
 0x625   :  { %1255 = vst.msk [vmem:[#allocation2 + $0xb8] sm:$0xff] %vm321_vm10, %v1250_v58  ;;  %v1182_v22 = vmul.f32 %v9223_v56, %v871_v44  ;;  %v1259_v26 = vmul.f32 %v8205_v34, %v1250_v58  ;;  %v12756_v56 = vld [vmem:[#allocation39_spill] sm:$0xff]  ;;  %v815_v58 = vmul.f32 1.442695, %v752_v24 }
 0x626   :  { %3382 = vrot.lane.b32.xlu1 %v3361_v21, %s8502_s24 }
 0x627   :  { %v1261_v2 = vadd.f32 %v1257_v6, %v1182_v22  ;;  %1757 = vrot.lane.b32.xlu0 %v1728_v39, %s8502_s24  ;;  %v8209_v6 = vpop.eup %8208  ;;  %8216 = vpow2.f32 %v815_v58 }
 0x628   :  { %v959_v4 = vpop.permute.xlu1 %958  ;;  %v8211_v44 = vpop.eup %8210 }
 0x629   :  { %1266 = vst.msk [vmem:[#allocation2 + $0x48] sm:$0xff] %vm321_vm10, %v1261_v2  ;;  %v1198_v11 = vmul.f32 %v12756_v56, %v959_v4  ;;  %v1270_v23 = vmul.f32 %v8207_v25, %v1261_v2 }
 0x62a   :  { %3384 = vrot.lane.b32.xlu1 %v3362_v54, %s8502_s24 }
 0x62b   :  { %v1263_v19 = vadd.f32 %v1259_v26, %v1198_v11  ;;  %1759 = vrot.lane.b32.xlu0 %v1729_v55, %s8502_s24  ;;  %v9531_v26 = vpop.permute.xlu0 %3396  ;;  %v12761_v55 = vld [vmem:[#allocation42_spill] sm:$0xff] }
 0x62c   :  { %v882_v41 = vpop.permute.xlu1 %881  ;;  %12760 = vst [vmem:[#allocation32_spill] sm:$0xff] %v9531_v26 }
 0x62d   :  { %1268 = vst.msk [vmem:[#allocation2 + $0xc8] sm:$0xff] %vm321_vm10, %v1263_v19  ;;  %v1184_v0 = vmul.f32 %v9232_v28, %v882_v41  ;;  %v1272_v20 = vmul.f32 %v8209_v6, %v1263_v19  ;;  %v8213_v28 = vpop.eup %8212 }
 0x62e   :  { %2559 = vbcast.lane.b32.xlu1 %v9261_v5, 264  ;;  %v8215_v56 = vpop.eup %8214 }
 0x62f   :  { %v1274_v34 = vadd.f32 %v1270_v23, %v1184_v0  ;;  %v9536_v4 = vpop.permute.xlu0 %2555 }
 0x630   :  { %v970_v21 = vpop.permute.xlu1 %969 }
 0x631   :  { %1279 = vst.msk [vmem:[#allocation2 + $0x58] sm:$0xff] %vm321_vm10, %v1274_v34  ;;  %v1200_v22 = vmul.f32 %v12759_v46, %v970_v21  ;;  %v1283_v39 = vmul.f32 %v8211_v44, %v1274_v34  ;;  %v8217_v24 = vpop.eup %8216 }
 0x632   :  { %2570 = vbcast.lane.b32.xlu1 %v9267_v48, 264 }
 0x633   :  { %v1276_v7 = vadd.f32 %v1272_v20, %v1200_v22  ;;  %v9541_v6 = vpop.permute.xlu0 %2566 }
 0x634   :  { %v893_v42 = vpop.permute.xlu1 %892 }
 0x635   :  { %1281 = vst.msk [vmem:[#allocation2 + $0xd8] sm:$0xff] %vm321_vm10, %v1276_v7  ;;  %v1186_v2 = vmul.f32 %v9240_v61, %v893_v42  ;;  %v1285_v25 = vmul.f32 %v8213_v28, %v1276_v7 }
 0x636   :  { %2581 = vbcast.lane.b32.xlu1 %v9272_v37, 264 }
 0x637   :  { %v1287_v54 = vadd.f32 %v1283_v39, %v1186_v2  ;;  %v9549_v34 = vpop.permute.xlu0 %2577 }
 0x638   :  { %v981_v11 = vpop.permute.xlu1 %980 }
 0x639   :  { %1292 = vst.msk [vmem:[#allocation2 + $0x68] sm:$0xff] %vm321_vm10, %v1287_v54  ;;  %v1202_v23 = vmul.f32 %v12761_v55, %v981_v11  ;;  %v1296_v52 = vmul.f32 %v8215_v56, %v1287_v54 }
 0x63a   :  { %2592 = vbcast.lane.b32.xlu1 %v9277_v3, 264 }
 0x63b   :  { %v1289_v50 = vadd.f32 %v1285_v25, %v1202_v23  ;;  %v9557_v46 = vpop.permute.xlu0 %2588 }
 0x63c   :  { %v904_v19 = vpop.permute.xlu1 %903 }
 0x63d   :  { %1294 = vst.msk [vmem:[#allocation2 + $0xe8] sm:$0xff] %vm321_vm10, %v1289_v50  ;;  %v1188_v61 = vmul.f32 %v9247_v29, %v904_v19  ;;  %v1298_v41 = vmul.f32 %v8217_v24, %v1289_v50 }
 0x63e   :  { %2603 = vbcast.lane.b32.xlu1 %v9282_v32, 264 }
 0x63f   :  { %v1300_v0 = vadd.f32 %v1296_v52, %v1188_v61 }
 0x640   :  { %v992_v20 = vpop.permute.xlu1 %991 }
 0x641   :  { %1305 = vst.msk [vmem:[#allocation2 + $0x78] sm:$0xff] %vm321_vm10, %v1300_v0  ;;  %v1204_v58 = vmul.f32 %v9169_v35, %v992_v20  ;;  %v9563_v35 = vpop.permute.xlu0 %2599 }
 0x642   :  { %2614 = vbcast.lane.b32.xlu1 %v9287_v30, 264 }
 0x643   :  { %v1302_v44 = vadd.f32 %v1298_v41, %v1204_v58 }
 0x644   :  { %v9551_v21 = vpop.permute.xlu1 %1354 }
 0x645   :  { %1307 = vst.msk [vmem:[#allocation2 + $0xf8] sm:$0xff] %vm321_vm10, %v1302_v44  ;;  %v9570_v28 = vpop.permute.xlu0 %2610 }
 0x646   :  { %2625 = vbcast.lane.b32.xlu1 %v9292_v33, 264 }
 0x648   :  { %v9555_v29 = vpop.permute.xlu1 %1362 }
 0x649   :  { %v9576_v2 = vpop.permute.xlu0 %2621 }
 0x64a   :  { %2636 = vbcast.lane.b32.xlu1 %v9297_v31, 264  ;;  %12762 = vst [vmem:[#allocation37_spill] sm:$0xff] %v9576_v2 }
 0x64c   :  { %v9560_v22 = vpop.permute.xlu1 %1418 }
 0x64d   :  { %v9583_v54 = vpop.permute.xlu0 %2632 }
 0x64e   :  { %3056 = vbcast.lane.b32.xlu1 %v9267_v48, 280  ;;  %12763 = vst [vmem:[#allocation34_spill] sm:$0xff] %v9583_v54 }
 0x650   :  { %v9565_v39 = vpop.permute.xlu1 %1346 }
 0x652   :  { %3064 = vbcast.lane.b32.xlu1 %v9272_v37, 280 }
 0x654   :  { %v9568_v7 = vpop.permute.xlu1 %1370 }
 0x656   :  { %3048 = vbcast.lane.b32.xlu1 %v9261_v5, 280  ;;  %v9589_v5 = vpop.permute.xlu0 %3052 }
 0x657   :  { %12764 = vst [vmem:[#allocation38_spill] sm:$0xff] %v9589_v5 }
 0x658   :  { %v9573_v42 = vpop.permute.xlu1 %1426 }
 0x65a   :  { %3072 = vbcast.lane.b32.xlu1 %v9277_v3, 280  ;;  %v9596_v11 = vpop.permute.xlu0 %3060 }
 0x65b   :  { %12765 = vst [vmem:[#allocation35_spill] sm:$0xff] %v9596_v11 }
 0x65c   :  { %v9578_v25 = vpop.permute.xlu1 %1378 }
 0x65e   :  { %3080 = vbcast.lane.b32.xlu1 %v9282_v32, 280 }
 0x660   :  { %v9581_v48 = vpop.permute.xlu1 %1410 }
 0x662   :  { %3088 = vbcast.lane.b32.xlu1 %v9287_v30, 280  ;;  %v9602_v30 = vpop.permute.xlu0 %3044 }
 0x663   :  { %12766 = vst [vmem:[#allocation39_spill] sm:$0xff] %v9602_v30 }
 0x664   :  { %v9586_v37 = vpop.permute.xlu1 %1434 }
 0x666   :  { %3096 = vbcast.lane.b32.xlu1 %v9292_v33, 280  ;;  %v9609_v23 = vpop.permute.xlu0 %3068 }
 0x667   :  { %12768 = vst [vmem:[#allocation40_spill] sm:$0xff] %v9609_v23 }
 0x668   :  { %v9591_v56 = vpop.permute.xlu1 %1386 }
 0x66a   :  { %3104 = vbcast.lane.b32.xlu1 %v9297_v31, 280  ;;  %v9615_v52 = vpop.permute.xlu0 %3076 }
 0x66b   :  { %12769 = vst [vmem:[#allocation42_spill] sm:$0xff] %v9615_v52 }
 0x66c   :  { %v9594_v3 = vpop.permute.xlu1 %1442 }
 0x66e   :  { %2471 = vbcast.lane.b32.xlu1 %v9329_v15, 264  ;;  %v9622_v19 = vpop.permute.xlu0 %3084 }
 0x66f   :  { %12771 = vst [vmem:[#allocation45_spill] sm:$0xff] %v9622_v19  ;;  %v1314_v19 = vld [vmem:[#allocation2 + $0x30] sm:$0xff] }
 0x670   :  { %v9599_v32 = vpop.permute.xlu1 %1390 }
 0x672   :  { %2482 = vbcast.lane.b32.xlu1 %v9335_v53, 264  ;;  %v9628_v41 = vpop.permute.xlu0 %3092 }
 0x673   :  { %12773 = vst [vmem:[#allocation47_spill] sm:$0xff] %v9628_v41  ;;  %v1324_v41 = vld [vmem:[#allocation2 + $0x80] sm:$0xff] }
 0x674   :  { %v9604_v55 = vpop.permute.xlu1 %1446 }
 0x676   :  { %2493 = vbcast.lane.b32.xlu1 %v9343_v38, 264  ;;  %v9635_v58 = vpop.permute.xlu0 %3100 }
 0x677   :  { %12776 = vst [vmem:[#allocation50_spill] sm:$0xff] %v9635_v58  ;;  %v1328_v58 = vld [vmem:[#allocation2 + $0xa0] sm:$0xff] }
 0x678   :  { %v9607_v33 = vpop.permute.xlu1 %3374 }
 0x679   :  { %12767 = vst [vmem:[#allocation36_spill] sm:$0xff] %v9607_v33  ;;  %v1722_v33 = vrot.slane %v9437_v63, 6 }
 0x67a   :  { %2504 = vbcast.lane.b32.xlu1 %v9351_v60, 264  ;;  %v9641_v40 = vpop.permute.xlu0 %2467 }
 0x67b   :  { %12778 = vst [vmem:[#allocation52_spill] sm:$0xff] %v9641_v40  ;;  %v1488_v40 = vmul.f32 %v9338_v47, %v1328_v58  ;;  %v12797_v47 = vld [vmem:[#allocation41_spill] sm:$0xff] }
 0x67c   :  { %v9612_v31 = vpop.permute.xlu1 %1398 }
 0x67e   :  { %2515 = vbcast.lane.b32.xlu1 %v9357_v57, 264  ;;  %v9648_v26 = vpop.permute.xlu0 %2478 }
 0x67f   :  { %12781 = vst [vmem:[#allocation55_spill] sm:$0xff] %v9648_v26 }
 0x680   :  { %v9617_v50 = vpop.permute.xlu1 %1454 }
 0x682   :  { %2526 = vbcast.lane.b32.xlu1 %v9365_v8, 264 }
 0x684   :  { %v9620_v24 = vpop.permute.xlu1 %3370 }
 0x685   :  { %12770 = vst [vmem:[#allocation44_spill] sm:$0xff] %v9620_v24 }
 0x686   :  { %2537 = vbcast.lane.b32.xlu1 %v9373_v14, 264 }
 0x688   :  { %v9625_v61 = vpop.permute.xlu1 %3390 }
 0x689   :  { %12772 = vst [vmem:[#allocation46_spill] sm:$0xff] %v9625_v61 }
 0x68a   :  { %2548 = vbcast.lane.b32.xlu1 %v9379_v9, 264 }
 0x68c   :  { %v9630_v0 = vpop.permute.xlu1 %1466 }
 0x68d   :  { %12774 = vst [vmem:[#allocation48_spill] sm:$0xff] %v9630_v0  ;;  %v1308_v0 = vld [vmem:[#allocation2] sm:$0xff] }
 0x68e   :  { %2992 = vbcast.lane.b32.xlu1 %v9335_v53, 280  ;;  %v1468_v26 = vmul.f32 %v9320_v43, %v1308_v0 }
 0x690   :  { %v9633_v20 = vpop.permute.xlu1 %3386 }
 0x691   :  { %12775 = vst [vmem:[#allocation49_spill] sm:$0xff] %v9633_v20 }
 0x692   :  { %3000 = vbcast.lane.b32.xlu1 %v9343_v38, 280  ;;  %v9654_v38 = vpop.permute.xlu0 %2489 }
 0x693   :  { %12782 = vst [vmem:[#allocation56_spill] sm:$0xff] %v9654_v38 }
 0x694   :  { %v9638_v44 = vpop.permute.xlu1 %3380 }
 0x695   :  { %12777 = vst [vmem:[#allocation51_spill] sm:$0xff] %v9638_v44  ;;  %v12790_v44 = vld [vmem:[#allocation18_spill] sm:$0xff] }
 0x696   :  { %2984 = vbcast.lane.b32.xlu1 %v9329_v15, 280  ;;  %v9661_v52 = vpop.permute.xlu0 %2500 }
 0x697   :  { %12783 = vst [vmem:[#allocation57_spill] sm:$0xff] %v9661_v52  ;;  %v1486_v52 = vmul.f32 %v9315_v18, %v1326_v49  ;;  %v1313_v49 = vld [vmem:[#allocation2 + $0x28] sm:$0xff] }
 0x698   :  { %v9643_v1 = vpop.permute.xlu1 %3382 }
 0x699   :  { %12779 = vst [vmem:[#allocation53_spill] sm:$0xff] %v9643_v1  ;;  %v1721_v1 = vrot.slane %v9437_v63, 5 }
 0x69a   :  { %3008 = vbcast.lane.b32.xlu1 %v9351_v60, 280  ;;  %v9668_v23 = vpop.permute.xlu0 %2511 }
 0x69b   :  { %12784 = vst [vmem:[#allocation58_spill] sm:$0xff] %v9668_v23  ;;  %v1310_v23 = vld [vmem:[#allocation2 + $0x10] sm:$0xff] }
 0x69c   :  { %v9646_v61 = vpop.permute.xlu1 %3384 }
 0x69d   :  { %12780 = vst [vmem:[#allocation54_spill] sm:$0xff] %v9646_v61  ;;  %v1718_v61 = vrot.slane %v9437_v63, 2 }
 0x69e   :  { %3016 = vbcast.lane.b32.xlu1 %v9357_v57, 280  ;;  %v3369_v57 = vrot.slane %v9058_v13, 7 }
 0x6a0   :  { %v9651_v53 = vpop.permute.xlu1 %2559 }
 0x6a2   :  { %3024 = vbcast.lane.b32.xlu1 %v9365_v8, 280 }
 0x6a4   :  { %v9656_v20 = vpop.permute.xlu1 %2570 }
 0x6a6   :  { %3032 = vbcast.lane.b32.xlu1 %v9373_v14, 280  ;;  %v9674_v14 = vpop.permute.xlu0 %2522 }
 0x6a7   :  { %12785 = vst [vmem:[#allocation59_spill] sm:$0xff] %v9674_v14  ;;  %v1730_v14 = vrot.slane %v9449_v36, 7 }
 0x6a8   :  { %v9659_v15 = vpop.permute.xlu1 %2581 }
 0x6aa   :  { %3040 = vbcast.lane.b32.xlu1 %v9379_v9, 280  ;;  %v1725_v9 = vrot.slane %v9449_v36, 2  ;;  %v9682_v13 = vpop.permute.xlu0 %2533 }
 0x6ab   :  { %12786 = vst [vmem:[#allocation60_spill] sm:$0xff] %v9682_v13  ;;  %v1723_v13 = vrot.slane %v9437_v63, 7 }
 0x6ac   :  { %v9664_v60 = vpop.permute.xlu1 %2592 }
 0x6ae   :  { %3400 = vrot.lane.b32.xlu1 %v3369_v57, %s8502_s24  ;;  %v7441_v57 = vld [vmem:[%s12545_s11] ss:$0 sm:$0xff] }
 0x6af   :  { %v9696_v24 = vmul.f32 %v7441_v57, %v12790_v44  ;;  %v7474_v44 = vld [vmem:[%s12545_s11 + $0x1] ss:$0 sm:$0xff] }
 0x6b0   :  { %v9670_v8 = vpop.permute.xlu1 %2603  ;;  %v9730_v0 = vmul.f32 %v7474_v44, %v12797_v47 }
 0x6b1   :  { %12791 = vst [vmem:[#allocation18_spill] sm:$0xff] %v9696_v24 }
 0x6b2   :  { %1735 = vrot.lane.b32.xlu1 %v1718_v61, %s8502_s24  ;;  %v12788_v61 = vld [vmem:[#allocation17_spill] sm:$0xff]  ;;  %12798 = vst [vmem:[#allocation41_spill] sm:$0xff] %v9730_v0 }
 0x6b3   :  { %v9692_v30 = vmul.f32 %v7441_v57, %v12788_v61  ;;  %v1330_v57 = vld [vmem:[#allocation2 + $0xb0] sm:$0xff]  ;;  %v1312_v61 = vld [vmem:[#allocation2 + $0x20] sm:$0xff] }
 0x6b4   :  { %v9676_v11 = vpop.permute.xlu1 %2614 }
 0x6b5   :  { %12789 = vst [vmem:[#allocation17_spill] sm:$0xff] %v9692_v30 }
 0x6b6   :  { %1731 = vrot.lane.b32.xlu1 %v9437_v63, %s8502_s24  ;;  %v1490_v63 = vmul.f32 %v9369_v10, %v1330_v57  ;;  %v1315_v10 = vld [vmem:[#allocation2 + $0x38] sm:$0xff] }
 0x6b7   :  { %v1475_v58 = vmul.f32 %v9568_v7, %v1315_v10  ;;  %v7467_v7 = vld [vmem:[%s12543_s9 + $0x1] ss:$0 sm:$0xff] }
 0x6b8   :  { %v9687_v5 = vpop.permute.xlu1 %2625 }
 0x6b9   :  { %12787 = vst [vmem:[#allocation61_spill] sm:$0xff] %v9687_v5  ;;  %v1338_v5 = vld [vmem:[#allocation2 + $0xf0] sm:$0xff] }
 0x6ba   :  { %1751 = vrot.lane.b32.xlu1 %v1725_v9, %s8502_s24  ;;  %v9698_v9 = vpop.permute.xlu0 %2544 }
 0x6bb   :  { %12792 = vst [vmem:[#allocation62_spill] sm:$0xff] %v9698_v9  ;;  %v1332_v9 = vld [vmem:[#allocation2 + $0xc0] sm:$0xff] }
 0x6bc   :  { %v9700_v17 = vpop.permute.xlu1 %2636  ;;  %v1492_v43 = vmul.f32 %v9389_v12, %v1332_v9  ;;  %v12800_v12 = vld [vmem:[#allocation19_spill] sm:$0xff] }
 0x6bd   :  { %12793 = vst [vmem:[#allocation63_spill] sm:$0xff] %v9700_v17  ;;  %v1484_v17 = vmul.f32 %v9360_v62, %v1324_v41  ;;  %v1470_v62 = vmul.f32 %v9305_v16, %v1310_v23  ;;  %v1472_v9 = vmul.f32 %v12800_v12, %v1312_v61  ;;  %v9744_v16 = vsel %vm321_vm10, %v1488_v40, 0.0  ;;  %v1309_v12 = vld [vmem:[#allocation2 + $0x8] sm:$0xff] }
 0x6be   :  { %1747 = vrot.lane.b32.xlu1 %v9449_v36, %s8502_s24  ;;  %v1311_v36 = vld [vmem:[#allocation2 + $0x18] sm:$0xff]  ;;  %v9725_v38 = vpop.permute.xlu0 %2988  ;;  %v9755_v57 = vsel %vm321_vm10, %v1492_v43, 0.0  ;;  %v1528_v61 = vsel %vm321_vm10, %v1475_v58, 0.0 }
 0x6bf   :  { %v1471_v18 = vmul.f32 %v9551_v21, %v1311_v36  ;;  %12796 = vst [vmem:[#allocation64_spill] sm:$0xff] %v9725_v38  ;;  %v1581_v21 = vsel %vm321_vm10, %v1486_v52, 0.0  ;;  %v9752_v52 = vsel %vm321_vm10, %v1490_v63, 0.0  ;;  %v1469_v63 = vmul.f32 %v9565_v39, %v1309_v12 }
 0x6c0   :  { %v9734_v41 = vpop.permute.xlu1 %3056 }
 0x6c1   :  { %12799 = vst [vmem:[#allocation65_spill] sm:$0xff] %v9734_v41  ;;  %v1510_v23 = vsel %vm321_vm10, %v1471_v18, 0.0 }
 0x6c2   :  { %1741 = vrot.lane.b32.xlu1 %v1721_v1, %s8502_s24  ;;  %v12794_v1 = vld [vmem:[#allocation43_spill] sm:$0xff]  ;;  %v9764_v43 = vpop.permute.xlu0 %2996 }
 0x6c3   :  { %v9722_v54 = vmul.f32 %v7474_v44, %v12794_v1  ;;  %v1500_v44 = vsel %vm321_vm10, %v1468_v26, 0.0  ;;  %v1509_v26 = vsel %vm321_vm10, %v1470_v62, 0.0  ;;  %12801 = vst [vmem:[#allocation19_spill] sm:$0xff] %v9764_v43  ;;  %v1329_v62 = vld [vmem:[#allocation2 + $0xa8] sm:$0xff] }
 0x6c4   :  { %v1511_v36 = vadd.f32 %v1510_v23, %v1509_v26  ;;  %v9770_v41 = vpop.permute.xlu1 %3064  ;;  %v12803_v23 = vld [vmem:[#allocation21_spill] sm:$0xff] }
 0x6c5   :  { %12795 = vst [vmem:[#allocation43_spill] sm:$0xff] %v9722_v54  ;;  %12802 = vst [vmem:[#allocation66_spill] sm:$0xff] %v9770_v41  ;;  %v1474_v26 = vmul.f32 %v12803_v23, %v1314_v19  ;;  %v1317_v41 = vld [vmem:[#allocation2 + $0x48] sm:$0xff]  ;;  %v12805_v19 = vld [vmem:[#allocation24_spill] sm:$0xff] }
 0x6c6   :  { %1743 = vrot.lane.b32.xlu1 %v1722_v33, %s8502_s24  ;;  %v1473_v33 = vmul.f32 %v9555_v29, %v1313_v49  ;;  %v9747_v29 = vsel %vm321_vm10, %v1484_v17, 0.0  ;;  %v1327_v49 = vld [vmem:[#allocation2 + $0x98] sm:$0xff]  ;;  %v1316_v17 = vld [vmem:[#allocation2 + $0x40] sm:$0xff] }
 0x6c7   :  { %v1487_v18 = vmul.f32 %v9560_v22, %v1327_v49  ;;  %v1318_v49 = vld [vmem:[#allocation2 + $0x50] sm:$0xff]  ;;  %v1501_v22 = vsel %vm321_vm10, %v1469_v63, 0.0  ;;  %v1477_v63 = vmul.f32 %v9578_v25, %v1317_v41  ;;  %v1527_v0 = vsel %vm321_vm10, %v1474_v26, 0.0  ;;  %v1335_v54 = vld [vmem:[#allocation2 + $0xd8] sm:$0xff] }
 0x6c8   :  { %v1519_v40 = vsel %vm321_vm10, %v1473_v33, 0.0  ;;  %v1518_v33 = vsel %vm321_vm10, %v1472_v9, 0.0  ;;  %v1478_v23 = vmul.f32 %v12805_v19, %v1318_v49  ;;  %v1325_v9 = vld [vmem:[#allocation2 + $0x88] sm:$0xff]  ;;  %v1502_v58 = vadd.f32 %v1501_v22, %v1500_v44  ;;  %v1331_v19 = vld [vmem:[#allocation2 + $0xb8] sm:$0xff]  ;;  %v9797_v43 = vpop.permute.xlu1 %3048 }
 0x6c9   :  { %v1520_v39 = vadd.f32 %v1519_v40, %v1518_v33  ;;  %v12804_v40 = vld [vmem:[#allocation22_spill] sm:$0xff]  ;;  %v1485_v49 = vmul.f32 %v9581_v48, %v1325_v9  ;;  %12806 = vst [vmem:[#allocation21_spill] sm:$0xff] %v9797_v43  ;;  %v1529_v2 = vadd.f32 %v1528_v61, %v1527_v0  ;;  %v1491_v25 = vmul.f32 %v9586_v37, %v1331_v19 }
 0x6ca   :  { %1745 = vrot.lane.b32.xlu1 %v1723_v13, %s8502_s24  ;;  %v1476_v33 = vmul.f32 %v12804_v40, %v1316_v17  ;;  %v1512_v13 = vrot.slane %v1511_v36, 4  ;;  %v9792_v17 = vpop.permute.xlu0 %2980  ;;  %v1545_v22 = vsel %vm321_vm10, %v1478_v23, 0.0 }
 0x6cb   :  { %v1521_v10 = vrot.slane %v1520_v39, 4  ;;  %v1573_v37 = vsel %vm321_vm10, %v1485_v49, 0.0 }
 0x6cc   :  { %v1513_v44 = vadd.f32 %v1512_v13, %v1511_v36  ;;  %v1574_v40 = vadd.f32 %v1573_v37, %v9747_v29  ;;  %v1495_v29 = vmul.f32 %v9416_v51, %v1335_v54 }
 0x6cd   :  { %v1522_v48 = vadd.f32 %v1521_v10, %v1520_v39 }
 0x6ce   :  { %1761 = vrot.lane.b32.xlu1 %v1730_v14, %s8502_s24  ;;  %v1582_v14 = vsel %vm321_vm10, %v1487_v18, 0.0  ;;  %v1489_v18 = vmul.f32 %v9573_v42, %v1329_v62  ;;  %v1536_v42 = vsel %vm321_vm10, %v1476_v33, 0.0  ;;  %v1503_v33 = vrot.slane %v1502_v58, 4  ;;  %v9818_v23 = vpop.permute.xlu0 %3004 }
 0x6cf   :  { %v1583_v12 = vadd.f32 %v1582_v14, %v1581_v21  ;;  %v1498_v21 = vmul.f32 %v9484_v59, %v1338_v5  ;;  %v1537_v14 = vsel %vm321_vm10, %v1477_v63, 0.0  ;;  %v1530_v59 = vrot.slane %v1529_v2, 4  ;;  %12808 = vst [vmem:[#allocation24_spill] sm:$0xff] %v9818_v23 }
 0x6d0   :  { %v1591_v9 = vsel %vm321_vm10, %v1489_v18, 0.0  ;;  %v1600_v5 = vsel %vm321_vm10, %v1491_v25, 0.0  ;;  %v1538_v10 = vadd.f32 %v1537_v14, %v1536_v42  ;;  %v9820_v18 = vpop.permute.xlu1 %3072  ;;  %v1514_v49 = vrot.slane %v1513_v44, 2  ;;  %v1337_v14 = vld [vmem:[#allocation2 + $0xe8] sm:$0xff] }
 0x6d1   :  { %v1584_v61 = vrot.slane %v1583_v12, 4  ;;  %v9815_v39 = vsel %vm321_vm10, %v1498_v21, 0.0  ;;  %12809 = vst [vmem:[#allocation67_spill] sm:$0xff] %v9820_v18  ;;  %v1333_v21 = vld [vmem:[#allocation2 + $0xc8] sm:$0xff]  ;;  %v1575_v37 = vrot.slane %v1574_v40, 4 }
 0x6d2   :  { %12807 = vst [vmem:[#allocation22_spill] sm:$0xff] %v9815_v39  ;;  %v1539_v18 = vrot.slane %v1538_v10, 4 }
 0x6d3   :  { %v1585_v43 = vadd.f32 %v1584_v61, %v1583_v12  ;;  %v1320_v12 = vld [vmem:[#allocation2 + $0x60] sm:$0xff]  ;;  %v1515_v61 = vadd.f32 %v1514_v49, %v1513_v44  ;;  %v1618_v44 = vsel %vm321_vm10, %v1495_v29, 0.0 }
 0x6d4   :  { %v7774_v38 = vpop.f32.mrb[6].mxu0 }
 0x6d5   :  { %v9801_v41 = vadd.f32 %v7774_v38, %v7467_v7  ;;  %v2136_v62 = vpop.f32.mrb[7].mxu0  ;;  %v1319_v38 = vld [vmem:[#allocation2 + $0x58] sm:$0xff] }
 0x6d6   :  { %v9805_v26 = vadd.f32 %v7467_v7, %v2136_v62  ;;  %v1479_v36 = vmul.f32 %v9591_v56, %v1319_v38  ;;  %v1592_v7 = vadd.f32 %v1591_v9, %v9744_v16  ;;  %v1523_v62 = vrot.slane %v1522_v48, 2  ;;  %v1321_v38 = vld [vmem:[#allocation2 + $0x68] sm:$0xff] }
 0x6d7   :  { %v2152_v0 = vand.u32 2147483647, %v9801_v41  ;;  %v1504_v56 = vadd.f32 %v1503_v33, %v1502_v58  ;;  %v1531_v16 = vadd.f32 %v1530_v59, %v1529_v2  ;;  %v1493_v9 = vmul.f32 %v9594_v3, %v1333_v21  ;;  %v9828_v59 = vpop.permute.xlu0 %3012 }
 0x6d8   :  { %v2151_v19 = vand.u32 2147483647, %v9805_v26  ;;  %v1546_v42 = vsel %vm321_vm10, %v1479_v36, 0.0  ;;  %v1481_v58 = vmul.f32 %v9409_v45, %v1321_v38  ;;  %v1524_v33 = vadd.f32 %v1523_v62, %v1522_v48  ;;  %12810 = vst [vmem:[#allocation68_spill] sm:$0xff] %v9828_v59  ;;  %v12812_v48 = vld [vmem:[#allocation28_spill] sm:$0xff] }
 0x6d9   :  { %v2154_v13 = vsub.f32 0.0, %v2152_v0  ;;  %v1601_v0 = vadd.f32 %v1600_v5, %v9752_v52  ;;  %v1323_v52 = vld [vmem:[#allocation2 + $0x78] sm:$0xff]  ;;  %v1547_v2 = vadd.f32 %v1546_v42, %v1545_v22  ;;  %v1480_v3 = vmul.f32 %v9599_v32, %v1320_v12  ;;  %v1334_v12 = vld [vmem:[#allocation2 + $0xd0] sm:$0xff] }
 0x6da   :  { %v2153_v63 = vsub.f32 0.0, %v2151_v19  ;;  %v1593_v19 = vrot.slane %v1592_v7, 4  ;;  %v1497_v36 = vmul.f32 %v9457_v27, %v1337_v14  ;;  %v1505_v51 = vrot.slane %v1504_v56, 2 }
 0x6db   :  { %v2157_v25 = vmul.f32 1.442695, %v2154_v13  ;;  %v1602_v5 = vrot.slane %v1601_v0, 4  ;;  %v9832_v13 = vpop.permute.xlu1 %3080  ;;  %v1532_v54 = vrot.slane %v1531_v16, 2  ;;  %v1540_v45 = vadd.f32 %v1539_v18, %v1538_v10 }
 0x6dc   :  { %v2155_v39 = vmul.f32 1.442695, %v2153_v63  ;;  %12811 = vst [vmem:[#allocation69_spill] sm:$0xff] %v9832_v13  ;;  %v1586_v63 = vrot.slane %v1585_v43, 2  ;;  %v1483_v49 = vmul.f32 %v12812_v48, %v1323_v52  ;;  %v1576_v22 = vadd.f32 %v1575_v37, %v1574_v40  ;;  %v9843_v40 = vpop.permute.xlu0 %3020 }
 0x6dd   :  { %8218 = vpow2.f32 %v2157_v25  ;;  %v1594_v25 = vadd.f32 %v1593_v19, %v1592_v7  ;;  %v1555_v62 = vsel %vm321_vm10, %v1481_v58, 0.0  ;;  %v1516_v21 = vrot.slane %v1515_v61, 1  ;;  %12813 = vst [vmem:[#allocation28_spill] sm:$0xff] %v9843_v40 }
 0x6de   :  { %8220 = vpow2.f32 %v2155_v39  ;;  %v1609_v39 = vsel %vm321_vm10, %v1493_v9, 0.0  ;;  %v1525_v32 = vrot.slane %v1524_v33, 1  ;;  %v1603_v38 = vadd.f32 %v1602_v5, %v1601_v0 }
 0x6df   :  { %v1548_v27 = vrot.slane %v1547_v2, 4  ;;  %v1610_v42 = vadd.f32 %v1609_v39, %v9755_v57  ;;  %v1554_v14 = vsel %vm321_vm10, %v1480_v3, 0.0  ;;  %v9841_v9 = vsel %vm321_vm10, %v1497_v36, 0.0  ;;  %v9849_v58 = vpop.permute.xlu1 %3088 }
 0x6e0   :  { %v1587_v7 = vadd.f32 %v1586_v63, %v1585_v43  ;;  %v1533_v10 = vadd.f32 %v1532_v54, %v1531_v16  ;;  %v1506_v18 = vadd.f32 %v1505_v51, %v1504_v56  ;;  %v1595_v19 = vrot.slane %v1594_v25, 2 }
 0x6e1   :  { %v1541_v29 = vrot.slane %v1540_v45, 2  ;;  %v1494_v37 = vmul.f32 %v9604_v55, %v1334_v12  ;;  %v9847_v0 = vsel %vm321_vm10, %v1483_v49, 0.0  ;;  %v1577_v52 = vrot.slane %v1576_v22, 2 }
 0x6e2   :  { %v1556_v5 = vadd.f32 %v1555_v62, %v1554_v14  ;;  %v1517_v3 = vadd.f32 %v1516_v21, %v1515_v61  ;;  %v1526_v36 = vadd.f32 %v1525_v32, %v1524_v33  ;;  %v1604_v56 = vrot.slane %v1603_v38, 2  ;;  %v7477_v61 = vld [vmem:[%s12546_s12 + $0x40] sm:$0xff]  ;;  %v7478_v33 = vld [vmem:[%s12546_s12 + $0x48] sm:$0xff]  ;;  %v7479_v32 = vld [vmem:[%s12546_s12 + $0x50] sm:$0xff]  ;;  %v9870_v14 = vpop.permute.xlu0 %3028 }
 0x6e3   :  { %v1549_v16 = vadd.f32 %v1548_v27, %v1547_v2  ;;  %v1611_v63 = vrot.slane %v1610_v42, 4  ;;  %v1588_v54 = vrot.slane %v1587_v7, 1  ;;  %v1534_v55 = vrot.slane %v1533_v10, 1  ;;  %12814 = vst [vmem:[#allocation70_spill] sm:$0xff] %v9870_v14 }
 0x6e4   :  { %v1507_v48 = vrot.slane %v1506_v18, 1  ;;  %v1617_v49 = vsel %vm321_vm10, %v1494_v37, 0.0  ;;  %v1542_v12 = vadd.f32 %v1541_v29, %v1540_v45  ;;  %v1596_v13 = vadd.f32 %v1595_v19, %v1594_v25  ;;  %v7480_v25 = vld [vmem:[%s12546_s12 + $0x58] sm:$0xff]  ;;  %v9872_v29 = vpop.permute.xlu1 %3096 }
 0x6e5   :  { %v1557_v2 = vrot.slane %v1556_v5, 4  ;;  %v1578_v62 = vadd.f32 %v1577_v52, %v1576_v22  ;;  %v7980_v21 = vpack.c.bf16 %v7478_v33, %v7477_v61  ;;  %v1550_v45 = vrot.slane %v1549_v16, 2  ;;  %12815 = vst [vmem:[#allocation71_spill] sm:$0xff] %v9872_v29  ;;  %v7481_v22 = vld [vmem:[%s12546_s12 + $0x60] sm:$0xff]  ;;  %v7482_v52 = vld [vmem:[%s12546_s12 + $0x68] sm:$0xff] }
 0x6e6   :  { %v1612_v27 = vadd.f32 %v1611_v63, %v1610_v42  ;;  %v1605_v19 = vadd.f32 %v1604_v56, %v1603_v38  ;;  %v7984_v37 = vpack.c.bf16 %v7480_v25, %v7479_v32  ;;  %v1508_v33 = vadd.f32 %v1507_v48, %v1506_v18 }
 0x6e7   :  { %v9851_v57 = vpop.eup %8218  ;;  %7981 = vmatprep.subr.bf16.mxu0 %v7980_v21  ;;  %v12816_v42 = vrot.slane %v9692_v30, 1  ;;  %v1535_v56 = vadd.f32 %v1534_v55, %v1533_v10  ;;  %v1597_v32 = vrot.slane %v1596_v13, 1  ;;  %v1558_v25 = vadd.f32 %v1557_v2, %v1556_v5  ;;  %v7483_v10 = vld [vmem:[%s12546_s12 + $0x70] sm:$0xff]  ;;  %v9903_v2 = vpop.permute.xlu0 %3036 }
 0x6e8   :  { %v9853_v43 = vpop.eup %8220  ;;  %v2168_v51 = vadd.f32 1.0, %v9851_v57  ;;  %v2171_v61 = vmul.f32 -0.5, %v9851_v57  ;;  %7983 = vmatpush3.bf16.msra.mxu0 %v7980_v21  ;;  %v1543_v14 = vrot.slane %v1542_v12, 1  ;;  %v12817_v40 = vrot.slane %v9692_v30, 2  ;;  %12821 = vst [vmem:[#allocation74_spill] sm:$0xff] %v9903_v2 }
 0x6e9   :  { %v2159_v39 = vadd.f32 1.0, %v9853_v43  ;;  %v9883_v38 = vadd.f32 %v12816_v42, %v1517_v3  ;;  %v2162_v63 = vmul.f32 -0.5, %v9853_v43  ;;  %7985 = vmatprep.subr.bf16.mxu0 %v7984_v37  ;;  %v1606_v18 = vrot.slane %v1605_v19, 1  ;;  %v7484_v3 = vld [vmem:[%s12546_s12 + $0x78] sm:$0xff] }
 0x6ea   :  { %8222 = vlog2.f32 %v2168_v51  ;;  %v1619_v51 = vadd.f32 %v1618_v44, %v1617_v49  ;;  %v9888_v59 = vadd.f32 %v12817_v40, %v1526_v36  ;;  %v7988_v44 = vpack.c.bf16 %v7482_v52, %v7481_v22  ;;  %v9910_v52 = vpop.permute.xlu1 %3104 }
 0x6eb   :  { %8224 = vlog2.f32 %v2159_v39  ;;  %v1589_v39 = vadd.f32 %v1588_v54, %v1587_v7  ;;  %v1613_v7 = vrot.slane %v1612_v27, 2  ;;  %v1579_v54 = vrot.slane %v1578_v62, 1 }
 0x6ec   :  { %12818 = vst [vmem:[#allocation72_spill] sm:$0xff] %v9888_v59  ;;  %v1551_v48 = vadd.f32 %v1550_v45, %v1549_v16  ;;  %v1620_v5 = vrot.slane %v1619_v51, 4  ;;  %v12819_v55 = vrot.slane %v9696_v24, 1  ;;  %v2172_v40 = vadd.f32 1.0, %v2171_v61  ;;  %7987 = vmatpush3.bf16.msra.mxu0 %v7984_v37 }
 0x6ed   :  { %v9901_v36 = vadd.f32 %v9692_v30, %v1508_v33  ;;  %v12822_v16 = vrot.slane %v9692_v30, 3  ;;  %v2174_v45 = vand.u32 2147483647, %v9851_v57  ;;  %v2163_v22 = vadd.f32 1.0, %v2162_v63  ;;  %7989 = vmatprep.subr.bf16.mxu0 %v7988_v44  ;;  %v1795_v63 = vld [vmem:[%s12546_s12] sm:$0xff] }
 0x6ee   :  { %v9898_v49 = vadd.f32 %v12819_v55, %v1589_v39  ;;  %v1598_v42 = vadd.f32 %v1597_v32, %v1596_v13  ;;  %v1559_v59 = vrot.slane %v1558_v25, 2  ;;  %v1544_v39 = vadd.f32 %v1543_v14, %v1542_v12  ;;  %v1796_v13 = vld [vmem:[%s12546_s12 + $0x8] sm:$0xff] }
 0x6ef   :  { %12820 = vst [vmem:[#allocation73_spill] sm:$0xff] %v9901_v36  ;;  %v9907_v21 = vadd.f32 %v12822_v16, %v1535_v56  ;;  %v2165_v61 = vand.u32 2147483647, %v9853_v43  ;;  %v7992_v33 = vpack.c.bf16 %v7484_v3, %v7483_v10  ;;  %v1322_v36 = vld [vmem:[#allocation2 + $0x70] sm:$0xff]  ;;  %v1607_v2 = vadd.f32 %v1606_v18, %v1605_v19 }
 0x6f0   :  { %v1614_v23 = vadd.f32 %v1613_v7, %v1612_v27  ;;  %v1580_v29 = vadd.f32 %v1579_v54, %v1578_v62  ;;  %v1552_v56 = vrot.slane %v1551_v48, 1  ;;  %v1621_v12 = vadd.f32 %v1620_v5, %v1619_v51  ;;  %7991 = vmatpush3.bf16.msra.mxu0 %v7988_v44  ;;  %v1336_v7 = vld [vmem:[#allocation2 + $0xe0] sm:$0xff]  ;;  %v9935_v44 = vpop.permute.xlu1 %2471 }
 0x6f1   :  { %v1482_v14 = vmul.f32 %v9612_v31, %v1322_v36  ;;  %v2173_v10 = vmul.f32 %v9851_v57, %v2172_v40  ;;  %v2146_v19 = vmax.f32 %v9801_v41, 0.0  ;;  %vm2175_vm14 = vcmp.lt.f32.partialorder %v2174_v45, 0.0004427343  ;;  %7993 = vmatprep.subr.bf16.mxu0 %v7992_v33  ;;  %v9929_v31 = vpop.permute.xlu0 %3398 }
 0x6f2   :  { %v2164_v27 = vmul.f32 %v9853_v43, %v2163_v22  ;;  %vm9923_vm15 = vcmp.lt.f32.partialorder %v2165_v61, 0.0004427343  ;;  %v1560_v3 = vadd.f32 %v1559_v59, %v1558_v25  ;;  %v9927_v51 = vpack.c.bf16 %v1796_v13, %v1795_v63  ;;  %12826 = vst [vmem:[#allocation76_spill] sm:$0xff] %v9929_v31 }
 0x6f3   :  { %v1496_v57 = vmul.f32 %v9617_v50, %v1336_v7  ;;  %v2145_v40 = vmax.f32 %v9805_v26, 0.0  ;;  %v1563_v36 = vsel %vm321_vm10, %v1482_v14, 0.0  ;;  %v12827_v16 = vrot.slane %v9692_v30, 4 }
 0x6f4   :  { %v8223_v55 = vpop.eup %8222  ;;  %12825 = vst [vmem:[#allocation75_spill] sm:$0xff] %v9927_v51  ;;  %vm2148_vm13 = vcmp.ne.f32.partialorder %v9801_v41, %v9801_v41  ;;  %v12829_v25 = vrot.slane %v9696_v24, 2  ;;  %v1622_v45 = vrot.slane %v1621_v12, 2  ;;  %7995 = vmatpush3.bf16.msra.mxu0 %v7992_v33  ;;  %v1615_v63 = vrot.slane %v1614_v23, 1 }
 0x6f5   :  { %v8225_v37 = vpop.eup %8224  ;;  %v2170_v32 = vmul.f32 0.6931472, %v8223_v55  ;;  %v9940_v59 = vadd.f32 %v12827_v16, %v1544_v39  ;;  %v1553_v55 = vadd.f32 %v1552_v56, %v1551_v48  ;;  %7997 = vmatprep.subr.bf16.mxu0 %v9927_v51  ;;  %v1565_v39 = vadd.f32 %v9847_v0, %v1563_v36  ;;  %v12839_v36 = vld [vmem:[#allocation10_spill] sm:$0xff] }
 0x6f6   :  { %v2161_v62 = vmul.f32 0.6931472, %v8225_v37  ;;  %v9946_v50 = vadd.f32 %v12829_v25, %v1598_v42  ;;  %v12831_v37 = vld [vmem:[#allocation27_spill] sm:$0xff]  ;;  %v12832_v42 = vrot.slane %v9696_v24, 3  ;;  %v9974_v54 = vadd.f32 %v1615_v63, %v1614_v23 }
 0x6f7   :  { %v2176_v18 = vsel %vm2175_vm14, %v2173_v10, %v2170_v32  ;;  %12828 = vst [vmem:[#allocation77_spill] sm:$0xff] %v9940_v59  ;;  %v1561_v32 = vrot.slane %v1560_v3, 1  ;;  %v1626_v10 = vsel %vm321_vm10, %v1496_v57, 0.0  ;;  %vm2147_vm14 = vcmp.ne.f32.partialorder %v9805_v26, %v9805_v26 }
 0x6f8   :  { %v2178_v5 = vadd.f32 %v2176_v18, %v2146_v19  ;;  %v2167_v43 = vsel %vm9923_vm15, %v2164_v27, %v2161_v62  ;;  %12830 = vst [vmem:[#allocation78_spill] sm:$0xff] %v9946_v50  ;;  %v9955_v19 = vadd.f32 %v12832_v42, %v1607_v2  ;;  %v1734_v62 = vpop.permute.xlu0 %1733  ;;  %v9964_v27 = vadd.f32 %v1622_v45, %v1621_v12  ;;  %v9968_v2 = vpop.permute.xlu1 %2482 }
 0x6f9   :  { %v2177_v61 = vadd.f32 %v2167_v43, %v2145_v40  ;;  %12838 = vst [vmem:[#allocation82_spill] sm:$0xff] %v9974_v54  ;;  %v1562_v40 = vadd.f32 %v1561_v32, %v1560_v3  ;;  %v1566_v43 = vrot.slane %v1565_v39, 4  ;;  %v9978_v12 = vadd.f32 %v9841_v9, %v1626_v10  ;;  %v9993_v3 = vld [vmem:[%s12544_s10 + $0x18] sm:$0xff] }
 0x6fa   :  { %v2180_v22 = vsel %vm2148_vm13, %v9801_v41, %v2178_v5  ;;  %12833 = vst [vmem:[#allocation27_spill] sm:$0xff] %v9955_v19  ;;  %v9958_v41 = vadd.f32 %v9696_v24, %v1580_v29  ;;  %12835 = vst [vmem:[#allocation80_spill] sm:$0xff] %v9964_v27  ;;  %v12836_v29 = vrot.slane %v9692_v30, 5  ;;  %v9988_v23 = vmul.f32 %v1734_v62, %v9883_v38 }
 0x6fb   :  { %v2237_v13 = vcombine.high %v2180_v22, %v2180_v22  ;;  %v2244_v14 = vrot.slane %v2180_v22, %v12831_v37  ;;  %v2185_v0 = vmul.f32 %v2180_v22, %v12794_v1  ;;  %v2179_v7 = vsel %vm2147_vm14, %v9805_v26, %v2177_v61  ;;  %v9983_v1 = vld [vmem:[%s12544_s10 + $0x10] sm:$0xff] }
 0x6fc   :  { %12834 = vst [vmem:[#allocation79_spill] sm:$0xff] %v9958_v41  ;;  %v9972_v18 = vadd.f32 %v12836_v29, %v1553_v55  ;;  %v2188_v45 = vcombine.high %v2179_v7, %v2179_v7  ;;  %v9998_v63 = vrot.slane %v2179_v7, %v12831_v37  ;;  %v12840_v32 = vrot.slane %v9692_v30, 6  ;;  %v10011_v62 = vpop.permute.xlu1 %2493 }
 0x6fd   :  { %v2251_v48 = vrot.slane %v2237_v13, %v12831_v37  ;;  %v2252_v33 = vcombine.high %v2244_v14, %v2244_v14  ;;  %v2260_v56 = vrot.slane %v2244_v14, %v12831_v37  ;;  %v2689_v55 = vcombine.high %v2185_v0, %v2185_v0 }
 0x6fe   :  { %12837 = vst [vmem:[#allocation81_spill] sm:$0xff] %v9972_v18  ;;  %v2696_v14 = vrot.slane %v2185_v0, %v12831_v37  ;;  %v10005_v10 = vadd.f32 %v12840_v32, %v1562_v40  ;;  %v10007_v42 = vadd.f32 %v1566_v43, %v1565_v39  ;;  %v10018_v0 = vmul.f32 %v2179_v7, %v12797_v47 }
 0x6ff   :  { %v2253_v57 = vcombine.high %v2251_v48, %v2251_v48  ;;  %v2274_v5 = vrot.slane %v2252_v33, %v12831_v37  ;;  %v2267_v26 = vrot.slane %v2251_v48, %v12831_v37  ;;  %v2321_v16 = vrot.slane %v2260_v56, %v12839_v36 }
 0x700   :  { %v2282_v25 = vcombine.high %v2260_v56, %v2260_v56  ;;  %12841 = vst [vmem:[#allocation83_spill] sm:$0xff] %v10005_v10  ;;  %v2703_v39 = vrot.slane %v2689_v55, %v12831_v37  ;;  %v2704_v22 = vcombine.high %v2696_v14, %v2696_v14  ;;  %v2712_v24 = vrot.slane %v2696_v14, %v12831_v37 }
 0x701   :  { %v2281_v9 = vrot.slane %v2253_v57, %v12831_v37  ;;  %v2284_v61 = vcombine.high %v2274_v5, %v2274_v5  ;;  %v2325_v13 = vrot.slane %v2274_v5, %v12839_v36  ;;  %v2382_v38 = vmul.f32 %v9983_v1, %v2321_v16 }
 0x702   :  { %v2283_v33 = vcombine.high %v2267_v26, %v2267_v26  ;;  %v2383_v56 = vmul.f32 %v9993_v3, %v2321_v16  ;;  %v2329_v57 = vrot.slane %v2282_v25, %v12839_v36  ;;  %v10015_v5 = vrot.slane %v2188_v45, %v12831_v37 }
 0x703   :  { %v2285_v29 = vcombine.high %v2281_v9, %v2281_v9  ;;  %v2333_v40 = vrot.slane %v2284_v61, %v12839_v36  ;;  %v10026_v16 = vrot.slane %v9998_v63, %v12831_v37  ;;  %v2337_v32 = vrot.slane %v2267_v26, %v12839_v36 }
 0x704   :  { %v2384_v25 = vmul.f32 %v9983_v1, %v2325_v13  ;;  %v2430_v45 = vmul.f32 1.442695, %v2382_v38  ;;  %v2341_v47 = vrot.slane %v2281_v9, %v12839_v36  ;;  %v2345_v7 = vrot.slane %v2283_v33, %v12839_v36  ;;  %v10039_v9 = vpop.permute.xlu1 %2504 }
 0x705   :  { %v2385_v61 = vmul.f32 %v9993_v3, %v2325_v13  ;;  %v2432_v55 = vmul.f32 1.442695, %v2383_v56  ;;  %v2349_v48 = vrot.slane %v2285_v29, %v12839_v36  ;;  %v2386_v43 = vmul.f32 %v9983_v1, %v2329_v57 }
 0x706   :  { %v2387_v51 = vmul.f32 %v9993_v3, %v2329_v57  ;;  %v2388_v26 = vmul.f32 %v9983_v1, %v2333_v40  ;;  %v2389_v38 = vmul.f32 %v9993_v3, %v2333_v40  ;;  %8226 = vpow2.f32 %v2430_v45 }
 0x707   :  { %v2705_v54 = vcombine.high %v2703_v39, %v2703_v39  ;;  %v2390_v33 = vmul.f32 %v9983_v1, %v2337_v32  ;;  %v2391_v13 = vmul.f32 %v9993_v3, %v2337_v32  ;;  %8228 = vpow2.f32 %v2432_v55 }
 0x708   :  { %v2434_v56 = vmul.f32 1.442695, %v2384_v25  ;;  %v2392_v29 = vmul.f32 %v9983_v1, %v2341_v47  ;;  %v2393_v57 = vmul.f32 %v9993_v3, %v2341_v47  ;;  %v2394_v14 = vmul.f32 %v9983_v1, %v2345_v7  ;;  %v10052_v30 = vpop.permute.xlu1 %2515 }
 0x709   :  { %v2436_v19 = vmul.f32 1.442695, %v2385_v61  ;;  %v2395_v50 = vmul.f32 %v9993_v3, %v2345_v7  ;;  %v2396_v40 = vmul.f32 %v9983_v1, %v2349_v48  ;;  %v2438_v45 = vmul.f32 1.442695, %v2386_v43 }
 0x70a   :  { %v2726_v27 = vrot.slane %v2704_v22, %v12831_v37  ;;  %v2397_v41 = vmul.f32 %v9993_v3, %v2349_v48  ;;  %v2440_v10 = vmul.f32 1.442695, %v2387_v51  ;;  %v2719_v32 = vrot.slane %v2703_v39, %v12831_v37 }
 0x70b   :  { %v2733_v25 = vrot.slane %v2705_v54, %v12831_v37  ;;  %8230 = vpow2.f32 %v2434_v56  ;;  %v2442_v55 = vmul.f32 1.442695, %v2388_v26  ;;  %v2444_v47 = vmul.f32 1.442695, %v2389_v38 }
 0x70c   :  { %v2446_v31 = vmul.f32 1.442695, %v2390_v33  ;;  %8232 = vpow2.f32 %v2436_v19  ;;  %v2448_v61 = vmul.f32 1.442695, %v2391_v13  ;;  %v2450_v18 = vmul.f32 1.442695, %v2392_v29 }
 0x70d   :  { %v2734_v7 = vcombine.high %v2712_v24, %v2712_v24  ;;  %8234 = vpow2.f32 %v2438_v45  ;;  %v2452_v43 = vmul.f32 1.442695, %v2393_v57  ;;  %v2454_v22 = vmul.f32 1.442695, %v2394_v14  ;;  %v10067_v14 = vpop.permute.xlu1 %2526 }
 0x70e   :  { %v2736_v59 = vcombine.high %v2726_v27, %v2726_v27  ;;  %8236 = vpow2.f32 %v2440_v10  ;;  %v2735_v51 = vcombine.high %v2719_v32, %v2719_v32  ;;  %v2737_v48 = vcombine.high %v2733_v25, %v2733_v25 }
 0x70f   :  { %v2773_v39 = vrot.slane %v2712_v24, %v12839_v36  ;;  %8238 = vpow2.f32 %v2442_v55  ;;  %v2456_v54 = vmul.f32 1.442695, %v2395_v50  ;;  %v2458_v26 = vmul.f32 1.442695, %v2396_v40 }
 0x710   :  { %v2777_v38 = vrot.slane %v2726_v27, %v12839_v36  ;;  %v8227_v19 = vpop.eup %8226  ;;  %8240 = vpow2.f32 %v2444_v47  ;;  %v10056_v33 = vmul.f32 1.442695, %v2397_v41  ;;  %v2781_v13 = vrot.slane %v2734_v7, %v12839_v36 }
 0x711   :  { %v2204_v56 = vcombine.high %v10015_v5, %v10015_v5  ;;  %v8229_v29 = vpop.eup %8228  ;;  %8242 = vpow2.f32 %v2446_v31  ;;  %v2785_v10 = vrot.slane %v2736_v59, %v12839_v36  ;;  %v2789_v24 = vrot.slane %v2719_v32, %v12839_v36 }
 0x712   :  { %v2793_v50 = vrot.slane %v2733_v25, %v12839_v36  ;;  %8244 = vpow2.f32 %v2448_v61  ;;  %v2797_v27 = vrot.slane %v2735_v51, %v12839_v36  ;;  %v2801_v57 = vrot.slane %v2737_v48, %v12839_v36 }
 0x713   :  { %v2834_v41 = vmul.f32 %v2773_v39, %v9536_v4  ;;  %8246 = vpow2.f32 %v2450_v18  ;;  %v2835_v40 = vmul.f32 %v2773_v39, %v9651_v53  ;;  %v2836_v31 = vmul.f32 %v2777_v38, %v9541_v6  ;;  %v10104_v39 = vpop.permute.xlu1 %2537 }
 0x714   :  { %v2852_v45 = vmul.f32 0.0, %v8227_v19  ;;  %v2837_v59 = vmul.f32 %v2777_v38, %v9656_v20  ;;  %v2838_v32 = vmul.f32 %v2781_v13, %v9549_v34  ;;  %v2853_v25 = vmul.f32 0.0, %v8229_v29 }
 0x715   :  { %v12842_v55 = vcombine.high %v9998_v63, %v9998_v63  ;;  %v8231_v61 = vpop.eup %8230  ;;  %8248 = vpow2.f32 %v2452_v43  ;;  %v2839_v4 = vmul.f32 %v2781_v13, %v9659_v15  ;;  %v10079_v18 = vmul.f32 %v2785_v10, %v9557_v46  ;;  %v12843_v13 = vld [vmem:[#allocation37_spill] sm:$0xff] }
 0x716   :  { %v2856_v53 = vadd.f32 %v2852_v45, %v2834_v41  ;;  %v8233_v6 = vpop.eup %8232  ;;  %8250 = vpow2.f32 %v2454_v22  ;;  %v10082_v20 = vmul.f32 %v2785_v10, %v9664_v60  ;;  %v10085_v34 = vmul.f32 %v2789_v24, %v9563_v35 }
 0x717   :  { %v2225_v47 = vrot.slane %v12842_v55, %v12831_v37  ;;  %v2857_v7 = vadd.f32 %v2853_v25, %v2835_v40  ;;  %v8235_v51 = vpop.eup %8234  ;;  %v10088_v63 = vmul.f32 %v2789_v24, %v9670_v8  ;;  %v10093_v46 = vrot.slane %v10015_v5, %v12831_v37  ;;  %v12844_v24 = vld [vmem:[#allocation61_spill] sm:$0xff]  ;;  %v12845_v40 = vld [vmem:[#allocation34_spill] sm:$0xff] }
 0x718   :  { %2860 = vst.msk [vmem:[#allocation2 + $0x80] sm:$0xff] %vm321_vm10, %v2856_v53  ;;  %v2864_v15 = vmul.f32 %v8231_v61, %v2856_v53  ;;  %v2233_v43 = vcombine.high %v10026_v16, %v10026_v16  ;;  %v8237_v60 = vpop.eup %8236  ;;  %v10098_v22 = vmul.f32 %v2793_v50, %v9570_v28  ;;  %v2289_v48 = vrot.slane %v10026_v16, %v12839_v36 }
 0x719   :  { %2861 = vst.msk [vmem:[#allocation2 + $0x88] sm:$0xff] %vm321_vm10, %v2857_v7  ;;  %v2865_v35 = vmul.f32 %v8233_v6, %v2857_v7  ;;  %v2293_v8 = vrot.slane %v2225_v47, %v12839_v36  ;;  %v8239_v38 = vpop.eup %8238  ;;  %8252 = vpow2.f32 %v2456_v54  ;;  %v10107_v19 = vmul.f32 %v2793_v50, %v9676_v11  ;;  %v12846_v6 = vld [vmem:[#allocation63_spill] sm:$0xff] }
 0x71a   :  { %v10110_v29 = vmul.f32 %v2797_v27, %v12843_v13  ;;  %v2868_v28 = vadd.f32 %v2864_v15, %v2836_v31  ;;  %v8241_v10 = vpop.eup %8240  ;;  %8254 = vpow2.f32 %v2458_v26  ;;  %v10113_v41 = vmul.f32 %v2797_v27, %v12844_v24 }
 0x71b   :  { %v10116_v45 = vmul.f32 %v2801_v57, %v12845_v40  ;;  %v2869_v16 = vadd.f32 %v2865_v35, %v2837_v59  ;;  %v8243_v25 = vpop.eup %8242  ;;  %v2235_v55 = vcombine.high %v2225_v47, %v2225_v47  ;;  %v2297_v11 = vrot.slane %v2233_v43, %v12839_v36 }
 0x71c   :  { %2872 = vst.msk [vmem:[#allocation2 + $0x90] sm:$0xff] %vm321_vm10, %v2868_v28  ;;  %v2876_v54 = vmul.f32 %v8235_v51, %v2868_v28  ;;  %v10122_v50 = vrot.slane %v10093_v46, %v12839_v36  ;;  %v8245_v31 = vpop.eup %8244  ;;  %v2368_v27 = vmul.f32 %v9983_v1, %v2293_v8  ;;  %v2366_v61 = vmul.f32 %v9983_v1, %v2289_v48 }
 0x71d   :  { %2873 = vst.msk [vmem:[#allocation2 + $0x98] sm:$0xff] %vm321_vm10, %v2869_v16  ;;  %v2877_v26 = vmul.f32 %v8237_v60, %v2869_v16  ;;  %v2367_v59 = vmul.f32 %v9993_v3, %v2289_v48  ;;  %v8247_v53 = vpop.eup %8246  ;;  %v10129_v7 = vmul.f32 %v2801_v57, %v12846_v6  ;;  %v10135_v51 = vrot.slane %v2204_v56, %v12831_v37  ;;  %v10140_v48 = vpop.permute.xlu1 %2548 }
 0x71e   :  { %v2880_v47 = vadd.f32 %v2876_v54, %v2838_v32  ;;  %v2369_v15 = vmul.f32 %v9993_v3, %v2293_v8  ;;  %v2398_v60 = vmul.f32 1.442695, %v2366_v61  ;;  %v2647_v13 = vrot.slane %v10018_v0, %v12831_v37 }
 0x71f   :  { %v2881_v43 = vadd.f32 %v2877_v26, %v2839_v4  ;;  %v2400_v35 = vmul.f32 1.442695, %v2367_v59  ;;  %v8249_v28 = vpop.eup %8248  ;;  %v2234_v32 = vcombine.high %v10093_v46, %v10093_v46  ;;  %v2301_v5 = vrot.slane %v2235_v55, %v12839_v36 }
 0x720   :  { %2884 = vst.msk [vmem:[#allocation2 + $0xa0] sm:$0xff] %vm321_vm10, %v2880_v47  ;;  %v2888_v57 = vmul.f32 %v8239_v38, %v2880_v47  ;;  %v2370_v56 = vmul.f32 %v9983_v1, %v2297_v11  ;;  %v8251_v8 = vpop.eup %8250  ;;  %v2374_v24 = vmul.f32 %v9983_v1, %v10122_v50  ;;  %v2402_v40 = vmul.f32 1.442695, %v2368_v27 }
 0x721   :  { %2885 = vst.msk [vmem:[#allocation2 + $0xa8] sm:$0xff] %vm321_vm10, %v2881_v43  ;;  %v2889_v4 = vmul.f32 %v8241_v10, %v2881_v43  ;;  %8256 = vpow2.f32 %v2398_v60  ;;  %v2404_v38 = vmul.f32 1.442695, %v2369_v15  ;;  %v2371_v54 = vmul.f32 %v9993_v3, %v2297_v11  ;;  %v10163_v47 = vpop.permute.xlu1 %2992 }
 0x722   :  { %v2892_v16 = vadd.f32 %v2888_v57, %v10079_v18  ;;  %8258 = vpow2.f32 %v2400_v35  ;;  %v2663_v55 = vrot.slane %v2647_v13, %v12831_v37  ;;  %v2655_v26 = vcombine.high %v2647_v13, %v2647_v13 }
 0x723   :  { %8260 = vpow2.f32 %v10056_v33  ;;  %v2893_v46 = vadd.f32 %v2889_v4, %v10082_v20  ;;  %v8253_v61 = vpop.eup %8252  ;;  %v2309_v27 = vrot.slane %v10135_v51, %v12839_v36  ;;  %v10159_v18 = vrot.slane %v2234_v32, %v12839_v36 }
 0x724   :  { %2896 = vst.msk [vmem:[#allocation2 + $0xb0] sm:$0xff] %vm321_vm10, %v2892_v16  ;;  %v2900_v10 = vmul.f32 %v8243_v25, %v2892_v16  ;;  %v2406_v59 = vmul.f32 1.442695, %v2370_v56  ;;  %v8255_v6 = vpop.eup %8254  ;;  %v2372_v20 = vmul.f32 %v9983_v1, %v2301_v5  ;;  %8262 = vpow2.f32 %v2402_v40 }
 0x725   :  { %2897 = vst.msk [vmem:[#allocation2 + $0xb8] sm:$0xff] %vm321_vm10, %v2893_v46  ;;  %v2901_v33 = vmul.f32 %v8245_v31, %v2893_v46  ;;  %v2414_v11 = vmul.f32 1.442695, %v2374_v24  ;;  %8264 = vpow2.f32 %v2404_v38  ;;  %v2408_v25 = vmul.f32 1.442695, %v2371_v54  ;;  %v12847_v38 = vld [vmem:[#allocation52_spill] sm:$0xff] }
 0x726   :  { %v2904_v15 = vadd.f32 %v2900_v10, %v10085_v34  ;;  %v2373_v43 = vmul.f32 %v9993_v3, %v2301_v5  ;;  %v2236_v35 = vcombine.high %v10135_v51, %v10135_v51  ;;  %v2741_v13 = vrot.slane %v2663_v55, %v12839_v36 }
 0x727   :  { %v2905_v60 = vadd.f32 %v2901_v33, %v10088_v63  ;;  %v10172_v31 = vrot.slane %v2655_v26, %v12831_v37  ;;  %v2376_v32 = vmul.f32 %v9983_v1, %v2309_v27  ;;  %8266 = vpow2.f32 %v2406_v59 }
 0x728   :  { %2908 = vst.msk [vmem:[#allocation2 + $0xc0] sm:$0xff] %vm321_vm10, %v2904_v15  ;;  %v2912_v57 = vmul.f32 %v8247_v53, %v2904_v15  ;;  %v2685_v34 = vcombine.high %v2663_v55, %v2663_v55  ;;  %8268 = vpow2.f32 %v2414_v11  ;;  %v2410_v63 = vmul.f32 1.442695, %v2372_v20  ;;  %v10189_v55 = vpop.permute.xlu1 %3000 }
 0x729   :  { %2909 = vst.msk [vmem:[#allocation2 + $0xc8] sm:$0xff] %vm321_vm10, %v2905_v60  ;;  %v2913_v5 = vmul.f32 %v8249_v28, %v2905_v60  ;;  %v2375_v56 = vmul.f32 %v9993_v3, %v10122_v50  ;;  %v10182_v24 = vmul.f32 %v9983_v1, %v10159_v18  ;;  %8270 = vpow2.f32 %v2408_v25 }
 0x72a   :  { %v2916_v4 = vadd.f32 %v2912_v57, %v10098_v22  ;;  %v2412_v53 = vmul.f32 1.442695, %v2373_v43  ;;  %v2818_v54 = vmul.f32 %v2741_v13, %v12847_v38  ;;  %v2819_v28 = vmul.f32 %v2741_v13, %v9935_v44  ;;  %v12848_v13 = vld [vmem:[#allocation55_spill] sm:$0xff] }
 0x72b   :  { %v8257_v40 = vpop.eup %8256  ;;  %v2917_v16 = vadd.f32 %v2913_v5, %v10107_v19  ;;  %v2745_v46 = vrot.slane %v10172_v31, %v12839_v36  ;;  %v2749_v10 = vrot.slane %v2685_v34, %v12839_v36  ;;  %v2640_v59 = vcombine.high %v10018_v0, %v10018_v0 }
 0x72c   :  { %v8259_v50 = vpop.eup %8258  ;;  %2920 = vst.msk [vmem:[#allocation2 + $0xd0] sm:$0xff] %vm321_vm10, %v2916_v4  ;;  %v2924_v22 = vmul.f32 %v8251_v8, %v2916_v4  ;;  %v2850_v26 = vmul.f32 0.0, %v8257_v40  ;;  %8272 = vpow2.f32 %v2410_v63  ;;  %v2416_v20 = vmul.f32 1.442695, %v2375_v56 }
 0x72d   :  { %v8261_v19 = vpop.eup %8260  ;;  %2921 = vst.msk [vmem:[#allocation2 + $0xd8] sm:$0xff] %vm321_vm10, %v2917_v16  ;;  %v2925_v33 = vmul.f32 %v8253_v61, %v2917_v16  ;;  %v2851_v44 = vmul.f32 0.0, %v8259_v50  ;;  %8274 = vpow2.f32 %v2412_v53  ;;  %v2377_v25 = vmul.f32 %v9993_v3, %v2309_v27 }
 0x72e   :  { %v2928_v11 = vadd.f32 %v2924_v22, %v10110_v29  ;;  %v2854_v15 = vadd.f32 %v2850_v26, %v2818_v54  ;;  %v8263_v8 = vpop.eup %8262  ;;  %v2820_v57 = vmul.f32 %v2745_v46, %v12848_v13  ;;  %v2687_v0 = vcombine.high %v10172_v31, %v10172_v31  ;;  %v10208_v31 = vpop.permute.xlu1 %2984 }
 0x72f   :  { %v2929_v43 = vadd.f32 %v2925_v33, %v10113_v41  ;;  %v2855_v60 = vadd.f32 %v2851_v44, %v2819_v28  ;;  %v8265_v34 = vpop.eup %8264  ;;  %v2821_v29 = vmul.f32 %v2745_v46, %v9968_v2  ;;  %v2654_v27 = vrot.slane %v2640_v59, %v12831_v37  ;;  %v12849_v28 = vld [vmem:[#allocation56_spill] sm:$0xff] }
 0x730   :  { %2932 = vst.msk [vmem:[#allocation2 + $0xe0] sm:$0xff] %vm321_vm10, %v2928_v11  ;;  %v2936_v61 = vmul.f32 %v8255_v6, %v2928_v11  ;;  %2858 = vst.msk [vmem:[#allocation2] sm:$0xff] %vm321_vm10, %v2854_v15  ;;  %v2862_v5 = vmul.f32 %v8263_v8, %v2854_v15  ;;  %8276 = vpow2.f32 %v2416_v20  ;;  %v2418_v56 = vmul.f32 1.442695, %v2376_v32  ;;  %v10216_v32 = vld [vmem:[#allocation2 + $0xf8] sm:$0xff] }
 0x731   :  { %2933 = vst.msk [vmem:[#allocation2 + $0xe8] sm:$0xff] %vm321_vm10, %v2929_v43  ;;  %v2937_v41 = vmul.f32 %v8261_v19, %v2929_v43  ;;  %2859 = vst.msk [vmem:[#allocation2 + $0x8] sm:$0xff] %vm321_vm10, %v2855_v60  ;;  %v2863_v63 = vmul.f32 %v8265_v34, %v2855_v60  ;;  %v8267_v4 = vpop.eup %8266  ;;  %v2420_v40 = vmul.f32 1.442695, %v2377_v25  ;;  %v2379_v2 = vmul.f32 %v9993_v3, %v10159_v18  ;;  %v1750_v19 = vpop.permute.xlu0 %1749 }
 0x732   :  { %v2940_v6 = vadd.f32 %v2936_v61, %v10116_v45  ;;  %v2866_v53 = vadd.f32 %v2862_v5, %v2820_v57  ;;  %v8269_v16 = vpop.eup %8268  ;;  %v2822_v46 = vmul.f32 %v2749_v10, %v12849_v28  ;;  %v2753_v50 = vrot.slane %v2687_v0, %v12839_v36  ;;  %v10237_v13 = vpop.permute.xlu1 %3008 }
 0x733   :  { %v2941_v38 = vadd.f32 %v2937_v41, %v10129_v7  ;;  %v2867_v54 = vadd.f32 %v2863_v63, %v2821_v29  ;;  %v8271_v22 = vpop.eup %8270  ;;  %v2823_v45 = vmul.f32 %v2749_v10, %v10011_v62  ;;  %v2670_v18 = vrot.slane %v2654_v27, %v12831_v37  ;;  %v2972_v5 = vld [vmem:[#allocation2 + $0xd0] sm:$0xff] }
 0x734   :  { %2944 = vst.msk [vmem:[#allocation2 + $0xf0] sm:$0xff] %vm321_vm10, %v2940_v6  ;;  %2870 = vst.msk [vmem:[#allocation2 + $0x10] sm:$0xff] %vm321_vm10, %v2866_v53  ;;  %v2874_v26 = vmul.f32 %v8267_v4, %v2866_v53  ;;  %v2656_v59 = vcombine.high %v2654_v27, %v2654_v27  ;;  %8278 = vpow2.f32 %v2418_v56  ;;  %v2422_v33 = vmul.f32 1.442695, %v10182_v24  ;;  %v12851_v24 = vld [vmem:[#allocation57_spill] sm:$0xff]  ;;  %v2973_v53 = vld [vmem:[#allocation2 + $0xd8] sm:$0xff] }
 0x735   :  { %2945 = vst.msk [vmem:[#allocation2 + $0xf8] sm:$0xff] %vm321_vm10, %v2941_v38  ;;  %2871 = vst.msk [vmem:[#allocation2 + $0x18] sm:$0xff] %vm321_vm10, %v2867_v54  ;;  %v2875_v7 = vmul.f32 %v8271_v22, %v2867_v54  ;;  %v2317_v44 = vrot.slane %v2236_v35, %v12839_v36  ;;  %v3589_v62 = vrot.slane %v9988_v23, 7  ;;  %8280 = vpow2.f32 %v2420_v40  ;;  %v1738_v6 = vpop.permute.xlu0 %1737 }
 0x736   :  { %v2878_v10 = vadd.f32 %v2874_v26, %v2822_v46  ;;  %v2424_v20 = vmul.f32 1.442695, %v2379_v2  ;;  %v8273_v11 = vpop.eup %8272  ;;  %v1568_v15 = vrot.slane %v10007_v42, 2  ;;  %v12850_v25 = vrot.slane %v9978_v12, 4 }
 0x737   :  { %v2879_v43 = vadd.f32 %v2875_v7, %v2823_v45  ;;  %v2824_v60 = vmul.f32 %v2753_v50, %v12851_v24  ;;  %v8275_v51 = vpop.eup %8274  ;;  %v2757_v57 = vrot.slane %v2670_v18, %v12839_v36  ;;  %v10242_v0 = vrot.slane %v2656_v59, %v12831_v37 }
 0x738   :  { %v10234_v8 = vadd.f32 %v12850_v25, %v9978_v12  ;;  %2882 = vst.msk [vmem:[#allocation2 + $0x20] sm:$0xff] %vm321_vm10, %v2878_v10  ;;  %v2886_v35 = vmul.f32 %v8273_v11, %v2878_v10  ;;  %v2380_v34 = vmul.f32 %v9983_v1, %v2317_v44  ;;  %v2825_v61 = vmul.f32 %v2753_v50, %v10039_v9 }
 0x739   :  { %2883 = vst.msk [vmem:[#allocation2 + $0x28] sm:$0xff] %vm321_vm10, %v2879_v43  ;;  %v2887_v12 = vmul.f32 %v8275_v51, %v2879_v43  ;;  %8282 = vpow2.f32 %v2422_v33  ;;  %v2381_v29 = vmul.f32 %v9993_v3, %v2317_v44  ;;  %v2686_v41 = vcombine.high %v2670_v18, %v2670_v18  ;;  %v12852_v3 = vld [vmem:[#allocation58_spill] sm:$0xff]  ;;  %v12854_v44 = vld [vmem:[#allocation64_spill] sm:$0xff] }
 0x73a   :  { %v2890_v27 = vadd.f32 %v2886_v35, %v2824_v60  ;;  %8284 = vpow2.f32 %v2424_v20  ;;  %v2426_v63 = vmul.f32 1.442695, %v2380_v34  ;;  %v8277_v56 = vpop.eup %8276  ;;  %v10249_v4 = vmul.f32 %v1750_v19, %v9898_v49  ;;  %v12853_v49 = vld [vmem:[#allocation45_spill] sm:$0xff]  ;;  %v2974_v51 = vld [vmem:[#allocation2 + $0xe0] sm:$0xff]  ;;  %v12856_v34 = vld [vmem:[#allocation19_spill] sm:$0xff] }
 0x73b   :  { %v2891_v1 = vadd.f32 %v2887_v12, %v2825_v61  ;;  %v2428_v40 = vmul.f32 1.442695, %v2381_v29  ;;  %v10252_v2 = vadd.f32 %v1568_v15, %v10007_v42  ;;  %v1631_v9 = vrot.slane %v10234_v8, 2  ;;  %v2948_v46 = vld [vmem:[#allocation2 + $0x10] sm:$0xff]  ;;  %v10262_v42 = vpop.permute.xlu1 %3016  ;;  %v12855_v15 = vld [vmem:[#allocation59_spill] sm:$0xff] }
 0x73c   :  { %2894 = vst.msk [vmem:[#allocation2 + $0x30] sm:$0xff] %vm321_vm10, %v2890_v27  ;;  %v2826_v38 = vmul.f32 %v2757_v57, %v12852_v3  ;;  %v2898_v54 = vmul.f32 %v8269_v16, %v2890_v27  ;;  %v2761_v28 = vrot.slane %v10242_v0, %v12839_v36  ;;  %v3132_v50 = vmul.f32 %v12853_v49, %v2972_v5  ;;  %v2949_v19 = vld [vmem:[#allocation2 + $0x18] sm:$0xff]  ;;  %v12857_v5 = vld [vmem:[#allocation60_spill] sm:$0xff]  ;;  %v2947_v49 = vld [vmem:[#allocation2 + $0x8] sm:$0xff] }
 0x73d   :  { %2895 = vst.msk [vmem:[#allocation2 + $0x38] sm:$0xff] %vm321_vm10, %v2891_v1  ;;  %v2899_v22 = vmul.f32 %v8277_v56, %v2891_v1  ;;  %v2827_v45 = vmul.f32 %v2757_v57, %v10052_v30  ;;  %8286 = vpow2.f32 %v2426_v63  ;;  %v10265_v26 = vmul.f32 %v1738_v6, %v9907_v21  ;;  %v2975_v63 = vld [vmem:[#allocation2 + $0xe8] sm:$0xff]  ;;  %v12858_v3 = vld [vmem:[#allocation47_spill] sm:$0xff] }
 0x73e   :  { %v3133_v18 = vmul.f32 %v9849_v58, %v2973_v53  ;;  %v2902_v16 = vadd.f32 %v2898_v54, %v2826_v38  ;;  %v2765_v59 = vrot.slane %v2686_v41, %v12839_v36  ;;  %v8279_v7 = vpop.eup %8278  ;;  %8288 = vpow2.f32 %v2428_v40  ;;  %v2946_v41 = vld [vmem:[#allocation2] sm:$0xff] }
 0x73f   :  { %v2903_v33 = vadd.f32 %v2899_v22, %v2827_v45  ;;  %v3108_v10 = vmul.f32 %v12854_v44, %v2948_v46  ;;  %v2950_v20 = vld [vmem:[#allocation2 + $0x20] sm:$0xff]  ;;  %v1570_v30 = vrot.slane %v10252_v2, 1  ;;  %v8281_v11 = vpop.eup %8280  ;;  %v2828_v21 = vmul.f32 %v2761_v28, %v12855_v15 }
 0x740   :  { %2906 = vst.msk [vmem:[#allocation2 + $0x40] sm:$0xff] %vm321_vm10, %v2902_v16  ;;  %v2829_v25 = vmul.f32 %v2761_v28, %v10067_v14  ;;  %v2910_v58 = vmul.f32 %v8279_v7, %v2902_v16  ;;  %v2688_v43 = vcombine.high %v10242_v0, %v10242_v0  ;;  %v2951_v24 = vld [vmem:[#allocation2 + $0x28] sm:$0xff]  ;;  %v3255_v60 = vsel %vm321_vm10, %v3132_v50, 0.0  ;;  %v12859_v16 = vld [vmem:[#allocation71_spill] sm:$0xff] }
 0x741   :  { %2907 = vst.msk [vmem:[#allocation2 + $0x48] sm:$0xff] %vm321_vm10, %v2903_v33  ;;  %v2911_v35 = vmul.f32 %v8281_v11, %v2903_v33  ;;  %v3109_v57 = vmul.f32 %v10163_v47, %v2949_v19  ;;  %v3110_v12 = vmul.f32 %v12856_v34, %v2950_v20  ;;  %v3256_v61 = vsel %vm321_vm10, %v3133_v18, 0.0  ;;  %v10286_v47 = vpop.permute.xlu1 %3024 }
 0x742   :  { %v2914_v29 = vadd.f32 %v2910_v58, %v2828_v21  ;;  %v2830_v14 = vmul.f32 %v2765_v59, %v12857_v5  ;;  %v3147_v27 = vsel %vm321_vm10, %v3108_v10, 0.0  ;;  %v2831_v6 = vmul.f32 %v2765_v59, %v10104_v39  ;;  %v12860_v21 = vld [vmem:[#allocation62_spill] sm:$0xff] }
 0x743   :  { %v8283_v0 = vpop.eup %8282  ;;  %v2915_v56 = vadd.f32 %v2911_v35, %v2829_v25  ;;  %v3148_v53 = vsel %vm321_vm10, %v3109_v57, 0.0  ;;  %v3111_v1 = vmul.f32 %v10189_v55, %v2951_v24  ;;  %v3134_v38 = vmul.f32 %v12858_v3, %v2974_v51  ;;  %v2952_v7 = vld [vmem:[#allocation2 + $0x30] sm:$0xff]  ;;  %v12861_v57 = vld [vmem:[#allocation24_spill] sm:$0xff] }
 0x744   :  { %v8285_v40 = vpop.eup %8284  ;;  %2918 = vst.msk [vmem:[#allocation2 + $0x50] sm:$0xff] %vm321_vm10, %v2914_v29  ;;  %v2922_v54 = vmul.f32 %v8283_v0, %v2914_v29  ;;  %v2769_v28 = vrot.slane %v2688_v43, %v12839_v36  ;;  %v3156_v46 = vsel %vm321_vm10, %v3110_v12, 0.0  ;;  %v3149_v50 = vadd.f32 %v3148_v53, %v3147_v27  ;;  %v2953_v43 = vld [vmem:[#allocation2 + $0x38] sm:$0xff] }
 0x745   :  { %2919 = vst.msk [vmem:[#allocation2 + $0x58] sm:$0xff] %vm321_vm10, %v2915_v56  ;;  %v2923_v39 = vmul.f32 %v8285_v40, %v2915_v56  ;;  %v3157_v22 = vsel %vm321_vm10, %v3111_v1, 0.0  ;;  %v3106_v55 = vmul.f32 %v9792_v17, %v2946_v41  ;;  %v3593_v45 = vrot.slane %v10265_v26, 5  ;;  %v12862_v40 = vld [vmem:[#allocation68_spill] sm:$0xff]  ;;  %v1797_v26 = vld [vmem:[%s12546_s12 + $0x10] sm:$0xff] }
 0x746   :  { %v10296_v18 = vadd.f32 %v3256_v61, %v3255_v60  ;;  %v3135_v59 = vmul.f32 %v12859_v16, %v2975_v63  ;;  %v2926_v19 = vadd.f32 %v2922_v54, %v2830_v14  ;;  %v3150_v10 = vrot.slane %v3149_v50, 4  ;;  %v3033_v61 = vpop.permute.xlu1 %3032 }
 0x747   :  { %v8287_v33 = vpop.eup %8286  ;;  %v2927_v44 = vadd.f32 %v2923_v39, %v2831_v6  ;;  %v3158_v20 = vadd.f32 %v3157_v22, %v3156_v46  ;;  %v3107_v11 = vmul.f32 %v10208_v31, %v2947_v49  ;;  %v3264_v15 = vsel %vm321_vm10, %v3134_v38, 0.0  ;;  %v2954_v12 = vld [vmem:[#allocation2 + $0x40] sm:$0xff] }
 0x748   :  { %2930 = vst.msk [vmem:[#allocation2 + $0x60] sm:$0xff] %vm321_vm10, %v2926_v19  ;;  %v2832_v17 = vmul.f32 %v2769_v28, %v12860_v21  ;;  %v2934_v25 = vmul.f32 %v8287_v33, %v2926_v19  ;;  %v3138_v58 = vsel %vm321_vm10, %v3106_v55, 0.0  ;;  %v8289_v24 = vpop.eup %8288  ;;  %v3151_v60 = vadd.f32 %v3150_v10, %v3149_v50  ;;  %v2955_v31 = vld [vmem:[#allocation2 + $0x48] sm:$0xff]  ;;  %v12863_v49 = vld [vmem:[#allocation28_spill] sm:$0xff]  ;;  %v2976_v19 = vld [vmem:[#allocation2 + $0xf0] sm:$0xff] }
 0x749   :  { %2931 = vst.msk [vmem:[#allocation2 + $0x68] sm:$0xff] %vm321_vm10, %v2927_v44  ;;  %v3159_v51 = vrot.slane %v3158_v20, 4  ;;  %v3139_v35 = vsel %vm321_vm10, %v3107_v11, 0.0  ;;  %v3112_v34 = vmul.f32 %v12861_v57, %v2952_v7  ;;  %v2935_v29 = vmul.f32 %v8289_v24, %v2927_v44  ;;  %v2977_v10 = vld [vmem:[#allocation2 + $0xf8] sm:$0xff]  ;;  %v12865_v57 = vld [vmem:[#allocation50_spill] sm:$0xff] }
 0x74a   :  { %v2833_v5 = vmul.f32 %v2769_v28, %v10140_v48  ;;  %v2938_v14 = vadd.f32 %v2934_v25, %v2832_v17  ;;  %v3140_v27 = vadd.f32 %v3139_v35, %v3138_v58  ;;  %v3152_v41 = vrot.slane %v3151_v60, 2  ;;  %v3041_v44 = vpop.permute.xlu1 %3040  ;;  %v12864_v25 = vld [vmem:[#allocation70_spill] sm:$0xff] }
 0x74b   :  { %v3160_v0 = vadd.f32 %v3159_v51, %v3158_v20  ;;  %v3113_v63 = vmul.f32 %v10237_v13, %v2953_v43  ;;  %v3165_v56 = vsel %vm321_vm10, %v3112_v34, 0.0  ;;  %v2956_v6 = vld [vmem:[#allocation2 + $0x50] sm:$0xff]  ;;  %v3114_v3 = vmul.f32 %v12862_v40, %v2954_v12 }
 0x74c   :  { %v2939_v53 = vadd.f32 %v2935_v29, %v2833_v5  ;;  %2942 = vst.msk [vmem:[#allocation2 + $0x70] sm:$0xff] %vm321_vm10, %v2938_v14  ;;  %v3141_v1 = vrot.slane %v3140_v27, 4  ;;  %v3115_v38 = vmul.f32 %v10262_v42, %v2955_v31  ;;  %v2957_v54 = vld [vmem:[#allocation2 + $0x58] sm:$0xff]  ;;  %v3265_v48 = vsel %vm321_vm10, %v3135_v59, 0.0 }
 0x74d   :  { %v3161_v28 = vrot.slane %v3160_v0, 2  ;;  %v3166_v46 = vsel %vm321_vm10, %v3113_v63, 0.0  ;;  %v3116_v39 = vmul.f32 %v12863_v49, %v2956_v6  ;;  %v3174_v22 = vsel %vm321_vm10, %v3114_v3, 0.0 }
 0x74e   :  { %2943 = vst.msk [vmem:[#allocation2 + $0x78] sm:$0xff] %vm321_vm10, %v2939_v53  ;;  %v3142_v13 = vadd.f32 %v3141_v1, %v3140_v27  ;;  %v3167_v50 = vadd.f32 %v3166_v46, %v3165_v56  ;;  %v3175_v55 = vsel %vm321_vm10, %v3115_v38, 0.0  ;;  %v3258_v16 = vrot.slane %v10296_v18, 4  ;;  %v10328_v3 = vpop.permute.xlu1 %3400 }
 0x74f   :  { %v3153_v42 = vadd.f32 %v3152_v41, %v3151_v60  ;;  %v3176_v7 = vadd.f32 %v3175_v55, %v3174_v22  ;;  %v3117_v59 = vmul.f32 %v10286_v47, %v2957_v54  ;;  %v2958_v33 = vld [vmem:[#allocation2 + $0x60] sm:$0xff]  ;;  %v3162_v20 = vadd.f32 %v3161_v28, %v3160_v0  ;;  %v12866_v54 = vld [vmem:[#allocation74_spill] sm:$0xff] }
 0x750   :  { %v3168_v11 = vrot.slane %v3167_v50, 4  ;;  %v3183_v21 = vsel %vm321_vm10, %v3116_v39, 0.0  ;;  %v2959_v17 = vld [vmem:[#allocation2 + $0x68] sm:$0xff]  ;;  %v3118_v58 = vmul.f32 %v12864_v25, %v2958_v33  ;;  %v3266_v43 = vadd.f32 %v3265_v48, %v3264_v15 }
 0x751   :  { %v3143_v24 = vrot.slane %v3142_v13, 2  ;;  %v3177_v51 = vrot.slane %v3176_v7, 4  ;;  %v3184_v35 = vsel %vm321_vm10, %v3117_v59, 0.0  ;;  %v3136_v60 = vmul.f32 %v12865_v57, %v2976_v19  ;;  %v12867_v25 = vld [vmem:[#allocation41_spill] sm:$0xff] }
 0x752   :  { %v3169_v34 = vadd.f32 %v3168_v11, %v3167_v50  ;;  %v3185_v31 = vadd.f32 %v3184_v35, %v3183_v21  ;;  %v3119_v47 = vmul.f32 %v3033_v61, %v2959_v17  ;;  %v3137_v12 = vmul.f32 %v9910_v52, %v2977_v10 }
 0x753   :  { %v3154_v29 = vrot.slane %v3153_v42, 1  ;;  %v3178_v5 = vadd.f32 %v3177_v51, %v3176_v7  ;;  %v3192_v14 = vsel %vm321_vm10, %v3118_v58, 0.0  ;;  %v2960_v27 = vld [vmem:[#allocation2 + $0x70] sm:$0xff]  ;;  %v3163_v41 = vrot.slane %v3162_v20, 1 }
 0x754   :  { %v3170_v0 = vrot.slane %v3169_v34, 2  ;;  %v3186_v63 = vrot.slane %v3185_v31, 4  ;;  %v3193_v15 = vsel %vm321_vm10, %v3119_v47, 0.0  ;;  %v3267_v56 = vrot.slane %v3266_v43, 4 }
 0x755   :  { %v3144_v6 = vadd.f32 %v3143_v24, %v3142_v13  ;;  %v3179_v53 = vrot.slane %v3178_v5, 2  ;;  %v3194_v1 = vadd.f32 %v3193_v15, %v3192_v14  ;;  %v2961_v40 = vld [vmem:[#allocation2 + $0x78] sm:$0xff]  ;;  %v3273_v61 = vsel %vm321_vm10, %v3136_v60, 0.0  ;;  %v12872_v15 = vld [vmem:[#allocation16_spill] sm:$0xff] }
 0x756   :  { %v3171_v52 = vadd.f32 %v3170_v0, %v3169_v34  ;;  %v3187_v38 = vadd.f32 %v3186_v63, %v3185_v31  ;;  %v3120_v48 = vmul.f32 %v12866_v54, %v2960_v27  ;;  %v3274_v28 = vsel %vm321_vm10, %v3137_v12, 0.0 }
 0x757   :  { %v3155_v46 = vadd.f32 %v3154_v29, %v3153_v42  ;;  %v3180_v49 = vadd.f32 %v3179_v53, %v3178_v5  ;;  %v3195_v39 = vrot.slane %v3194_v1, 4  ;;  %v3164_v50 = vadd.f32 %v3163_v41, %v3162_v20  ;;  %v10337_v20 = vpop.permute.xlu1 %1735 }
 0x758   :  { %v3172_v22 = vrot.slane %v3171_v52, 1  ;;  %v3188_v55 = vrot.slane %v3187_v38, 2  ;;  %v3121_v13 = vmul.f32 %v3041_v44, %v2961_v40  ;;  %v3145_v19 = vrot.slane %v3144_v6, 1  ;;  %v12869_v44 = vld [vmem:[#allocation48_spill] sm:$0xff] }
 0x759   :  { %v3181_v7 = vrot.slane %v3180_v49, 1  ;;  %v3196_v59 = vadd.f32 %v3195_v39, %v3194_v1  ;;  %v3201_v33 = vsel %vm321_vm10, %v3120_v48, 0.0  ;;  %v3275_v10 = vadd.f32 %v3274_v28, %v3273_v61  ;;  %v12874_v61 = vld [vmem:[#allocation36_spill] sm:$0xff] }
 0x75a   :  { %v3173_v11 = vadd.f32 %v3172_v22, %v3171_v52  ;;  %v3189_v21 = vadd.f32 %v3188_v55, %v3187_v38  ;;  %v3202_v17 = vsel %vm321_vm10, %v3121_v13, 0.0  ;;  %v12868_v58 = vrot.slane %v12867_v25, 1  ;;  %v12877_v22 = vld [vmem:[#allocation30_spill] sm:$0xff] }
 0x75b   :  { %v3182_v42 = vadd.f32 %v3181_v7, %v3180_v49  ;;  %v3197_v51 = vrot.slane %v3196_v59, 2  ;;  %v3203_v35 = vadd.f32 %v3202_v17, %v3201_v33  ;;  %v1499_v57 = vmul.f32 %v12869_v44, %v10216_v32  ;;  %v10362_v54 = vpop.permute.xlu1 %1731  ;;  %v12879_v33 = vld [vmem:[#allocation44_spill] sm:$0xff] }
 0x75c   :  { %v3325_v24 = vadd.f32 %v12868_v58, %v3155_v46  ;;  %v10344_v60 = vadd.f32 %v1631_v9, %v10234_v8  ;;  %v12870_v34 = vrot.slane %v12867_v25, 2  ;;  %v3190_v47 = vrot.slane %v3189_v21, 1  ;;  %v2963_v58 = vld [vmem:[#allocation2 + $0x88] sm:$0xff] }
 0x75d   :  { %v3146_v12 = vadd.f32 %v3145_v19, %v3144_v6  ;;  %v12871_v29 = vrot.slane %v12867_v25, 3  ;;  %v3198_v14 = vadd.f32 %v3197_v51, %v3196_v59  ;;  %v3204_v27 = vrot.slane %v3203_v35, 4 }
 0x75e   :  { %v3326_v31 = vadd.f32 %v12870_v34, %v3164_v50  ;;  %v3259_v41 = vadd.f32 %v3258_v16, %v10296_v18  ;;  %v3268_v32 = vadd.f32 %v3267_v56, %v3266_v43  ;;  %v3276_v0 = vrot.slane %v3275_v10, 4  ;;  %v12875_v18 = vld [vmem:[#allocation29_spill] sm:$0xff] }
 0x75f   :  { %v3327_v5 = vadd.f32 %v12871_v29, %v3173_v11  ;;  %v3191_v63 = vadd.f32 %v3190_v47, %v3189_v21  ;;  %v3419_v8 = vmul.f32 %v12872_v15, %v3325_v24  ;;  %v12873_v9 = vrot.slane %v12867_v25, 4  ;;  %v12881_v47 = vld [vmem:[#allocation53_spill] sm:$0xff]  ;;  %v2969_v15 = vld [vmem:[#allocation2 + $0xb8] sm:$0xff] }
 0x760   :  { %v3199_v1 = vrot.slane %v3198_v14, 1  ;;  %v3205_v40 = vadd.f32 %v3204_v27, %v3203_v35  ;;  %v10357_v6 = vsel %vm321_vm10, %v1499_v57, 0.0  ;;  %v3420_v52 = vmul.f32 %v12874_v61, %v3326_v31  ;;  %v12880_v35 = vld [vmem:[#allocation51_spill] sm:$0xff]  ;;  %v2964_v57 = vld [vmem:[#allocation2 + $0x90] sm:$0xff]  ;;  %v10378_v31 = vpop.permute.xlu1 %1751  ;;  %v2966_v27 = vld [vmem:[#allocation2 + $0xa0] sm:$0xff] }
 0x761   :  { %v3328_v53 = vadd.f32 %v12873_v9, %v3182_v42  ;;  %vm3460_vm15 = vcmask 1041409   ;;  %vm3463_vm13 = vcmask 1042434   ;;  %v3324_v38 = vadd.f32 %v12867_v25, %v3146_v12 }
 0x762   :  { %v3421_v16 = vmul.f32 %v12875_v18, %v3327_v5  ;;  %v3200_v43 = vadd.f32 %v3199_v1, %v3198_v14  ;;  %v3206_v56 = vrot.slane %v3205_v40, 2  ;;  %v3260_v48 = vrot.slane %v3259_v41, 2  ;;  %v2965_v14 = vld [vmem:[#allocation2 + $0x98] sm:$0xff]  ;;  %v2970_v18 = vld [vmem:[#allocation2 + $0xc0] sm:$0xff] }
 0x763   :  { %v3269_v28 = vrot.slane %v3268_v32, 2  ;;  %v10364_v46 = vadd.f32 %v3276_v0, %v3275_v10  ;;  %v12876_v49 = vrot.slane %v12867_v25, 5  ;;  %v3459_v50 = vrot.slane %v3419_v8, 7  ;;  %v2962_v10 = vld [vmem:[#allocation2 + $0x80] sm:$0xff]  ;;  %v12882_v8 = vld [vmem:[#allocation39_spill] sm:$0xff] }
 0x764   :  { %v3422_v55 = vmul.f32 %v12877_v22, %v3328_v53  ;;  %v3207_v13 = vadd.f32 %v3206_v56, %v3205_v40  ;;  %vm3466_vm14 = vcmask 1043459   ;;  %v3462_v19 = vrot.slane %v3420_v52, 6  ;;  %v12883_v53 = vld [vmem:[#allocation21_spill] sm:$0xff]  ;;  %v12888_v22 = vld [vmem:[#allocation66_spill] sm:$0xff] }
 0x765   :  { %v3329_v39 = vadd.f32 %v12876_v49, %v3191_v63  ;;  %v12878_v7 = vrot.slane %v12867_v25, 6  ;;  %v3418_v11 = vmul.f32 %v12879_v33, %v3324_v38  ;;  %v3465_v21 = vrot.slane %v3421_v16, 5  ;;  %v2968_v63 = vld [vmem:[#allocation2 + $0xb0] sm:$0xff]  ;;  %v2971_v16 = vld [vmem:[#allocation2 + $0xc8] sm:$0xff]  ;;  %v12891_v33 = vld [vmem:[#allocation67_spill] sm:$0xff] }
 0x766   :  { %v3208_v17 = vrot.slane %v3207_v13, 1  ;;  %v10372_v24 = vadd.f32 %v3260_v48, %v3259_v41  ;;  %v10374_v42 = vadd.f32 %v3269_v28, %v3268_v32  ;;  %v3278_v51 = vrot.slane %v10364_v46, 2  ;;  %v2967_v41 = vld [vmem:[#allocation2 + $0xa8] sm:$0xff] }
 0x767   :  { %v3330_v59 = vadd.f32 %v12878_v7, %v3200_v43  ;;  %v3423_v44 = vmul.f32 %v12880_v35, %v3329_v39  ;;  %v3461_v29 = vsel %vm3460_vm15, %v3459_v50, %v3418_v11  ;;  %v3468_v5 = vrot.slane %v3422_v55, 4  ;;  %v12885_v43 = vld [vmem:[#allocation38_spill] sm:$0xff]  ;;  %v12886_v28 = vld [vmem:[#allocation65_spill] sm:$0xff]  ;;  %v12887_v39 = vld [vmem:[#allocation35_spill] sm:$0xff] }
 0x768   :  { %v3209_v34 = vadd.f32 %v3208_v17, %v3207_v13  ;;  %v3464_v32 = vsel %vm3463_vm13, %v3462_v19, %v3461_v29  ;;  %v3122_v9 = vmul.f32 %v12882_v8, %v2962_v10  ;;  %v3123_v1 = vmul.f32 %v12883_v53, %v2963_v58  ;;  %v12889_v13 = vld [vmem:[#allocation54_spill] sm:$0xff]  ;;  %v12890_v7 = vld [vmem:[#allocation40_spill] sm:$0xff]  ;;  %v12893_v58 = vld [vmem:[#allocation69_spill] sm:$0xff] }
 0x769   :  { %v3424_v12 = vmul.f32 %v12881_v47, %v3330_v59  ;;  %v3471_v0 = vrot.slane %v3423_v44, 3  ;;  %v12884_v40 = vrot.slane %v12867_v25, 7  ;;  %v3467_v52 = vsel %vm3466_vm14, %v3465_v21, %v3464_v32  ;;  %v12892_v17 = vld [vmem:[#allocation42_spill] sm:$0xff] }
 0x76a   :  { %v3124_v56 = vmul.f32 %v12885_v43, %v2964_v57  ;;  %v3470_v48 = vsel %vm3469_vm12, %v3468_v5, %v3467_v52  ;;  %v3125_v49 = vmul.f32 %v12886_v28, %v2965_v14  ;;  %v3126_v50 = vmul.f32 %v12887_v39, %v2966_v27  ;;  %v10401_v57 = vpop.permute.xlu1 %1747 }
 0x76b   :  { %v3331_v61 = vadd.f32 %v12884_v40, %v3209_v34  ;;  %v3474_v38 = vrot.slane %v3424_v12, 2  ;;  %v3127_v55 = vmul.f32 %v12888_v22, %v2967_v41  ;;  %v3473_v25 = vsel %vm3472_vm11, %v3471_v0, %v3470_v48  ;;  %v12894_v40 = vld [vmem:[#allocation22_spill] sm:$0xff] }
 0x76c   :  { %v3128_v59 = vmul.f32 %v12890_v7, %v2968_v63  ;;  %v3129_v11 = vmul.f32 %v12891_v33, %v2969_v15  ;;  %v3130_v10 = vmul.f32 %v12892_v17, %v2970_v18  ;;  %v3131_v35 = vmul.f32 %v12893_v58, %v2971_v16  ;;  %v1740_v16 = vpop.permute.xlu0 %1739 }
 0x76d   :  { %v3425_v19 = vmul.f32 %v12889_v13, %v3331_v61  ;;  %v3476_v21 = vsel %vm12625_vm8, %v3474_v38, %v3473_v25  ;;  %v3210_v44 = vsel %vm321_vm10, %v3122_v9, 0.0  ;;  %v3211_v47 = vsel %vm321_vm10, %v3123_v1, 0.0  ;;  %v12895_v25 = vld [vmem:[#allocation77_spill] sm:$0xff] }
 0x76e   :  { %v3219_v12 = vsel %vm321_vm10, %v3124_v56, 0.0  ;;  %v3220_v29 = vsel %vm321_vm10, %v3125_v49, 0.0  ;;  %v3212_v5 = vadd.f32 %v3211_v47, %v3210_v44  ;;  %v3228_v27 = vsel %vm321_vm10, %v3126_v50, 0.0  ;;  %v1742_v50 = vpop.permute.xlu1 %1741 }
 0x76f   :  { %v3477_v34 = vrot.slane %v3425_v19, 1  ;;  %v3221_v14 = vadd.f32 %v3220_v29, %v3219_v12  ;;  %v3229_v41 = vsel %vm321_vm10, %v3127_v55, 0.0  ;;  %v3237_v63 = vsel %vm321_vm10, %v3128_v59, 0.0 }
 0x770   :  { %v3230_v0 = vadd.f32 %v3229_v41, %v3228_v27  ;;  %v3238_v15 = vsel %vm321_vm10, %v3129_v11, 0.0  ;;  %v3213_v8 = vrot.slane %v3212_v5, 4  ;;  %v3246_v1 = vsel %vm321_vm10, %v3130_v10, 0.0  ;;  %v12897_v27 = vld [vmem:[#allocation72_spill] sm:$0xff] }
 0x771   :  { %v3479_v32 = vsel %vm12624_vm9, %v3477_v34, %v3476_v21  ;;  %v3222_v9 = vrot.slane %v3221_v14, 4  ;;  %v3239_v53 = vadd.f32 %v3238_v15, %v3237_v63  ;;  %v1637_v61 = vadd.f32 %v10357_v6, %v12894_v40  ;;  %v12901_v40 = vld [vmem:[#allocation17_spill] sm:$0xff] }
 0x772   :  { %7791 = vmatprep.mubr.msk.f32.mxu0 %vm321_vm10, %v3479_v32  ;;  %v3279_v52 = vadd.f32 %v3278_v51, %v10364_v46  ;;  %v3231_v38 = vrot.slane %v3230_v0, 4  ;;  %v3247_v18 = vsel %vm321_vm10, %v3131_v35, 0.0  ;;  %v3214_v43 = vadd.f32 %v3213_v8, %v3212_v5  ;;  %v1744_v32 = vpop.permute.xlu1 %1743 }
 0x773   :  { %v3223_v56 = vadd.f32 %v3222_v9, %v3221_v14  ;;  %v3240_v48 = vrot.slane %v3239_v53, 4  ;;  %v3248_v28 = vadd.f32 %v3247_v18, %v3246_v1  ;;  %v3262_v49 = vrot.slane %v10372_v24, 1 }
 0x774   :  { %v3271_v39 = vrot.slane %v10374_v42, 1  ;;  %v1571_v22 = vadd.f32 %v1570_v30, %v10252_v2  ;;  %v3232_v6 = vadd.f32 %v3231_v38, %v3230_v0  ;;  %v3215_v55 = vrot.slane %v3214_v43, 2  ;;  %v12896_v2 = vld [vmem:[#allocation73_spill] sm:$0xff] }
 0x775   :  { %v3224_v46 = vrot.slane %v3223_v56, 2  ;;  %v3241_v51 = vadd.f32 %v3240_v48, %v3239_v53  ;;  %v3249_v13 = vrot.slane %v3248_v28, 4  ;;  %v1638_v19 = vrot.slane %v1637_v61, 4  ;;  %v1754_v48 = vpop.permute.xlu0 %1753 }
 0x776   :  { %v10423_v7 = vmul.f32 %v1740_v16, %v12895_v25  ;;  %v3280_v59 = vrot.slane %v3279_v52, 1  ;;  %v3233_v33 = vrot.slane %v3232_v6, 2  ;;  %v3216_v11 = vadd.f32 %v3215_v55, %v3214_v43  ;;  %v12908_v25 = vld [vmem:[#allocation32_spill] sm:$0xff] }
 0x777   :  { %v3225_v21 = vadd.f32 %v3224_v46, %v3223_v56  ;;  %v3242_v17 = vrot.slane %v3241_v51, 2  ;;  %v3250_v10 = vadd.f32 %v3249_v13, %v3248_v28  ;;  %v3263_v58 = vadd.f32 %v3262_v49, %v10372_v24  ;;  %v12907_v13 = vld [vmem:[#allocation15_spill] sm:$0xff] }
 0x778   :  { %v3272_v35 = vadd.f32 %v3271_v39, %v10374_v42  ;;  %v1779_v30 = vmul.f32 %v10362_v54, %v12896_v2  ;;  %v3234_v44 = vadd.f32 %v3233_v33, %v3232_v6  ;;  %v3217_v34 = vrot.slane %v3216_v11, 1  ;;  %v12898_v42 = vld [vmem:[#allocation43_spill] sm:$0xff] }
 0x779   :  { %v3226_v47 = vrot.slane %v3225_v21, 1  ;;  %v3243_v12 = vadd.f32 %v3242_v17, %v3241_v51  ;;  %v3251_v29 = vrot.slane %v3250_v10, 2  ;;  %v1639_v5 = vadd.f32 %v1638_v19, %v1637_v61  ;;  %v1746_v17 = vpop.permute.xlu1 %1745 }
 0x77a   :  { %v3281_v14 = vadd.f32 %v3280_v59, %v3279_v52  ;;  %v1781_v41 = vmul.f32 %v10337_v20, %v12897_v27  ;;  %v3235_v0 = vrot.slane %v3234_v44, 1  ;;  %v3218_v63 = vadd.f32 %v3217_v34, %v3216_v11  ;;  %v12909_v11 = vld [vmem:[#allocation81_spill] sm:$0xff]  ;;  %v12913_v34 = vld [vmem:[#allocation76_spill] sm:$0xff] }
 0x77b   :  { %v3227_v15 = vadd.f32 %v3226_v47, %v3225_v21  ;;  %v3244_v24 = vrot.slane %v3243_v12, 1  ;;  %v3252_v8 = vadd.f32 %v3251_v29, %v3250_v10  ;;  %v12899_v9 = vrot.slane %v12898_v42, 5  ;;  %v12910_v10 = vld [vmem:[#allocation46_spill] sm:$0xff] }
 0x77c   :  { %v12900_v54 = vrot.slane %v12898_v42, 6  ;;  %v12902_v38 = vrot.slane %v12901_v40, 7  ;;  %v3236_v61 = vadd.f32 %v3235_v0, %v3234_v44  ;;  %v3590_v20 = vsel %vm3460_vm15, %v3589_v62, %v1779_v30  ;;  %v12912_v30 = vld [vmem:[#allocation33_spill] sm:$0xff] }
 0x77d   :  { %v3337_v53 = vadd.f32 %v12899_v9, %v3263_v58  ;;  %v3245_v52 = vadd.f32 %v3244_v24, %v3243_v12  ;;  %v3253_v16 = vrot.slane %v3252_v8, 1  ;;  %v12903_v43 = vrot.slane %v12898_v42, 1  ;;  %v12916_v24 = vld [vmem:[#allocation31_spill] sm:$0xff] }
 0x77e   :  { %v3338_v1 = vadd.f32 %v12900_v54, %v3272_v35  ;;  %v1692_v18 = vadd.f32 %v12902_v38, %v1571_v22  ;;  %v12904_v28 = vrot.slane %v12898_v42, 7  ;;  %v3591_v39 = vrot.slane %v1781_v41, 6  ;;  %v12915_v41 = vld [vmem:[#allocation49_spill] sm:$0xff] }
 0x77f   :  { %v3333_v56 = vadd.f32 %v12903_v43, %v3227_v15  ;;  %v3332_v6 = vadd.f32 %v12898_v42, %v3218_v63  ;;  %v12905_v55 = vrot.slane %v12898_v42, 2  ;;  %v1640_v46 = vrot.slane %v1639_v5, 2 }
 0x780   :  { %v3339_v49 = vadd.f32 %v12904_v28, %v3281_v14  ;;  %v3254_v51 = vadd.f32 %v3253_v16, %v3252_v8  ;;  %v12906_v23 = vrot.slane %v12898_v42, 3  ;;  %v3431_v59 = vmul.f32 %v12908_v25, %v3337_v53  ;;  %v12914_v14 = vld [vmem:[#allocation83_spill] sm:$0xff]  ;;  %v12920_v28 = vld [vmem:[#allocation78_spill] sm:$0xff] }
 0x781   :  { %v3334_v22 = vadd.f32 %v12905_v55, %v3236_v61  ;;  %v3427_v19 = vmul.f32 %v12907_v13, %v3333_v56  ;;  %v3592_v33 = vsel %vm3463_vm13, %v3591_v39, %v3590_v20  ;;  %v1784_v21 = vmul.f32 %v1742_v50, %v12909_v11  ;;  %v1799_v11 = vld [vmem:[%s12546_s12 + $0x20] sm:$0xff] }
 0x782   :  { %v3335_v62 = vadd.f32 %v12906_v23, %v3245_v52  ;;  %v12911_v35 = vrot.slane %v12898_v42, 4  ;;  %v3432_v47 = vmul.f32 %v12913_v34, %v3338_v1  ;;  %v3433_v29 = vmul.f32 %v10328_v3, %v3339_v49  ;;  %v1756_v42 = vpop.permute.xlu0 %1755  ;;  %v12925_v34 = vld [vmem:[#allocation75_spill] sm:$0xff] }
 0x783   :  { %v3428_v58 = vmul.f32 %v12910_v10, %v3334_v22  ;;  %v3480_v12 = vrot.slane %v3427_v19, 7  ;;  %v1785_v27 = vmul.f32 %v1744_v32, %v12914_v14  ;;  %v3426_v0 = vmul.f32 %v12915_v41, %v3332_v6  ;;  %v12921_v19 = vld [vmem:[#allocation27_spill] sm:$0xff]  ;;  %v12923_v10 = vld [vmem:[#allocation18_spill] sm:$0xff] }
 0x784   :  { %v3336_v2 = vadd.f32 %v12911_v35, %v3254_v51  ;;  %v3429_v44 = vmul.f32 %v12912_v30, %v3335_v62  ;;  %v3595_v50 = vrot.slane %v10423_v7, 4  ;;  %v1786_v15 = vmul.f32 %v1746_v17, %v1692_v18  ;;  %v12917_v7 = vld [vmem:[#allocation79_spill] sm:$0xff]  ;;  %v12922_v17 = vld [vmem:[#allocation82_spill] sm:$0xff] }
 0x785   :  { %v3482_v63 = vrot.slane %v3428_v58, 6  ;;  %v3594_v53 = vsel %vm3466_vm14, %v3593_v45, %v3592_v33  ;;  %v1641_v54 = vadd.f32 %v1640_v46, %v1639_v5  ;;  %v3481_v1 = vsel %vm3460_vm15, %v3480_v12, %v3426_v0  ;;  %v1798_v45 = vld [vmem:[%s12546_s12 + $0x18] sm:$0xff]  ;;  %v12918_v5 = vld [vmem:[#allocation80_spill] sm:$0xff] }
 0x786   :  { %v3430_v8 = vmul.f32 %v12916_v24, %v3336_v2  ;;  %v3484_v9 = vrot.slane %v3429_v44, 5  ;;  %v3488_v3 = vrot.slane %v3431_v59, 3  ;;  %v3597_v40 = vrot.slane %v1784_v21, 3  ;;  %v1800_v21 = vld [vmem:[%s12546_s12 + $0x28] sm:$0xff]  ;;  %v1762_v24 = vpop.permute.xlu1 %1761 }
 0x787   :  { %v3483_v32 = vsel %vm3463_vm13, %v3482_v63, %v3481_v1  ;;  %v3490_v61 = vrot.slane %v3432_v47, 2  ;;  %v3492_v20 = vrot.slane %v3433_v29, 1  ;;  %v1787_v18 = vmul.f32 %v10401_v57, %v12917_v7  ;;  %v1801_v63 = vld [vmem:[%s12546_s12 + $0x30] sm:$0xff] }
 0x788   :  { %v3486_v38 = vrot.slane %v3430_v8, 4  ;;  %v3599_v52 = vrot.slane %v1785_v27, 2  ;;  %v3485_v16 = vsel %vm3466_vm14, %v3484_v9, %v3483_v32  ;;  %v12919_v43 = vrot.slane %v12918_v5, 1 }
 0x789   :  { %v1789_v49 = vmul.f32 %v10378_v31, %v12920_v28  ;;  %v3601_v39 = vrot.slane %v1786_v15, 1  ;;  %v3603_v6 = vrot.slane %v10249_v4, 7  ;;  %v3596_v55 = vsel %vm3469_vm12, %v3595_v50, %v3594_v53  ;;  %v1758_v31 = vpop.permute.xlu0 %1757  ;;  %v1802_v50 = vld [vmem:[%s12546_s12 + $0x38] sm:$0xff]  ;;  %v8474_v28 = vld [vmem:[%s12535_s1 + $0x8] sm:$0xff] }
 0x78a   :  { %v1625_v56 = vadd.f32 %v12919_v43, %v12918_v5  ;;  %v3487_v57 = vsel %vm3469_vm12, %v3486_v38, %v3485_v16  ;;  %v1642_v22 = vrot.slane %v1641_v54, 1  ;;  %v1633_v51 = vrot.slane %v10344_v60, 1  ;;  %v12927_v43 = vld [vmem:[#allocation6_spill] sm:$0xff] }
 0x78b   :  { %v3489_v46 = vsel %vm3472_vm11, %v3488_v3, %v3487_v57  ;;  %v3598_v23 = vsel %vm3472_vm11, %v3597_v40, %v3596_v55  ;;  %v8000_v13 = vpack.c.bf16 %v1798_v45, %v1797_v26  ;;  %v1790_v25 = vmul.f32 %v1754_v48, %v12921_v19  ;;  %v12926_v26 = vld [vmem:[#allocation7_spill] sm:$0xff] }
 0x78c   :  { %v3491_v62 = vsel %vm12625_vm8, %v3490_v61, %v3489_v46  ;;  %v3604_v59 = vsel %vm3460_vm15, %v3603_v6, %v1787_v18  ;;  %v3600_v4 = vsel %vm12625_vm8, %v3599_v52, %v3598_v23  ;;  %v12924_v58 = vrot.slane %v12923_v10, 4 }
 0x78d   :  { %v3493_v33 = vsel %vm12624_vm9, %v3492_v20, %v3491_v62  ;;  %v3605_v48 = vrot.slane %v1789_v49, 6  ;;  %v3602_v2 = vsel %vm12624_vm9, %v3601_v39, %v3600_v4  ;;  %v1666_v30 = vrot.slane %v12923_v10, 5  ;;  %v1760_v8 = vpop.permute.xlu0 %1759  ;;  %v8475_v39 = vld [vmem:[%s12535_s1] sm:$0xff]  ;;  %v7494_v4 = vld [vmem:[%s12538_s4 + $0x48] sm:$0xff] }
 0x78e   :  { %v1697_v35 = vadd.f32 %v12924_v58, %v12922_v17  ;;  %7792 = vmatmul.mubr.msk.f32.vlgmr.msra.gmra.mrb[8].mxu0 %vm321_vm10, %v3493_v33  ;;  %v1643_v44 = vadd.f32 %v1642_v22, %v1641_v54  ;;  %v1634_v12 = vadd.f32 %v1633_v51, %v10344_v60  ;;  %v8004_v14 = vpack.c.bf16 %v1800_v21, %v1799_v11  ;;  %v7493_v33 = vld [vmem:[%s12538_s4 + $0x40] sm:$0xff]  ;;  %v7495_v11 = vld [vmem:[%s12538_s4 + $0x50] sm:$0xff]  ;;  %v7496_v17 = vld [vmem:[%s12538_s4 + $0x58] sm:$0xff] }
 0x78f   :  { %7999 = vmatpush3.bf16.msra.mxu0 %v12925_v34  ;;  %7810 = vmatprep.mubr.msk.f32.mxu0 %vm321_vm10, %v3602_v2  ;;  %v3606_v29 = vsel %vm3463_vm13, %v3605_v48, %v3604_v59  ;;  %v3607_v27 = vrot.slane %v1790_v25, 5  ;;  %v1698_v41 = vadd.f32 %v1666_v30, %v1625_v56  ;;  %v1668_v0 = vrot.slane %v12923_v10, 7 }
 0x790   :  { %v1791_v47 = vmul.f32 %v1756_v42, %v1697_v35  ;;  %8001 = vmatprep.subr.bf16.mxu0 %v8000_v13  ;;  %v1667_v15 = vrot.slane %v12923_v10, 6  ;;  %v8008_v1 = vpack.c.bf16 %v1802_v50, %v1801_v63  ;;  %v8012_v21 = vpack.c.bf16 %v7494_v4, %v7493_v33  ;;  %v12937_v33 = vld [vmem:[#allocation12_spill] sm:$0xff] }
 0x791   :  { %v1792_v60 = vmul.f32 %v1758_v31, %v1698_v41  ;;  %v3608_v9 = vsel %vm3466_vm14, %v3607_v27, %v3606_v29  ;;  %v1700_v42 = vadd.f32 %v1668_v0, %v1643_v44  ;;  %v8016_v10 = vpack.c.bf16 %v7496_v17, %v7495_v11  ;;  %v7492_v29 = vld [vmem:[%s12537_s3 + $0x1] ss:$0 sm:$0xff] }
 0x792   :  { %v3609_v53 = vrot.slane %v1791_v47, 4  ;;  %v1699_v54 = vadd.f32 %v1667_v15, %v1634_v12  ;;  %v7491_v47 = vld [vmem:[%s12536_s2 + $0x1] ss:$0 sm:$0xff] }
 0x793   :  { %8003 = vmatpush3.bf16.msra.mxu0 %v8000_v13  ;;  %v1794_v3 = vmul.f32 %v1762_v24, %v1700_v42  ;;  %v3611_v38 = vrot.slane %v1792_v60, 3  ;;  %v7504_v15 = vld [vmem:[%s12541_s7 + $0x80] sm:$0xff]  ;;  %v7505_v24 = vld [vmem:[%s12541_s7 + $0x88] sm:$0xff]  ;;  %v7506_v60 = vld [vmem:[%s12541_s7 + $0x90] sm:$0xff] }
 0x794   :  { %8005 = vmatprep.subr.bf16.mxu0 %v8004_v14  ;;  %v1793_v40 = vmul.f32 %v1760_v8, %v1699_v54  ;;  %v3610_v32 = vsel %vm3469_vm12, %v3609_v53, %v3608_v9  ;;  %v8020_v8 = vpack.c.bf16 %v7505_v24, %v7504_v15  ;;  %v7507_v9 = vld [vmem:[%s12541_s7 + $0x98] sm:$0xff]  ;;  %v7508_v53 = vld [vmem:[%s12541_s7 + $0xa0] sm:$0xff]  ;;  %v7509_v54 = vld [vmem:[%s12541_s7 + $0xa8] sm:$0xff] }
 0x795   :  { %v3615_v61 = vrot.slane %v1794_v3, 1  ;;  %v3612_v20 = vsel %vm3472_vm11, %v3611_v38, %v3610_v32  ;;  %v8024_v42 = vpack.c.bf16 %v7507_v9, %v7506_v60  ;;  %v7510_v3 = vld [vmem:[%s12541_s7 + $0xb0] sm:$0xff]  ;;  %v7534_v38 = vld [vmem:[%s12538_s4 + $0x60] sm:$0xff] }
 0x796   :  { %v3613_v7 = vrot.slane %v1793_v40, 2  ;;  %8021 = vmatprep.subr.bf16.mxu1 %v8020_v8  ;;  %v7511_v40 = vld [vmem:[%s12541_s7 + $0xb8] sm:$0xff]  ;;  %v7501_v15 = vld [vmem:[%s12540_s6 + $0x2] ss:$0 sm:$0xff] }
 0x797   :  { %8007 = vmatpush3.bf16.msra.mxu0 %v8004_v14  ;;  %8023 = vmatpush3.bf16.msra.mxu1 %v8020_v8  ;;  %v8032_v32 = vpack.c.bf16 %v7511_v40, %v7510_v3 }
 0x798   :  { %8009 = vmatprep.subr.bf16.mxu0 %v8008_v1  ;;  %v3614_v18 = vsel %vm12625_vm8, %v3613_v7, %v3612_v20  ;;  %8025 = vmatprep.subr.bf16.mxu1 %v8024_v42  ;;  %v7499_v7 = vld [vmem:[%s12539_s5 + $0x8] sm:$0xf] }
 0x799   :  { %v3616_v52 = vsel %vm12624_vm9, %v3615_v61, %v3614_v18  ;;  %v7535_v61 = vld [vmem:[%s12538_s4 + $0x68] sm:$0xff]  ;;  %vm12938_vm9 = vcmp.ge.s32.totalorder %v12937_v33, 1 }
 0x79a   :  { %v10599_v20 = vpack.c.bf16 %v7535_v61, %v7534_v38  ;;  %v7536_v38 = vld [vmem:[%s12538_s4 + $0x70] sm:$0xff]  ;;  %v7537_v61 = vld [vmem:[%s12538_s4 + $0x78] sm:$0xff] }
 0x79b   :  { %8011 = vmatpush3.bf16.msra.mxu0 %v8008_v1  ;;  %v8028_v1 = vpack.c.bf16 %v7509_v54, %v7508_v53  ;;  %8027 = vmatpush3.bf16.msra.mxu1 %v8024_v42 }
 0x79c   :  { %8013 = vmatprep.subr.bf16.mxu0 %v8012_v21 }
 0x79d   :  { %8029 = vmatprep.subr.bf16.mxu1 %v8028_v1 }
 0x79e   :  { %7811 = vmatmul.mubr.msk.f32.vlgmr.msra.gmra.mrb[8].mxu0 %vm321_vm10, %v3616_v52  ;;  %v12931_v52 = vld [vmem:[#allocation9_spill] sm:$0xff] }
 0x79f   :  { %8015 = vmatpush3.bf16.msra.mxu0 %v8012_v21  ;;  %8031 = vmatpush3.bf16.msra.mxu1 %v8028_v1 }
 0x7a0   :  { %8017 = vmatprep.subr.bf16.mxu0 %v8016_v10  ;;  %8033 = vmatprep.subr.bf16.mxu1 %v8032_v32 }
 0x7a3   :  { %8019 = vmatpush3.bf16.msra.mxu0 %v8016_v10  ;;  %8035 = vmatpush3.bf16.msra.mxu1 %v8032_v32 }
 0x7a4   :  { %8037 = vmatprep.subr.bf16.mxu1 %v10599_v20 }
 0x871   :  { %v7812_v16 = vpop.f32.mrb[8].mxu0 }
 0x872   :  { %v3697_v45 = vadd.f32 %v7812_v16, %v12926_v26  ;;  %v3687_v5 = vpop.f32.mrb[9].mxu0  ;;  %v3837_v16 = vrot.slane %v7499_v7, %v12931_v52 }
 0x873   :  { %v3696_v56 = vadd.f32 %v3687_v5, %v12927_v43 }
 0x874   :  { %v10528_v49 = vadd.f32 %v8474_v28, %v3697_v45  ;;  %v3849_v28 = vrot.slane %v7499_v7, %v12839_v36 }
 0x875   :  { %v10533_v57 = vadd.f32 %v8475_v39, %v3696_v56 }
 0x876   :  { %12928 = vst [vmem:[#allocation37_spill] sm:$0xff] %v10528_v49  ;;  %v3707_v6 = vsel %vm91_vm0, %v10528_v49, 0.0 }
 0x877   :  { %12929 = vst [vmem:[#allocation61_spill] sm:$0xff] %v10533_v57  ;;  %3708 = vadd.xlane.f32.xlu1 %v3707_v6  ;;  %v3704_v55 = vsel %vm91_vm0, %v10533_v57, 0.0 }
 0x878   :  { %3705 = vadd.xlane.f32.xlu0 %v3704_v55  ;;  %v12933_v55 = vld [vmem:[#allocation13_spill] sm:$0xff] }
 0x904   :  { %v3709_v22 = vpop.xlane.xlu1 %3708 }
 0x905   :  { %v3711_v46 = vmul.f32 0.03125, %v3709_v22  ;;  %v3706_v51 = vpop.xlane.xlu0 %3705  ;;  %v3863_v22 = vrot.slane %v7499_v7, %v12933_v55 }
 0x906   :  { %v3710_v23 = vmul.f32 0.03125, %v3706_v51 }
 0x907   :  { %v3713_v62 = vsub.f32 %v10528_v49, %v3711_v46  ;;  %v12934_v46 = vld [vmem:[#allocation14_spill] sm:$0xff] }
 0x908   :  { %v3712_v13 = vsub.f32 %v10533_v57, %v3710_v23  ;;  %v3877_v51 = vrot.slane %v7499_v7, %v12934_v46 }
 0x909   :  { %v3715_v31 = vmul.f32 %v3713_v62, %v3713_v62 }
 0x90a   :  { %v3714_v19 = vmul.f32 %v3712_v13, %v3712_v13 }
 0x90b   :  { %v3719_v59 = vsel %vm91_vm0, %v3715_v31, 0.0  ;;  %v12936_v31 = vld [vmem:[#allocation11_spill] sm:$0xff] }
 0x90c   :  { %v3716_v25 = vsel %vm91_vm0, %v3714_v19, 0.0  ;;  %vm12939_vm8 = vcmp.ge.s32.totalorder %v12936_v31, 1 }
 0x90d   :  { %3717 = vadd.xlane.f32.xlu0 %v3716_v25 }
 0x911   :  { %3720 = vadd.xlane.f32.xlu0 %v3719_v59 }
 0x99a   :  { %v3718_v58 = vpop.xlane.xlu0 %3717 }
 0x99b   :  { %v3722_v35 = vmul.f32 0.03125, %v3718_v58 }
 0x99d   :  { %v3724_v48 = vadd.f32 1e-05, %v3722_v35 }
 0x99e   :  { %v3721_v2 = vpop.xlane.xlu0 %3720 }
 0x99f   :  { %8290 = vrsqrt.f32 %v3724_v48  ;;  %v3723_v30 = vmul.f32 0.03125, %v3721_v2 }
 0x9a1   :  { %v3725_v44 = vadd.f32 1e-05, %v3723_v30 }
 0x9a3   :  { %8292 = vrsqrt.f32 %v3725_v44 }
 0x9a9   :  { %v8291_v34 = vpop.eup %8290 }
 0x9aa   :  { %v3728_v12 = vmul.f32 %v8291_v34, %v3712_v13 }
 0x9ac   :  { %v3736_v14 = vmul.f32 %v7491_v47, %v3728_v12 }
 0x9ad   :  { %v8293_v27 = vpop.eup %8292 }
 0x9ae   :  { %v3729_v41 = vmul.f32 %v8293_v27, %v3713_v62  ;;  %v10561_v0 = vadd.f32 %v7492_v29, %v3736_v14 }
 0x9b0   :  { %v3737_v63 = vmul.f32 %v7491_v47, %v3729_v41  ;;  %7821 = vmatprep.mubr.msk.f32.mxu0 %vm91_vm0, %v10561_v0 }
 0x9b2   :  { %v10565_v50 = vadd.f32 %v7492_v29, %v3737_v63 }
 0x9b4   :  { %7822 = vmatmul.mubr.msk.f32.vlgmr.msra.gmra.mrb[10].mxu0 %vm91_vm0, %v10565_v50 }
 0xa87   :  { %v10605_v18 = vpop.f32.mrb[10].mxu0 }
 0xa88   :  { %12930 = vst [vmem:[#allocation34_spill] sm:$0xff] %v10605_v18  ;;  %v3841_v26 = vrot.slane %v10605_v18, 5  ;;  %v3855_v45 = vrot.slane %v10605_v18, 6  ;;  %v10610_v5 = vpop.f32.mrb[11].mxu0  ;;  %v3869_v43 = vrot.slane %v10605_v18, 7  ;;  %v3839_v23 = vmul.f32 %v10605_v18, %v3837_v16 }
 0xa89   :  { %12932 = vst [vmem:[#allocation63_spill] sm:$0xff] %v10610_v5  ;;  %v3840_v56 = vrot.slane %v10610_v5, 5  ;;  %v3854_v39 = vrot.slane %v10610_v5, 6  ;;  %v3868_v6 = vrot.slane %v10610_v5, 7  ;;  %v3838_v17 = vmul.f32 %v3837_v16, %v10610_v5 }
 0xa8b   :  { %v3842_v13 = vsel %vm229_vm1, %v3840_v56, %v3841_v26  ;;  %v3843_v19 = vsel %vm229_vm1, %v3841_v26, %v3840_v56  ;;  %v3856_v25 = vsel %vm250_vm2, %v3854_v39, %v3855_v45  ;;  %v3857_v11 = vsel %vm250_vm2, %v3855_v45, %v3854_v39 }
 0xa8c   :  { %v3844_v59 = vsel %vm232_vm3, %v3843_v19, 0.0  ;;  %v3845_v4 = vsel %vm233_vm4, %v3842_v13, 0.0  ;;  %v3859_v21 = vsel %vm254_vm7, %v3856_v25, 0.0  ;;  %v3870_v35 = vsel %vm271_vm5, %v3868_v6, %v3869_v43 }
 0xa8d   :  { %v3850_v10 = vmul.f32 %v3849_v28, %v3844_v59  ;;  %v3851_v58 = vmul.f32 %v3849_v28, %v3845_v4  ;;  %v3858_v48 = vsel %vm253_vm6, %v3857_v11, 0.0  ;;  %v3865_v2 = vmul.f32 %v3863_v22, %v3859_v21 }
 0xa8e   :  { %v3871_v30 = vsel %vm271_vm5, %v3869_v43, %v3868_v6  ;;  %v3873_v44 = vsel %vm12938_vm9, %v3870_v35, 0.0  ;;  %v3864_v12 = vmul.f32 %v3863_v22, %v3858_v48  ;;  %v8040_v45 = vpack.c.bf16 %v7537_v61, %v7536_v38  ;;  %v7514_v43 = vld [vmem:[%s12542_s8 + $0x4] sm:$0x3]  ;;  %v7540_v6 = vld [vmem:[%s12539_s5 + $0xc] sm:$0xf]  ;;  %s8503_s5 = smov [#allocation3]  }
 0xa8f   :  { %v3852_v34 = vadd.f32 %v3850_v10, %v3838_v17  ;;  %v3853_v47 = vadd.f32 %v3851_v58, %v3839_v23  ;;  %v3872_v29 = vsel %vm12939_vm8, %v3871_v30, 0.0  ;;  %v3879_v63 = vmul.f32 %v3877_v51, %v3873_v44  ;;  %s7417_s3 = sshll.u32 %s8503_s5, 4  ;;  %s7418_s3 = int_to_ptr.vmem [resolvable:$true] %s7417_s3 }
 0xa90   :  { %v3878_v41 = vmul.f32 %v3877_v51, %v3872_v29  ;;  %vm12942_vm8 = vcmask 1041408   ;;  %v5477_v51 = vrot.slane %v7540_v6, %v12931_v52  ;;  %v5489_v59 = vrot.slane %v7540_v6, %v12839_v36  ;;  %p8481_p1 = scmp.lt.s32.totalorder %s7418_s3, %s7418_s3 }
 0xa91   :  { %v3866_v14 = vadd.f32 %v3864_v12, %v3852_v34  ;;  %v3867_v27 = vadd.f32 %v3865_v2, %v3853_v47  ;;  %7843 = vmatprep.subr.msk.mxu0 %vm12942_vm8, %v7514_v43  ;;  %vm12943_vm9 = vmmov %vm12942_vm8  ;;  %v5503_v17 = vrot.slane %v7540_v6, %v12933_v55  ;;  %v5517_v48 = vrot.slane %v7540_v6, %v12934_v46  ;;  %v12953_v6 = vld [vmem:[#allocation23_spill] sm:$0xff] }
 0xa92   :  { %7844 = vmatpush3.msk.msra.mxu0 %vm12943_vm9, %v7514_v43  ;;  %v12950_v43 = vld [vmem:[#allocation20_spill] sm:$0xff] }
 0xa93   :  { %v3880_v24 = vadd.f32 %v3878_v41, %v3866_v14  ;;  %v3881_v60 = vadd.f32 %v3879_v63, %v3867_v27 }
 0xa95   :  { %v3890_v8 = vadd.f32 %v7501_v15, %v3880_v24  ;;  %v3891_v9 = vadd.f32 %v7501_v15, %v3881_v60 }
 0xa97   :  { %v7502_v42 = vmul.f32 -1.442695, %v3890_v8  ;;  %v7503_v53 = vmul.f32 -1.442695, %v3891_v9 }
 0xa99   :  { %8294 = vpow2.f32 %v7502_v42 }
 0xa9a   :  { %8296 = vpow2.f32 %v7503_v53 }
 0xaa3   :  { %v8295_v54 = vpop.eup %8294 }
 0xaa4   :  { %v3898_v1 = vadd.f32 1.0, %v8295_v54  ;;  %v8297_v3 = vpop.eup %8296 }
 0xaa5   :  { %v3899_v40 = vadd.f32 1.0, %v8297_v3 }
 0xaa6   :  { %8298 = vrcp.f32 %v3898_v1 }
 0xaa7   :  { %8300 = vrcp.f32 %v3899_v40 }
 0xab0   :  { %v8299_v32 = vpop.eup %8298 }
 0xab1   :  { %v10654_v7 = vmul.f32 %v8299_v32, %v3890_v8  ;;  %v8301_v16 = vpop.eup %8300 }
 0xab2   :  { %v10658_v26 = vmul.f32 %v8301_v16, %v3891_v9 }
 0xab3   :  { %12940 = vst [vmem:[#allocation52_spill] sm:$0xff] %v10654_v7  ;;  %7840 = vmatprep.mubr.msk.f32.mxu1 %vm321_vm10, %v10654_v7 }
 0xab4   :  { %12941 = vst [vmem:[#allocation55_spill] sm:$0xff] %v10658_v26  ;;  %7841 = vmatmul.mubr.msk.f32.vlgmr.msra.gmra.mrb[4].mxu1 %vm321_vm10, %v10658_v26 }
 0xab5   :  { %8039 = vmatpush3.bf16.msra.mxu1 %v10599_v20  ;;  %7856 = vmatprep.mubr.msk.f32.mxu1 %vm91_vm0, %v10561_v0  ;;  %v7545_v20 = vld [vmem:[%s12541_s7 + $0xc0] sm:$0xff]  ;;  %v7546_v0 = vld [vmem:[%s12541_s7 + $0xc8] sm:$0xff] }
 0xab6   :  { %8041 = vmatprep.subr.bf16.mxu1 %v8040_v45  ;;  %v10678_v56 = vpack.c.bf16 %v7546_v0, %v7545_v20 }
 0xab8   :  { %8045 = vmatprep.subr.bf16.mxu0 %v10678_v56 }
 0xab9   :  { %8043 = vmatpush3.bf16.msra.mxu1 %v8040_v45 }
 0xabc   :  { %7857 = vmatmul.mubr.msk.f32.vlgmr.msra.gmra.mrb[6].mxu1 %vm91_vm0, %v10565_v50 }
 0xb87   :  { %v10681_v50 = vpop.f32.mrb[4].mxu1 }
 0xb88   :  { %4010 = vrot.lane.b32.xlu1 %v10681_v50, %s8500_s23  ;;  %v10685_v28 = vpop.f32.mrb[5].mxu1  ;;  %v10702_v23 = vrot.slane %v10681_v50, %v12839_v36  ;;  %v10721_v35 = vrot.slane %v10681_v50, %v12933_v55  ;;  %v10769_v45 = vrot.slane %v10681_v50, %v12931_v52  ;;  %v10779_v0 = vrot.slane %v10681_v50, %v12950_v43 }
 0xb89   :  { %4008 = vrot.lane.b32.xlu0 %v10685_v28, %s8500_s23  ;;  %v10691_v39 = vrot.slane %v10685_v28, %v12839_v36  ;;  %v10717_v58 = vrot.slane %v10685_v28, %v12933_v55  ;;  %v10754_v61 = vrot.slane %v10685_v28, %v12934_v46  ;;  %v10774_v20 = vrot.slane %v10685_v28, %v12950_v43 }
 0xb8a   :  { %12944 = vst [vmem:[#allocation56_spill] sm:$0xff] %v10702_v23  ;;  %12949 = vst [vmem:[#allocation45_spill] sm:$0xff] %v10769_v45 }
 0xb8b   :  { %12951 = vst [vmem:[#allocation64_spill] sm:$0xff] %v10774_v20  ;;  %12952 = vst [vmem:[#allocation59_spill] sm:$0xff] %v10779_v0 }
 0xb8d   :  { %4416 = vbcast.lane.b32.xlu0 %v10691_v39, 256 }
 0xb8f   :  { %v10697_v22 = vpop.f32.mrb[6].mxu1 }
 0xb90   :  { %v5481_v13 = vrot.slane %v10697_v22, 5  ;;  %v5495_v19 = vrot.slane %v10697_v22, 6  ;;  %v10706_v25 = vpop.f32.mrb[7].mxu1  ;;  %v5509_v4 = vrot.slane %v10697_v22, 7  ;;  %v5479_v2 = vmul.f32 %v10697_v22, %v5477_v51 }
 0xb91   :  { %v5480_v11 = vrot.slane %v10706_v25, 5  ;;  %v5494_v21 = vrot.slane %v10706_v25, 6  ;;  %4504 = vbcast.lane.b32.xlu0 %v10702_v23, 256  ;;  %v5508_v10 = vrot.slane %v10706_v25, 7  ;;  %v5478_v27 = vmul.f32 %v5477_v51, %v10706_v25 }
 0xb92   :  { %v10784_v51 = vrot.slane %v10685_v28, %v12953_v6 }
 0xb93   :  { %v5482_v30 = vsel %vm229_vm1, %v5480_v11, %v5481_v13  ;;  %v5483_v44 = vsel %vm229_vm1, %v5481_v13, %v5480_v11  ;;  %v5496_v34 = vsel %vm250_vm2, %v5494_v21, %v5495_v19  ;;  %v5497_v29 = vsel %vm250_vm2, %v5495_v19, %v5494_v21  ;;  %v12956_v19 = vld [vmem:[#allocation25_spill] sm:$0xff]  ;;  %v12957_v11 = vld [vmem:[#allocation26_spill] sm:$0xff] }
 0xb94   :  { %v5484_v47 = vsel %vm232_vm3, %v5483_v44, 0.0  ;;  %v5485_v12 = vsel %vm233_vm4, %v5482_v30, 0.0  ;;  %v5499_v14 = vsel %vm254_vm7, %v5496_v34, 0.0  ;;  %v5510_v15 = vsel %vm271_vm5, %v5508_v10, %v5509_v4  ;;  %12954 = vst [vmem:[#allocation19_spill] sm:$0xff] %v10784_v51 }
 0xb95   :  { %v5490_v41 = vmul.f32 %v5489_v59, %v5484_v47  ;;  %v5491_v63 = vmul.f32 %v5489_v59, %v5485_v12  ;;  %4427 = vbcast.lane.b32.xlu0 %v10717_v58, 256  ;;  %v5498_v24 = vsel %vm253_vm6, %v5497_v29, 0.0  ;;  %v5505_v60 = vmul.f32 %v5503_v17, %v5499_v14 }
 0xb96   :  { %v5511_v8 = vsel %vm271_vm5, %v5509_v4, %v5508_v10  ;;  %vm12945_vm1 = vcmp.ge.s32.totalorder %v12937_v33, 1  ;;  %v5504_v54 = vmul.f32 %v5503_v17, %v5498_v24  ;;  %vm12946_vm2 = vcmp.ge.s32.totalorder %v12936_v31, 1  ;;  %vm12964_vm5 = vmmov %vm12942_vm8 }
 0xb97   :  { %v5513_v9 = vsel %vm12945_vm1, %v5510_v15, 0.0  ;;  %v5492_v42 = vadd.f32 %v5490_v41, %v5478_v27  ;;  %v5493_v53 = vadd.f32 %v5491_v63, %v5479_v2  ;;  %v5512_v1 = vsel %vm12946_vm2, %v5511_v8, 0.0  ;;  %v7548_v8 = vld [vmem:[%s12541_s7 + $0xd8] sm:$0xff]  ;;  %vm12965_vm6 = vmmov %vm12964_vm5 }
 0xb98   :  { %v5518_v32 = vmul.f32 %v5517_v48, %v5512_v1  ;;  %v5519_v38 = vmul.f32 %v5517_v48, %v5513_v9  ;;  %v10759_v33 = vrot.slane %v10681_v50, %v12934_v46  ;;  %v10764_v31 = vrot.slane %v10685_v28, %v12931_v52  ;;  %v7542_v48 = vld [vmem:[%s12540_s6 + $0x3] ss:$0 sm:$0xff] }
 0xb99   :  { %4515 = vbcast.lane.b32.xlu0 %v10721_v35, 256  ;;  %v5506_v3 = vadd.f32 %v5504_v54, %v5492_v42  ;;  %v5507_v40 = vadd.f32 %v5505_v60, %v5493_v53  ;;  %v10789_v13 = vrot.slane %v10681_v50, %v12953_v6  ;;  %v10794_v59 = vrot.slane %v10685_v28, %v12956_v19  ;;  %v7547_v60 = vld [vmem:[%s12541_s7 + $0xd0] sm:$0xff] }
 0xb9a   :  { %12947 = vst [vmem:[#allocation57_spill] sm:$0xff] %v10759_v33  ;;  %12948 = vst [vmem:[#allocation58_spill] sm:$0xff] %v10764_v31  ;;  %v10799_v4 = vrot.slane %v10681_v50, %v12956_v19  ;;  %v10804_v21 = vrot.slane %v10685_v28, %v12957_v11  ;;  %v10809_v17 = vrot.slane %v10681_v50, %v12957_v11  ;;  %v7565_v10 = vmul.f32 -1.442695, %v10706_v25 }
 0xb9b   :  { %v5520_v62 = vadd.f32 %v5518_v32, %v5506_v3  ;;  %v5521_v16 = vadd.f32 %v5519_v38, %v5507_v40  ;;  %12955 = vst [vmem:[#allocation60_spill] sm:$0xff] %v10789_v13  ;;  %v7566_v2 = vmul.f32 -1.442695, %v10697_v22  ;;  %vm12959_vm3 = vcmask 15360   ;;  %v7549_v40 = vld [vmem:[%s12541_s7 + $0xe0] sm:$0xff]  ;;  %v7550_v32 = vld [vmem:[%s12541_s7 + $0xe8] sm:$0xff] }
 0xb9c   :  { %8302 = vpow2.f32 %v7565_v10  ;;  %vm12961_vm4 = vmmov %vm12959_vm3  ;;  %v7552_v10 = vld [vmem:[%s12541_s7 + $0xf8] sm:$0xff] }
 0xb9d   :  { %4438 = vbcast.lane.b32.xlu0 %v10754_v61, 256  ;;  %v5530_v28 = vadd.f32 %v7542_v48, %v5520_v62  ;;  %v5531_v34 = vadd.f32 %v7542_v48, %v5521_v16  ;;  %v8052_v62 = vpack.c.bf16 %v7550_v32, %v7549_v40  ;;  %v7551_v16 = vld [vmem:[%s12541_s7 + $0xf0] sm:$0xff]  ;;  %vm12999_vm2 = vmmov %vm12959_vm3 }
 0xb9e   :  { %v8056_v48 = vpack.c.bf16 %v7552_v10, %v7551_v16 }
 0xb9f   :  { %v7543_v50 = vmul.f32 -1.442695, %v5530_v28  ;;  %v7544_v12 = vmul.f32 -1.442695, %v5531_v34 }
 0xba1   :  { %4526 = vbcast.lane.b32.xlu0 %v10759_v33, 256  ;;  %8304 = vpow2.f32 %v7543_v50 }
 0xba2   :  { %8306 = vpow2.f32 %v7566_v2 }
 0xba5   :  { %4449 = vbcast.lane.b32.xlu0 %v10764_v31, 256 }
 0xba6   :  { %v8303_v30 = vpop.eup %8302 }
 0xba7   :  { %v6935_v44 = vadd.f32 1.0, %v8303_v30 }
 0xba9   :  { %4537 = vbcast.lane.b32.xlu0 %v10769_v45, 256  ;;  %8308 = vrcp.f32 %v6935_v44 }
 0xbaa   :  { %8310 = vpow2.f32 %v7544_v12 }
 0xbab   :  { %v8305_v47 = vpop.eup %8304 }
 0xbac   :  { %v8307_v29 = vpop.eup %8306  ;;  %v5538_v14 = vadd.f32 1.0, %v8305_v47  ;;  %v7516_v47 = vld [vmem:[%s12543_s9 + $0x2] ss:$0 sm:$0xff] }
 0xbad   :  { %4460 = vbcast.lane.b32.xlu0 %v10774_v20, 256  ;;  %v6936_v27 = vadd.f32 1.0, %v8307_v29 }
 0xbae   :  { %8312 = vrcp.f32 %v5538_v14 }
 0xbaf   :  { %8314 = vrcp.f32 %v6936_v27 }
 0xbb1   :  { %4548 = vbcast.lane.b32.xlu0 %v10779_v0, 256 }
 0xbb3   :  { %v8309_v41 = vpop.eup %8308 }
 0xbb4   :  { %v10828_v63 = vmul.f32 %v8309_v41, %v10706_v25  ;;  %v8311_v15 = vpop.eup %8310  ;;  %v8048_v25 = vpack.c.bf16 %v7548_v8, %v7547_v60  ;;  %v7555_v60 = vld [vmem:[%s12542_s8 + $0x6] sm:$0x3] }
 0xbb5   :  { %4471 = vbcast.lane.b32.xlu0 %v10784_v51, 256  ;;  %v5539_v42 = vadd.f32 1.0, %v8311_v15  ;;  %7878 = vmatprep.subr.msk.mxu1 %vm12964_vm5, %v7555_v60 }
 0xbb6   :  { %12958 = vst [vmem:[#allocation47_spill] sm:$0xff] %v10828_v63  ;;  %v6945_v24 = vrot.slane %v10828_v63, 1  ;;  %v6947_v50 = vrot.slane %v10828_v63, 3  ;;  %v6948_v2 = vrot.slane %v10828_v63, 4  ;;  %7879 = vmatpush3.msk.msra.mxu1 %vm12965_vm6, %v7555_v60 }
 0xbb7   :  { %8316 = vrcp.f32 %v5539_v42 }
 0xbb8   :  { %v8313_v9 = vpop.eup %8312 }
 0xbb9   :  { %4559 = vbcast.lane.b32.xlu0 %v10789_v13, 256  ;;  %v8315_v54 = vpop.eup %8314  ;;  %v10840_v3 = vmul.f32 %v8313_v9, %v5530_v28 }
 0xbba   :  { %v10854_v38 = vmul.f32 %v8315_v54, %v10697_v22 }
 0xbbb   :  { %12960 = vst [vmem:[#allocation71_spill] sm:$0xff] %v10840_v3 }
 0xbbc   :  { %12962 = vst [vmem:[#allocation62_spill] sm:$0xff] %v10854_v38  ;;  %v6954_v30 = vrot.slane %v10854_v38, 3  ;;  %v6955_v44 = vrot.slane %v10854_v38, 4 }
 0xbbd   :  { %4482 = vbcast.lane.b32.xlu0 %v10794_v59, 256 }
 0xbc1   :  { %4570 = vbcast.lane.b32.xlu0 %v10799_v4, 256  ;;  %v8317_v22 = vpop.eup %8316 }
 0xbc2   :  { %v10866_v28 = vmul.f32 %v8317_v22, %v5531_v34  ;;  %v6956_v34 = vrot.slane %v10854_v38, 5 }
 0xbc4   :  { %12963 = vst [vmem:[#allocation24_spill] sm:$0xff] %v10866_v28 }
 0xbc5   :  { %4493 = vbcast.lane.b32.xlu0 %v10804_v21, 256 }
 0xbc9   :  { %4581 = vbcast.lane.b32.xlu0 %v10809_v17, 256 }
 0xbcd   :  { %4937 = vbcast.lane.b32.xlu0 %v10717_v58, 272 }
 0xbd1   :  { %4945 = vbcast.lane.b32.xlu0 %v10754_v61, 272 }
 0xbd5   :  { %5001 = vbcast.lane.b32.xlu0 %v10721_v35, 272 }
 0xbd9   :  { %4929 = vbcast.lane.b32.xlu0 %v10691_v39, 272 }
 0xbdd   :  { %4953 = vbcast.lane.b32.xlu0 %v10764_v31, 272 }
 0xbe1   :  { %5009 = vbcast.lane.b32.xlu0 %v10759_v33, 272 }
 0xbe5   :  { %4961 = vbcast.lane.b32.xlu0 %v10774_v20, 272 }
 0xbe9   :  { %4993 = vbcast.lane.b32.xlu0 %v10702_v23, 272 }
 0xbed   :  { %5017 = vbcast.lane.b32.xlu0 %v10769_v45, 272 }
 0xbf1   :  { %4969 = vbcast.lane.b32.xlu0 %v10784_v51, 272 }
 0xbf5   :  { %5025 = vbcast.lane.b32.xlu0 %v10779_v0, 272 }
 0xbf9   :  { %6961 = vrot.lane.b32.xlu0 %v6945_v24, %s8502_s24 }
 0xbfa   :  { %v4011_v1 = vpop.permute.xlu1 %4010 }
 0xbfb   :  { %v4009_v53 = vpop.permute.xlu0 %4008 }
 0xbfc   :  { %7845 = vmatprep.mubr.msk.f32.mxu0 %vm12959_vm3, %v4009_v53  ;;  %vm13001_vm3 = vmmov %vm12999_vm2 }
 0xbfd   :  { %7846 = vmatmul.mubr.msk.f32.vlgmr.msra.gmra.mrb[12].mxu0 %vm12961_vm4, %v4011_v1  ;;  %4981 = vbcast.lane.b32.xlu0 %v10794_v59, 280 }
 0xbfe   :  { %8047 = vmatpush3.bf16.msra.mxu0 %v10678_v56  ;;  %7875 = vmatprep.mubr.msk.f32.mxu0 %vm321_vm10, %v10840_v3  ;;  %v6952_v56 = vrot.slane %v10854_v38, 1 }
 0xbff   :  { %8049 = vmatprep.subr.bf16.mxu0 %v8048_v25  ;;  %v10885_v12 = vpop.permute.xlu0 %4416 }
 0xc01   :  { %5037 = vbcast.lane.b32.xlu0 %v10789_v13, 280 }
 0xc02   :  { %8051 = vmatpush3.bf16.msra.mxu0 %v8048_v25 }
 0xc03   :  { %8053 = vmatprep.subr.bf16.mxu0 %v8052_v62  ;;  %v10897_v9 = vpop.permute.xlu0 %4504 }
 0xc05   :  { %6977 = vrot.lane.b32.xlu0 %v6952_v56, %s8502_s24 }
 0xc06   :  { %8055 = vmatpush3.bf16.msra.mxu0 %v8052_v62 }
 0xc07   :  { %8057 = vmatprep.subr.bf16.mxu0 %v8056_v48  ;;  %v10900_v54 = vpop.permute.xlu0 %4427 }
 0xc09   :  { %4989 = vbcast.lane.b32.xlu0 %v10804_v21, 280 }
 0xc0a   :  { %8059 = vmatpush3.bf16.msra.mxu0 %v8056_v48 }
 0xc0b   :  { %v10907_v62 = vpop.permute.xlu0 %4515 }
 0xc0d   :  { %7876 = vmatmul.mubr.msk.f32.vlgmr.msra.gmra.mrb[14].mxu0 %vm321_vm10, %v10866_v28  ;;  %5045 = vbcast.lane.b32.xlu0 %v10799_v4, 280 }
 0xc11   :  { %6965 = vrot.lane.b32.xlu0 %v6947_v50, %s8502_s24  ;;  %v10917_v50 = vpop.permute.xlu0 %4438 }
 0xc15   :  { %5049 = vbcast.lane.b32.xlu0 %v10809_v17, 272 }
 0xc19   :  { %6967 = vrot.lane.b32.xlu0 %v6948_v2, %s8502_s24 }
 0xc1d   :  { %6981 = vrot.lane.b32.xlu0 %v6954_v30, %s8502_s24 }
 0xc21   :  { %6983 = vrot.lane.b32.xlu0 %v6955_v44, %s8502_s24 }
 0xc25   :  { %6985 = vrot.lane.b32.xlu0 %v6956_v34, %s8502_s24 }
 0xcd0   :  { %v7847_v29 = vpop.f32.mrb[12].mxu0 }
 0xcd1   :  { %v10887_v14 = vadd.f32 %v7847_v29, %v7516_v47  ;;  %v4085_v27 = vpop.f32.mrb[13].mxu0  ;;  %v10927_v29 = vpop.permute.xlu0 %4526 }
 0xcd2   :  { %v10889_v41 = vadd.f32 %v7516_v47, %v4085_v27 }
 0xcd3   :  { %v4101_v15 = vand.u32 2147483647, %v10887_v14  ;;  %vm4097_vm1 = vcmp.ne.f32.partialorder %v10887_v14, %v10887_v14 }
 0xcd4   :  { %v4100_v24 = vand.u32 2147483647, %v10889_v41  ;;  %v4094_v57 = vmax.f32 %v10889_v41, 0.0  ;;  %vm4096_vm9 = vcmp.ne.f32.partialorder %v10889_v41, %v10889_v41 }
 0xcd5   :  { %v4103_v8 = vsub.f32 0.0, %v4101_v15  ;;  %v10938_v49 = vpop.permute.xlu0 %4449 }
 0xcd6   :  { %v4102_v42 = vsub.f32 0.0, %v4100_v24 }
 0xcd7   :  { %v4106_v53 = vmul.f32 1.442695, %v4103_v8 }
 0xcd8   :  { %v4104_v25 = vmul.f32 1.442695, %v4102_v42 }
 0xcd9   :  { %8318 = vpow2.f32 %v4106_v53 }
 0xcda   :  { %8320 = vpow2.f32 %v4104_v25 }
 0xce0   :  { %v7877_v1 = vpop.f32.mrb[14].mxu0 }
 0xce1   :  { %v10902_v40 = vpop.f32.mrb[15].mxu0  ;;  %v10905_v32 = vrot.slane %v7877_v1, %v12839_v36  ;;  %v10913_v22 = vrot.slane %v7877_v1, %v12933_v55  ;;  %v10920_v30 = vrot.slane %v7877_v1, %v12934_v46  ;;  %v10925_v47 = vrot.slane %v7877_v1, %v12931_v52 }
 0xce2   :  { %5648 = vrot.lane.b32.xlu1 %v10902_v40, %s8500_s23  ;;  %v10932_v25 = vrot.slane %v7877_v1, %v12950_v43  ;;  %v10941_v28 = vrot.slane %v7877_v1, %v12953_v6 }
 0xce3   :  { %12966 = vst [vmem:[#allocation68_spill] sm:$0xff] %v10905_v32  ;;  %v8319_v16 = vpop.eup %8318  ;;  %6144 = vbcast.lane.b32.xlu0 %v10905_v32, 256  ;;  %12967 = vst [vmem:[#allocation28_spill] sm:$0xff] %v10913_v22 }
 0xce4   :  { %v8321_v10 = vpop.eup %8320  ;;  %v4117_v56 = vadd.f32 1.0, %v8319_v16  ;;  %v4120_v2 = vmul.f32 -0.5, %v8319_v16  ;;  %12968 = vst [vmem:[#allocation70_spill] sm:$0xff] %v10920_v30  ;;  %12969 = vst [vmem:[#allocation50_spill] sm:$0xff] %v10925_v47  ;;  %v4123_v27 = vand.u32 2147483647, %v8319_v16 }
 0xce5   :  { %v4108_v48 = vadd.f32 1.0, %v8321_v10  ;;  %v4111_v44 = vmul.f32 -0.5, %v8321_v10  ;;  %v4114_v24 = vand.u32 2147483647, %v8321_v10  ;;  %12970 = vst [vmem:[#allocation74_spill] sm:$0xff] %v10932_v25  ;;  %12971 = vst [vmem:[#allocation41_spill] sm:$0xff] %v10941_v28 }
 0xce6   :  { %8322 = vlog2.f32 %v4117_v56  ;;  %5650 = vrot.lane.b32.xlu1 %v7877_v1, %s8500_s23  ;;  %v4121_v34 = vadd.f32 1.0, %v4120_v2  ;;  %v4095_v56 = vmax.f32 %v10887_v14, 0.0  ;;  %vm4124_vm7 = vcmp.lt.f32.partialorder %v4123_v27, 0.0004427343 }
 0xce7   :  { %8324 = vlog2.f32 %v4108_v48  ;;  %6155 = vbcast.lane.b32.xlu0 %v10913_v22, 256  ;;  %v4112_v15 = vadd.f32 1.0, %v4111_v44  ;;  %vm4115_vm8 = vcmp.lt.f32.partialorder %v4114_v24, 0.0004427343  ;;  %v10955_v24 = vpop.permute.xlu0 %4537 }
 0xce8   :  { %v4122_v53 = vmul.f32 %v8319_v16, %v4121_v34 }
 0xce9   :  { %v4113_v2 = vmul.f32 %v8321_v10, %v4112_v15 }
 0xcea   :  { %4420 = vbcast.lane.b32.xlu1 %v10691_v39, 264 }
 0xceb   :  { %6166 = vbcast.lane.b32.xlu0 %v10920_v30, 256 }
 0xcee   :  { %4508 = vbcast.lane.b32.xlu1 %v10702_v23, 264 }
 0xcef   :  { %6177 = vbcast.lane.b32.xlu0 %v10925_v47, 256 }
 0xcf0   :  { %v8323_v60 = vpop.eup %8322 }
 0xcf1   :  { %v8325_v8 = vpop.eup %8324  ;;  %v4119_v42 = vmul.f32 0.6931472, %v8323_v60 }
 0xcf2   :  { %v4110_v48 = vmul.f32 0.6931472, %v8325_v8  ;;  %4431 = vbcast.lane.b32.xlu1 %v10717_v58, 264 }
 0xcf3   :  { %v4125_v44 = vsel %vm4124_vm7, %v4122_v53, %v4119_v42  ;;  %6188 = vbcast.lane.b32.xlu0 %v10932_v25, 256  ;;  %v10965_v53 = vpop.permute.xlu0 %4460 }
 0xcf4   :  { %v4127_v60 = vadd.f32 %v4125_v44, %v4095_v56  ;;  %v4116_v16 = vsel %vm4115_vm8, %v4113_v2, %v4110_v48  ;;  %vm13175_vm8 = vcmask 1046534  }
 0xcf5   :  { %v4126_v34 = vadd.f32 %v4116_v16, %v4094_v57  ;;  %v10953_v57 = vrot.slane %v7877_v1, %v12956_v19 }
 0xcf6   :  { %4519 = vbcast.lane.b32.xlu1 %v10721_v35, 264  ;;  %v4129_v27 = vsel %vm4097_vm1, %v10887_v14, %v4127_v60  ;;  %vm13184_vm1 = vmmov %vm13175_vm8 }
 0xcf7   :  { %v4128_v10 = vsel %vm4096_vm9, %v10889_v41, %v4126_v34  ;;  %6199 = vbcast.lane.b32.xlu0 %v10941_v28, 256  ;;  %v4193_v8 = vrot.slane %v4129_v27, %v12831_v37  ;;  %v10961_v41 = vrot.slane %v7877_v1, %v12957_v11  ;;  %v4186_v56 = vcombine.high %v4129_v27, %v4129_v27  ;;  %v10977_v38 = vpop.permute.xlu0 %4548 }
 0xcf8   :  { %v4144_v15 = vrot.slane %v4128_v10, %v12831_v37  ;;  %v4137_v44 = vcombine.high %v4128_v10, %v4128_v10  ;;  %vm13177_vm9 = vcmask 1047559  }
 0xcf9   :  { %v4201_v14 = vcombine.high %v4193_v8, %v4193_v8  ;;  %v4209_v60 = vrot.slane %v4193_v8, %v12831_v37  ;;  %v4200_v1 = vrot.slane %v4186_v56, %v12831_v37  ;;  %v10985_v8 = vmul.f32 %v4128_v10, %v10654_v7 }
 0xcfa   :  { %4442 = vbcast.lane.b32.xlu1 %v10754_v61, 264  ;;  %v4152_v42 = vcombine.high %v4144_v15, %v4144_v15  ;;  %v4160_v48 = vrot.slane %v4144_v15, %v12831_v37  ;;  %v10982_v15 = vld [vmem:[%s12544_s10 + $0x20] sm:$0xff] }
 0xcfb   :  { %6210 = vbcast.lane.b32.xlu0 %v10953_v57, 256  ;;  %v4223_v16 = vrot.slane %v4201_v14, %v12831_v37  ;;  %v4231_v14 = vcombine.high %v4209_v60, %v4209_v60  ;;  %v4202_v63 = vcombine.high %v4200_v1, %v4200_v1  ;;  %v4216_v23 = vrot.slane %v4200_v1, %v12831_v37 }
 0xcfc   :  { %v4174_v2 = vrot.slane %v4152_v42, %v12831_v37  ;;  %v4182_v34 = vcombine.high %v4160_v48, %v4160_v48  ;;  %v4151_v42 = vrot.slane %v4137_v44, %v12831_v37  ;;  %v10998_v18 = vrot.slane %v4209_v60, %v12839_v36 }
 0xcfd   :  { %v10989_v56 = vrot.slane %v4223_v16, %v12839_v36  ;;  %v4596_v1 = vrot.slane %v10985_v8, %v12831_v37 }
 0xcfe   :  { %4530 = vbcast.lane.b32.xlu1 %v10759_v33, 264  ;;  %v10975_v3 = vrot.slane %v4174_v2, %v12839_v36  ;;  %12975 = vst [vmem:[#allocation29_spill] sm:$0xff] %v10998_v18  ;;  %v4184_v10 = vcombine.high %v4174_v2, %v4174_v2  ;;  %v11001_v44 = vrot.slane %v4182_v34, %v12839_v36 }
 0xcff   :  { %6221 = vbcast.lane.b32.xlu0 %v10961_v41, 256  ;;  %12973 = vst [vmem:[#allocation16_spill] sm:$0xff] %v10989_v56  ;;  %v4153_v33 = vcombine.high %v4151_v42, %v4151_v42  ;;  %v4331_v60 = vmul.f32 %v10982_v15, %v10998_v18  ;;  %v4233_v2 = vcombine.high %v4223_v16, %v4223_v16 }
 0xd00   :  { %12972 = vst [vmem:[#allocation48_spill] sm:$0xff] %v10975_v3  ;;  %12976 = vst [vmem:[#allocation30_spill] sm:$0xff] %v11001_v44  ;;  %v4317_v7 = vmul.f32 %v10982_v15, %v10975_v3  ;;  %v11015_v34 = vrot.slane %v4231_v14, %v12839_v36  ;;  %v4167_v11 = vrot.slane %v4151_v42, %v12831_v37 }
 0xd01   :  { %v4379_v16 = vmul.f32 1.442695, %v4331_v60  ;;  %v11028_v14 = vrot.slane %v4184_v10, %v12839_v36 }
 0xd02   :  { %4453 = vbcast.lane.b32.xlu1 %v10764_v31, 264  ;;  %12977 = vst [vmem:[#allocation44_spill] sm:$0xff] %v11015_v34  ;;  %v4351_v18 = vmul.f32 1.442695, %v4317_v7  ;;  %v4335_v10 = vmul.f32 %v10982_v15, %v11015_v34 }
 0xd03   :  { %6641 = vbcast.lane.b32.xlu0 %v10913_v22, 272  ;;  %v10993_v22 = vrot.slane %v4160_v48, %v12839_v36  ;;  %v11008_v48 = vmul.f32 %v4129_v27, %v10658_v26  ;;  %v11023_v27 = vrot.slane %v4202_v63, %v12831_v37  ;;  %v4232_v26 = vcombine.high %v4216_v23, %v4216_v23 }
 0xd04   :  { %12978 = vst [vmem:[#allocation51_spill] sm:$0xff] %v11028_v14  ;;  %v11036_v63 = vrot.slane %v4153_v33, %v12831_v37  ;;  %v4604_v33 = vcombine.high %v4596_v1, %v4596_v1 }
 0xd05   :  { %12974 = vst [vmem:[#allocation36_spill] sm:$0xff] %v10993_v22  ;;  %v4645_v42 = vrot.slane %v11008_v48, %v12831_v37  ;;  %v11048_v7 = vrot.slane %v11023_v27, %v12839_v36 }
 0xd06   :  { %4541 = vbcast.lane.b32.xlu1 %v10769_v45, 264  ;;  %v4315_v45 = vmul.f32 %v10982_v15, %v10993_v22  ;;  %v11020_v22 = vpop.permute.xlu0 %4471  ;;  %v11069_v5 = vrot.slane %v11036_v63, %v12839_v36 }
 0xd07   :  { %6649 = vbcast.lane.b32.xlu0 %v10920_v30, 272  ;;  %v4333_v30 = vmul.f32 %v10982_v15, %v10989_v56  ;;  %v4319_v56 = vmul.f32 %v10982_v15, %v11001_v44  ;;  %12981 = vst [vmem:[#allocation21_spill] sm:$0xff] %v11048_v7 }
 0xd08   :  { %v4347_v3 = vmul.f32 1.442695, %v4315_v45  ;;  %v11033_v45 = vrot.slane %v4216_v23, %v12839_v36  ;;  %v11051_v23 = vrot.slane %v4232_v26, %v12839_v36  ;;  %v4183_v26 = vcombine.high %v4167_v11, %v4167_v11  ;;  %12984 = vst [vmem:[#allocation35_spill] sm:$0xff] %v11069_v5 }
 0xd09   :  { %v4383_v60 = vmul.f32 1.442695, %v4333_v30  ;;  %v4321_v30 = vmul.f32 %v10982_v15, %v11028_v14 }
 0xd0a   :  { %4464 = vbcast.lane.b32.xlu1 %v10774_v20, 264  ;;  %8326 = vpow2.f32 %v4347_v3  ;;  %12979 = vst [vmem:[#allocation53_spill] sm:$0xff] %v11033_v45  ;;  %12982 = vst [vmem:[#allocation38_spill] sm:$0xff] %v11051_v23  ;;  %v4612_v3 = vrot.slane %v4596_v1, %v12831_v37  ;;  %v11060_v34 = vpop.permute.xlu0 %4559  ;;  %v4339_v44 = vmul.f32 %v10982_v15, %v11033_v45 }
 0xd0b   :  { %6633 = vbcast.lane.b32.xlu0 %v10905_v32, 272  ;;  %v11041_v32 = vrot.slane %v4233_v2, %v12839_v36  ;;  %8328 = vpow2.f32 %v4379_v16  ;;  %v11056_v2 = vrot.slane %v4167_v11, %v12839_v36  ;;  %v4355_v16 = vmul.f32 1.442695, %v4319_v56 }
 0xd0c   :  { %8330 = vpow2.f32 %v4351_v18  ;;  %v4653_v20 = vcombine.high %v4645_v42, %v4645_v42  ;;  %v4341_v18 = vmul.f32 %v10982_v15, %v11048_v7  ;;  %v11077_v11 = vrot.slane %v10902_v40, %v12839_v36 }
 0xd0d   :  { %12980 = vst [vmem:[#allocation39_spill] sm:$0xff] %v11041_v32  ;;  %12983 = vst [vmem:[#allocation65_spill] sm:$0xff] %v11056_v2  ;;  %v4337_v1 = vmul.f32 %v10982_v15, %v11041_v32  ;;  %8332 = vpow2.f32 %v4383_v60  ;;  %v11080_v56 = vrot.slane %v4612_v3, %v12839_v36  ;;  %v4323_v60 = vmul.f32 %v10982_v15, %v11056_v2 }
 0xd0e   :  { %4552 = vbcast.lane.b32.xlu1 %v10779_v0, 264  ;;  %v4661_v0 = vrot.slane %v4645_v42, %v12831_v37  ;;  %v4626_v42 = vrot.slane %v4604_v33, %v12831_v37  ;;  %8334 = vpow2.f32 %v4355_v16  ;;  %v4359_v7 = vmul.f32 1.442695, %v4321_v30  ;;  %v11103_v30 = vpop.permute.xlu0 %4482 }
 0xd0f   :  { %6657 = vbcast.lane.b32.xlu0 %v10925_v47, 272  ;;  %v4387_v47 = vmul.f32 1.442695, %v4335_v10  ;;  %v11085_v10 = vmul.f32 %v10982_v15, %v11051_v23  ;;  %v4395_v45 = vmul.f32 1.442695, %v4339_v44  ;;  %v11096_v14 = vrot.slane %v4653_v20, %v12831_v37 }
 0xd10   :  { %v11093_v32 = vrot.slane %v4661_v0, %v12839_v36  ;;  %v4325_v23 = vmul.f32 %v10982_v15, %v11069_v5  ;;  %v4391_v2 = vmul.f32 1.442695, %v4337_v1  ;;  %v4589_v44 = vcombine.high %v10985_v8, %v10985_v8 }
 0xd11   :  { %8336 = vpow2.f32 %v4387_v47  ;;  %v4767_v20 = vmul.f32 %v11080_v56, %v10885_v12  ;;  %v4634_v47 = vcombine.high %v4612_v3, %v4612_v3  ;;  %v4363_v5 = vmul.f32 1.442695, %v4323_v60 }
 0xd12   :  { %4475 = vbcast.lane.b32.xlu1 %v10784_v51, 264  ;;  %v4683_v31 = vcombine.high %v4661_v0, %v4661_v0  ;;  %8338 = vpow2.f32 %v4359_v7  ;;  %v4638_v1 = vcombine.high %v11008_v48, %v11008_v48  ;;  %v4636_v0 = vcombine.high %v4626_v42, %v4626_v42 }
 0xd13   :  { %6665 = vbcast.lane.b32.xlu0 %v10932_v25, 272  ;;  %v11090_v25 = vrot.slane %v4183_v26, %v12839_v36  ;;  %v11109_v26 = vrot.slane %v4626_v42, %v12839_v36  ;;  %8340 = vpow2.f32 %v4391_v2  ;;  %v4603_v7 = vrot.slane %v4589_v44, %v12831_v37  ;;  %v11134_v44 = vpop.permute.xlu0 %4570 }
 0xd14   :  { %v8327_v33 = vpop.eup %8326  ;;  %v11128_v60 = vrot.slane %v4634_v47, %v12839_v36  ;;  %8342 = vpow2.f32 %v4363_v5  ;;  %v4652_v2 = vrot.slane %v4638_v1, %v12831_v37  ;;  %v4367_v42 = vmul.f32 1.442695, %v4325_v23 }
 0xd15   :  { %v4799_v16 = vmul.f32 0.0, %v8327_v33  ;;  %v8329_v51 = vpop.eup %8328  ;;  %v11117_v33 = vrot.slane %v11096_v14, %v12839_v36  ;;  %v4327_v3 = vmul.f32 %v10982_v15, %v11090_v25  ;;  %v4685_v47 = vcombine.high %v11096_v14, %v11096_v14 }
 0xd16   :  { %4563 = vbcast.lane.b32.xlu1 %v10789_v13, 264  ;;  %v4801_v13 = vmul.f32 0.0, %v8329_v51  ;;  %v8331_v12 = vpop.eup %8330  ;;  %8344 = vpow2.f32 %v4395_v45  ;;  %v11143_v5 = vrot.slane %v4636_v0, %v12839_v36  ;;  %v4399_v23 = vmul.f32 1.442695, %v4341_v18 }
 0xd17   :  { %6673 = vbcast.lane.b32.xlu0 %v10941_v28, 272  ;;  %v4803_v8 = vadd.f32 %v4799_v16, %v4767_v20  ;;  %v4783_v28 = vmul.f32 %v11093_v32, %v10897_v9  ;;  %v4769_v9 = vmul.f32 %v11109_v26, %v10900_v54  ;;  %v8333_v16 = vpop.eup %8332  ;;  %v11131_v20 = vrot.slane %v4683_v31, %v12839_v36 }
 0xd18   :  { %v11146_v31 = vrot.slane %v4603_v7, %v12831_v37  ;;  %v4771_v1 = vmul.f32 %v11128_v60, %v10917_v50  ;;  %v11155_v0 = vrot.slane %v4652_v2, %v12831_v37  ;;  %8346 = vpow2.f32 %v4367_v42  ;;  %v11170_v42 = vpop.permute.xlu0 %4493 }
 0xd19   :  { %4807 = vst.msk [vmem:[#allocation2] sm:$0xff] %vm321_vm10, %v4803_v8  ;;  %v4805_v51 = vadd.f32 %v4801_v13, %v4783_v28  ;;  %v4811_v48 = vmul.f32 %v8331_v12, %v4803_v8  ;;  %v4785_v28 = vmul.f32 %v11117_v33, %v10907_v62  ;;  %v8335_v8 = vpop.eup %8334  ;;  %v4605_v12 = vcombine.high %v4603_v7, %v4603_v7 }
 0xd1a   :  { %4486 = vbcast.lane.b32.xlu1 %v10794_v59, 264  ;;  %v4185_v7 = vcombine.high %v11036_v63, %v11036_v63  ;;  %8348 = vpow2.f32 %v4399_v23  ;;  %v11186_v23 = vrot.slane %v11155_v0, %v12839_v36 }
 0xd1b   :  { %6681 = vbcast.lane.b32.xlu0 %v10953_v57, 272  ;;  %4809 = vst.msk [vmem:[#allocation2 + $0x80] sm:$0xff] %vm321_vm10, %v4805_v51  ;;  %v4815_v13 = vadd.f32 %v4811_v48, %v4769_v9  ;;  %v4813_v54 = vmul.f32 %v8333_v16, %v4805_v51  ;;  %v8337_v45 = vpop.eup %8336  ;;  %v4787_v51 = vmul.f32 %v11131_v20, %v10927_v29  ;;  %v4371_v9 = vmul.f32 1.442695, %v4327_v3 }
 0xd1c   :  { %v11159_v16 = vrot.slane %v4685_v47, %v12839_v36  ;;  %v8339_v50 = vpop.eup %8338  ;;  %v4773_v29 = vmul.f32 %v11143_v5, %v10938_v49  ;;  %v11168_v3 = vrot.slane %v11146_v31, %v12839_v36  ;;  %v11175_v63 = vrot.slane %v4605_v12, %v12831_v37 }
 0xd1d   :  { %4819 = vst.msk [vmem:[#allocation2 + $0x10] sm:$0xff] %vm321_vm10, %v4815_v13  ;;  %v4817_v62 = vadd.f32 %v4813_v54, %v4785_v28  ;;  %v4823_v14 = vmul.f32 %v8335_v8, %v4815_v13  ;;  %v4654_v28 = vcombine.high %v4652_v2, %v4652_v2  ;;  %v4403_v54 = vmul.f32 1.442695, %v11085_v10  ;;  %v8341_v47 = vpop.eup %8340 }
 0xd1e   :  { %4574 = vbcast.lane.b32.xlu1 %v10799_v4, 264  ;;  %v4234_v49 = vcombine.high %v11023_v27, %v11023_v27  ;;  %v11182_v8 = vrot.slane %v10902_v40, %v12933_v55  ;;  %8350 = vpow2.f32 %v4371_v9  ;;  %v8343_v27 = vpop.eup %8342  ;;  %v4775_v55 = vmul.f32 %v11168_v3, %v10965_v53 }
 0xd1f   :  { %6689 = vbcast.lane.b32.xlu0 %v10961_v41, 272  ;;  %4821 = vst.msk [vmem:[#allocation2 + $0x90] sm:$0xff] %vm321_vm10, %v4817_v62  ;;  %v4827_v18 = vadd.f32 %v4823_v14, %v4771_v1  ;;  %v4825_v48 = vmul.f32 %v8337_v45, %v4817_v62  ;;  %v4789_v1 = vmul.f32 %v11159_v16, %v10955_v24  ;;  %8352 = vpow2.f32 %v4403_v54 }
 0xd20   :  { %v11192_v14 = vrot.slane %v4654_v28, %v12831_v37  ;;  %v11198_v12 = vrot.slane %v4185_v7, %v12839_v36  ;;  %v4635_v9 = vcombine.high %v11146_v31, %v11146_v31  ;;  %v11210_v53 = vrot.slane %v10902_v40, %v12934_v46  ;;  %v4582_v7 = vpop.permute.xlu0 %4581 }
 0xd21   :  { %4831 = vst.msk [vmem:[#allocation2 + $0x20] sm:$0xff] %vm321_vm10, %v4827_v18  ;;  %v4829_v2 = vadd.f32 %v4825_v48, %v4787_v51  ;;  %v4835_v13 = vmul.f32 %v8339_v50, %v4827_v18  ;;  %v11204_v51 = vrot.slane %v11175_v63, %v12839_v36  ;;  %v8345_v18 = vpop.eup %8344  ;;  %v4791_v48 = vmul.f32 %v11186_v23, %v10977_v38 }
 0xd22   :  { %4497 = vbcast.lane.b32.xlu1 %v10804_v21, 264  ;;  %v4329_v28 = vmul.f32 %v10982_v15, %v11198_v12  ;;  %v11217_v50 = vrot.slane %v4234_v49, %v12839_v36  ;;  %v11222_v31 = vrot.slane %v11192_v14, %v12839_v36  ;;  %v4684_v46 = vcombine.high %v11155_v0, %v11155_v0 }
 0xd23   :  { %6056 = vbcast.lane.b32.xlu0 %v11077_v11, 256  ;;  %4833 = vst.msk [vmem:[#allocation2 + $0xa0] sm:$0xff] %vm321_vm10, %v4829_v2  ;;  %v4839_v62 = vadd.f32 %v4835_v13, %v4773_v29  ;;  %v4837_v10 = vmul.f32 %v8341_v47, %v4829_v2  ;;  %v8347_v13 = vpop.eup %8346  ;;  %v4777_v49 = vmul.f32 %v11204_v51, %v11020_v22 }
 0xd24   :  { %v4375_v38 = vmul.f32 1.442695, %v4329_v28  ;;  %v4345_v54 = vmul.f32 %v10982_v15, %v11217_v50  ;;  %v8349_v0 = vpop.eup %8348  ;;  %v11244_v22 = vrot.slane %v4684_v46, %v12839_v36  ;;  %v11257_v28 = vrot.slane %v10902_v40, %v12950_v43 }
 0xd25   :  { %4843 = vst.msk [vmem:[#allocation2 + $0x30] sm:$0xff] %vm321_vm10, %v4839_v62  ;;  %v4841_v45 = vadd.f32 %v4837_v10, %v4789_v1  ;;  %v4847_v24 = vmul.f32 %v8343_v27, %v4839_v62  ;;  %v11234_v1 = vrot.slane %v4635_v9, %v12839_v36  ;;  %v4793_v27 = vmul.f32 %v11222_v31, %v11060_v34 }
 0xd26   :  { %4585 = vbcast.lane.b32.xlu1 %v10809_v17, 264  ;;  %8354 = vpow2.f32 %v4375_v38  ;;  %v4407_v10 = vmul.f32 1.442695, %v4345_v54  ;;  %v4637_v34 = vcombine.high %v11175_v63, %v11175_v63  ;;  %v4686_v46 = vcombine.high %v11192_v14, %v11192_v14 }
 0xd27   :  { %6067 = vbcast.lane.b32.xlu0 %v11182_v8, 256  ;;  %4845 = vst.msk [vmem:[#allocation2 + $0xb0] sm:$0xff] %vm321_vm10, %v4841_v45  ;;  %v4851_v29 = vadd.f32 %v4847_v24, %v4775_v55  ;;  %v4849_v2 = vmul.f32 %v8345_v18, %v4841_v45  ;;  %v11247_v24 = vpop.permute.xlu0 %4937  ;;  %v4779_v9 = vmul.f32 %v11234_v1, %v11103_v30 }
 0xd28   :  { %v8351_v45 = vpop.eup %8350  ;;  %8356 = vpow2.f32 %v4407_v10  ;;  %v11268_v43 = vrot.slane %v4637_v34, %v12839_v36 }
 0xd29   :  { %4855 = vst.msk [vmem:[#allocation2 + $0x40] sm:$0xff] %vm321_vm10, %v4851_v29  ;;  %v4853_v47 = vadd.f32 %v4849_v2, %v4791_v48  ;;  %v4859_v62 = vmul.f32 %v8347_v13, %v4851_v29  ;;  %v8353_v48 = vpop.eup %8352  ;;  %v4795_v29 = vmul.f32 %v11244_v22, %v11134_v44  ;;  %v11274_v13 = vrot.slane %v10902_v40, %v12953_v6 }
 0xd2a   :  { %4941 = vbcast.lane.b32.xlu1 %v10717_v58, 280  ;;  %v11238_v58 = vrot.slane %v10902_v40, %v12931_v52  ;;  %v11278_v44 = vrot.slane %v4686_v46, %v12839_v36  ;;  %v4781_v14 = vmul.f32 %v11268_v43, %v11170_v42  ;;  %v12986_v42 = vld [vmem:[#allocation63_spill] sm:$0xff] }
 0xd2b   :  { %6078 = vbcast.lane.b32.xlu0 %v11210_v53, 256  ;;  %4857 = vst.msk [vmem:[#allocation2 + $0xc0] sm:$0xff] %vm321_vm10, %v4853_v47  ;;  %v4863_v15 = vadd.f32 %v4859_v62, %v4777_v49  ;;  %v4861_v55 = vmul.f32 %v8349_v0, %v4853_v47  ;;  %v11270_v63 = vpop.permute.xlu0 %4945  ;;  %v11286_v47 = vrot.slane %v10902_v40, %v12956_v19  ;;  %v12985_v0 = vld [vmem:[#allocation58_spill] sm:$0xff]  ;;  %v12988_v19 = vld [vmem:[#allocation57_spill] sm:$0xff] }
 0xd2c   :  { %v4797_v49 = vmul.f32 %v11278_v44, %v4582_v7 }
 0xd2d   :  { %4867 = vst.msk [vmem:[#allocation2 + $0x50] sm:$0xff] %vm321_vm10, %v4863_v15  ;;  %v4865_v52 = vadd.f32 %v4861_v55, %v4793_v27  ;;  %v4871_v18 = vmul.f32 %v8351_v45, %v4863_v15  ;;  %v7524_v15 = vmul.f32 -1.442695, %v12986_v42  ;;  %v12987_v27 = vld [vmem:[#allocation26_spill] sm:$0xff]  ;;  %v12989_v45 = vld [vmem:[#allocation64_spill] sm:$0xff] }
 0xd2e   :  { %4949 = vbcast.lane.b32.xlu1 %v10754_v61, 280  ;;  %v11297_v55 = vrot.slane %v10902_v40, %v12987_v27  ;;  %v11310_v40 = vld [vmem:[%s12544_s10 + $0x28] sm:$0xff] }
 0xd2f   :  { %6089 = vbcast.lane.b32.xlu0 %v11238_v58, 256  ;;  %4869 = vst.msk [vmem:[#allocation2 + $0xd0] sm:$0xff] %vm321_vm10, %v4865_v52  ;;  %v4875_v61 = vadd.f32 %v4871_v18, %v4779_v9  ;;  %v4873_v2 = vmul.f32 %v8353_v48, %v4865_v52  ;;  %v11290_v10 = vpop.permute.xlu0 %5001  ;;  %8358 = vpow2.f32 %v7524_v15  ;;  %v12990_v52 = vld [vmem:[#allocation34_spill] sm:$0xff]  ;;  %v12991_v18 = vld [vmem:[#allocation56_spill] sm:$0xff] }
 0xd30   :  { %v7525_v9 = vmul.f32 -1.442695, %v12990_v52  ;;  %v12992_v48 = vld [vmem:[#allocation36_spill] sm:$0xff] }
 0xd31   :  { %4879 = vst.msk [vmem:[#allocation2 + $0x60] sm:$0xff] %vm321_vm10, %v4875_v61  ;;  %v4877_v30 = vadd.f32 %v4873_v2, %v4795_v29  ;;  %v12993_v29 = vld [vmem:[#allocation45_spill] sm:$0xff]  ;;  %v12997_v15 = vld [vmem:[#allocation16_spill] sm:$0xff] }
 0xd32   :  { %5005 = vbcast.lane.b32.xlu1 %v10721_v35, 280  ;;  %v8355_v35 = vpop.eup %8354  ;;  %8360 = vpow2.f32 %v7525_v9  ;;  %v4334_v27 = vmul.f32 %v11310_v40, %v12997_v15 }
 0xd33   :  { %6100 = vbcast.lane.b32.xlu0 %v11257_v28, 256  ;;  %4881 = vst.msk [vmem:[#allocation2 + $0xe0] sm:$0xff] %vm321_vm10, %v4877_v30  ;;  %v4883_v38 = vmul.f32 %v8355_v35, %v4875_v61  ;;  %v8357_v54 = vpop.eup %8356  ;;  %v11302_v7 = vpop.permute.xlu0 %4929  ;;  %v4316_v61 = vmul.f32 %v11310_v40, %v12992_v48 }
 0xd34   :  { %v4885_v62 = vmul.f32 %v8357_v54, %v4877_v30  ;;  %v12994_v30 = vld [vmem:[#allocation29_spill] sm:$0xff]  ;;  %v4385_v48 = vmul.f32 1.442695, %v4334_v27 }
 0xd35   :  { %v4887_v6 = vadd.f32 %v4883_v38, %v4781_v14  ;;  %v4349_v46 = vmul.f32 1.442695, %v4316_v61  ;;  %v4332_v35 = vmul.f32 %v11310_v40, %v12994_v30  ;;  %v12995_v38 = vld [vmem:[#allocation48_spill] sm:$0xff]  ;;  %v13000_v61 = vld [vmem:[#allocation30_spill] sm:$0xff] }
 0xd36   :  { %4933 = vbcast.lane.b32.xlu1 %v10691_v39, 280  ;;  %v4889_v39 = vadd.f32 %v4885_v62, %v4797_v49  ;;  %v4318_v54 = vmul.f32 %v11310_v40, %v12995_v38  ;;  %v12996_v49 = vld [vmem:[#allocation19_spill] sm:$0xff]  ;;  %v13002_v38 = vld [vmem:[#allocation44_spill] sm:$0xff] }
 0xd37   :  { %6111 = vbcast.lane.b32.xlu0 %v11274_v13, 256  ;;  %4891 = vst.msk [vmem:[#allocation2 + $0x70] sm:$0xff] %vm321_vm10, %v4887_v6  ;;  %v11313_v34 = vpop.permute.xlu0 %4953  ;;  %8362 = vpow2.f32 %v4349_v46  ;;  %v4381_v62 = vmul.f32 1.442695, %v4332_v35 }
 0xd38   :  { %4893 = vst.msk [vmem:[#allocation2 + $0xf0] sm:$0xff] %vm321_vm10, %v4889_v39  ;;  %v4353_v39 = vmul.f32 1.442695, %v4318_v54  ;;  %v4336_v54 = vmul.f32 %v11310_v40, %v13002_v38 }
 0xd39   :  { %v8359_v2 = vpop.eup %8358 }
 0xd3a   :  { %4957 = vbcast.lane.b32.xlu1 %v12985_v0, 280  ;;  %v5295_v6 = vadd.f32 1.0, %v8359_v2 }
 0xd3b   :  { %6122 = vbcast.lane.b32.xlu0 %v11286_v47, 256  ;;  %v11322_v14 = vpop.permute.xlu0 %5009 }
 0xd3c   :  { %v8361_v0 = vpop.eup %8360  ;;  %8364 = vrcp.f32 %v5295_v6  ;;  %v13003_v6 = vld [vmem:[#allocation60_spill] sm:$0xff] }
 0xd3d   :  { %8366 = vpow2.f32 %v4381_v62 }
 0xd3e   :  { %5013 = vbcast.lane.b32.xlu1 %v12988_v19, 280  ;;  %v12998_v19 = vld [vmem:[#allocation59_spill] sm:$0xff]  ;;  %8368 = vpow2.f32 %v4353_v39 }
 0xd3f   :  { %6133 = vbcast.lane.b32.xlu0 %v11297_v55, 256  ;;  %v13004_v39 = vld [vmem:[#allocation47_spill] sm:$0xff] }
 0xd40   :  { %v6946_v15 = vrot.slane %v13004_v39, 2 }
 0xd41   :  { %v8363_v46 = vpop.eup %8362 }
 0xd42   :  { %4965 = vbcast.lane.b32.xlu1 %v12989_v45, 280  ;;  %v11331_v45 = vpop.permute.xlu0 %4961  ;;  %v4800_v62 = vmul.f32 0.0, %v8363_v46 }
 0xd43   :  { %6577 = vbcast.lane.b32.xlu0 %v11182_v8, 272 }
 0xd46   :  { %4997 = vbcast.lane.b32.xlu1 %v12991_v18, 280  ;;  %v5296_v18 = vadd.f32 1.0, %v8361_v0  ;;  %v11340_v30 = vpop.permute.xlu0 %4993 }
 0xd47   :  { %6585 = vbcast.lane.b32.xlu0 %v11210_v53, 272 }
 0xd48   :  { %8370 = vrcp.f32 %v5296_v18 }
 0xd49   :  { %8372 = vpow2.f32 %v4385_v48 }
 0xd4a   :  { %5021 = vbcast.lane.b32.xlu1 %v12993_v29, 280  ;;  %v4320_v29 = vmul.f32 %v11310_v40, %v13000_v61 }
 0xd4b   :  { %6569 = vbcast.lane.b32.xlu0 %v11077_v11, 272 }
 0xd4c   :  { %v4357_v35 = vmul.f32 1.442695, %v4320_v29  ;;  %v11351_v29 = vpop.permute.xlu0 %5017 }
 0xd4e   :  { %4973 = vbcast.lane.b32.xlu1 %v12996_v49, 280  ;;  %8374 = vpow2.f32 %v4357_v35 }
 0xd4f   :  { %6593 = vbcast.lane.b32.xlu0 %v11238_v58, 272 }
 0xd52   :  { %5029 = vbcast.lane.b32.xlu1 %v12998_v19, 280  ;;  %v4389_v19 = vmul.f32 1.442695, %v4336_v54  ;;  %v13006_v54 = vld [vmem:[#allocation62_spill] sm:$0xff] }
 0xd53   :  { %6601 = vbcast.lane.b32.xlu0 %v11257_v28, 272 }
 0xd54   :  { %v5649_v9 = vpop.permute.xlu1 %5648  ;;  %8376 = vpow2.f32 %v4389_v19  ;;  %v11369_v19 = vpop.permute.xlu0 %4969 }
 0xd55   :  { %7880 = vmatprep.mubr.msk.f32.mxu1 %vm12999_vm2, %v5649_v9  ;;  %v13005_v9 = vld [vmem:[#allocation51_spill] sm:$0xff]  ;;  %vm13186_vm2 = vmmov %vm13177_vm9 }
 0xd56   :  { %4977 = vbcast.lane.b32.xlu1 %v10794_v59, 272  ;;  %v8365_v59 = vpop.eup %8364  ;;  %v4322_v18 = vmul.f32 %v11310_v40, %v13005_v9 }
 0xd57   :  { %6609 = vbcast.lane.b32.xlu0 %v11274_v13, 272  ;;  %v8367_v27 = vpop.eup %8366  ;;  %v11355_v46 = vmul.f32 %v8365_v59, %v12986_v42 }
 0xd58   :  { %v5651_v2 = vpop.permute.xlu1 %5650  ;;  %v8369_v61 = vpop.eup %8368 }
 0xd59   :  { %7881 = vmatmul.mubr.msk.f32.vlgmr.msra.gmra.mrb[8].mxu1 %vm13001_vm3, %v5651_v2  ;;  %vm13187_vm3 = vmmov %vm13184_vm1 }
 0xd5a   :  { %5033 = vbcast.lane.b32.xlu1 %v13003_v6, 272  ;;  %v6957_v6 = vrot.slane %v13006_v54, 6 }
 0xd5b   :  { %6617 = vbcast.lane.b32.xlu0 %v11286_v47, 272 }
 0xd5c   :  { %v4421_v49 = vpop.permute.xlu1 %4420 }
 0xd5d   :  { %v4768_v0 = vmul.f32 %v11080_v56, %v4421_v49  ;;  %v4802_v56 = vmul.f32 0.0, %v8367_v27  ;;  %v4361_v49 = vmul.f32 1.442695, %v4322_v18  ;;  %v5305_v18 = vrot.slane %v11355_v46, 1 }
 0xd5e   :  { %6963 = vrot.lane.b32.xlu1 %v6946_v15, %s8502_s24  ;;  %v8371_v15 = vpop.eup %8370 }
 0xd5f   :  { %v4804_v48 = vadd.f32 %v4800_v62, %v4768_v0  ;;  %6625 = vbcast.lane.b32.xlu0 %v11297_v55, 272  ;;  %v13007_v62 = vld [vmem:[#allocation39_spill] sm:$0xff]  ;;  %v8373_v36 = vpop.eup %8372  ;;  %v11367_v27 = vmul.f32 %v8371_v15, %v12990_v52  ;;  %8378 = vpow2.f32 %v4361_v49 }
 0xd60   :  { %v4509_v2 = vpop.permute.xlu1 %4508  ;;  %v4338_v0 = vmul.f32 %v11310_v40, %v13007_v62 }
 0xd61   :  { %4808 = vst.msk [vmem:[#allocation2 + $0x8] sm:$0xff] %vm321_vm10, %v4804_v48  ;;  %v4784_v35 = vmul.f32 %v11093_v32, %v4509_v2  ;;  %v4812_v38 = vmul.f32 %v8369_v61, %v4804_v48 }
 0xd62   :  { %4985 = vbcast.lane.b32.xlu1 %v10804_v21, 272  ;;  %v4393_v48 = vmul.f32 1.442695, %v4338_v0  ;;  %v13008_v21 = vld [vmem:[#allocation65_spill] sm:$0xff]  ;;  %v11383_v0 = vpop.permute.xlu0 %5025 }
 0xd63   :  { %v4806_v9 = vadd.f32 %v4802_v56, %v4784_v35  ;;  %6987 = vrot.lane.b32.xlu0 %v6957_v6, %s8502_s24  ;;  %v4324_v2 = vmul.f32 %v11310_v40, %v13008_v21  ;;  %v8375_v56 = vpop.eup %8374  ;;  %v5312_v35 = vrot.slane %v11367_v27, 1 }
 0xd64   :  { %v4432_v42 = vpop.permute.xlu1 %4431  ;;  %8380 = vpow2.f32 %v4393_v48  ;;  %v8377_v62 = vpop.eup %8376  ;;  %v13010_v48 = vld [vmem:[#allocation35_spill] sm:$0xff] }
 0xd65   :  { %4810 = vst.msk [vmem:[#allocation2 + $0x88] sm:$0xff] %vm321_vm10, %v4806_v9  ;;  %v4770_v32 = vmul.f32 %v11109_v26, %v4432_v42  ;;  %v4814_v59 = vmul.f32 %v8373_v36, %v4806_v9  ;;  %v6953_v9 = vrot.slane %v13006_v54, 2 }
 0xd66   :  { %5041 = vbcast.lane.b32.xlu1 %v10799_v4, 272  ;;  %v4365_v4 = vmul.f32 1.442695, %v4324_v2 }
 0xd67   :  { %v4816_v61 = vadd.f32 %v4812_v38, %v4770_v32  ;;  %5321 = vrot.lane.b32.xlu0 %v5305_v18, %s8502_s24  ;;  %v13009_v38 = vld [vmem:[#allocation53_spill] sm:$0xff]  ;;  %v5307_v32 = vrot.slane %v11355_v46, 3 }
 0xd68   :  { %v4520_v26 = vpop.permute.xlu1 %4519  ;;  %v4340_v49 = vmul.f32 %v11310_v40, %v13009_v38  ;;  %8382 = vpow2.f32 %v4365_v4 }
 0xd69   :  { %4820 = vst.msk [vmem:[#allocation2 + $0x18] sm:$0xff] %vm321_vm10, %v4816_v61  ;;  %v4786_v36 = vmul.f32 %v11117_v33, %v4520_v26  ;;  %v4824_v52 = vmul.f32 %v8375_v56, %v4816_v61  ;;  %v4326_v61 = vmul.f32 %v11310_v40, %v13010_v48  ;;  %v8379_v21 = vpop.eup %8378  ;;  %v11396_v26 = vpop.permute.xlu0 %6961  ;;  %v5315_v48 = vrot.slane %v11367_v27, 4 }
 0xd6a   :  { %6959 = vrot.lane.b32.xlu1 %v13004_v39, %s8502_s24  ;;  %v4397_v18 = vmul.f32 1.442695, %v4340_v49  ;;  %13011 = vst [vmem:[#allocation66_spill] sm:$0xff] %v11396_v26  ;;  %v13049_v26 = vld [vmem:[#allocation55_spill] sm:$0xff] }
 0xd6b   :  { %v4818_v6 = vadd.f32 %v4814_v59, %v4786_v36  ;;  %5337 = vrot.lane.b32.xlu0 %v5312_v35, %s8502_s24  ;;  %v5308_v36 = vrot.slane %v11355_v46, 4  ;;  %v4369_v35 = vmul.f32 1.442695, %v4326_v61 }
 0xd6c   :  { %v4443_v15 = vpop.permute.xlu1 %4442  ;;  %8384 = vpow2.f32 %v4397_v18  ;;  %v6949_v18 = vrot.slane %v13004_v39, 5 }
 0xd6d   :  { %4822 = vst.msk [vmem:[#allocation2 + $0x98] sm:$0xff] %vm321_vm10, %v4818_v6  ;;  %v4772_v33 = vmul.f32 %v11128_v60, %v4443_v15  ;;  %v4826_v42 = vmul.f32 %v8377_v62, %v4818_v6  ;;  %v13012_v6 = vld [vmem:[#allocation21_spill] sm:$0xff]  ;;  %v5314_v15 = vrot.slane %v11367_v27, 3  ;;  %8386 = vpow2.f32 %v4369_v35 }
 0xd6e   :  { %6979 = vrot.lane.b32.xlu1 %v6953_v9, %s8502_s24  ;;  %v4342_v4 = vmul.f32 %v11310_v40, %v13012_v6  ;;  %v8381_v38 = vpop.eup %8380  ;;  %v11410_v9 = vpop.permute.xlu0 %4981  ;;  %v5316_v6 = vrot.slane %v11367_v27, 5 }
 0xd6f   :  { %v4828_v59 = vadd.f32 %v4824_v52, %v4772_v33  ;;  %5325 = vrot.lane.b32.xlu0 %v5307_v32, %s8502_s24  ;;  %v4328_v33 = vmul.f32 %v11310_v40, %v11090_v25 }
 0xd70   :  { %v4531_v2 = vpop.permute.xlu1 %4530 }
 0xd71   :  { %4832 = vst.msk [vmem:[#allocation2 + $0x28] sm:$0xff] %vm321_vm10, %v4828_v59  ;;  %v4788_v60 = vmul.f32 %v11131_v20, %v4531_v2  ;;  %v4836_v56 = vmul.f32 %v8379_v21, %v4828_v59  ;;  %v4373_v25 = vmul.f32 1.442695, %v4328_v33  ;;  %v13013_v21 = vld [vmem:[#allocation38_spill] sm:$0xff]  ;;  %v5317_v33 = vrot.slane %v11367_v27, 6 }
 0xd72   :  { %5053 = vbcast.lane.b32.xlu1 %v10809_v17, 280  ;;  %v4401_v17 = vmul.f32 1.442695, %v4342_v4  ;;  %v8383_v32 = vpop.eup %8382  ;;  %v4344_v2 = vmul.f32 %v11310_v40, %v13013_v21  ;;  %v11422_v35 = vpop.permute.xlu0 %5037 }
 0xd73   :  { %v4830_v52 = vadd.f32 %v4826_v42, %v4788_v60  ;;  %5327 = vrot.lane.b32.xlu0 %v5308_v36, %s8502_s24 }
 0xd74   :  { %v4454_v49 = vpop.permute.xlu1 %4453  ;;  %8388 = vpow2.f32 %v4401_v17  ;;  %v6951_v17 = vrot.slane %v13004_v39, 7 }
 0xd75   :  { %4834 = vst.msk [vmem:[#allocation2 + $0xa8] sm:$0xff] %vm321_vm10, %v4830_v52  ;;  %v4838_v20 = vmul.f32 %v8381_v38, %v4830_v52  ;;  %v4774_v62 = vmul.f32 %v11143_v5, %v4454_v49  ;;  %v6950_v52 = vrot.slane %v13004_v39, 6  ;;  %8390 = vpow2.f32 %v4373_v25 }
 0xd76   :  { %6975 = vrot.lane.b32.xlu1 %v13006_v54, %s8502_s24  ;;  %v4405_v38 = vmul.f32 1.442695, %v4344_v2  ;;  %v4330_v49 = vmul.f32 %v11310_v40, %v11198_v12  ;;  %v4346_v12 = vmul.f32 %v11310_v40, %v11217_v50 }
 0xd77   :  { %v4840_v42 = vadd.f32 %v4836_v56, %v4774_v62  ;;  %5341 = vrot.lane.b32.xlu0 %v5314_v15, %s8502_s24  ;;  %v8385_v56 = vpop.eup %8384 }
 0xd78   :  { %v4542_v59 = vpop.permute.xlu1 %4541  ;;  %v8387_v62 = vpop.eup %8386  ;;  %8392 = vpow2.f32 %v4405_v38  ;;  %v4409_v25 = vmul.f32 1.442695, %v4346_v12 }
 0xd79   :  { %4844 = vst.msk [vmem:[#allocation2 + $0x38] sm:$0xff] %vm321_vm10, %v4840_v42  ;;  %v4790_v5 = vmul.f32 %v11159_v16, %v4542_v59  ;;  %v4848_v61 = vmul.f32 %v8383_v32, %v4840_v42  ;;  %v4377_v32 = vmul.f32 1.442695, %v4330_v49  ;;  %v11438_v59 = vpop.permute.xlu0 %6977 }
 0xd7a   :  { %6969 = vrot.lane.b32.xlu1 %v6949_v18, %s8502_s24  ;;  %13014 = vst [vmem:[#allocation54_spill] sm:$0xff] %v11438_v59  ;;  %v5309_v59 = vrot.slane %v11355_v46, 5 }
 0xd7b   :  { %v4842_v60 = vadd.f32 %v4838_v20, %v4790_v5  ;;  %5343 = vrot.lane.b32.xlu0 %v5315_v48, %s8502_s24  ;;  %8394 = vpow2.f32 %v4377_v32  ;;  %v13019_v32 = vld [vmem:[#allocation74_spill] sm:$0xff] }
 0xd7c   :  { %v4465_v36 = vpop.permute.xlu1 %4464  ;;  %8396 = vpow2.f32 %v4409_v25 }
 0xd7d   :  { %4846 = vst.msk [vmem:[#allocation2 + $0xb8] sm:$0xff] %vm321_vm10, %v4842_v60  ;;  %v4776_v16 = vmul.f32 %v11168_v3, %v4465_v36  ;;  %v4850_v4 = vmul.f32 %v8385_v56, %v4842_v60  ;;  %v13016_v56 = vld [vmem:[#allocation28_spill] sm:$0xff]  ;;  %v11468_v25 = vpop.permute.xlu0 %4989 }
 0xd7e   :  { %6971 = vrot.lane.b32.xlu1 %v6950_v52, %s8502_s24  ;;  %v8389_v39 = vpop.eup %8388 }
 0xd7f   :  { %v4852_v20 = vadd.f32 %v4848_v61, %v4776_v16  ;;  %5345 = vrot.lane.b32.xlu0 %v5316_v6, %s8502_s24  ;;  %v13015_v61 = vld [vmem:[#allocation68_spill] sm:$0xff]  ;;  %v8391_v2 = vpop.eup %8390 }
 0xd80   :  { %v4553_v15 = vpop.permute.xlu1 %4552 }
 0xd81   :  { %4856 = vst.msk [vmem:[#allocation2 + $0x48] sm:$0xff] %vm321_vm10, %v4852_v20  ;;  %v4792_v3 = vmul.f32 %v11186_v23, %v4553_v15  ;;  %v4860_v42 = vmul.f32 %v8387_v62, %v4852_v20  ;;  %v13018_v15 = vld [vmem:[#allocation50_spill] sm:$0xff] }
 0xd82   :  { %6973 = vrot.lane.b32.xlu1 %v6951_v17, %s8502_s24  ;;  %v8393_v52 = vpop.eup %8392 }
 0xd83   :  { %v4854_v18 = vadd.f32 %v4850_v4, %v4792_v3  ;;  %5347 = vrot.lane.b32.xlu0 %v5317_v33, %s8502_s24  ;;  %v13017_v4 = vld [vmem:[#allocation70_spill] sm:$0xff] }
 0xd84   :  { %v4476_v5 = vpop.permute.xlu1 %4475 }
 0xd85   :  { %4858 = vst.msk [vmem:[#allocation2 + $0xc8] sm:$0xff] %vm321_vm10, %v4854_v18  ;;  %v4778_v23 = vmul.f32 %v11204_v51, %v4476_v5  ;;  %v4862_v48 = vmul.f32 %v8389_v39, %v4854_v18  ;;  %v8395_v49 = vpop.eup %8394 }
 0xd86   :  { %6148 = vbcast.lane.b32.xlu1 %v13015_v61, 264  ;;  %v8397_v3 = vpop.eup %8396 }
 0xd87   :  { %v4864_v21 = vadd.f32 %v4860_v42, %v4778_v23 }
 0xd88   :  { %v4564_v60 = vpop.permute.xlu1 %4563 }
 0xd89   :  { %4868 = vst.msk [vmem:[#allocation2 + $0x58] sm:$0xff] %vm321_vm10, %v4864_v21  ;;  %v4794_v50 = vmul.f32 %v11222_v31, %v4564_v60  ;;  %v4872_v40 = vmul.f32 %v8391_v2, %v4864_v21  ;;  %v11474_v21 = vpop.permute.xlu0 %5045 }
 0xd8a   :  { %6159 = vbcast.lane.b32.xlu1 %v13016_v56, 264 }
 0xd8b   :  { %v4866_v36 = vadd.f32 %v4862_v48, %v4794_v50 }
 0xd8c   :  { %v4487_v16 = vpop.permute.xlu1 %4486 }
 0xd8d   :  { %4870 = vst.msk [vmem:[#allocation2 + $0xd8] sm:$0xff] %vm321_vm10, %v4866_v36  ;;  %v4780_v51 = vmul.f32 %v11234_v1, %v4487_v16  ;;  %v4874_v6 = vmul.f32 %v8393_v52, %v4866_v36  ;;  %v11481_v50 = vpop.permute.xlu0 %6965 }
 0xd8e   :  { %6170 = vbcast.lane.b32.xlu1 %v13017_v4, 264  ;;  %13021 = vst [vmem:[#allocation40_spill] sm:$0xff] %v11481_v50 }
 0xd8f   :  { %v4876_v38 = vadd.f32 %v4872_v40, %v4780_v51 }
 0xd90   :  { %v4575_v20 = vpop.permute.xlu1 %4574 }
 0xd91   :  { %4880 = vst.msk [vmem:[#allocation2 + $0x68] sm:$0xff] %vm321_vm10, %v4876_v38  ;;  %v4796_v31 = vmul.f32 %v11244_v22, %v4575_v20  ;;  %v4884_v62 = vmul.f32 %v8395_v49, %v4876_v38  ;;  %v13020_v22 = vld [vmem:[#allocation41_spill] sm:$0xff] }
 0xd92   :  { %6181 = vbcast.lane.b32.xlu1 %v13018_v15, 264 }
 0xd93   :  { %v4878_v17 = vadd.f32 %v4874_v6, %v4796_v31 }
 0xd94   :  { %v4498_v33 = vpop.permute.xlu1 %4497 }
 0xd95   :  { %4882 = vst.msk [vmem:[#allocation2 + $0xe8] sm:$0xff] %vm321_vm10, %v4878_v17  ;;  %v4782_v1 = vmul.f32 %v11268_v43, %v4498_v33  ;;  %v4886_v42 = vmul.f32 %v8397_v3, %v4878_v17 }
 0xd96   :  { %6192 = vbcast.lane.b32.xlu1 %v13019_v32, 264 }
 0xd97   :  { %v4888_v12 = vadd.f32 %v4884_v62, %v4782_v1 }
 0xd98   :  { %v4586_v18 = vpop.permute.xlu1 %4585 }
 0xd99   :  { %4892 = vst.msk [vmem:[#allocation2 + $0x78] sm:$0xff] %vm321_vm10, %v4888_v12  ;;  %v4798_v39 = vmul.f32 %v11278_v44, %v4586_v18 }
 0xd9a   :  { %6203 = vbcast.lane.b32.xlu1 %v13020_v22, 264 }
 0xd9b   :  { %v4890_v5 = vadd.f32 %v4886_v42, %v4798_v39 }
 0xd9c   :  { %v11459_v23 = vpop.permute.xlu1 %4941 }
 0xd9d   :  { %4894 = vst.msk [vmem:[#allocation2 + $0xf8] sm:$0xff] %vm321_vm10, %v4890_v5 }
 0xd9e   :  { %6214 = vbcast.lane.b32.xlu1 %v10953_v57, 264 }
 0xda0   :  { %v11463_v48 = vpop.permute.xlu1 %4949 }
 0xda2   :  { %6225 = vbcast.lane.b32.xlu1 %v10961_v41, 264 }
 0xda4   :  { %v11466_v43 = vpop.permute.xlu1 %5005 }
 0xda6   :  { %6645 = vbcast.lane.b32.xlu1 %v13016_v56, 280  ;;  %v11487_v56 = vpop.permute.xlu0 %5049 }
 0xda8   :  { %v11471_v44 = vpop.permute.xlu1 %4933 }
 0xdaa   :  { %6653 = vbcast.lane.b32.xlu1 %v13017_v4, 280  ;;  %v11494_v16 = vpop.permute.xlu0 %6967 }
 0xdab   :  { %13022 = vst [vmem:[#allocation67_spill] sm:$0xff] %v11494_v16 }
 0xdac   :  { %v11476_v2 = vpop.permute.xlu1 %4957 }
 0xdae   :  { %6637 = vbcast.lane.b32.xlu1 %v13015_v61, 280  ;;  %v11500_v51 = vpop.permute.xlu0 %6981 }
 0xdaf   :  { %13023 = vst [vmem:[#allocation42_spill] sm:$0xff] %v11500_v51 }
 0xdb0   :  { %v11479_v60 = vpop.permute.xlu1 %5013 }
 0xdb2   :  { %6661 = vbcast.lane.b32.xlu1 %v13018_v15, 280  ;;  %v11507_v38 = vpop.permute.xlu0 %6983 }
 0xdb3   :  { %13024 = vst [vmem:[#allocation69_spill] sm:$0xff] %v11507_v38 }
 0xdb4   :  { %v11484_v40 = vpop.permute.xlu1 %4965 }
 0xdb6   :  { %6669 = vbcast.lane.b32.xlu1 %v13019_v32, 280 }
 0xdb8   :  { %v11489_v36 = vpop.permute.xlu1 %4997 }
 0xdba   :  { %6677 = vbcast.lane.b32.xlu1 %v13020_v22, 280 }
 0xdbc   :  { %v11492_v52 = vpop.permute.xlu1 %5021 }
 0xdbe   :  { %6685 = vbcast.lane.b32.xlu1 %v10953_v57, 280  ;;  %v11513_v57 = vpop.permute.xlu0 %6985 }
 0xdbf   :  { %13025 = vst [vmem:[#allocation22_spill] sm:$0xff] %v11513_v57 }
 0xdc0   :  { %v11497_v61 = vpop.permute.xlu1 %4973 }
 0xdc2   :  { %6693 = vbcast.lane.b32.xlu1 %v10961_v41, 280  ;;  %v11518_v41 = vpop.permute.xlu0 %6144 }
 0xdc4   :  { %v11502_v6 = vpop.permute.xlu1 %5029 }
 0xdc6   :  { %6060 = vbcast.lane.b32.xlu1 %v11077_v11, 264  ;;  %v11525_v15 = vpop.permute.xlu0 %6155 }
 0xdc8   :  { %v11505_v4 = vpop.permute.xlu1 %4977 }
 0xdca   :  { %6071 = vbcast.lane.b32.xlu1 %v11182_v8, 264  ;;  %v11531_v3 = vpop.permute.xlu0 %6166 }
 0xdcc   :  { %v11510_v49 = vpop.permute.xlu1 %5033 }
 0xdce   :  { %6082 = vbcast.lane.b32.xlu1 %v11210_v53, 264  ;;  %v11538_v42 = vpop.permute.xlu0 %6177 }
 0xdd0   :  { %v11515_v20 = vpop.permute.xlu1 %6963 }
 0xdd1   :  { %13026 = vst [vmem:[#allocation77_spill] sm:$0xff] %v11515_v20  ;;  %v5310_v20 = vrot.slane %v11355_v46, 6 }
 0xdd2   :  { %6093 = vbcast.lane.b32.xlu1 %v11238_v58, 264  ;;  %v11544_v12 = vpop.permute.xlu0 %6188 }
 0xdd4   :  { %v11520_v31 = vpop.permute.xlu1 %4985 }
 0xdd6   :  { %6104 = vbcast.lane.b32.xlu1 %v11257_v28, 264  ;;  %v11551_v22 = vpop.permute.xlu0 %6199 }
 0xdd7   :  { %13034 = vst [vmem:[#allocation46_spill] sm:$0xff] %v11551_v22  ;;  %v4896_v22 = vld [vmem:[#allocation2 + $0x8] sm:$0xff] }
 0xdd8   :  { %v11523_v62 = vpop.permute.xlu1 %5041 }
 0xdd9   :  { %13027 = vst [vmem:[#allocation73_spill] sm:$0xff] %v11523_v62  ;;  %v13053_v62 = vld [vmem:[#allocation24_spill] sm:$0xff] }
 0xdda   :  { %6115 = vbcast.lane.b32.xlu1 %v11274_v13, 264 }
 0xddc   :  { %v11528_v17 = vpop.permute.xlu1 %6959 }
 0xddd   :  { %13028 = vst [vmem:[#allocation72_spill] sm:$0xff] %v11528_v17 }
 0xdde   :  { %6126 = vbcast.lane.b32.xlu1 %v11286_v47, 264 }
 0xde0   :  { %v11533_v33 = vpop.permute.xlu1 %6979 }
 0xde1   :  { %13029 = vst [vmem:[#allocation43_spill] sm:$0xff] %v11533_v33  ;;  %v5313_v33 = vrot.slane %v11367_v27, 2 }
 0xde2   :  { %6137 = vbcast.lane.b32.xlu1 %v11297_v55, 264 }
 0xde4   :  { %v11536_v1 = vpop.permute.xlu1 %5053 }
 0xde5   :  { %13030 = vst [vmem:[#allocation17_spill] sm:$0xff] %v11536_v1 }
 0xde6   :  { %6581 = vbcast.lane.b32.xlu1 %v11182_v8, 280  ;;  %v11557_v8 = vpop.permute.xlu0 %6210 }
 0xde7   :  { %13036 = vst [vmem:[#allocation76_spill] sm:$0xff] %v11557_v8  ;;  %v4913_v8 = vld [vmem:[#allocation2 + $0x90] sm:$0xff] }
 0xde8   :  { %v11541_v32 = vpop.permute.xlu1 %6975 }
 0xde9   :  { %13031 = vst [vmem:[#allocation15_spill] sm:$0xff] %v11541_v32 }
 0xdea   :  { %6589 = vbcast.lane.b32.xlu1 %v11210_v53, 280  ;;  %v11564_v38 = vpop.permute.xlu0 %6221 }
 0xdeb   :  { %13037 = vst [vmem:[#allocation83_spill] sm:$0xff] %v11564_v38  ;;  %v4897_v38 = vld [vmem:[#allocation2 + $0x10] sm:$0xff] }
 0xdec   :  { %v11546_v18 = vpop.permute.xlu1 %6969 }
 0xded   :  { %13032 = vst [vmem:[#allocation32_spill] sm:$0xff] %v11546_v18  ;;  %v13045_v18 = vld [vmem:[#allocation52_spill] sm:$0xff] }
 0xdee   :  { %6573 = vbcast.lane.b32.xlu1 %v11077_v11, 280 }
 0xdf0   :  { %v11549_v39 = vpop.permute.xlu1 %6971 }
 0xdf1   :  { %13033 = vst [vmem:[#allocation81_spill] sm:$0xff] %v11549_v39 }
 0xdf2   :  { %6597 = vbcast.lane.b32.xlu1 %v11238_v58, 280  ;;  %v11570_v58 = vpop.permute.xlu0 %6641 }
 0xdf3   :  { %13038 = vst [vmem:[#allocation49_spill] sm:$0xff] %v11570_v58  ;;  %v4900_v58 = vld [vmem:[#allocation2 + $0x28] sm:$0xff] }
 0xdf4   :  { %v11554_v5 = vpop.permute.xlu1 %6973 }
 0xdf5   :  { %13035 = vst [vmem:[#allocation33_spill] sm:$0xff] %v11554_v5 }
 0xdf6   :  { %6605 = vbcast.lane.b32.xlu1 %v11257_v28, 280  ;;  %v6958_v28 = vrot.slane %v13006_v54, 7  ;;  %v11579_v39 = vpop.permute.xlu0 %6649 }
 0xdf7   :  { %13040 = vst [vmem:[#allocation79_spill] sm:$0xff] %v11579_v39 }
 0xdf8   :  { %v11559_v32 = vpop.permute.xlu1 %6148 }
 0xdfa   :  { %6613 = vbcast.lane.b32.xlu1 %v11274_v13, 280  ;;  %v5306_v13 = vrot.slane %v11355_v46, 2 }
 0xdfc   :  { %v11562_v53 = vpop.permute.xlu1 %6159 }
 0xdfe   :  { %6621 = vbcast.lane.b32.xlu1 %v11286_v47, 280 }
 0xe00   :  { %v11567_v11 = vpop.permute.xlu1 %6170 }
 0xe02   :  { %6629 = vbcast.lane.b32.xlu1 %v11297_v55, 280  ;;  %v11586_v55 = vpop.permute.xlu0 %6633 }
 0xe03   :  { %13042 = vst [vmem:[#allocation78_spill] sm:$0xff] %v11586_v55  ;;  %v4895_v55 = vld [vmem:[#allocation2] sm:$0xff] }
 0xe04   :  { %v11572_v51 = vpop.permute.xlu1 %6181 }
 0xe06   :  { %6989 = vrot.lane.b32.xlu1 %v6958_v28, %s8502_s24  ;;  %v11592_v28 = vpop.permute.xlu0 %6657 }
 0xe07   :  { %13044 = vst [vmem:[#allocation82_spill] sm:$0xff] %v11592_v28  ;;  %v13051_v28 = vld [vmem:[#allocation71_spill] sm:$0xff] }
 0xe08   :  { %v11577_v5 = vpop.permute.xlu1 %6192 }
 0xe09   :  { %13039 = vst [vmem:[#allocation31_spill] sm:$0xff] %v11577_v5  ;;  %v4901_v5 = vld [vmem:[#allocation2 + $0x30] sm:$0xff] }
 0xe0a   :  { %5323 = vrot.lane.b32.xlu1 %v5306_v13, %s8502_s24  ;;  %v7523_v13 = vld [vmem:[%s12545_s11 + $0x2] ss:$0 sm:$0xff]  ;;  %v11609_v50 = vpop.permute.xlu0 %6665 }
 0xe0b   :  { %v11602_v17 = vmul.f32 %v7523_v13, %v13045_v18  ;;  %13048 = vst [vmem:[#allocation7_spill] sm:$0xff] %v11609_v50  ;;  %v11613_v57 = vmul.f32 %v7523_v13, %v13049_v26  ;;  %v5318_v18 = vrot.slane %v11367_v27, 7 }
 0xe0c   :  { %v11584_v47 = vpop.permute.xlu1 %6203 }
 0xe0d   :  { %13041 = vst [vmem:[#allocation80_spill] sm:$0xff] %v11584_v47  ;;  %13046 = vst [vmem:[#allocation18_spill] sm:$0xff] %v11602_v17 }
 0xe0e   :  { %5319 = vrot.lane.b32.xlu1 %v11355_v46, %s8502_s24  ;;  %13050 = vst [vmem:[#allocation6_spill] sm:$0xff] %v11613_v57 }
 0xe10   :  { %v11590_v54 = vpop.permute.xlu1 %6214 }
 0xe11   :  { %13043 = vst [vmem:[#allocation27_spill] sm:$0xff] %v11590_v54  ;;  %v4899_v54 = vld [vmem:[#allocation2 + $0x20] sm:$0xff] }
 0xe12   :  { %5339 = vrot.lane.b32.xlu1 %v5313_v33, %s8502_s24  ;;  %v7564_v33 = vld [vmem:[%s12545_s11 + $0x3] ss:$0 sm:$0xff] }
 0xe13   :  { %v11616_v39 = vmul.f32 %v7564_v33, %v13051_v28  ;;  %v11626_v26 = vmul.f32 %v7564_v33, %v13053_v62  ;;  %v11637_v33 = vpop.permute.xlu0 %6673 }
 0xe14   :  { %v11607_v16 = vpop.permute.xlu1 %6225  ;;  %13056 = vst [vmem:[#allocation8_spill] sm:$0xff] %v11637_v33 }
 0xe15   :  { %13047 = vst [vmem:[#allocation75_spill] sm:$0xff] %v11607_v16  ;;  %13052 = vst [vmem:[#allocation9_spill] sm:$0xff] %v11616_v39  ;;  %v4916_v16 = vld [vmem:[#allocation2 + $0xa8] sm:$0xff] }
 0xe16   :  { %5335 = vrot.lane.b32.xlu1 %v11367_v27, %s8502_s24  ;;  %13054 = vst [vmem:[#allocation13_spill] sm:$0xff] %v11626_v26  ;;  %v5059_v27 = vmul.f32 %v11270_v63, %v4899_v54 }
 0xe18   :  { %v11634_v50 = vpop.permute.xlu1 %6645 }
 0xe19   :  { %13055 = vst [vmem:[#allocation14_spill] sm:$0xff] %v11634_v50 }
 0xe1a   :  { %5329 = vrot.lane.b32.xlu1 %v5309_v59, %s8502_s24  ;;  %v5311_v59 = vrot.slane %v11355_v46, 7  ;;  %v4898_v46 = vld [vmem:[#allocation2 + $0x18] sm:$0xff] }
 0xe1b   :  { %v5058_v13 = vmul.f32 %v11459_v23, %v4898_v46  ;;  %v5057_v23 = vmul.f32 %v11247_v24, %v4897_v38  ;;  %v5060_v46 = vmul.f32 %v11463_v48, %v4900_v58  ;;  %v5073_v24 = vmul.f32 %v11290_v10, %v4913_v8  ;;  %v4902_v58 = vld [vmem:[#allocation2 + $0x38] sm:$0xff]  ;;  %v11666_v10 = vpop.permute.xlu0 %6681  ;;  %v4911_v8 = vld [vmem:[#allocation2 + $0x80] sm:$0xff] }
 0xe1c   :  { %v5055_v48 = vmul.f32 %v11302_v7, %v4895_v55  ;;  %v5056_v38 = vmul.f32 %v11471_v44, %v4896_v22  ;;  %v5062_v63 = vmul.f32 %v11476_v2, %v4902_v58  ;;  %v11662_v54 = vpop.permute.xlu1 %6653  ;;  %13058 = vst [vmem:[#allocation12_spill] sm:$0xff] %v11666_v10  ;;  %v5061_v22 = vmul.f32 %v11313_v34, %v4901_v5 }
 0xe1d   :  { %v5097_v33 = vsel %vm321_vm10, %v5058_v13, 0.0  ;;  %13057 = vst [vmem:[#allocation11_spill] sm:$0xff] %v11662_v54  ;;  %v5096_v7 = vsel %vm321_vm10, %v5057_v23, 0.0  ;;  %v5106_v44 = vsel %vm321_vm10, %v5060_v46, 0.0  ;;  %v5105_v23 = vsel %vm321_vm10, %v5059_v27, 0.0 }
 0xe1e   :  { %5331 = vrot.lane.b32.xlu1 %v5310_v20, %s8502_s24  ;;  %v4915_v20 = vld [vmem:[#allocation2 + $0xa0] sm:$0xff]  ;;  %v5098_v2 = vadd.f32 %v5097_v33, %v5096_v7  ;;  %v5168_v46 = vsel %vm321_vm10, %v5073_v24, 0.0  ;;  %v5087_v34 = vsel %vm321_vm10, %v5055_v48, 0.0  ;;  %v5088_v5 = vsel %vm321_vm10, %v5056_v38, 0.0  ;;  %v4917_v24 = vld [vmem:[#allocation2 + $0xb0] sm:$0xff] }
 0xe1f   :  { %v5107_v55 = vadd.f32 %v5106_v44, %v5105_v23  ;;  %v5115_v33 = vsel %vm321_vm10, %v5062_v63, 0.0  ;;  %v5071_v7 = vmul.f32 %v11340_v30, %v4911_v8  ;;  %v5114_v58 = vsel %vm321_vm10, %v5061_v22, 0.0  ;;  %v11694_v50 = vpop.permute.xlu0 %6689 }
 0xe20   :  { %v5099_v38 = vrot.slane %v5098_v2, 4  ;;  %v5089_v44 = vadd.f32 %v5088_v5, %v5087_v34  ;;  %v11690_v23 = vpop.permute.xlu1 %6637  ;;  %13060 = vst [vmem:[#allocation23_spill] sm:$0xff] %v11694_v50  ;;  %v5116_v30 = vadd.f32 %v5115_v33, %v5114_v58  ;;  %v5077_v34 = vmul.f32 %v11351_v29, %v4917_v24  ;;  %v4919_v58 = vld [vmem:[#allocation2 + $0xc0] sm:$0xff] }
 0xe21   :  { %13059 = vst [vmem:[#allocation20_spill] sm:$0xff] %v11690_v23  ;;  %v4905_v23 = vld [vmem:[#allocation2 + $0x50] sm:$0xff] }
 0xe22   :  { %5333 = vrot.lane.b32.xlu1 %v5311_v59, %s8502_s24  ;;  %v4914_v59 = vld [vmem:[#allocation2 + $0x98] sm:$0xff]  ;;  %v5117_v39 = vrot.slane %v5116_v30, 4 }
 0xe23   :  { %v5074_v47 = vmul.f32 %v11466_v43, %v4914_v59  ;;  %v5076_v43 = vmul.f32 %v11479_v60, %v4916_v16  ;;  %v5075_v16 = vmul.f32 %v11322_v14, %v4915_v20  ;;  %v4904_v14 = vld [vmem:[#allocation2 + $0x48] sm:$0xff]  ;;  %v4903_v20 = vld [vmem:[#allocation2 + $0x40] sm:$0xff] }
 0xe24   :  { %v5064_v27 = vmul.f32 %v11484_v40, %v4904_v14  ;;  %v5063_v22 = vmul.f32 %v11331_v45, %v4903_v20  ;;  %v4918_v14 = vld [vmem:[#allocation2 + $0xb8] sm:$0xff]  ;;  %v5090_v45 = vrot.slane %v5089_v44, 4  ;;  %v5159_v20 = vsel %vm321_vm10, %v5071_v7, 0.0  ;;  %v11707_v26 = vpop.permute.xlu1 %6661 }
 0xe25   :  { %v5169_v60 = vsel %vm321_vm10, %v5074_v47, 0.0  ;;  %v5178_v47 = vsel %vm321_vm10, %v5076_v43, 0.0  ;;  %v5177_v63 = vsel %vm321_vm10, %v5075_v16, 0.0  ;;  %13061 = vst [vmem:[#allocation25_spill] sm:$0xff] %v11707_v26  ;;  %v4924_v26 = vld [vmem:[#allocation2 + $0xe8] sm:$0xff] }
 0xe26   :  { %5349 = vrot.lane.b32.xlu1 %v5318_v18, %s8502_s24  ;;  %v7557_v18 = vld [vmem:[%s12543_s9 + $0x3] ss:$0 sm:$0xff]  ;;  %v5170_v59 = vadd.f32 %v5169_v60, %v5168_v46  ;;  %v5179_v8 = vadd.f32 %v5178_v47, %v5177_v63  ;;  %v4912_v60 = vld [vmem:[#allocation2 + $0x88] sm:$0xff]  ;;  %v5100_v47 = vadd.f32 %v5099_v38, %v5098_v2 }
 0xe27   :  { %v5072_v46 = vmul.f32 %v11489_v36, %v4912_v60  ;;  %v5123_v36 = vsel %vm321_vm10, %v5063_v22, 0.0  ;;  %v5091_v22 = vadd.f32 %v5090_v45, %v5089_v44 }
 0xe28   :  { %v5171_v5 = vrot.slane %v5170_v59, 4  ;;  %v5180_v54 = vrot.slane %v5179_v8, 4 }
 0xe29   :  { %v5160_v24 = vsel %vm321_vm10, %v5072_v46, 0.0  ;;  %v5118_v46 = vadd.f32 %v5117_v39, %v5116_v30  ;;  %v5092_v30 = vrot.slane %v5091_v22, 2 }
 0xe2a   :  { %v5172_v38 = vadd.f32 %v5171_v5, %v5170_v59  ;;  %v4906_v59 = vld [vmem:[#allocation2 + $0x58] sm:$0xff] }
 0xe2b   :  { %v5066_v44 = vmul.f32 %v11497_v61, %v4906_v59 }
 0xe2c   :  { %v7882_v13 = vpop.f32.mrb[8].mxu1 }
 0xe2d   :  { %v11687_v1 = vadd.f32 %v7882_v13, %v7557_v18  ;;  %v5725_v48 = vpop.f32.mrb[9].mxu1  ;;  %v5108_v13 = vrot.slane %v5107_v55, 4 }
 0xe2e   :  { %v11692_v43 = vadd.f32 %v7557_v18, %v5725_v48  ;;  %v5124_v18 = vsel %vm321_vm10, %v5064_v27, 0.0  ;;  %v5078_v48 = vmul.f32 %v11492_v52, %v4918_v14  ;;  %v5079_v27 = vmul.f32 %v11383_v0, %v4919_v58  ;;  %v4922_v14 = vld [vmem:[#allocation2 + $0xd8] sm:$0xff] }
 0xe2f   :  { %v5741_v40 = vand.u32 2147483647, %v11687_v1  ;;  %v5125_v29 = vadd.f32 %v5124_v18, %v5123_v36  ;;  %v5109_v2 = vadd.f32 %v5108_v13, %v5107_v55  ;;  %v5186_v18 = vsel %vm321_vm10, %v5077_v34, 0.0 }
 0xe30   :  { %v5740_v16 = vand.u32 2147483647, %v11692_v43  ;;  %v5187_v7 = vsel %vm321_vm10, %v5078_v48, 0.0  ;;  %v5181_v36 = vadd.f32 %v5180_v54, %v5179_v8  ;;  %v5161_v0 = vadd.f32 %v5160_v24, %v5159_v20 }
 0xe31   :  { %v5743_v33 = vsub.f32 0.0, %v5741_v40  ;;  %v11709_v40 = vpop.permute.xlu0 %6056  ;;  %v5065_v58 = vmul.f32 %v11369_v19, %v4905_v23  ;;  %v5126_v50 = vrot.slane %v5125_v29, 4  ;;  %v5188_v55 = vadd.f32 %v5187_v7, %v5186_v18  ;;  %v11720_v23 = vpop.permute.xlu1 %6669 }
 0xe32   :  { %v5742_v63 = vsub.f32 0.0, %v5740_v16  ;;  %v4925_v16 = vld [vmem:[#allocation2 + $0xf0] sm:$0xff]  ;;  %v5082_v13 = vmul.f32 %v11422_v35, %v4922_v14  ;;  %v5195_v34 = vsel %vm321_vm10, %v5079_v27, 0.0  ;;  %v5173_v48 = vrot.slane %v5172_v38, 2  ;;  %13062 = vst [vmem:[#allocation58_spill] sm:$0xff] %v11720_v23  ;;  %v4920_v27 = vld [vmem:[#allocation2 + $0xc8] sm:$0xff] }
 0xe33   :  { %v5746_v60 = vmul.f32 1.442695, %v5743_v33  ;;  %v5101_v33 = vrot.slane %v5100_v47, 2  ;;  %v5085_v5 = vmul.f32 %v11487_v56, %v4925_v16  ;;  %v5110_v45 = vrot.slane %v5109_v2, 2 }
 0xe34   :  { %v5744_v52 = vmul.f32 1.442695, %v5742_v63  ;;  %v4908_v63 = vld [vmem:[#allocation2 + $0x68] sm:$0xff]  ;;  %v5084_v54 = vmul.f32 %v11474_v21, %v4924_v26  ;;  %v5162_v20 = vrot.slane %v5161_v0, 4  ;;  %v5132_v35 = vsel %vm321_vm10, %v5065_v58, 0.0 }
 0xe35   :  { %8398 = vpow2.f32 %v5746_v60  ;;  %v5068_v39 = vmul.f32 %v11410_v9, %v4908_v63  ;;  %v5102_v19 = vadd.f32 %v5101_v33, %v5100_v47  ;;  %v11722_v8 = vpop.permute.xlu0 %6067  ;;  %v5119_v56 = vrot.slane %v5118_v46, 2  ;;  %v4910_v9 = vld [vmem:[#allocation2 + $0x78] sm:$0xff] }
 0xe36   :  { %8400 = vpow2.f32 %v5744_v52  ;;  %v5182_v60 = vrot.slane %v5181_v36, 2  ;;  %v5127_v61 = vadd.f32 %v5126_v50, %v5125_v29  ;;  %v5189_v24 = vrot.slane %v5188_v55, 4 }
 0xe37   :  { %v11726_v52 = vsel %vm321_vm10, %v5082_v13, 0.0  ;;  %v11729_v21 = vsel %vm321_vm10, %v5085_v5, 0.0  ;;  %v5133_v26 = vsel %vm321_vm10, %v5066_v44, 0.0  ;;  %v5080_v47 = vmul.f32 %v11502_v6, %v4920_v27 }
 0xe38   :  { %13063 = vst [vmem:[#allocation63_spill] sm:$0xff] %v11729_v21  ;;  %v5174_v7 = vadd.f32 %v5173_v48, %v5172_v38  ;;  %v5111_v14 = vadd.f32 %v5110_v45, %v5109_v2  ;;  %v5142_v16 = vsel %vm321_vm10, %v5068_v39, 0.0  ;;  %v11735_v18 = vsel %vm321_vm10, %v5084_v54, 0.0  ;;  %v11743_v48 = vpop.permute.xlu1 %6677  ;;  %v4907_v39 = vld [vmem:[#allocation2 + $0x60] sm:$0xff] }
 0xe39   :  { %13064 = vst [vmem:[#allocation26_spill] sm:$0xff] %v11735_v18  ;;  %v5103_v50 = vrot.slane %v5102_v19, 1  ;;  %v5093_v29 = vadd.f32 %v5092_v30, %v5091_v22  ;;  %v5163_v58 = vadd.f32 %v5162_v20, %v5161_v0  ;;  %v5070_v63 = vmul.f32 %v11468_v25, %v4910_v9  ;;  %v11745_v45 = vpop.permute.xlu0 %6078  ;;  %v4921_v9 = vld [vmem:[#allocation2 + $0xd0] sm:$0xff] }
 0xe3a   :  { %v5120_v59 = vadd.f32 %v5119_v56, %v5118_v46  ;;  %v5183_v13 = vadd.f32 %v5182_v60, %v5181_v36  ;;  %v5190_v44 = vadd.f32 %v5189_v24, %v5188_v55  ;;  %v5134_v6 = vadd.f32 %v5133_v26, %v5132_v35 }
 0xe3b   :  { %v5128_v38 = vrot.slane %v5127_v61, 2  ;;  %v5196_v22 = vsel %vm321_vm10, %v5080_v47, 0.0  ;;  %v5175_v54 = vrot.slane %v5174_v7, 1  ;;  %v5112_v25 = vrot.slane %v5111_v14, 1 }
 0xe3c   :  { %v5067_v46 = vmul.f32 %v11505_v4, %v4907_v39  ;;  %v5104_v36 = vadd.f32 %v5103_v50, %v5102_v19  ;;  %v5094_v55 = vrot.slane %v5093_v29, 1  ;;  %v5121_v30 = vrot.slane %v5120_v59, 1 }
 0xe3d   :  { %v5184_v20 = vrot.slane %v5183_v13, 1  ;;  %v5164_v35 = vrot.slane %v5163_v58, 2  ;;  %v5135_v56 = vrot.slane %v5134_v6, 4  ;;  %v5197_v60 = vadd.f32 %v5196_v22, %v5195_v34  ;;  %v11759_v34 = vpop.permute.xlu0 %6089 }
 0xe3e   :  { %v5129_v24 = vadd.f32 %v5128_v38, %v5127_v61  ;;  %v5191_v27 = vrot.slane %v5190_v44, 2  ;;  %v11751_v26 = vsel %vm321_vm10, %v5070_v63, 0.0  ;;  %v5176_v47 = vadd.f32 %v5175_v54, %v5174_v7 }
 0xe3f   :  { %v11737_v33 = vpop.eup %8398  ;;  %v5113_v21 = vadd.f32 %v5112_v25, %v5111_v14  ;;  %v5141_v4 = vsel %vm321_vm10, %v5067_v46, 0.0  ;;  %v5081_v19 = vmul.f32 %v11510_v49, %v4921_v9  ;;  %v5095_v39 = vadd.f32 %v5094_v55, %v5093_v29 }
 0xe40   :  { %v11740_v5 = vpop.eup %8400  ;;  %v5757_v2 = vadd.f32 1.0, %v11737_v33  ;;  %v5760_v23 = vmul.f32 -0.5, %v11737_v33  ;;  %v13066_v61 = vrot.slane %v11602_v17, 1  ;;  %v5122_v63 = vadd.f32 %v5121_v30, %v5120_v59 }
 0xe41   :  { %v5748_v0 = vadd.f32 1.0, %v11740_v5  ;;  %v5751_v50 = vmul.f32 -0.5, %v11740_v5  ;;  %v5185_v7 = vadd.f32 %v5184_v20, %v5183_v13  ;;  %v5165_v22 = vadd.f32 %v5164_v35, %v5163_v58 }
 0xe42   :  { %8402 = vlog2.f32 %v5757_v2  ;;  %v11757_v2 = vpop.permute.xlu1 %6685  ;;  %v11763_v38 = vadd.f32 %v13066_v61, %v5104_v36  ;;  %v5136_v54 = vadd.f32 %v5135_v56, %v5134_v6  ;;  %v5198_v14 = vrot.slane %v5197_v60, 4 }
 0xe43   :  { %8404 = vlog2.f32 %v5748_v0  ;;  %13065 = vst [vmem:[#allocation57_spill] sm:$0xff] %v11757_v2  ;;  %v5130_v0 = vrot.slane %v5129_v24, 1  ;;  %v5192_v25 = vadd.f32 %v5191_v27, %v5190_v44  ;;  %v5143_v46 = vadd.f32 %v5142_v16, %v5141_v4 }
 0xe44   :  { %13067 = vst [vmem:[#allocation64_spill] sm:$0xff] %v11763_v38  ;;  %v13068_v49 = vrot.slane %v11613_v57, 1  ;;  %v5761_v18 = vadd.f32 1.0, %v5760_v23  ;;  %v13070_v29 = vrot.slane %v11602_v17, 2  ;;  %v5204_v36 = vsel %vm321_vm10, %v5081_v19, 0.0 }
 0xe45   :  { %v5763_v59 = vand.u32 2147483647, %v11737_v33  ;;  %v5752_v13 = vadd.f32 1.0, %v5751_v50  ;;  %v11776_v58 = vadd.f32 %v11602_v17, %v5095_v39  ;;  %v13073_v44 = vrot.slane %v11602_v17, 3  ;;  %v11789_v50 = vpop.permute.xlu0 %6100 }
 0xe46   :  { %v11767_v9 = vadd.f32 %v13068_v49, %v5176_v47  ;;  %v11771_v55 = vadd.f32 %v13070_v29, %v5113_v21  ;;  %v5754_v6 = vand.u32 2147483647, %v11740_v5  ;;  %v13075_v23 = vrot.slane %v11613_v57, 2  ;;  %v11787_v47 = vpop.permute.xlu1 %6693 }
 0xe47   :  { %13072 = vst [vmem:[#allocation36_spill] sm:$0xff] %v11776_v58  ;;  %v11780_v16 = vadd.f32 %v13073_v44, %v5122_v63  ;;  %v5166_v21 = vrot.slane %v5165_v22, 1  ;;  %v5199_v35 = vadd.f32 %v5198_v14, %v5197_v60  ;;  %v5131_v56 = vadd.f32 %v5130_v0, %v5129_v24  ;;  %13077 = vst [vmem:[#allocation48_spill] sm:$0xff] %v11787_v47 }
 0xe48   :  { %13069 = vst [vmem:[#allocation34_spill] sm:$0xff] %v11767_v9  ;;  %13071 = vst [vmem:[#allocation56_spill] sm:$0xff] %v11771_v55  ;;  %v11785_v30 = vadd.f32 %v13075_v23, %v5185_v7  ;;  %v5193_v27 = vrot.slane %v5192_v25, 1  ;;  %v5137_v4 = vrot.slane %v5136_v54, 2  ;;  %v5144_v39 = vrot.slane %v5143_v46, 4 }
 0xe49   :  { %13074 = vst [vmem:[#allocation45_spill] sm:$0xff] %v11780_v16  ;;  %v5206_v61 = vadd.f32 %v11726_v52, %v5204_v36  ;;  %v5762_v49 = vmul.f32 %v11737_v33, %v5761_v18  ;;  %v5735_v7 = vmax.f32 %v11687_v1, 0.0  ;;  %vm5764_vm4 = vcmp.lt.f32.partialorder %v5763_v59, 0.0004427343 }
 0xe4a   :  { %13076 = vst [vmem:[#allocation29_spill] sm:$0xff] %v11785_v30  ;;  %v5753_v60 = vmul.f32 %v11740_v5, %v5752_v13  ;;  %v5734_v14 = vmax.f32 %v11692_v43, 0.0  ;;  %vm5755_vm5 = vcmp.lt.f32.partialorder %v5754_v6, 0.0004427343  ;;  %v5167_v0 = vadd.f32 %v5166_v21, %v5165_v22  ;;  %v11809_v22 = vpop.permute.xlu1 %6060 }
 0xe4b   :  { %v5194_v44 = vadd.f32 %v5193_v27, %v5192_v25  ;;  %v11796_v58 = vadd.f32 %v5137_v4, %v5136_v54  ;;  %v13079_v52 = vrot.slane %v11602_v17, 4  ;;  %v5200_v18 = vrot.slane %v5199_v35, 2  ;;  %v11811_v54 = vpop.permute.xlu0 %6111  ;;  %v4909_v25 = vld [vmem:[#allocation2 + $0x70] sm:$0xff] }
 0xe4c   :  { %v8403_v20 = vpop.eup %8402  ;;  %vm5737_vm6 = vcmp.ne.f32.partialorder %v11687_v1, %v11687_v1  ;;  %v11804_v5 = vadd.f32 %v5144_v39, %v5143_v46  ;;  %v5207_v59 = vrot.slane %v5206_v61, 4  ;;  %vm5736_vm7 = vcmp.ne.f32.partialorder %v11692_v43, %v11692_v43  ;;  %13081 = vst [vmem:[#allocation59_spill] sm:$0xff] %v11811_v54 }
 0xe4d   :  { %v8405_v19 = vpop.eup %8404  ;;  %v5759_v63 = vmul.f32 0.6931472, %v8403_v20  ;;  %13078 = vst [vmem:[#allocation19_spill] sm:$0xff] %v11796_v58  ;;  %v11800_v36 = vadd.f32 %v13079_v52, %v5131_v56  ;;  %v5069_v46 = vmul.f32 %v11520_v31, %v4909_v25 }
 0xe4e   :  { %v5750_v29 = vmul.f32 0.6931472, %v8405_v19  ;;  %v11825_v19 = vadd.f32 %v5200_v18, %v5199_v35  ;;  %v11847_v18 = vpop.permute.xlu1 %6071 }
 0xe4f   :  { %v5765_v24 = vsel %vm5764_vm4, %v5762_v49, %v5759_v63  ;;  %13080 = vst [vmem:[#allocation16_spill] sm:$0xff] %v11800_v36  ;;  %v11829_v49 = vadd.f32 %v5207_v59, %v5206_v61  ;;  %v11843_v61 = vld [vmem:[%s12544_s10 + $0x30] sm:$0xff]  ;;  %v11854_v59 = vld [vmem:[%s12544_s10 + $0x38] sm:$0xff]  ;;  %vm13190_vm4 = vmmov %vm13186_vm2 }
 0xe50   :  { %v5767_v23 = vadd.f32 %v5765_v24, %v5735_v7  ;;  %v5756_v30 = vsel %vm5755_vm5, %v5753_v60, %v5750_v29  ;;  %13085 = vst [vmem:[#allocation60_spill] sm:$0xff] %v11825_v19 }
 0xe51   :  { %v5766_v33 = vadd.f32 %v5756_v30, %v5734_v14  ;;  %v11816_v30 = vadd.f32 %v11613_v57, %v5167_v0  ;;  %v11838_v14 = vsel %vm321_vm10, %v5069_v46, 0.0  ;;  %v13086_v0 = vld [vmem:[#allocation10_spill] sm:$0xff] }
 0xe52   :  { %v5769_v13 = vsel %vm5737_vm6, %v11687_v1, %v5767_v23  ;;  %v13083_v1 = vrot.slane %v11613_v57, 3 }
 0xe53   :  { %v5826_v6 = vcombine.high %v5769_v13, %v5769_v13  ;;  %v5833_v21 = vrot.slane %v5769_v13, %v12831_v37  ;;  %v5768_v20 = vsel %vm5736_vm7, %v11692_v43, %v5766_v33  ;;  %13082 = vst [vmem:[#allocation30_spill] sm:$0xff] %v11816_v30  ;;  %v5774_v27 = vmul.f32 %v5769_v13, %v13053_v62  ;;  %v11849_v33 = vpop.permute.xlu0 %6122 }
 0xe54   :  { %v11821_v56 = vadd.f32 %v13083_v1, %v5194_v44  ;;  %v5777_v7 = vcombine.high %v5768_v20, %v5768_v20  ;;  %v11832_v31 = vrot.slane %v5768_v20, %v12831_v37  ;;  %13087 = vst [vmem:[#allocation47_spill] sm:$0xff] %v11849_v33 }
 0xe55   :  { %v5840_v39 = vrot.slane %v5826_v6, %v12831_v37  ;;  %v5841_v63 = vcombine.high %v5833_v21, %v5833_v21  ;;  %v5849_v43 = vrot.slane %v5833_v21, %v12831_v37  ;;  %v6278_v23 = vcombine.high %v5774_v27, %v5774_v27 }
 0xe56   :  { %13084 = vst [vmem:[#allocation44_spill] sm:$0xff] %v11821_v56  ;;  %v6285_v52 = vrot.slane %v5774_v27, %v12831_v37  ;;  %v11860_v1 = vrot.slane %v5777_v7, %v12831_v37  ;;  %v11875_v29 = vrot.slane %v11832_v31, %v12831_v37  ;;  %v11884_v56 = vpop.permute.xlu1 %6082 }
 0xe57   :  { %v5842_v60 = vcombine.high %v5840_v39, %v5840_v39  ;;  %v5856_v62 = vrot.slane %v5840_v39, %v12831_v37  ;;  %v5863_v24 = vrot.slane %v5841_v63, %v12831_v37  ;;  %v5871_v35 = vcombine.high %v5849_v43, %v5849_v43  ;;  %v11886_v30 = vpop.permute.xlu0 %6133 }
 0xe58   :  { %v5910_v44 = vrot.slane %v5849_v43, %v13086_v0  ;;  %v11865_v39 = vmul.f32 %v5768_v20, %v13051_v28  ;;  %v6293_v27 = vcombine.high %v6285_v52, %v6285_v52  ;;  %13088 = vst [vmem:[#allocation51_spill] sm:$0xff] %v11886_v30 }
 0xe59   :  { %v5870_v13 = vrot.slane %v5842_v60, %v12831_v37  ;;  %v5872_v25 = vcombine.high %v5856_v62, %v5856_v62  ;;  %v5873_v6 = vcombine.high %v5863_v24, %v5863_v24  ;;  %v5914_v21 = vrot.slane %v5863_v24, %v13086_v0 }
 0xe5a   :  { %v5918_v46 = vrot.slane %v5871_v35, %v13086_v0  ;;  %v5926_v60 = vrot.slane %v5856_v62, %v13086_v0  ;;  %v5971_v4 = vmul.f32 %v11843_v61, %v5910_v44  ;;  %v5972_v35 = vmul.f32 %v11854_v59, %v5910_v44 }
 0xe5b   :  { %v5874_v63 = vcombine.high %v5870_v13, %v5870_v13  ;;  %v5922_v43 = vrot.slane %v5873_v6, %v13086_v0  ;;  %v5930_v24 = vrot.slane %v5870_v13, %v13086_v0  ;;  %v5973_v7 = vmul.f32 %v11843_v61, %v5914_v21  ;;  %v11900_v10 = vpop.permute.xlu0 %6577 }
 0xe5c   :  { %v5934_v28 = vrot.slane %v5872_v25, %v13086_v0  ;;  %v5974_v20 = vmul.f32 %v11854_v59, %v5914_v21  ;;  %v6292_v6 = vrot.slane %v6278_v23, %v12831_v37  ;;  %v5975_v57 = vmul.f32 %v11843_v61, %v5918_v46  ;;  %13089 = vst [vmem:[#allocation62_spill] sm:$0xff] %v11900_v10 }
 0xe5d   :  { %v5938_v62 = vrot.slane %v5874_v63, %v13086_v0  ;;  %v5976_v13 = vmul.f32 %v11854_v59, %v5918_v46  ;;  %v6301_v44 = vrot.slane %v6285_v52, %v12831_v37  ;;  %v5977_v55 = vmul.f32 %v11843_v61, %v5922_v43 }
 0xe5e   :  { %v5978_v25 = vmul.f32 %v11854_v59, %v5922_v43  ;;  %v5979_v21 = vmul.f32 %v11843_v61, %v5926_v60  ;;  %v6019_v23 = vmul.f32 1.442695, %v5971_v4  ;;  %v5980_v36 = vmul.f32 %v11854_v59, %v5926_v60 }
 0xe5f   :  { %v5981_v63 = vmul.f32 %v11843_v61, %v5930_v24  ;;  %v6021_v16 = vmul.f32 1.442695, %v5972_v35  ;;  %v6023_v9 = vmul.f32 1.442695, %v5973_v7  ;;  %v5982_v46 = vmul.f32 %v11854_v59, %v5930_v24  ;;  %v11898_v24 = vpop.permute.xlu1 %6093 }
 0xe60   :  { %v5983_v52 = vmul.f32 %v11843_v61, %v5934_v28  ;;  %v6025_v47 = vmul.f32 1.442695, %v5974_v20  ;;  %v6294_v17 = vcombine.high %v6292_v6, %v6292_v6  ;;  %v5984_v30 = vmul.f32 %v11854_v59, %v5934_v28 }
 0xe61   :  { %v5985_v38 = vmul.f32 %v11843_v61, %v5938_v62  ;;  %8406 = vpow2.f32 %v6019_v23  ;;  %v6027_v43 = vmul.f32 1.442695, %v5975_v57  ;;  %v5986_v4 = vmul.f32 %v11854_v59, %v5938_v62 }
 0xe62   :  { %8408 = vpow2.f32 %v6021_v16  ;;  %v6029_v60 = vmul.f32 1.442695, %v5976_v13  ;;  %v6031_v2 = vmul.f32 1.442695, %v5977_v55  ;;  %v6033_v35 = vmul.f32 1.442695, %v5978_v25 }
 0xe63   :  { %8410 = vpow2.f32 %v6023_v9  ;;  %v6035_v7 = vmul.f32 1.442695, %v5979_v21  ;;  %v6037_v33 = vmul.f32 1.442695, %v5980_v36  ;;  %v6308_v28 = vrot.slane %v6292_v6, %v12831_v37 }
 0xe64   :  { %8412 = vpow2.f32 %v6025_v47  ;;  %v6315_v20 = vrot.slane %v6293_v27, %v12831_v37  ;;  %v6322_v57 = vrot.slane %v6294_v17, %v12831_v37  ;;  %v6039_v62 = vmul.f32 1.442695, %v5981_v63 }
 0xe65   :  { %8414 = vpow2.f32 %v6027_v43  ;;  %v6041_v16 = vmul.f32 1.442695, %v5982_v46  ;;  %v6323_v13 = vcombine.high %v6301_v44, %v6301_v44  ;;  %v6043_v9 = vmul.f32 1.442695, %v5983_v52  ;;  %v11911_v52 = vpop.permute.xlu1 %6104 }
 0xe66   :  { %8416 = vpow2.f32 %v6029_v60  ;;  %v6324_v55 = vcombine.high %v6308_v28, %v6308_v28  ;;  %v6325_v25 = vcombine.high %v6315_v20, %v6315_v20  ;;  %v6045_v36 = vmul.f32 1.442695, %v5984_v30 }
 0xe67   :  { %8418 = vpow2.f32 %v6031_v2  ;;  %v6326_v21 = vcombine.high %v6322_v57, %v6322_v57  ;;  %v6362_v23 = vrot.slane %v6301_v44, %v13086_v0  ;;  %v6047_v47 = vmul.f32 1.442695, %v5985_v38  ;;  %v11913_v2 = vpop.permute.xlu0 %6585 }
 0xe68   :  { %8420 = vpow2.f32 %v6033_v35  ;;  %v6366_v6 = vrot.slane %v6315_v20, %v13086_v0  ;;  %v6370_v27 = vrot.slane %v6323_v13, %v13086_v0  ;;  %v6049_v17 = vmul.f32 1.442695, %v5986_v4  ;;  %13090 = vst [vmem:[#allocation39_spill] sm:$0xff] %v11913_v2 }
 0xe69   :  { %8422 = vpow2.f32 %v6035_v7  ;;  %v6374_v63 = vrot.slane %v6325_v25, %v13086_v0  ;;  %v6378_v30 = vrot.slane %v6308_v28, %v13086_v0  ;;  %v6382_v38 = vrot.slane %v6322_v57, %v13086_v0 }
 0xe6a   :  { %8424 = vpow2.f32 %v6037_v33  ;;  %v6386_v44 = vrot.slane %v6324_v55, %v13086_v0  ;;  %v11919_v4 = vrot.slane %v6326_v21, %v13086_v0  ;;  %v6423_v60 = vmul.f32 %v6362_v23, %v11518_v41  ;;  %v11956_v21 = vpop.permute.xlu1 %6115 }
 0xe6b   :  { %v8407_v43 = vpop.eup %8406  ;;  %8426 = vpow2.f32 %v6039_v62  ;;  %v6424_v35 = vmul.f32 %v6362_v23, %v11559_v32  ;;  %v6425_v20 = vmul.f32 %v6366_v6, %v11525_v15  ;;  %v6426_v33 = vmul.f32 %v6366_v6, %v11562_v53  ;;  %v13091_v15 = vld [vmem:[#allocation31_spill] sm:$0xff]  ;;  %13094 = vst [vmem:[#allocation65_spill] sm:$0xff] %v11956_v21  ;;  %v11958_v6 = vpop.permute.xlu0 %6569 }
 0xe6c   :  { %v8409_v7 = vpop.eup %8408  ;;  %8428 = vpow2.f32 %v6041_v16  ;;  %v11926_v28 = vmul.f32 %v6370_v27, %v11531_v3  ;;  %v11929_v62 = vmul.f32 %v6370_v27, %v11567_v11  ;;  %v11932_v13 = vmul.f32 %v6374_v63, %v11538_v42  ;;  %v13092_v3 = vld [vmem:[#allocation46_spill] sm:$0xff]  ;;  %13095 = vst [vmem:[#allocation53_spill] sm:$0xff] %v11958_v6  ;;  %v13096_v27 = vld [vmem:[#allocation80_spill] sm:$0xff] }
 0xe6d   :  { %v8411_v57 = vpop.eup %8410  ;;  %8430 = vpow2.f32 %v6043_v9  ;;  %v11935_v41 = vmul.f32 %v6374_v63, %v11572_v51  ;;  %v11938_v16 = vmul.f32 %v6378_v30, %v11544_v12  ;;  %v11941_v53 = vmul.f32 %v6378_v30, %v13091_v15  ;;  %v13097_v15 = vld [vmem:[#allocation76_spill] sm:$0xff] }
 0xe6e   :  { %v8413_v32 = vpop.eup %8412  ;;  %v11944_v55 = vmul.f32 %v6382_v38, %v13092_v3  ;;  %v6441_v9 = vmul.f32 0.0, %v8407_v43  ;;  %8432 = vpow2.f32 %v6045_v36  ;;  %v6442_v11 = vmul.f32 0.0, %v8409_v7  ;;  %v13098_v3 = vld [vmem:[#allocation27_spill] sm:$0xff]  ;;  %v11992_v58 = vpop.permute.xlu1 %6126 }
 0xe6f   :  { %v8415_v25 = vpop.eup %8414  ;;  %v11948_v42 = vrot.slane %v11860_v1, %v12831_v37  ;;  %v13093_v51 = vcombine.high %v11832_v31, %v11832_v31  ;;  %v11961_v63 = vmul.f32 %v6382_v38, %v13096_v27  ;;  %v5822_v30 = vcombine.high %v11875_v29, %v11875_v29  ;;  %13099 = vst [vmem:[#allocation35_spill] sm:$0xff] %v11992_v58 }
 0xe70   :  { %v8417_v23 = vpop.eup %8416  ;;  %v6445_v36 = vadd.f32 %v6441_v9, %v6423_v60  ;;  %v5878_v43 = vrot.slane %v11875_v29, %v13086_v0  ;;  %v11968_v31 = vmul.f32 %v6386_v44, %v13097_v15  ;;  %v6446_v46 = vadd.f32 %v6442_v11, %v6424_v35 }
 0xe71   :  { %v11954_v12 = vrot.slane %v13093_v51, %v12831_v37  ;;  %v8419_v7 = vpop.eup %8418  ;;  %v11971_v51 = vmul.f32 %v6386_v44, %v13098_v3  ;;  %8434 = vpow2.f32 %v6047_v47  ;;  %v11978_v9 = vrot.slane %v11948_v42, %v13086_v0 }
 0xe72   :  { %v8421_v38 = vpop.eup %8420  ;;  %6449 = vst.msk [vmem:[#allocation2 + $0x80] sm:$0xff] %vm321_vm10, %v6445_v36  ;;  %v6453_v60 = vmul.f32 %v8411_v57, %v6445_v36  ;;  %v5886_v29 = vrot.slane %v5822_v30, %v13086_v0  ;;  %6450 = vst.msk [vmem:[#allocation2 + $0x88] sm:$0xff] %vm321_vm10, %v6446_v46  ;;  %v6454_v44 = vmul.f32 %v8413_v32, %v6446_v46  ;;  %8436 = vpow2.f32 %v6049_v17 }
 0xe73   :  { %v5882_v6 = vrot.slane %v11954_v12, %v13086_v0  ;;  %v8423_v27 = vpop.eup %8422  ;;  %v5955_v11 = vmul.f32 %v11843_v61, %v5878_v43  ;;  %v5956_v15 = vmul.f32 %v11854_v59, %v5878_v43  ;;  %v6236_v36 = vrot.slane %v11865_v39, %v12831_v37  ;;  %v11996_v43 = vpop.permute.xlu0 %6593 }
 0xe74   :  { %v8425_v47 = vpop.eup %8424  ;;  %v6457_v3 = vadd.f32 %v6453_v60, %v6425_v20  ;;  %v5959_v57 = vmul.f32 %v11843_v61, %v5886_v29  ;;  %v6458_v30 = vadd.f32 %v6454_v44, %v6426_v33  ;;  %v5824_v46 = vcombine.high %v11954_v12, %v11954_v12  ;;  %13100 = vst [vmem:[#allocation21_spill] sm:$0xff] %v11996_v43 }
 0xe75   :  { %v5957_v35 = vmul.f32 %v11843_v61, %v5882_v6  ;;  %v11988_v2 = vpop.eup %8426  ;;  %v5987_v32 = vmul.f32 1.442695, %v5955_v11  ;;  %v5989_v10 = vmul.f32 1.442695, %v5956_v15  ;;  %v5963_v20 = vmul.f32 %v11843_v61, %v11978_v9 }
 0xe76   :  { %v11994_v19 = vpop.eup %8428  ;;  %6461 = vst.msk [vmem:[#allocation2 + $0x90] sm:$0xff] %vm321_vm10, %v6457_v3  ;;  %v6465_v17 = vmul.f32 %v8415_v25, %v6457_v3  ;;  %v12002_v33 = vrot.slane %v6236_v36, %v12831_v37  ;;  %6462 = vst.msk [vmem:[#allocation2 + $0x98] sm:$0xff] %vm321_vm10, %v6458_v30  ;;  %v6466_v12 = vmul.f32 %v8417_v23, %v6458_v30  ;;  %v5995_v25 = vmul.f32 1.442695, %v5959_v57  ;;  %v13101_v30 = vld [vmem:[#allocation83_spill] sm:$0xff] }
 0xe77   :  { %v5991_v60 = vmul.f32 1.442695, %v5957_v35  ;;  %v12004_v44 = vpop.eup %8430  ;;  %8438 = vpow2.f32 %v5987_v32  ;;  %v5958_v11 = vmul.f32 %v11854_v59, %v5882_v6  ;;  %v6244_v15 = vcombine.high %v6236_v36, %v6236_v36 }
 0xe78   :  { %v6469_v43 = vadd.f32 %v6465_v17, %v11926_v28  ;;  %8440 = vpow2.f32 %v5989_v10  ;;  %v5960_v3 = vmul.f32 %v11854_v59, %v5886_v29  ;;  %v12010_v58 = vpop.eup %8432  ;;  %v6470_v35 = vadd.f32 %v6466_v12, %v11929_v62  ;;  %v13102_v28 = vld [vmem:[#allocation75_spill] sm:$0xff]  ;;  %v12036_v17 = vpop.permute.xlu1 %6137 }
 0xe79   :  { %v6330_v21 = vrot.slane %v12002_v33, %v13086_v0  ;;  %v5993_v54 = vmul.f32 1.442695, %v5958_v11  ;;  %v12016_v23 = vrot.slane %v6244_v15, %v12831_v37  ;;  %v12020_v6 = vmul.f32 %v11919_v4, %v13101_v30  ;;  %v12040_v12 = vpop.permute.xlu0 %6601 }
 0xe7a   :  { %v12024_v10 = vmul.f32 %v11919_v4, %v13102_v28  ;;  %6473 = vst.msk [vmem:[#allocation2 + $0xa0] sm:$0xff] %vm321_vm10, %v6469_v43  ;;  %v6477_v29 = vmul.f32 %v8419_v7, %v6469_v43  ;;  %8442 = vpow2.f32 %v5991_v60  ;;  %6474 = vst.msk [vmem:[#allocation2 + $0xa8] sm:$0xff] %vm321_vm10, %v6470_v35  ;;  %v6478_v62 = vmul.f32 %v8421_v38, %v6470_v35 }
 0xe7b   :  { %v13103_v57 = vcombine.high %v11860_v1, %v11860_v1  ;;  %v5823_v32 = vcombine.high %v11948_v42, %v11948_v42  ;;  %8444 = vpow2.f32 %v5993_v54  ;;  %v12038_v4 = vpop.eup %8434  ;;  %v6334_v38 = vrot.slane %v12016_v23, %v13086_v0 }
 0xe7c   :  { %v6481_v7 = vadd.f32 %v6477_v29, %v11932_v13  ;;  %v5997_v43 = vmul.f32 1.442695, %v5960_v3  ;;  %v5890_v1 = vrot.slane %v5824_v46, %v13086_v0  ;;  %v6482_v60 = vadd.f32 %v6478_v62, %v11935_v41  ;;  %v12048_v42 = vpop.eup %8436 }
 0xe7d   :  { %v12032_v36 = vrot.slane %v13103_v57, %v12831_v37  ;;  %v6003_v11 = vmul.f32 1.442695, %v5963_v20  ;;  %8446 = vpow2.f32 %v5995_v25  ;;  %v6407_v54 = vmul.f32 %v6330_v21, %v11709_v40 }
 0xe7e   :  { %6485 = vst.msk [vmem:[#allocation2 + $0xb0] sm:$0xff] %vm321_vm10, %v6481_v7  ;;  %v6489_v15 = vmul.f32 %v8423_v27, %v6481_v7  ;;  %v6274_v13 = vcombine.high %v12002_v33, %v12002_v33  ;;  %v5961_v35 = vmul.f32 %v11843_v61, %v5890_v1  ;;  %v5962_v3 = vmul.f32 %v11854_v59, %v5890_v1 }
 0xe7f   :  { %6486 = vst.msk [vmem:[#allocation2 + $0xb8] sm:$0xff] %vm321_vm10, %v6482_v60  ;;  %v6490_v46 = vmul.f32 %v8425_v47, %v6482_v60  ;;  %v6408_v41 = vmul.f32 %v6330_v21, %v11809_v22  ;;  %v6276_v40 = vcombine.high %v12016_v23, %v12016_v23  ;;  %v5964_v20 = vmul.f32 %v11854_v59, %v11978_v9  ;;  %v12065_v22 = vpop.permute.xlu1 %6581  ;;  %v12067_v23 = vpop.permute.xlu0 %6609 }
 0xe80   :  { %v6493_v27 = vadd.f32 %v6489_v15, %v11938_v16  ;;  %v6409_v25 = vmul.f32 %v6334_v38, %v11722_v8  ;;  %8448 = vpow2.f32 %v5997_v43  ;;  %v5999_v33 = vmul.f32 1.442695, %v5961_v35 }
 0xe81   :  { %v8439_v30 = vpop.eup %8438  ;;  %v6494_v28 = vadd.f32 %v6490_v46, %v11941_v53  ;;  %v6410_v29 = vmul.f32 %v6334_v38, %v11847_v18  ;;  %v6001_v47 = vmul.f32 1.442695, %v5962_v3  ;;  %8450 = vpow2.f32 %v6003_v11 }
 0xe82   :  { %v8441_v21 = vpop.eup %8440  ;;  %6497 = vst.msk [vmem:[#allocation2 + $0xc0] sm:$0xff] %vm321_vm10, %v6493_v27  ;;  %v6501_v16 = vmul.f32 %v11988_v2, %v6493_v27  ;;  %v6439_v9 = vmul.f32 0.0, %v8439_v30  ;;  %v6338_v8 = vrot.slane %v6274_v13, %v13086_v0  ;;  %8452 = vpow2.f32 %v5999_v33  ;;  %v12096_v30 = vld [vmem:[#allocation2 + $0xe0] sm:$0xff] }
 0xe83   :  { %6498 = vst.msk [vmem:[#allocation2 + $0xc8] sm:$0xff] %vm321_vm10, %v6494_v28  ;;  %v6502_v53 = vmul.f32 %v11994_v19, %v6494_v28  ;;  %v6440_v18 = vmul.f32 0.0, %v8441_v21  ;;  %v6005_v62 = vmul.f32 1.442695, %v5964_v20  ;;  %v6229_v57 = vcombine.high %v11865_v39, %v11865_v39  ;;  %v12091_v46 = vpop.permute.xlu1 %6589 }
 0xe84   :  { %v8443_v7 = vpop.eup %8442  ;;  %v6505_v38 = vadd.f32 %v6501_v16, %v11944_v55  ;;  %v6443_v43 = vadd.f32 %v6439_v9, %v6407_v54  ;;  %8454 = vpow2.f32 %v6001_v47  ;;  %v5898_v2 = vrot.slane %v12032_v36, %v13086_v0 }
 0xe85   :  { %v8445_v1 = vpop.eup %8444  ;;  %v6506_v60 = vadd.f32 %v6502_v53, %v11961_v63  ;;  %v6444_v11 = vadd.f32 %v6440_v18, %v6408_v41  ;;  %v6243_v15 = vrot.slane %v6229_v57, %v12831_v37  ;;  %v5902_v19 = vrot.slane %v5823_v32, %v13086_v0 }
 0xe86   :  { %6509 = vst.msk [vmem:[#allocation2 + $0xd0] sm:$0xff] %vm321_vm10, %v6505_v38  ;;  %v6513_v39 = vmul.f32 %v12004_v44, %v6505_v38  ;;  %6447 = vst.msk [vmem:[#allocation2] sm:$0xff] %vm321_vm10, %v6443_v43  ;;  %v6451_v55 = vmul.f32 %v8443_v7, %v6443_v43  ;;  %v5965_v54 = vmul.f32 %v11843_v61, %v5898_v2  ;;  %8456 = vpow2.f32 %v6005_v62  ;;  %v12093_v44 = vpop.permute.xlu0 %6617 }
 0xe87   :  { %v5966_v13 = vmul.f32 %v11854_v59, %v5898_v2  ;;  %v8447_v35 = vpop.eup %8446  ;;  %6510 = vst.msk [vmem:[#allocation2 + $0xd8] sm:$0xff] %vm321_vm10, %v6506_v60  ;;  %v6514_v63 = vmul.f32 %v12010_v58, %v6506_v60  ;;  %6448 = vst.msk [vmem:[#allocation2 + $0x8] sm:$0xff] %vm321_vm10, %v6444_v11  ;;  %v6452_v3 = vmul.f32 %v8445_v1, %v6444_v11  ;;  %v12116_v2 = vpop.permute.xlu1 %6573 }
 0xe88   :  { %v6342_v32 = vrot.slane %v6276_v40, %v13086_v0  ;;  %v6517_v41 = vadd.f32 %v6513_v39, %v11968_v31  ;;  %v6455_v20 = vadd.f32 %v6451_v55, %v6409_v25  ;;  %v6007_v27 = vmul.f32 1.442695, %v5965_v54 }
 0xe89   :  { %v6009_v33 = vmul.f32 1.442695, %v5966_v13  ;;  %v6518_v28 = vadd.f32 %v6514_v63, %v11971_v51  ;;  %v6456_v58 = vadd.f32 %v6452_v3, %v6410_v29  ;;  %v6411_v47 = vmul.f32 %v6338_v8, %v11745_v45  ;;  %v13105_v3 = vld [vmem:[#allocation8_spill] sm:$0xff] }
 0xe8a   :  { %v12101_v21 = vrot.slane %v6243_v15, %v12831_v37  ;;  %v8449_v40 = vpop.eup %8448  ;;  %6521 = vst.msk [vmem:[#allocation2 + $0xe0] sm:$0xff] %vm321_vm10, %v6517_v41  ;;  %v6525_v16 = vmul.f32 %v12038_v4, %v6517_v41  ;;  %6459 = vst.msk [vmem:[#allocation2 + $0x10] sm:$0xff] %vm321_vm10, %v6455_v20  ;;  %v6463_v31 = vmul.f32 %v8447_v35, %v6455_v20  ;;  %8458 = vpow2.f32 %v6007_v27  ;;  %v12118_v60 = vpop.permute.xlu0 %6625 }
 0xe8b   :  { %v6245_v25 = vcombine.high %v6243_v15, %v6243_v15  ;;  %v5967_v9 = vmul.f32 %v11843_v61, %v5902_v19  ;;  %v8451_v53 = vpop.eup %8450  ;;  %6522 = vst.msk [vmem:[#allocation2 + $0xe8] sm:$0xff] %vm321_vm10, %v6518_v28  ;;  %v6526_v51 = vmul.f32 %v12048_v42, %v6518_v28  ;;  %6460 = vst.msk [vmem:[#allocation2 + $0x18] sm:$0xff] %vm321_vm10, %v6456_v58  ;;  %8460 = vpow2.f32 %v6009_v33 }
 0xe8c   :  { %v6464_v45 = vmul.f32 %v8449_v40, %v6456_v58  ;;  %v6412_v29 = vmul.f32 %v6338_v8, %v11884_v56  ;;  %v8453_v18 = vpop.eup %8452  ;;  %v6529_v4 = vadd.f32 %v6525_v16, %v12020_v6  ;;  %v5825_v62 = vcombine.high %v12032_v36, %v12032_v36  ;;  %v12120_v56 = vld [vmem:[#allocation2 + $0xf8] sm:$0xff]  ;;  %v12151_v58 = vpop.permute.xlu1 %6597 }
 0xe8d   :  { %v6467_v57 = vadd.f32 %v6463_v31, %v6411_v47  ;;  %v6530_v7 = vadd.f32 %v6526_v51, %v12024_v10  ;;  %v5968_v43 = vmul.f32 %v11854_v59, %v5902_v19  ;;  %v6011_v42 = vmul.f32 1.442695, %v5967_v9  ;;  %v6561_v8 = vld [vmem:[#allocation2 + $0xd0] sm:$0xff] }
 0xe8e   :  { %v6468_v38 = vadd.f32 %v6464_v45, %v6412_v29  ;;  %v8455_v1 = vpop.eup %8454  ;;  %6533 = vst.msk [vmem:[#allocation2 + $0xf0] sm:$0xff] %vm321_vm10, %v6529_v4  ;;  %v6562_v6 = vld [vmem:[#allocation2 + $0xd8] sm:$0xff]  ;;  %v6413_v36 = vmul.f32 %v6342_v32, %v11759_v34  ;;  %v6346_v11 = vrot.slane %v12101_v21, %v13086_v0  ;;  %v12128_v15 = vrot.slane %v6245_v25, %v12831_v37 }
 0xe8f   :  { %6471 = vst.msk [vmem:[#allocation2 + $0x20] sm:$0xff] %vm321_vm10, %v6467_v57  ;;  %v6475_v10 = vmul.f32 %v8453_v18, %v6467_v57  ;;  %6534 = vst.msk [vmem:[#allocation2 + $0xf8] sm:$0xff] %vm321_vm10, %v6530_v7  ;;  %v6414_v39 = vmul.f32 %v6342_v32, %v11898_v24  ;;  %8462 = vpow2.f32 %v6011_v42  ;;  %v6013_v55 = vmul.f32 1.442695, %v5968_v43  ;;  %v13107_v45 = vld [vmem:[#allocation59_spill] sm:$0xff]  ;;  %v13108_v18 = vld [vmem:[#allocation65_spill] sm:$0xff] }
 0xe90   :  { %6472 = vst.msk [vmem:[#allocation2 + $0x28] sm:$0xff] %vm321_vm10, %v6468_v38  ;;  %v6476_v19 = vmul.f32 %v8455_v1, %v6468_v38  ;;  %v5152_v54 = vadd.f32 %v11751_v26, %v11838_v14  ;;  %v5906_v13 = vrot.slane %v5825_v62, %v13086_v0  ;;  %v13104_v35 = vrot.slane %v11804_v5, 2  ;;  %v8457_v63 = vpop.eup %8456  ;;  %v13109_v43 = vld [vmem:[#allocation60_spill] sm:$0xff] }
 0xe91   :  { %v6479_v34 = vadd.f32 %v6475_v10, %v6413_v36  ;;  %v6721_v41 = vmul.f32 %v13105_v3, %v6561_v8  ;;  %v6722_v20 = vmul.f32 %v11743_v48, %v6562_v6  ;;  %8464 = vpow2.f32 %v6013_v55  ;;  %v6563_v6 = vld [vmem:[#allocation2 + $0xe0] sm:$0xff]  ;;  %v6537_v36 = vld [vmem:[#allocation2 + $0x10] sm:$0xff]  ;;  %v13110_v10 = vld [vmem:[#allocation19_spill] sm:$0xff] }
 0xe92   :  { %v5147_v37 = vadd.f32 %v13104_v35, %v11804_v5  ;;  %v6480_v27 = vadd.f32 %v6476_v19, %v6414_v39  ;;  %v6415_v24 = vmul.f32 %v6346_v11, %v11789_v50  ;;  %v6416_v26 = vmul.f32 %v6346_v11, %v11911_v52  ;;  %v12153_v50 = vpop.permute.xlu0 %6987 }
 0xe93   :  { %6483 = vst.msk [vmem:[#allocation2 + $0x30] sm:$0xff] %vm321_vm10, %v6479_v34  ;;  %v6487_v14 = vmul.f32 %v8451_v53, %v6479_v34  ;;  %v6350_v32 = vrot.slane %v12128_v15, %v13086_v0  ;;  %v6275_v33 = vcombine.high %v12101_v21, %v12101_v21  ;;  %v5969_v48 = vmul.f32 %v11843_v61, %v5906_v13  ;;  %v13106_v61 = vld [vmem:[#allocation73_spill] sm:$0xff] }
 0xe94   :  { %6484 = vst.msk [vmem:[#allocation2 + $0x38] sm:$0xff] %vm321_vm10, %v6480_v27  ;;  %v6488_v5 = vmul.f32 %v8457_v63, %v6480_v27  ;;  %v5970_v28 = vmul.f32 %v11854_v59, %v5906_v13  ;;  %v5153_v47 = vrot.slane %v5152_v54, 4  ;;  %v5209_v52 = vrot.slane %v11829_v49, 2  ;;  %v8459_v31 = vpop.eup %8458  ;;  %v6564_v13 = vld [vmem:[#allocation2 + $0xe8] sm:$0xff]  ;;  %v12172_v63 = vpop.permute.xlu1 %6605 }
 0xe95   :  { %v6491_v40 = vadd.f32 %v6487_v14, %v6415_v24  ;;  %v5148_v16 = vrot.slane %v5147_v37, 1  ;;  %v6844_v25 = vsel %vm321_vm10, %v6721_v41, 0.0  ;;  %v6845_v9 = vsel %vm321_vm10, %v6722_v20, 0.0  ;;  %v8461_v51 = vpop.eup %8460 }
 0xe96   :  { %v6492_v53 = vadd.f32 %v6488_v5, %v6416_v26  ;;  %v6015_v21 = vmul.f32 1.442695, %v5969_v48  ;;  %v5083_v59 = vmul.f32 %v13106_v61, %v12096_v30  ;;  %v6417_v29 = vmul.f32 %v6350_v32, %v13107_v45  ;;  %v6538_v30 = vld [vmem:[#allocation2 + $0x18] sm:$0xff]  ;;  %v5322_v41 = vpop.permute.xlu0 %5321  ;;  %v13114_v5 = vld [vmem:[#allocation62_spill] sm:$0xff]  ;;  %v6539_v45 = vld [vmem:[#allocation2 + $0x20] sm:$0xff] }
 0xe97   :  { %6495 = vst.msk [vmem:[#allocation2 + $0x40] sm:$0xff] %vm321_vm10, %v6491_v40  ;;  %v6418_v4 = vmul.f32 %v6350_v32, %v13108_v18  ;;  %v6499_v62 = vmul.f32 %v8459_v31, %v6491_v40  ;;  %v6354_v7 = vrot.slane %v6275_v33, %v13086_v0  ;;  %v6017_v38 = vmul.f32 1.442695, %v5970_v28  ;;  %v13116_v31 = vld [vmem:[#allocation35_spill] sm:$0xff] }
 0xe98   :  { %6496 = vst.msk [vmem:[#allocation2 + $0x48] sm:$0xff] %vm321_vm10, %v6492_v53  ;;  %v6500_v57 = vmul.f32 %v8461_v51, %v6492_v53  ;;  %8466 = vpow2.f32 %v6015_v21  ;;  %v5202_v42 = vrot.slane %v13109_v43, 1  ;;  %v6846_v1 = vadd.f32 %v6845_v9, %v6844_v25  ;;  %v13117_v9 = vld [vmem:[#allocation26_spill] sm:$0xff] }
 0xe99   :  { %v6503_v8 = vadd.f32 %v6499_v62, %v6417_v29  ;;  %v13111_v11 = vrot.slane %v13110_v10, 1  ;;  %v8463_v39 = vpop.eup %8462  ;;  %v5154_v55 = vadd.f32 %v5153_v47, %v5152_v54  ;;  %v12170_v34 = vadd.f32 %v5209_v52, %v11829_v49  ;;  %v13112_v54 = vld [vmem:[#allocation12_spill] sm:$0xff]  ;;  %v13113_v49 = vld [vmem:[#allocation47_spill] sm:$0xff]  ;;  %v13115_v47 = vld [vmem:[#allocation57_spill] sm:$0xff] }
 0xe9a   :  { %v6504_v35 = vadd.f32 %v6500_v57, %v6418_v4  ;;  %8468 = vpow2.f32 %v6017_v38  ;;  %v5213_v3 = vsel %vm321_vm10, %v5083_v59, 0.0  ;;  %v6277_v27 = vcombine.high %v12128_v15, %v12128_v15  ;;  %v13119_v29 = vld [vmem:[#allocation17_spill] sm:$0xff]  ;;  %v13120_v38 = vld [vmem:[#allocation18_spill] sm:$0xff] }
 0xe9b   :  { %v5140_v19 = vadd.f32 %v13111_v11, %v13110_v10  ;;  %6507 = vst.msk [vmem:[#allocation2 + $0x50] sm:$0xff] %vm321_vm10, %v6503_v8  ;;  %v6511_v20 = vmul.f32 %v8463_v39, %v6503_v8  ;;  %v5149_v24 = vadd.f32 %v5148_v16, %v5147_v37  ;;  %v8465_v26 = vpop.eup %8464  ;;  %v6723_v14 = vmul.f32 %v13112_v54, %v6563_v6  ;;  %v13118_v37 = vld [vmem:[#allocation64_spill] sm:$0xff]  ;;  %v6540_v57 = vld [vmem:[#allocation2 + $0x28] sm:$0xff]  ;;  %v6565_v10 = vld [vmem:[#allocation2 + $0xf0] sm:$0xff] }
 0xe9c   :  { %6508 = vst.msk [vmem:[#allocation2 + $0x58] sm:$0xff] %vm321_vm10, %v6504_v35  ;;  %v6419_v32 = vmul.f32 %v6354_v7, %v13113_v49  ;;  %v6697_v33 = vmul.f32 %v13114_v5, %v6537_v36  ;;  %v6698_v48 = vmul.f32 %v12065_v22, %v6538_v30  ;;  %v6847_v28 = vrot.slane %v6846_v1, 4  ;;  %v6535_v54 = vld [vmem:[#allocation2] sm:$0xff]  ;;  %v13125_v5 = vld [vmem:[#allocation23_spill] sm:$0xff] }
 0xe9d   :  { %v6724_v52 = vmul.f32 %v13115_v47, %v6564_v13  ;;  %v6512_v40 = vmul.f32 %v8465_v26, %v6504_v35  ;;  %v6420_v25 = vmul.f32 %v6354_v7, %v13116_v31  ;;  %v5215_v15 = vadd.f32 %v13117_v9, %v5213_v3  ;;  %v12199_v7 = vpop.permute.xlu1 %6613  ;;  %v6536_v26 = vld [vmem:[#allocation2 + $0x8] sm:$0xff]  ;;  %v6542_v47 = vld [vmem:[#allocation2 + $0x38] sm:$0xff] }
 0xe9e   :  { %v12187_v16 = vmul.f32 %v5322_v41, %v13118_v37  ;;  %v6515_v53 = vadd.f32 %v6511_v20, %v6419_v32  ;;  %v5155_v21 = vrot.slane %v5154_v55, 2  ;;  %v6358_v61 = vrot.slane %v6277_v27, %v13086_v0 }
 0xe9f   :  { %v6516_v51 = vadd.f32 %v6512_v40, %v6420_v25  ;;  %v6736_v59 = vsel %vm321_vm10, %v6697_v33, 0.0  ;;  %v6737_v22 = vsel %vm321_vm10, %v6698_v48, 0.0  ;;  %v5086_v18 = vmul.f32 %v13119_v29, %v12120_v56  ;;  %v6566_v56 = vld [vmem:[#allocation2 + $0xf8] sm:$0xff]  ;;  %v13126_v48 = vld [vmem:[#allocation48_spill] sm:$0xff]  ;;  %v5338_v40 = vpop.permute.xlu0 %5337  ;;  %v6544_v37 = vld [vmem:[#allocation2 + $0x48] sm:$0xff] }
 0xea0   :  { %v12195_v4 = vadd.f32 %v5202_v42, %v13109_v43  ;;  %6519 = vst.msk [vmem:[#allocation2 + $0x60] sm:$0xff] %vm321_vm10, %v6515_v53  ;;  %v13121_v0 = vrot.slane %v13120_v38, 5  ;;  %v6848_v8 = vadd.f32 %v6847_v28, %v6846_v1  ;;  %v6853_v30 = vsel %vm321_vm10, %v6723_v14, 0.0  ;;  %v13124_v1 = vld [vmem:[#allocation51_spill] sm:$0xff] }
 0xea1   :  { %v6854_v36 = vsel %vm321_vm10, %v6724_v52, 0.0  ;;  %6520 = vst.msk [vmem:[#allocation2 + $0x68] sm:$0xff] %vm321_vm10, %v6516_v51  ;;  %v13122_v43 = vrot.slane %v13120_v38, 6  ;;  %v5216_v39 = vrot.slane %v5215_v15, 4  ;;  %v7171_v13 = vrot.slane %v12187_v16, 7  ;;  %v6541_v52 = vld [vmem:[#allocation2 + $0x30] sm:$0xff]  ;;  %v6622_v29 = vpop.permute.xlu1 %6621 }
 0xea2   :  { %v12203_v6 = vadd.f32 %v13121_v0, %v5140_v19  ;;  %v8467_v11 = vpop.eup %8466  ;;  %v6738_v35 = vadd.f32 %v6737_v22, %v6736_v59  ;;  %v13123_v19 = vld [vmem:[#allocation39_spill] sm:$0xff]  ;;  %v6421_v41 = vmul.f32 %v6358_v61, %v13124_v1  ;;  %v6700_v27 = vmul.f32 %v12091_v46, %v6540_v57  ;;  %v13127_v59 = vld [vmem:[#allocation53_spill] sm:$0xff]  ;;  %v6545_v1 = vld [vmem:[#allocation2 + $0x50] sm:$0xff] }
 0xea3   :  { %v12210_v42 = vadd.f32 %v13122_v43, %v5149_v24  ;;  %v6699_v3 = vmul.f32 %v13123_v19, %v6539_v45  ;;  %v6523_v20 = vmul.f32 %v8467_v11, %v6515_v53  ;;  %v12216_v14 = vadd.f32 %v5155_v21, %v5154_v55  ;;  %v6543_v53 = vld [vmem:[#allocation2 + $0x40] sm:$0xff]  ;;  %v13128_v0 = vld [vmem:[#allocation21_spill] sm:$0xff] }
 0xea4   :  { %v8469_v49 = vpop.eup %8468  ;;  %v5223_v24 = vsel %vm321_vm10, %v5086_v18, 0.0  ;;  %v6855_v32 = vadd.f32 %v6854_v36, %v6853_v30  ;;  %v6725_v33 = vmul.f32 %v13125_v5, %v6565_v10  ;;  %v6726_v28 = vmul.f32 %v13126_v48, %v6566_v56  ;;  %v13129_v30 = vld [vmem:[#allocation34_spill] sm:$0xff]  ;;  %v13172_v16 = vld [vmem:[#allocation33_spill] sm:$0xff] }
 0xea5   :  { %v6849_v31 = vrot.slane %v6848_v8, 2  ;;  %v6524_v25 = vmul.f32 %v8469_v49, %v6516_v51  ;;  %v6422_v9 = vmul.f32 %v6358_v61, %v12036_v17  ;;  %v6527_v46 = vadd.f32 %v6523_v20, %v6421_v41  ;;  %v6630_v48 = vpop.permute.xlu1 %6629 }
 0xea6   :  { %v6739_v55 = vrot.slane %v6738_v35, 4  ;;  %v6745_v21 = vsel %vm321_vm10, %v6699_v3, 0.0  ;;  %v6695_v22 = vmul.f32 %v13127_v59, %v6535_v54  ;;  %v6696_v45 = vmul.f32 %v12116_v2, %v6536_v26  ;;  %v13130_v2 = vld [vmem:[#allocation63_spill] sm:$0xff] }
 0xea7   :  { %v6528_v18 = vadd.f32 %v6524_v25, %v6422_v9  ;;  %6531 = vst.msk [vmem:[#allocation2 + $0x70] sm:$0xff] %vm321_vm10, %v6527_v46  ;;  %v6746_v57 = vsel %vm321_vm10, %v6700_v27, 0.0  ;;  %v6701_v51 = vmul.f32 %v13128_v0, %v6541_v52  ;;  %v6702_v17 = vmul.f32 %v12151_v58, %v6542_v47  ;;  %v6546_v3 = vld [vmem:[#allocation2 + $0x58] sm:$0xff] }
 0xea8   :  { %v12229_v61 = vadd.f32 %v5216_v39, %v5215_v15  ;;  %v12232_v36 = vmul.f32 %v5338_v40, %v13129_v30  ;;  %v6703_v56 = vmul.f32 %v12040_v12, %v6543_v53  ;;  %v6704_v10 = vmul.f32 %v12172_v63, %v6544_v37  ;;  %v6548_v27 = vld [vmem:[#allocation2 + $0x68] sm:$0xff]  ;;  %v6547_v12 = vld [vmem:[#allocation2 + $0x60] sm:$0xff] }
 0xea9   :  { %v5224_v43 = vadd.f32 %v5223_v24, %v13130_v2  ;;  %v6856_v11 = vrot.slane %v6855_v32, 4  ;;  %v6862_v19 = vsel %vm321_vm10, %v6725_v33, 0.0  ;;  %6532 = vst.msk [vmem:[#allocation2 + $0x78] sm:$0xff] %vm321_vm10, %v6528_v18  ;;  %v5157_v58 = vrot.slane %v12216_v14, 1  ;;  %v5326_v24 = vpop.permute.xlu0 %5325  ;;  %v13131_v37 = vld [vmem:[#allocation45_spill] sm:$0xff]  ;;  %v12261_v2 = vpop.permute.xlu1 %6989 }
 0xeaa   :  { %v6850_v15 = vadd.f32 %v6849_v31, %v6848_v8  ;;  %v6863_v39 = vsel %vm321_vm10, %v6726_v28, 0.0  ;;  %v6740_v41 = vadd.f32 %v6739_v55, %v6738_v35  ;;  %v6747_v20 = vadd.f32 %v6746_v57, %v6745_v21 }
 0xeab   :  { %v6727_v63 = vsel %vm321_vm10, %v6695_v22, 0.0  ;;  %v6728_v26 = vsel %vm321_vm10, %v6696_v45, 0.0  ;;  %v6754_v54 = vsel %vm321_vm10, %v6701_v51, 0.0  ;;  %v6755_v49 = vsel %vm321_vm10, %v6702_v17, 0.0 }
 0xeac   :  { %v6763_v5 = vsel %vm321_vm10, %v6703_v56, 0.0  ;;  %v6764_v33 = vsel %vm321_vm10, %v6704_v10, 0.0  ;;  %v6705_v8 = vmul.f32 %v12067_v23, %v6545_v1  ;;  %v6706_v35 = vmul.f32 %v12199_v7, %v6546_v3 }
 0xead   :  { %v6857_v28 = vadd.f32 %v6856_v11, %v6855_v32  ;;  %v6864_v47 = vadd.f32 %v6863_v39, %v6862_v19  ;;  %v6707_v52 = vmul.f32 %v12093_v44, %v6547_v12  ;;  %v6708_v40 = vmul.f32 %v6622_v29, %v6548_v27  ;;  %v5328_v17 = vpop.permute.xlu0 %5327  ;;  %v13132_v12 = vld [vmem:[#allocation16_spill] sm:$0xff] }
 0xeae   :  { %v5225_v31 = vrot.slane %v5224_v43, 4  ;;  %v6741_v25 = vrot.slane %v6740_v41, 2  ;;  %v6748_v9 = vrot.slane %v6747_v20, 4  ;;  %v6729_v46 = vadd.f32 %v6728_v26, %v6727_v63  ;;  %v6549_v0 = vld [vmem:[#allocation2 + $0x70] sm:$0xff] }
 0xeaf   :  { %v12251_v53 = vmul.f32 %v5326_v24, %v13131_v37  ;;  %v6851_v55 = vrot.slane %v6850_v15, 1  ;;  %v6756_v21 = vadd.f32 %v6755_v49, %v6754_v54  ;;  %v6765_v59 = vadd.f32 %v6764_v33, %v6763_v5  ;;  %v6556_v33 = vld [vmem:[#allocation2 + $0xa8] sm:$0xff]  ;;  %v13136_v37 = vld [vmem:[#allocation20_spill] sm:$0xff] }
 0xeb0   :  { %v6772_v7 = vsel %vm321_vm10, %v6705_v8, 0.0  ;;  %v6773_v32 = vsel %vm321_vm10, %v6706_v35, 0.0  ;;  %v5158_v22 = vadd.f32 %v5157_v58, %v12216_v14  ;;  %v6858_v44 = vrot.slane %v6857_v28, 2  ;;  %v6550_v57 = vld [vmem:[#allocation2 + $0x78] sm:$0xff]  ;;  %v13134_v8 = vld [vmem:[#allocation13_spill] sm:$0xff] }
 0xeb1   :  { %v6865_v45 = vrot.slane %v6864_v47, 4  ;;  %v6781_v29 = vsel %vm321_vm10, %v6707_v52, 0.0  ;;  %v6782_v18 = vsel %vm321_vm10, %v6708_v40, 0.0  ;;  %v12259_v51 = vadd.f32 %v5225_v31, %v5224_v43  ;;  %v6558_v40 = vld [vmem:[#allocation2 + $0xb8] sm:$0xff] }
 0xeb2   :  { %v6742_v30 = vadd.f32 %v6741_v25, %v6740_v41  ;;  %v6749_v56 = vadd.f32 %v6748_v9, %v6747_v20  ;;  %v6730_v10 = vrot.slane %v6729_v46, 4  ;;  %v6852_v11 = vadd.f32 %v6851_v55, %v6850_v15  ;;  %v6552_v20 = vld [vmem:[#allocation2 + $0x88] sm:$0xff] }
 0xeb3   :  { %v6757_v19 = vrot.slane %v6756_v21, 4  ;;  %v6766_v3 = vrot.slane %v6765_v59, 4  ;;  %v6774_v14 = vadd.f32 %v6773_v32, %v6772_v7  ;;  %v6783_v58 = vadd.f32 %v6782_v18, %v6781_v29  ;;  %v6560_v9 = vld [vmem:[#allocation2 + $0xc8] sm:$0xff] }
 0xeb4   :  { %v6709_v39 = vmul.f32 %v12118_v60, %v6549_v0  ;;  %v6710_v27 = vmul.f32 %v6630_v48, %v6550_v57  ;;  %v12266_v63 = vmul.f32 %v5328_v17, %v13132_v12  ;;  %v12268_v43 = vadd.f32 %v6858_v44, %v6857_v28  ;;  %v6554_v60 = vld [vmem:[#allocation2 + $0x98] sm:$0xff]  ;;  %v13139_v0 = vld [vmem:[#allocation25_spill] sm:$0xff] }
 0xeb5   :  { %v12270_v41 = vadd.f32 %v6865_v45, %v6864_v47  ;;  %v13133_v26 = vrot.slane %v13120_v38, 7  ;;  %v6743_v49 = vrot.slane %v6742_v30, 1  ;;  %v6750_v24 = vrot.slane %v6749_v56, 2  ;;  %v6551_v45 = vld [vmem:[#allocation2 + $0x80] sm:$0xff] }
 0xeb6   :  { %v12277_v5 = vadd.f32 %v6730_v10, %v6729_v46  ;;  %v13135_v35 = vrot.slane %v13134_v8, 5  ;;  %v6758_v28 = vadd.f32 %v6757_v19, %v6756_v21  ;;  %v6767_v47 = vadd.f32 %v6766_v3, %v6765_v59  ;;  %v12286_v46 = vpop.permute.xlu1 %5323  ;;  %v13138_v21 = vld [vmem:[#allocation11_spill] sm:$0xff]  ;;  %v6553_v10 = vld [vmem:[#allocation2 + $0x90] sm:$0xff] }
 0xeb7   :  { %v12274_v15 = vadd.f32 %v13133_v26, %v5158_v22  ;;  %v6775_v52 = vrot.slane %v6774_v14, 4  ;;  %v6784_v31 = vrot.slane %v6783_v58, 4  ;;  %v6790_v38 = vsel %vm321_vm10, %v6709_v39, 0.0  ;;  %v13137_v22 = vld [vmem:[#allocation14_spill] sm:$0xff]  ;;  %v6559_v26 = vld [vmem:[#allocation2 + $0xc0] sm:$0xff] }
 0xeb8   :  { %v12281_v48 = vadd.f32 %v13135_v35, %v6852_v11  ;;  %v6791_v25 = vsel %vm321_vm10, %v6710_v27, 0.0  ;;  %v6712_v55 = vmul.f32 %v13136_v37, %v6552_v20  ;;  %v6860_v7 = vrot.slane %v12268_v43, 1  ;;  %v6555_v11 = vld [vmem:[#allocation2 + $0xa0] sm:$0xff]  ;;  %v13140_v27 = vld [vmem:[#allocation58_spill] sm:$0xff] }
 0xeb9   :  { %v6867_v32 = vrot.slane %v12270_v41, 2  ;;  %v6714_v44 = vmul.f32 %v13137_v22, %v6554_v60  ;;  %v6716_v59 = vmul.f32 %v13138_v21, %v6556_v33  ;;  %v12292_v29 = vadd.f32 %v6743_v49, %v6742_v30  ;;  %v6557_v20 = vld [vmem:[#allocation2 + $0xb0] sm:$0xff]  ;;  %v13143_v22 = vld [vmem:[#allocation79_spill] sm:$0xff] }
 0xeba   :  { %v6751_v18 = vadd.f32 %v6750_v24, %v6749_v56  ;;  %v6732_v57 = vrot.slane %v12277_v5, 2  ;;  %v6718_v17 = vmul.f32 %v13139_v0, %v6558_v40  ;;  %v6759_v19 = vrot.slane %v6758_v28, 2  ;;  %v13141_v30 = vld [vmem:[#allocation78_spill] sm:$0xff]  ;;  %v13142_v40 = vld [vmem:[#allocation49_spill] sm:$0xff]  ;;  %v13145_v0 = vld [vmem:[#allocation7_spill] sm:$0xff] }
 0xebb   :  { %v6768_v3 = vrot.slane %v6767_v47, 2  ;;  %v6792_v39 = vadd.f32 %v6791_v25, %v6790_v38  ;;  %v6720_v12 = vmul.f32 %v13140_v27, %v6560_v9  ;;  %v6776_v60 = vadd.f32 %v6775_v52, %v6774_v14  ;;  %v13144_v25 = vld [vmem:[#allocation82_spill] sm:$0xff] }
 0xebc   :  { %v6785_v35 = vadd.f32 %v6784_v31, %v6783_v58  ;;  %v6800_v33 = vsel %vm321_vm10, %v6712_v55, 0.0  ;;  %v6711_v49 = vmul.f32 %v13141_v30, %v6551_v45  ;;  %v6809_v56 = vsel %vm321_vm10, %v6714_v44, 0.0  ;;  %v12307_v58 = vpop.permute.xlu1 %5319 }
 0xebd   :  { %v6818_v24 = vsel %vm321_vm10, %v6716_v59, 0.0  ;;  %v6713_v37 = vmul.f32 %v13142_v40, %v6553_v10  ;;  %v6715_v21 = vmul.f32 %v13143_v22, %v6555_v11  ;;  %v6827_v38 = vsel %vm321_vm10, %v6718_v17, 0.0 }
 0xebe   :  { %v6717_v9 = vmul.f32 %v13144_v25, %v6557_v20  ;;  %v6719_v27 = vmul.f32 %v13145_v0, %v6559_v26  ;;  %v6799_v14 = vsel %vm321_vm10, %v6711_v49, 0.0  ;;  %v6793_v52 = vrot.slane %v6792_v39, 4 }
 0xebf   :  { %v6836_v31 = vsel %vm321_vm10, %v6720_v12, 0.0  ;;  %v6801_v55 = vadd.f32 %v6800_v33, %v6799_v14  ;;  %v6808_v44 = vsel %vm321_vm10, %v6713_v37, 0.0  ;;  %v6817_v45 = vsel %vm321_vm10, %v6715_v21, 0.0 }
 0xec0   :  { %v6810_v59 = vadd.f32 %v6809_v56, %v6808_v44  ;;  %v6826_v10 = vsel %vm321_vm10, %v6717_v9, 0.0  ;;  %v6835_v17 = vsel %vm321_vm10, %v6719_v27, 0.0  ;;  %v6760_v11 = vadd.f32 %v6759_v19, %v6758_v28  ;;  %v12315_v9 = vpop.permute.xlu1 %5339 }
 0xec1   :  { %v6769_v20 = vadd.f32 %v6768_v3, %v6767_v47  ;;  %v6819_v26 = vadd.f32 %v6818_v24, %v6817_v45  ;;  %v6828_v30 = vadd.f32 %v6827_v38, %v6826_v10  ;;  %v6752_v49 = vrot.slane %v6751_v18, 1 }
 0xec2   :  { %v6802_v40 = vrot.slane %v6801_v55, 4  ;;  %v6811_v22 = vrot.slane %v6810_v59, 4  ;;  %v6837_v25 = vadd.f32 %v6836_v31, %v6835_v17  ;;  %v6777_v0 = vrot.slane %v6776_v60, 2 }
 0xec3   :  { %v6794_v12 = vadd.f32 %v6793_v52, %v6792_v39  ;;  %v6820_v33 = vrot.slane %v6819_v26, 4  ;;  %v6829_v14 = vrot.slane %v6828_v30, 4  ;;  %v6733_v56 = vadd.f32 %v6732_v57, %v12277_v5 }
 0xec4   :  { %v6786_v37 = vrot.slane %v6785_v35, 2  ;;  %v6812_v21 = vadd.f32 %v6811_v22, %v6810_v59  ;;  %v6838_v44 = vrot.slane %v6837_v25, 4  ;;  %v6761_v27 = vrot.slane %v6760_v11, 1  ;;  %v13146_v59 = vld [vmem:[#allocation9_spill] sm:$0xff] }
 0xec5   :  { %v6770_v28 = vrot.slane %v6769_v20, 1  ;;  %v6821_v47 = vadd.f32 %v6820_v33, %v6819_v26  ;;  %v6830_v19 = vadd.f32 %v6829_v14, %v6828_v30  ;;  %v6753_v3 = vadd.f32 %v6752_v49, %v6751_v18 }
 0xec6   :  { %v6803_v24 = vadd.f32 %v6802_v40, %v6801_v55  ;;  %v6813_v38 = vrot.slane %v6812_v21, 2  ;;  %v6839_v45 = vadd.f32 %v6838_v44, %v6837_v25  ;;  %v6778_v31 = vadd.f32 %v6777_v0, %v6776_v60  ;;  %v12325_v40 = vpop.permute.xlu1 %5335  ;;  %v13150_v44 = vld [vmem:[#allocation66_spill] sm:$0xff] }
 0xec7   :  { %v6795_v10 = vrot.slane %v6794_v12, 2  ;;  %v6822_v39 = vrot.slane %v6821_v47, 2  ;;  %v6831_v52 = vrot.slane %v6830_v19, 2  ;;  %v6734_v17 = vrot.slane %v6733_v56, 1 }
 0xec8   :  { %v6787_v62 = vadd.f32 %v6786_v37, %v6785_v35  ;;  %v6814_v5 = vadd.f32 %v6813_v38, %v6812_v21  ;;  %v6840_v57 = vrot.slane %v6839_v45, 2  ;;  %v13147_v22 = vrot.slane %v13146_v59, 1  ;;  %v13149_v37 = vld [vmem:[#allocation22_spill] sm:$0xff] }
 0xec9   :  { %v6762_v54 = vadd.f32 %v6761_v27, %v6760_v11  ;;  %v6771_v23 = vadd.f32 %v6770_v28, %v6769_v20  ;;  %v6823_v26 = vadd.f32 %v6822_v39, %v6821_v47  ;;  %v13148_v18 = vrot.slane %v13146_v59, 2 }
 0xeca   :  { %v6914_v1 = vadd.f32 %v13147_v22, %v12292_v29  ;;  %v6804_v30 = vrot.slane %v6803_v24, 2  ;;  %v6832_v49 = vadd.f32 %v6831_v52, %v6830_v19  ;;  %v6868_v60 = vadd.f32 %v6867_v32, %v12270_v41 }
 0xecb   :  { %v6915_v55 = vadd.f32 %v13148_v18, %v6753_v3  ;;  %v6861_v35 = vadd.f32 %v6860_v7, %v12268_v43  ;;  %v6779_v25 = vrot.slane %v6778_v31, 1  ;;  %v6796_v29 = vadd.f32 %v6795_v10, %v6794_v12  ;;  %v13153_v43 = vld [vmem:[#allocation77_spill] sm:$0xff] }
 0xecc   :  { %v6841_v11 = vadd.f32 %v6840_v57, %v6839_v45  ;;  %v6735_v20 = vadd.f32 %v6734_v17, %v6733_v56  ;;  %v6788_v0 = vrot.slane %v6787_v62, 1  ;;  %v6815_v33 = vrot.slane %v6814_v5, 1  ;;  %v12345_v17 = vpop.permute.xlu1 %5329  ;;  %v13155_v57 = vld [vmem:[#allocation40_spill] sm:$0xff] }
 0xecd   :  { %v6824_v14 = vrot.slane %v6823_v26, 1  ;;  %v12332_v21 = vmul.f32 %v13149_v37, %v12281_v48  ;;  %v7008_v27 = vmul.f32 %v13150_v44, %v6914_v1  ;;  %v13151_v41 = vrot.slane %v13146_v59, 3  ;;  %v13160_v44 = vld [vmem:[#allocation72_spill] sm:$0xff] }
 0xece   :  { %v13152_v28 = vrot.slane %v13146_v59, 4  ;;  %v7009_v7 = vmul.f32 %v13153_v43, %v6915_v55  ;;  %v6805_v12 = vadd.f32 %v6804_v30, %v6803_v24  ;;  %v6833_v19 = vrot.slane %v6832_v49, 1  ;;  %v13156_v24 = vld [vmem:[#allocation67_spill] sm:$0xff]  ;;  %v13157_v55 = vld [vmem:[#allocation56_spill] sm:$0xff] }
 0xecf   :  { %v6916_v32 = vadd.f32 %v13151_v41, %v6762_v54  ;;  %v6869_v56 = vrot.slane %v6868_v60, 1  ;;  %v13154_v3 = vrot.slane %v13134_v8, 6  ;;  %v6780_v45 = vadd.f32 %v6779_v25, %v6778_v31 }
 0xed0   :  { %v6917_v47 = vadd.f32 %v13152_v28, %v6771_v23  ;;  %v6797_v48 = vrot.slane %v6796_v29, 1  ;;  %v6842_v10 = vrot.slane %v6841_v11, 1  ;;  %v6913_v1 = vadd.f32 %v13146_v59, %v6735_v20 }
 0xed1   :  { %v12342_v38 = vadd.f32 %v13154_v3, %v6861_v35  ;;  %v6789_v39 = vadd.f32 %v6788_v0, %v6787_v62  ;;  %v6816_v52 = vadd.f32 %v6815_v33, %v6814_v5  ;;  %v6825_v54 = vadd.f32 %v6824_v14, %v6823_v26  ;;  %v7567_v62 = vld [vmem:[%s12546_s12 + $0xc0] sm:$0xff]  ;;  %v7568_v5 = vld [vmem:[%s12546_s12 + $0xc8] sm:$0xff] }
 0xed2   :  { %v7048_v23 = vrot.slane %v7008_v27, 7  ;;  %v7010_v22 = vmul.f32 %v13155_v57, %v6916_v32  ;;  %v7011_v18 = vmul.f32 %v13156_v24, %v6917_v47  ;;  %v5369_v30 = vmul.f32 %v12286_v46, %v13157_v55  ;;  %v13159_v14 = vld [vmem:[#allocation36_spill] sm:$0xff] }
 0xed3   :  { %v7050_v35 = vrot.slane %v7009_v7, 6  ;;  %v6806_v37 = vrot.slane %v6805_v12, 1  ;;  %v6834_v31 = vadd.f32 %v6833_v19, %v6832_v49  ;;  %v6870_v25 = vadd.f32 %v6869_v56, %v6868_v60  ;;  %v7569_v49 = vld [vmem:[%s12546_s12 + $0xd0] sm:$0xff]  ;;  %v7570_v60 = vld [vmem:[%s12546_s12 + $0xd8] sm:$0xff]  ;;  %v13168_v55 = vld [vmem:[#allocation32_spill] sm:$0xff] }
 0xed4   :  { %v13158_v26 = vrot.slane %v13146_v59, 5  ;;  %v6798_v0 = vadd.f32 %v6797_v48, %v6796_v29  ;;  %v6843_v33 = vadd.f32 %v6842_v10, %v6841_v11  ;;  %v5367_v46 = vmul.f32 %v12307_v58, %v13159_v14 }
 0xed5   :  { %v7007_v27 = vmul.f32 %v13160_v44, %v6913_v1  ;;  %v13161_v41 = vrot.slane %v13146_v59, 6  ;;  %v13162_v28 = vrot.slane %v13134_v8, 1  ;;  %v13163_v11 = vrot.slane %v13134_v8, 2  ;;  %v5332_v1 = vpop.permute.xlu1 %5331  ;;  %v7573_v44 = vld [vmem:[%s12546_s12 + $0xf0] sm:$0xff] }
 0xed6   :  { %v6918_v20 = vadd.f32 %v13158_v26, %v6780_v45  ;;  %v7052_v58 = vrot.slane %v7010_v22, 5  ;;  %v7054_v43 = vrot.slane %v7011_v18, 4  ;;  %v7173_v7 = vrot.slane %v5369_v30, 6 }
 0xed7   :  { %v6919_v32 = vadd.f32 %v13161_v41, %v6789_v39  ;;  %v6922_v29 = vadd.f32 %v13162_v28, %v6816_v52  ;;  %v6923_v47 = vadd.f32 %v13163_v11, %v6825_v54  ;;  %v8060_v19 = vpack.c.bf16 %v7568_v5, %v7567_v62  ;;  %v7571_v39 = vld [vmem:[%s12546_s12 + $0xe0] sm:$0xff]  ;;  %v7572_v52 = vld [vmem:[%s12546_s12 + $0xe8] sm:$0xff] }
 0xed8   :  { %v6807_v56 = vadd.f32 %v6806_v37, %v6805_v12  ;;  %v13164_v3 = vrot.slane %v13134_v8, 3  ;;  %v13165_v48 = vrot.slane %v13134_v8, 7  ;;  %v8064_v57 = vpack.c.bf16 %v7570_v60, %v7569_v49  ;;  %v13169_v37 = vld [vmem:[#allocation54_spill] sm:$0xff]  ;;  %v13171_v5 = vld [vmem:[#allocation81_spill] sm:$0xff] }
 0xed9   :  { %v13166_v54 = vrot.slane %v13134_v8, 4  ;;  %v7172_v12 = vsel %vm3460_vm15, %v7171_v13, %v5367_v46  ;;  %8061 = vmatprep.subr.bf16.mxu1 %v8060_v19  ;;  %v13167_v24 = vrot.slane %v13146_v59, 7  ;;  %v7012_v30 = vmul.f32 %v13168_v55, %v6918_v20  ;;  %v12398_v59 = vpop.permute.xlu0 %5341 }
 0xeda   :  { %v6924_v45 = vadd.f32 %v13164_v3, %v6834_v31  ;;  %v6928_v10 = vadd.f32 %v13165_v48, %v6870_v25  ;;  %v7016_v31 = vmul.f32 %v13169_v37, %v6922_v29  ;;  %v13170_v25 = vld [vmem:[#allocation43_spill] sm:$0xff]  ;;  %8063 = vmatpush3.bf16.msra.mxu1 %v8060_v19  ;;  %v7013_v26 = vmul.f32 %v13171_v5, %v6919_v32  ;;  %v13174_v32 = vld [vmem:[#allocation69_spill] sm:$0xff] }
 0xedb   :  { %v6925_v22 = vadd.f32 %v13166_v54, %v6843_v33  ;;  %v6920_v18 = vadd.f32 %v13167_v24, %v6798_v0  ;;  %v7017_v62 = vmul.f32 %v13170_v25, %v6923_v47  ;;  %v7049_v14 = vsel %vm3460_vm15, %v7048_v23, %v7007_v27  ;;  %8065 = vmatprep.subr.bf16.mxu1 %v8064_v57  ;;  %v13173_v0 = vld [vmem:[#allocation42_spill] sm:$0xff]  ;;  %v7574_v23 = vld [vmem:[%s12546_s12 + $0xf8] sm:$0xff] }
 0xedc   :  { %v8068_v33 = vpack.c.bf16 %v7572_v52, %v7571_v39  ;;  %v7051_v13 = vsel %vm3463_vm13, %v7050_v35, %v7049_v14  ;;  %v7056_v46 = vrot.slane %v7012_v30, 3  ;;  %v6921_v20 = vadd.f32 %v13134_v8, %v6807_v56  ;;  %v5334_v56 = vpop.permute.xlu1 %5333  ;;  %v13181_v25 = vld [vmem:[#allocation30_spill] sm:$0xff] }
 0xedd   :  { %v7014_v49 = vmul.f32 %v13172_v16, %v6920_v18  ;;  %v7018_v60 = vmul.f32 %v13173_v0, %v6924_v45  ;;  %v7053_v27 = vsel %vm3466_vm14, %v7052_v58, %v7051_v13  ;;  %v7058_v41 = vrot.slane %v7013_v26, 2  ;;  %v13183_v16 = vld [vmem:[#allocation29_spill] sm:$0xff] }
 0xede   :  { %v7019_v35 = vmul.f32 %v13174_v32, %v6925_v22  ;;  %v7021_v28 = vmul.f32 %v12153_v50, %v12342_v38  ;;  %v7055_v8 = vsel %vm3469_vm12, %v7054_v43, %v7053_v27  ;;  %v7022_v11 = vmul.f32 %v12261_v2, %v6928_v10  ;;  %8067 = vmatpush3.bf16.msra.mxu1 %v8064_v57  ;;  %v13176_v38 = vld [vmem:[#allocation15_spill] sm:$0xff]  ;;  %v7527_v57 = vld [vmem:[%s12546_s12 + $0x88] sm:$0xff]  ;;  %v13185_v27 = vld [vmem:[#allocation44_spill] sm:$0xff] }
 0xedf   :  { %v7060_v29 = vrot.slane %v7014_v49, 1  ;;  %v7062_v47 = vrot.slane %v7016_v31, 7  ;;  %v7174_v19 = vsel %vm3463_vm13, %v7173_v7, %v7172_v12  ;;  %v7057_v3 = vsel %vm3472_vm11, %v7056_v46, %v7055_v8  ;;  %8069 = vmatprep.subr.bf16.mxu1 %v8068_v33  ;;  %v7526_v7 = vld [vmem:[%s12546_s12 + $0x80] sm:$0xff]  ;;  %v7531_v8 = vld [vmem:[%s12546_s12 + $0xa8] sm:$0xff] }
 0xee0   :  { %v7064_v45 = vrot.slane %v7017_v62, 6  ;;  %v5372_v58 = vmul.f32 %v12345_v17, %v12203_v6  ;;  %v8072_v48 = vpack.c.bf16 %v7574_v23, %v7573_v44  ;;  %v7059_v50 = vsel %vm13175_vm8, %v7058_v41, %v7057_v3 }
 0xee1   :  { %v7015_v43 = vmul.f32 %v13176_v38, %v6921_v20  ;;  %v7066_v39 = vrot.slane %v7018_v60, 5  ;;  %v5373_v2 = vmul.f32 %v5332_v1, %v12210_v42  ;;  %v7061_v10 = vsel %vm13177_vm9, %v7060_v29, %v7059_v50  ;;  %v5344_v42 = vpop.permute.xlu0 %5343  ;;  %v13188_v29 = vld [vmem:[#allocation6_spill] sm:$0xff] }
 0xee2   :  { %v7177_v6 = vrot.slane %v12266_v63, 4  ;;  %v13178_v17 = vrot.slane %v12229_v61, 2  ;;  %v7068_v54 = vrot.slane %v7019_v35, 4  ;;  %v5374_v22 = vmul.f32 %v5334_v56, %v12274_v15  ;;  %7899 = vmatprep.mubr.msk.f32.mxu1 %vm321_vm10, %v7061_v10  ;;  %8071 = vmatpush3.bf16.msra.mxu1 %v8068_v33 }
 0xee3   :  { %v7070_v1 = vrot.slane %v12332_v21, 3  ;;  %v7063_v12 = vsel %vm3460_vm15, %v7062_v47, %v7015_v43  ;;  %v7072_v24 = vrot.slane %v7021_v28, 2  ;;  %v13179_v18 = vrot.slane %v12259_v51, 2  ;;  %8073 = vmatprep.subr.bf16.mxu1 %v8072_v48  ;;  %v7530_v28 = vld [vmem:[%s12546_s12 + $0xa0] sm:$0xff] }
 0xee4   :  { %v5219_v52 = vadd.f32 %v13178_v17, %v12229_v61  ;;  %v7065_v63 = vsel %vm3463_vm13, %v7064_v45, %v7063_v12  ;;  %v13180_v61 = vrot.slane %v12251_v53, 5  ;;  %v7179_v15 = vrot.slane %v5372_v58, 3  ;;  %v7529_v53 = vld [vmem:[%s12546_s12 + $0x98] sm:$0xff] }
 0xee5   :  { %v5228_v55 = vadd.f32 %v13179_v18, %v12259_v51  ;;  %v8076_v37 = vpack.c.bf16 %v7527_v57, %v7526_v7  ;;  %v7067_v31 = vsel %vm3466_vm14, %v7066_v39, %v7065_v63  ;;  %v7074_v21 = vrot.slane %v7022_v11, 1  ;;  %v7528_v51 = vld [vmem:[%s12546_s12 + $0x90] sm:$0xff]  ;;  %v5350_v7 = vpop.permute.xlu1 %5349 }
 0xee6   :  { %v7176_v30 = vsel %vm3466_vm14, %v13180_v61, %v7174_v19  ;;  %v5375_v62 = vmul.f32 %v12325_v40, %v13181_v25  ;;  %v7181_v5 = vrot.slane %v5373_v2, 2  ;;  %v13182_v26 = vrot.slane %v12170_v34, 1  ;;  %8075 = vmatpush3.bf16.msra.mxu1 %v8072_v48  ;;  %v7532_v39 = vld [vmem:[%s12546_s12 + $0xb0] sm:$0xff]  ;;  %v7533_v2 = vld [vmem:[%s12546_s12 + $0xb8] sm:$0xff] }
 0xee7   :  { %v7069_v33 = vsel %vm3469_vm12, %v7068_v54, %v7067_v31  ;;  %v5377_v49 = vmul.f32 %v12315_v9, %v13183_v16  ;;  %v7183_v13 = vrot.slane %v5374_v22, 1  ;;  %v7185_v40 = vrot.slane %v12232_v36, 7  ;;  %8077 = vmatprep.subr.bf16.mxu1 %v8076_v37  ;;  %v5346_v9 = vpop.permute.xlu0 %5345  ;;  %v13193_v31 = vld [vmem:[#allocation37_spill] sm:$0xff] }
 0xee8   :  { %v5212_v14 = vadd.f32 %v13182_v26, %v12170_v34  ;;  %v7071_v46 = vsel %vm3472_vm11, %v7070_v1, %v7069_v33  ;;  %v7178_v20 = vsel %vm3469_vm12, %v7177_v6, %v7176_v30  ;;  %v5229_v0 = vrot.slane %v5228_v55, 1 }
 0xee9   :  { %v5220_v60 = vrot.slane %v5219_v52, 1  ;;  %v7073_v44 = vsel %vm13184_vm1, %v7072_v24, %v7071_v46  ;;  %v7180_v23 = vsel %vm3472_vm11, %v7179_v15, %v7178_v20  ;;  %v8080_v34 = vpack.c.bf16 %v7529_v53, %v7528_v51 }
 0xeea   :  { %v5378_v41 = vmul.f32 %v12398_v59, %v13185_v27  ;;  %v7075_v32 = vsel %vm13186_vm2, %v7074_v21, %v7073_v44  ;;  %v7186_v36 = vsel %vm3460_vm15, %v7185_v40, %v5375_v62  ;;  %v7182_v35 = vsel %vm13187_vm3, %v7181_v5, %v7180_v23  ;;  %vm13191_vm15 = vmmov %vm13184_vm1  ;;  %v13194_v62 = vld [vmem:[#allocation61_spill] sm:$0xff]  ;;  %v7326_v23 = vld [vmem:[%s12549_s15 + $0x10] sm:$0xff] }
 0xeeb   :  { %v13189_v11 = vrot.slane %v13188_v29, 4  ;;  %v7187_v59 = vrot.slane %v5377_v49, 6  ;;  %7900 = vmatmul.mubr.msk.f32.vlgmr.msra.gmra.mrb[10].mxu1 %vm321_vm10, %v7075_v32  ;;  %v7184_v19 = vsel %vm13190_vm4, %v7183_v13, %v7182_v35  ;;  %v5254_v56 = vrot.slane %v13188_v29, 5  ;;  %v5348_v6 = vpop.permute.xlu0 %5347  ;;  %v7325_v44 = vld [vmem:[%s12549_s15 + $0x8] sm:$0xff]  ;;  %v7327_v27 = vld [vmem:[%s12549_s15 + $0x18] sm:$0xff] }
 0xeec   :  { %v5230_v3 = vadd.f32 %v5229_v0, %v5228_v55  ;;  %8079 = vmatpush3.bf16.msra.mxu1 %v8076_v37  ;;  %7918 = vmatprep.mubr.msk.f32.mxu1 %vm321_vm10, %v7184_v19  ;;  %v5221_v58 = vadd.f32 %v5220_v60, %v5219_v52  ;;  %v8084_v50 = vpack.c.bf16 %v7531_v8, %v7530_v28  ;;  %v7189_v38 = vrot.slane %v5378_v41, 5  ;;  %v7324_v60 = vld [vmem:[%s12549_s15] sm:$0xff] }
 0xeed   :  { %v5285_v47 = vadd.f32 %v13189_v11, %v12195_v4  ;;  %v7188_v48 = vsel %vm3463_vm13, %v7187_v59, %v7186_v36  ;;  %8081 = vmatprep.subr.bf16.mxu1 %v8080_v34  ;;  %v5286_v43 = vadd.f32 %v5254_v56, %v5212_v14  ;;  %v5256_v4 = vrot.slane %v13188_v29, 7  ;;  %vm13192_vm13 = vmmov %vm13186_vm2  ;;  %v7579_v11 = vld [vmem:[%s12547_s13] ss:$0 sm:$0xff]  ;;  %s8476_s13 = scalar_lea.vmem %s7418_s3, 256 }
 0xeee   :  { %v5255_v10 = vrot.slane %v13188_v29, 6  ;;  %v7190_v17 = vsel %vm3466_vm14, %v7189_v38, %v7188_v48  ;;  %v8096_v41 = vpack.c.bf16 %v7327_v27, %v7326_v23  ;;  %v7580_v59 = vld [vmem:[%s12548_s14] ss:$0 sm:$0xff]  ;;  %p8477_p0 = scmp.ne.s32.totalorder %s7418_s3, %s8476_s13  ;;  %p8482_p2 = scmp.lt.s32.totalorder %s8476_s13, %s8476_s13 }
 0xeef   :  { %v5379_v45 = vmul.f32 %v5344_v42, %v5285_v47  ;;  %v5380_v57 = vmul.f32 %v5346_v9, %v5286_v43  ;;  %v5288_v52 = vadd.f32 %v5256_v4, %v5230_v3  ;;  %v8088_v42 = vpack.c.bf16 %v7533_v2, %v7532_v39 }
 0xef0   :  { %8083 = vmatpush3.bf16.msra.mxu1 %v8080_v34  ;;  %v5287_v22 = vadd.f32 %v5255_v10, %v5221_v58  ;;  %v8092_v34 = vpack.c.bf16 %v7325_v44, %v7324_v60  ;;  %p8483_p3 = por %p8482_p2, %p8481_p1 }
 0xef1   :  { %v7191_v54 = vrot.slane %v5379_v45, 4  ;;  %8085 = vmatprep.subr.bf16.mxu1 %v8084_v50  ;;  %v5382_v1 = vmul.f32 %v5350_v7, %v5288_v52  ;;  %v7193_v18 = vrot.slane %v5380_v57, 3 }
 0xef2   :  { %v5381_v12 = vmul.f32 %v5348_v6, %v5287_v22  ;;  %8093 = vmatprep.subr.bf16.mxu0 %v8092_v34  ;;  %p8484_p4 = pnand %p8483_p3, %p8477_p0 }
 0xef3   :  { %v7192_v24 = vsel %vm3469_vm12, %v7191_v54, %v7190_v17  ;;  %v7197_v63 = vrot.slane %v5382_v1, 1  ;;  %8095 = vmatpush3.bf16.msra.mxu0 %v8092_v34 }
 0xef4   :  { %8087 = vmatpush3.bf16.msra.mxu1 %v8084_v50  ;;  %v7194_v55 = vsel %vm3472_vm11, %v7193_v18, %v7192_v24  ;;  %v7195_v61 = vrot.slane %v5381_v12, 2  ;;  %8097 = vmatprep.subr.bf16.mxu0 %v8096_v41 }
 0xef5   :  { %8089 = vmatprep.subr.bf16.mxu1 %v8088_v42 }
 0xef6   :  { %v7196_v30 = vsel %vm13191_vm15, %v7195_v61, %v7194_v55 }
 0xef7   :  { %v7198_v15 = vsel %vm13192_vm13, %v7197_v63, %v7196_v30  ;;  %8099 = vmatpush3.bf16.msra.mxu0 %v8096_v41 }
 0xef8   :  { %8091 = vmatpush3.bf16.msra.mxu1 %v8088_v42 }
 0xefb   :  { %7919 = vmatmul.mubr.msk.f32.vlgmr.msra.gmra.mrb[10].mxu1 %vm321_vm10, %v7198_v15  ;;  %vm7409_vm10 = vcmask 130048  }
 0xfce   :  { %v7920_v37 = vpop.f32.mrb[10].mxu1 }
 0xfcf   :  { %v7279_v21 = vadd.f32 %v7920_v37, %v13193_v31  ;;  %v7269_v25 = vpop.f32.mrb[11].mxu1 }
 0xfd0   :  { %v7278_v5 = vadd.f32 %v7269_v25, %v13194_v62 }
 0xfd1   :  { %v7285_v51 = vsel %vm91_vm0, %v7279_v21, 0.0 }
 0xfd2   :  { %7286 = vadd.xlane.f32.xlu1 %v7285_v51  ;;  %v7282_v53 = vsel %vm91_vm0, %v7278_v5, 0.0 }
 0xfd3   :  { %7283 = vadd.xlane.f32.xlu0 %v7282_v53 }
0x105f   :  { %v7287_v26 = vpop.xlane.xlu1 %7286 }
0x1060   :  { %v7289_v14 = vmul.f32 0.03125, %v7287_v26  ;;  %v7284_v33 = vpop.xlane.xlu0 %7283 }
0x1061   :  { %v7288_v16 = vmul.f32 0.03125, %v7284_v33 }
0x1062   :  { %v7291_v49 = vsub.f32 %v7279_v21, %v7289_v14 }
0x1063   :  { %v7290_v13 = vsub.f32 %v7278_v5, %v7288_v16 }
0x1064   :  { %v7293_v20 = vmul.f32 %v7291_v49, %v7291_v49 }
0x1065   :  { %v7292_v40 = vmul.f32 %v7290_v13, %v7290_v13 }
0x1066   :  { %v7297_v0 = vsel %vm91_vm0, %v7293_v20, 0.0 }
0x1067   :  { %v7294_v46 = vsel %vm91_vm0, %v7292_v40, 0.0 }
0x1068   :  { %7295 = vadd.xlane.f32.xlu0 %v7294_v46 }
0x106c   :  { %7298 = vadd.xlane.f32.xlu0 %v7297_v0 }
0x10f5   :  { %v7296_v9 = vpop.xlane.xlu0 %7295 }
0x10f6   :  { %v7300_v32 = vmul.f32 0.03125, %v7296_v9 }
0x10f8   :  { %v7302_v36 = vadd.f32 1e-05, %v7300_v32 }
0x10f9   :  { %v7299_v35 = vpop.xlane.xlu0 %7298 }
0x10fa   :  { %8470 = vrsqrt.f32 %v7302_v36  ;;  %v7301_v28 = vmul.f32 0.03125, %v7299_v35 }
0x10fc   :  { %v7303_v8 = vadd.f32 1e-05, %v7301_v28 }
0x10fe   :  { %8472 = vrsqrt.f32 %v7303_v8 }
0x1104   :  { %v8471_v29 = vpop.eup %8470 }
0x1105   :  { %v7306_v47 = vmul.f32 %v8471_v29, %v7290_v13 }
0x1107   :  { %v7314_v19 = vmul.f32 %v7579_v11, %v7306_v47 }
0x1108   :  { %v8473_v56 = vpop.eup %8472 }
0x1109   :  { %v7307_v3 = vmul.f32 %v8473_v56, %v7291_v49  ;;  %v7322_v45 = vadd.f32 %v7580_v59, %v7314_v19 }
0x110b   :  { %v7315_v58 = vmul.f32 %v7579_v11, %v7307_v3  ;;  %7929 = vmatprep.mubr.msk.f32.mxu0 %vm91_vm0, %v7322_v45 }
0x110d   :  { %v7323_v48 = vadd.f32 %v7580_v59, %v7315_v58 }
0x110f   :  { %7930 = vmatmul.mubr.msk.f32.vlgmr.msra.gmra.mrb[16].mxu0 %vm91_vm0, %v7323_v48 }
0x11e2   :  { %v7931_v50 = vpop.f32.mrb[16].mxu0 }
0x11e3   :  { %7411 = vst.msk [vmem:[#allocation3 + $0x8] sm:$0xff] %vm7409_vm10, %v7931_v50  ;;  %v7400_v38 = vpop.f32.mrb[17].mxu0 }
0x11e4   :  { %7410 = vst.msk [vmem:[#allocation3] sm:$0xff] %vm7409_vm10, %v7400_v38 }
0x11e5   :  { %8487 = shalt.err (!%p8484_p4)
}
0x11e6   :  { %s8488_s1 = scalar_lea.hbm %s12550_s16, 256 }
0x11e7   :  { %p8489_p5 = scmp.ne.s32.totalorder %s12550_s16, %s8488_s1  ;;  %p8492_p6 = scmp.lt.u32.totalorder %s8488_s1, %s12550_s16 }
0x11e9   :  { %p8494_p7 = pnand %p8492_p6, %p8489_p5 }
0x11eb   :  { %8497 = shalt.err (!%p8494_p7)
}
0x11ec   :  { %s8504_s22 = smov 128   ;;  %s8505_s25 = smov 8  }
0x11ed   :  { %7423 = dma.vmem_to_hbm [thread:$0]  %s7418_s3, 256, %s12550_s16, [#allocation4], %s8504_s22, %s8504_s22, %s8505_s25  }
0x11ee   :  { %8498 = dma.done.wait [#allocation4], 256  }
0x11ef   :  { %8499 = vsyncadd [#allocation4], 4294967040 }
0x11f0   :  { %7427 = vsyncpa [#allocation4], 1 }

</bundles_post_ra>
